<compile_context>
chip_gen: v7x
topology: tpu7x:2x2x1
jax: 0.10.0
libtpu: 0.0.40
codegen_flags: <defaults>
</compile_context>

<pallas_src>
import functools

import jax
import jax.numpy as jnp
from jax import lax
from jax.experimental import pallas as pl
from jax.experimental.pallas import tpu as pltpu

# ---------------- small DenseNet-BC configuration ----------------
GROWTH = 8                 # growth_rate (k)
BLOCK_CONFIG = (2, 2)      # layers per dense block
NUM_INIT_FEATURES = 16     # conv0 output channels
BN_SIZE = 2                # bottleneck multiplier
BN_EPS = 1e-5
MXU_DTYPE = jnp.bfloat16   # matmul operand dtype (accumulation is f32)


def _round_up(x, m):
    return (x + m - 1) // m * m


def _row_block(m, preferred=256):
    """Largest row block <= preferred that divides m (multiple of 8), else m."""
    for cand in (preferred, 128, 64, 32, 16, 8):
        if cand <= m and m % cand == 0:
            return cand
    return m


# ============================ Pallas kernels ============================

def _matmul_post_affine_kernel(a_ref, w_ref, s_ref, b_ref, o_ref, *, act):
    """o = relu?( (a @ w) * scale + bias )   -- conv0 + norm0 + relu0."""
    y = jnp.dot(a_ref[...], w_ref[...], preferred_element_type=jnp.float32)
    y = y * s_ref[...] + b_ref[...]
    if act:
        y = jnp.maximum(y, 0.0)
    o_ref[...] = y


def _dense_block_kernel(*refs, layers, H, W, pitch, lead, growth, cb,
                        epi_matmul):
    """Fused DenseNet block for one image; feature map resident in VMEM.

    Layout: padded-flat rows q = lead + p * pitch + t over the zero-padded
    (H+2) x pitch spatial grid.  pitch is a power-of-two row stride >= W+2
    (so tap-row offsets stay sublane aligned) and lead is chosen so the
    interior start lead + pitch + 1 is a multiple of 8.
    Output rows are indexed k = i*pitch + j (valid for j < W); the wrapper
    reshapes/slices the valid pixels out.
    """
    if epi_matmul:
        (x_ref, s1_ref, b1_ref, w1_ref, s2_ref, b2_ref, w2_ref,
         se_ref, be_ref, we_ref, o_ref, feat_ref, y2_ref, slab_ref) = refs
    else:
        (x_ref, s1_ref, b1_ref, w1_ref, s2_ref, b2_ref, w2_ref,
         se_ref, be_ref, o_ref, feat_ref, y2_ref, slab_ref) = refs
        we_ref = None

    R, cmax = feat_ref.shape
    c0 = x_ref.shape[1]
    rows_out = (H - 1) * pitch + W          # conv-output rows (pitch-strided)
    istart = lead + pitch + 1               # flat row of interior pixel (0, 0)

    # Scatter the compact [H*W, c0] input into the padded-flat buffer; every
    # other row / not-yet-produced channel starts at zero.
    feat_ref[...] = jnp.zeros((R, cmax), jnp.float32)
    for i in range(H):
        dst = lead + (i + 1) * pitch + 1                       # sublane aligned
        feat_ref[dst:dst + W, 0:c0] = x_ref[i * W:(i + 1) * W, :]

    # Interior mask, computed in-kernel (pitch is a power of two).
    q = lax.broadcasted_iota(jnp.int32, (R, 1), 0) - lead
    p = jnp.right_shift(q, pitch.bit_length() - 1)
    t = jnp.bitwise_and(q, pitch - 1)
    interior = (q >= 0) & (p >= 1) & (p <= H) & (t >= 1) & (t <= W)
    mask = jnp.where(interior, 1.0, 0.0)

    for l in range(layers):
        # norm1 + relu1 + conv1 (1x1 bottleneck).  Channels this layer has not
        # produced yet carry zero scale/bias and zero weight rows, so they
        # contribute exactly nothing to the GEMM.
        t1 = jnp.maximum(feat_ref[...] * s1_ref[l] + b1_ref[l], 0.0)
        y1 = jnp.dot(t1.astype(MXU_DTYPE), w1_ref[l],
                     preferred_element_type=jnp.float32)
        # norm2 + relu2, re-zeroed outside the interior so conv2 sees proper
        # zero padding.
        y2_ref[...] = jnp.maximum(y1 * s2_ref[l] + b2_ref[l], 0.0) * mask
        # conv2 (3x3 / pad 1): build a [rows_out, 9*cb] im2col slab in VMEM
        # with 9 shifted row-copies, then one K = 9*cb GEMM.
        for tap in range(9):
            off = lead + (tap // 3) * pitch + (tap % 3)
            slab_ref[:, tap * cb:(tap + 1) * cb] = (
                y2_ref[off:off + rows_out, :].astype(MXU_DTYPE))
        new = jnp.dot(slab_ref[...], w2_ref[l],
                      preferred_element_type=jnp.float32)
        # "concat": the new channels go straight into the resident buffer.
        col = c0 + l * growth
        feat_ref[istart:istart + rows_out, col:col + growth] = new

    # Epilogue on the fully-grown feature map (interior rows only).
    tfeat = feat_ref[istart:istart + rows_out, :]
    if epi_matmul:        # transition: norm + relu + 1x1 conv (pool outside)
        tt = jnp.maximum(tfeat * se_ref[...] + be_ref[...], 0.0)
        res = jnp.dot(tt.astype(MXU_DTYPE), we_ref[...],
                      preferred_element_type=jnp.float32)
    else:                 # norm5: affine only (the module's forward ends here)
        res = tfeat * se_ref[...] + be_ref[...]
    o_ref[0:rows_out, :] = res
    # rows >= rows_out of the output block are never read by the wrapper.


# ============================ Pallas wrappers ============================

def matmul_bn_relu(a, w, scale, bias, *, act):
    """relu?((a @ w) * scale + bias).  a: [M,K] bf16, w: [K,N] bf16."""
    M, K = a.shape
    _, N = w.shape
    br = _row_block(M)
    return pl.pallas_call(
        functools.partial(_matmul_post_affine_kernel, act=act),
        out_shape=jax.ShapeDtypeStruct((M, N), jnp.float32),
        grid=(M // br,),
        in_specs=[
            pl.BlockSpec((br, K), lambda i: (i, 0)),
            pl.BlockSpec((K, N), lambda i: (0, 0)),
            pl.BlockSpec((1, N), lambda i: (0, 0)),
            pl.BlockSpec((1, N), lambda i: (0, 0)),
        ],
        out_specs=pl.BlockSpec((br, N), lambda i: (i, 0)),
        compiler_params=pltpu.CompilerParams(dimension_semantics=("parallel",)),
    )(a, w, scale, bias)


def dense_block(x, bp):
    """One fused dense block (+ transition conv or norm5 epilogue).

    x: [N, H, W, C0] f32.  Returns [N, H, W, C_out] f32 (pre-pool for the
    transition case).
    """
    N, H, W, c0 = x.shape
    pitch = max(8, pl.next_power_of_2(W + 2))
    assert pitch & (pitch - 1) == 0 and pitch >= W + 2
    lead = (-(pitch + 1)) % 8           # align interior start to sublanes
    R = _round_up(lead + (H + 2) * pitch, 8)
    rows_out = (H - 1) * pitch + W

    L = bp["W1"].shape[0]
    cmax = bp["S1"].shape[-1]
    cb = bp["W1"].shape[-1]
    g = bp["W2"].shape[-1]
    epi_matmul = "WE" in bp
    c_out = bp["WE"].shape[-1] if epi_matmul else cmax
    out_rows = H * pitch

    args = [x.reshape(N * H * W, c0), bp["S1"], bp["B1"], bp["W1"],
            bp["S2"], bp["B2"], bp["W2"], bp["SE"], bp["BE"]]
    in_specs = [
        pl.BlockSpec((H * W, c0), lambda n: (n, 0)),
        pl.BlockSpec(bp["S1"].shape, lambda n: (0, 0, 0)),
        pl.BlockSpec(bp["B1"].shape, lambda n: (0, 0, 0)),
        pl.BlockSpec(bp["W1"].shape, lambda n: (0, 0, 0)),
        pl.BlockSpec(bp["S2"].shape, lambda n: (0, 0, 0)),
        pl.BlockSpec(bp["B2"].shape, lambda n: (0, 0, 0)),
        pl.BlockSpec(bp["W2"].shape, lambda n: (0, 0, 0)),
        pl.BlockSpec(bp["SE"].shape, lambda n: (0, 0)),
        pl.BlockSpec(bp["BE"].shape, lambda n: (0, 0)),
    ]
    if epi_matmul:
        args.append(bp["WE"])
        in_specs.append(pl.BlockSpec(bp["WE"].shape, lambda n: (0, 0)))

    out = pl.pallas_call(
        functools.partial(_dense_block_kernel, layers=L, H=H, W=W, pitch=pitch,
                          lead=lead, growth=g, cb=cb, epi_matmul=epi_matmul),
        out_shape=jax.ShapeDtypeStruct((N * out_rows, c_out), jnp.float32),
        grid=(N,),
        in_specs=in_specs,
        out_specs=pl.BlockSpec((out_rows, c_out), lambda n: (n, 0)),
        scratch_shapes=[
            pltpu.VMEM((R, cmax), jnp.float32),        # resident feature map
            pltpu.VMEM((R, cb), jnp.float32),          # bottleneck activation
            pltpu.VMEM((rows_out, 9 * cb), MXU_DTYPE),  # im2col slab (bf16)
        ],
        compiler_params=pltpu.CompilerParams(dimension_semantics=("parallel",)),
    )(*args)

    # rows are indexed i*pitch + j; keep the valid j < W columns only
    out = out.reshape(N, H, pitch, c_out)[:, :, :W, :]
    return out


# ============================ JAX glue ============================

def _extract_patches_concat(x, kh, kw, stride, pad):
    """im2col for conv0 only: NHWC -> ([N,Ho,Wo,kh*kw*C], Ho, Wo)."""
    N, H, W, C = x.shape
    xp = jnp.pad(x, ((0, 0), (pad, pad), (pad, pad), (0, 0)))
    Ho = (H + 2 * pad - kh) // stride + 1
    Wo = (W + 2 * pad - kw) // stride + 1
    cols = []
    for dh in range(kh):
        for dw in range(kw):
            cols.append(xp[:, dh:dh + stride * Ho:stride,
                           dw:dw + stride * Wo:stride, :])
    return jnp.concatenate(cols, axis=-1), Ho, Wo


def _fold_bn(p):
    scale = p["gamma"] / jnp.sqrt(p["var"] + BN_EPS)
    bias = p["beta"] - p["mean"] * scale
    return (scale.reshape(1, -1).astype(jnp.float32),
            bias.reshape(1, -1).astype(jnp.float32))


def prepare_params(params):
    """One-time prep: fold BN stats, stack per-block layer params (zero-padded
    to the block's final channel count), bf16-cast conv weights."""
    fp = {}
    fp["conv0_w"] = params["conv0"].reshape(-1, params["conv0"].shape[-1]) \
                                   .astype(MXU_DTYPE)          # [49*3, F]
    fp["norm0_s"], fp["norm0_b"] = _fold_bn(params["norm0"])

    fp["blocks"] = []
    n_blocks = len(params["blocks"])
    for bi, layers in enumerate(params["blocks"]):
        L = len(layers)
        g = layers[0]["conv2"].shape[-1]
        c_in0 = layers[0]["conv1"].shape[0]
        cmax = c_in0 + L * g
        S1, B1, W1, S2, B2, W2 = [], [], [], [], [], []
        for lp in layers:
            c_l = lp["conv1"].shape[0]
            pad = cmax - c_l
            s1, b1 = _fold_bn(lp["norm1"])
            S1.append(jnp.pad(s1, ((0, 0), (0, pad))))
            B1.append(jnp.pad(b1, ((0, 0), (0, pad))))
            W1.append(jnp.pad(lp["conv1"], ((0, pad), (0, 0))).astype(MXU_DTYPE))
            s2, b2 = _fold_bn(lp["norm2"])
            S2.append(s2)
            B2.append(b2)
            W2.append(lp["conv2"].reshape(-1, g).astype(MXU_DTYPE))
        bp = {"S1": jnp.stack(S1), "B1": jnp.stack(B1), "W1": jnp.stack(W1),
              "S2": jnp.stack(S2), "B2": jnp.stack(B2), "W2": jnp.stack(W2)}
        if bi != n_blocks - 1:               # transition epilogue
            tp = params["transitions"][bi]
            bp["SE"], bp["BE"] = _fold_bn(tp["norm"])
            bp["WE"] = tp["conv"].astype(MXU_DTYPE)
        else:                                 # norm5 epilogue (no ReLU)
            bp["SE"], bp["BE"] = _fold_bn(params["norm5"])
        fp["blocks"].append(bp)
    return fp


# ============================ DenseNet forward ============================

def _forward(x_nchw, fp):
    x = jnp.transpose(x_nchw, (0, 2, 3, 1)).astype(jnp.float32)  # NCHW -> NHWC
    N = x.shape[0]

    # conv0 (7x7 / s2 / p3) as a bf16 im2col GEMM fused with norm0 + relu0
    patches, Ho, Wo = _extract_patches_concat(x, 7, 7, 2, 3)
    K = patches.shape[-1]
    y = matmul_bn_relu(patches.reshape(N * Ho * Wo, K).astype(MXU_DTYPE),
                       fp["conv0_w"], fp["norm0_s"], fp["norm0_b"], act=True)
    y = y.reshape(N, Ho, Wo, -1)

    # pool0: tiny 3x3/s2 max pool left to XLA (a dedicated pallas_call here
    # is pure launch overhead per the perf review).
    y = lax.reduce_window(y, -jnp.inf, lax.max, (1, 3, 3, 1), (1, 2, 2, 1),
                          ((0, 0), (1, 1), (1, 1), (0, 0)))

    # fused dense blocks (transition conv / norm5 fused as epilogues)
    nb = len(fp["blocks"])
    for bi, bp in enumerate(fp["blocks"]):
        y = dense_block(y, bp)
        if bi != nb - 1:
            # transition's tiny 2x2/s2 average pool in XLA
            y = lax.reduce_window(y, 0.0, lax.add, (1, 2, 2, 1), (1, 2, 2, 1),
                                  ((0, 0), (0, 0), (0, 0), (0, 0))) * 0.25

    # norm5 already applied in the last block's epilogue (forward returns
    # self.features(x) only)
    return jnp.transpose(y, (0, 3, 1, 2))                        # back to NCHW


densenet_forward = jax.jit(_forward)


# ============================ parameters ============================

def _init_bn(key, c):
    k1, k2, k3, k4 = jax.random.split(key, 4)
    return {
        "gamma": jax.random.uniform(k1, (c,), jnp.float32, 0.5, 1.5),
        "beta": 0.1 * jax.random.normal(k2, (c,), jnp.float32),
        "mean": 0.1 * jax.random.normal(k3, (c,), jnp.float32),
        "var": jax.random.uniform(k4, (c,), jnp.float32, 0.5, 1.5),
    }


def init_params(key):
    params = {}
    key, k = jax.random.split(key)
    params["conv0"] = 0.05 * jax.random.normal(
        k, (7, 7, 3, NUM_INIT_FEATURES), jnp.float32)            # HWIO
    key, k = jax.random.split(key)
    params["norm0"] = _init_bn(k, NUM_INIT_FEATURES)

    blocks, transitions = [], []
    c = NUM_INIT_FEATURES
    for bi, nl in enumerate(BLOCK_CONFIG):
        layers = []
        for _ in range(nl):
            cb = BN_SIZE * GROWTH
            key, k1, k2, k3, k4 = jax.random.split(key, 5)
            layers.append({
                "norm1": _init_bn(k1, c),
                "conv1": 0.1 * jax.random.normal(k2, (c, cb), jnp.float32),
                "norm2": _init_bn(k3, cb),
                "conv2": 0.1 * jax.random.normal(k4, (3, 3, cb, GROWTH),
                                                 jnp.float32),
            })
            c += GROWTH
        blocks.append(layers)
        if bi != len(BLOCK_CONFIG) - 1:
            key, k1, k2 = jax.random.split(key, 3)
            transitions.append({
                "norm": _init_bn(k1, c),
                "conv": 0.1 * jax.random.normal(k2, (c, c // 2), jnp.float32),
            })
            c //= 2
    key, k = jax.random.split(key)
    params["norm5"] = _init_bn(k, c)
    params["blocks"] = blocks
    params["transitions"] = transitions
    return params


# ============================ pure-JAX reference ============================
# The reference mirrors the kernel's mixed-precision policy (bf16 conv/matmul
# operands, f32 accumulation, f32 elementwise) so the check isolates
# implementation correctness.

def _conv_ref(x, w, stride, pad):
    return lax.conv_general_dilated(
        x.astype(MXU_DTYPE), w.astype(MXU_DTYPE), (stride, stride),
        ((pad, pad), (pad, pad)),
        dimension_numbers=("NHWC", "HWIO", "NHWC"),
        preferred_element_type=jnp.float32)


def _bn_ref(x, p, act):
    s, b = _fold_bn(p)
    y = x * s + b
    return jnp.maximum(y, 0.0) if act else y


def _reference(x_nchw, params):
    y = jnp.transpose(x_nchw, (0, 2, 3, 1)).astype(jnp.float32)
    y = _conv_ref(y, params["conv0"], 2, 3)
    y = _bn_ref(y, params["norm0"], True)
    y = lax.reduce_window(y, -jnp.inf, lax.max, (1, 3, 3, 1), (1, 2, 2, 1),
                          ((0, 0), (1, 1), (1, 1), (0, 0)))
    for bi, nl in enumerate(BLOCK_CONFIG):
        for li in range(nl):
            lp = params["blocks"][bi][li]
            t = _bn_ref(y, lp["norm1"], True)
            t = _conv_ref(t, lp["conv1"].reshape(1, 1, *lp["conv1"].shape), 1, 0)
            t = _bn_ref(t, lp["norm2"], True)
            t = _conv_ref(t, lp["conv2"], 1, 1)
            y = jnp.concatenate([y, t], axis=-1)
        if bi != len(BLOCK_CONFIG) - 1:
            tp = params["transitions"][bi]
            t = _bn_ref(y, tp["norm"], True)
            t = _conv_ref(t, tp["conv"].reshape(1, 1, *tp["conv"].shape), 1, 0)
            y = lax.reduce_window(t, 0.0, lax.add, (1, 2, 2, 1), (1, 2, 2, 1),
                                  ((0, 0), (0, 0), (0, 0), (0, 0))) / 4.0
    y = _bn_ref(y, params["norm5"], False)
    return jnp.transpose(y, (0, 3, 1, 2))


densenet_reference = jax.jit(_reference)


# ============================ main ============================

if __name__ == "__main__":
    key = jax.random.PRNGKey(0)
    pkey, xkey = jax.random.split(key)
    raw_params = init_params(pkey)
    params = prepare_params(raw_params)

    # NCHW input, as PyTorch expects: batch=2, 3 channels, 32x32 image.
    x = jax.random.normal(xkey, (2, 3, 32, 32), jnp.float32)

    out = jax.block_until_ready(densenet_forward(x, params))
    ref = jax.block_until_ready(densenet_reference(x, raw_params))

    assert out.shape == ref.shape == (2, 32, 4, 4), (out.shape, ref.shape)
    err = float(jnp.max(jnp.abs(out - ref)))
    assert err < 5e-2, f"Pallas vs reference mismatch: max abs err {err}"
    print("KERNEL_OK")
</pallas_src>

<mosaic_0001>
module attributes {stable_mosaic.version = 11 : i64} {
  func.func @_matmul_post_affine_kernel(%arg0: i32, %arg1: memref<256x147xbf16, #tpu.memory_space<vmem>>, %arg2: memref<147x16xbf16, #tpu.memory_space<vmem>>, %arg3: memref<1x16xf32, #tpu.memory_space<vmem>>, %arg4: memref<1x16xf32, #tpu.memory_space<vmem>>, %arg5: memref<256x16xf32, #tpu.memory_space<vmem>>) attributes {dimension_semantics = [#tpu.dimension_semantics<parallel>], iteration_bounds = array<i64: 2>, scalar_prefetch = 0 : i64, scratch_operands = 0 : i64, tpu.core_type = #tpu.core_type<tc>, window_params = [{transform_indices = @transform_0, window_bounds = array<i64: 256, 147>}, {pipeline_mode = #tpu.pipeline_mode<synchronous>, transform_indices = @transform_1, window_bounds = array<i64: 147, 16>}, {pipeline_mode = #tpu.pipeline_mode<synchronous>, transform_indices = @transform_2, window_bounds = array<i64: 1, 16>}, {pipeline_mode = #tpu.pipeline_mode<synchronous>, transform_indices = @transform_3, window_bounds = array<i64: 1, 16>}, {transform_indices = @transform_4, window_bounds = array<i64: 256, 16>}]} {
    %c0 = arith.constant 0 : index
    %c0_0 = arith.constant 0 : index
    %0 = vector.load %arg1[%c0, %c0_0] : memref<256x147xbf16, #tpu.memory_space<vmem>>, vector<256x147xbf16>
    %c0_1 = arith.constant 0 : index
    %c0_2 = arith.constant 0 : index
    %1 = vector.load %arg2[%c0_1, %c0_2] : memref<147x16xbf16, #tpu.memory_space<vmem>>, vector<147x16xbf16>
    %cst = arith.constant dense<0.000000e+00> : vector<256x16xf32>
    %2 = tpu.matmul %0, %1, %cst {dimension_numbers = #tpu.dot_dimension_numbers<[1], [0], [0], [1], [0, 0, 1, 1], [], []>} : vector<256x147xbf16>, vector<147x16xbf16>, vector<256x16xf32> -> vector<256x16xf32>
    %c0_3 = arith.constant 0 : index
    %c0_4 = arith.constant 0 : index
    %3 = vector.load %arg3[%c0_3, %c0_4] : memref<1x16xf32, #tpu.memory_space<vmem>>, vector<1x16xf32>
    %4 = vector.broadcast %3 : vector<1x16xf32> to vector<256x16xf32>
    %5 = arith.mulf %2, %4 : vector<256x16xf32>
    %c0_5 = arith.constant 0 : index
    %c0_6 = arith.constant 0 : index
    %6 = vector.load %arg4[%c0_5, %c0_6] : memref<1x16xf32, #tpu.memory_space<vmem>>, vector<1x16xf32>
    %7 = vector.broadcast %6 : vector<1x16xf32> to vector<256x16xf32>
    %8 = arith.addf %5, %7 : vector<256x16xf32>
    %cst_7 = arith.constant 0.000000e+00 : f32
    %9 = vector.broadcast %cst_7 : f32 to vector<256x16xf32>
    %10 = arith.maximumf %8, %9 : vector<256x16xf32>
    %c0_8 = arith.constant 0 : index
    %c0_9 = arith.constant 0 : index
    %11 = vector.load %arg5[%c0_8, %c0_9] : memref<256x16xf32, #tpu.memory_space<vmem>>, vector<256x16xf32>
    tpu.vector_store %arg5[%c0_8, %c0_9], %10 {strides = array<i32>} : memref<256x16xf32, #tpu.memory_space<vmem>>, vector<256x16xf32>,
    return
  }
  func.func @transform_0(%arg0: i32) -> (i32, i32) {
    %c0_i32 = arith.constant 0 : i32
    %c0_i32_0 = arith.constant 0 : i32
    return %arg0, %c0_i32 : i32, i32
  }
  func.func @transform_1(%arg0: i32) -> (i32, i32) {
    %c0_i32 = arith.constant 0 : i32
    %c0_i32_0 = arith.constant 0 : i32
    %c0_i32_1 = arith.constant 0 : i32
    return %c0_i32, %c0_i32_0 : i32, i32
  }
  func.func @transform_2(%arg0: i32) -> (i32, i32) {
    %c0_i32 = arith.constant 0 : i32
    %c0_i32_0 = arith.constant 0 : i32
    %c0_i32_1 = arith.constant 0 : i32
    return %c0_i32, %c0_i32_0 : i32, i32
  }
  func.func @transform_3(%arg0: i32) -> (i32, i32) {
    %c0_i32 = arith.constant 0 : i32
    %c0_i32_0 = arith.constant 0 : i32
    %c0_i32_1 = arith.constant 0 : i32
    return %c0_i32, %c0_i32_0 : i32, i32
  }
  func.func @transform_4(%arg0: i32) -> (i32, i32) {
    %c0_i32 = arith.constant 0 : i32
    %c0_i32_0 = arith.constant 0 : i32
    return %arg0, %c0_i32 : i32, i32
  }
}

module attributes {stable_mosaic.version = 11 : i64} {
  func.func @_dense_block_kernel(%arg0: i32, %arg1: memref<64x16xf32, #tpu.memory_space<vmem>>, %arg2: memref<2x1x32xf32, #tpu.memory_space<vmem>>, %arg3: memref<2x1x32xf32, #tpu.memory_space<vmem>>, %arg4: memref<2x32x16xbf16, #tpu.memory_space<vmem>>, %arg5: memref<2x1x16xf32, #tpu.memory_space<vmem>>, %arg6: memref<2x1x16xf32, #tpu.memory_space<vmem>>, %arg7: memref<2x144x8xbf16, #tpu.memory_space<vmem>>, %arg8: memref<1x32xf32, #tpu.memory_space<vmem>>, %arg9: memref<1x32xf32, #tpu.memory_space<vmem>>, %arg10: memref<32x16xbf16, #tpu.memory_space<vmem>>, %arg11: memref<128x16xf32, #tpu.memory_space<vmem>>, %arg12: memref<168x32xf32, #tpu.memory_space<vmem>>, %arg13: memref<168x16xf32, #tpu.memory_space<vmem>>, %arg14: memref<120x144xbf16, #tpu.memory_space<vmem>>) attributes {dimension_semantics = [#tpu.dimension_semantics<parallel>], iteration_bounds = array<i64: 2>, scalar_prefetch = 0 : i64, scratch_operands = 3 : i64, tpu.core_type = #tpu.core_type<tc>, window_params = [{transform_indices = @transform_0, window_bounds = array<i64: 64, 16>}, {pipeline_mode = #tpu.pipeline_mode<synchronous>, transform_indices = @transform_1, window_bounds = array<i64: 2, 1, 32>}, {pipeline_mode = #tpu.pipeline_mode<synchronous>, transform_indices = @transform_2, window_bounds = array<i64: 2, 1, 32>}, {pipeline_mode = #tpu.pipeline_mode<synchronous>, transform_indices = @transform_3, window_bounds = array<i64: 2, 32, 16>}, {pipeline_mode = #tpu.pipeline_mode<synchronous>, transform_indices = @transform_4, window_bounds = array<i64: 2, 1, 16>}, {pipeline_mode = #tpu.pipeline_mode<synchronous>, transform_indices = @transform_5, window_bounds = array<i64: 2, 1, 16>}, {pipeline_mode = #tpu.pipeline_mode<synchronous>, transform_indices = @transform_6, window_bounds = array<i64: 2, 144, 8>}, {pipeline_mode = #tpu.pipeline_mode<synchronous>, transform_indices = @transform_7, window_bounds = array<i64: 1, 32>}, {pipeline_mode = #tpu.pipeline_mode<synchronous>, transform_indices = @transform_8, window_bounds = array<i64: 1, 32>}, {pipeline_mode = #tpu.pipeline_mode<synchronous>, transform_indices = @transform_9, window_bounds = array<i64: 32, 16>}, {transform_indices = @transform_10, window_bounds = array<i64: 128, 16>}]} {
    %cst = arith.constant 0.000000e+00 : f32
    %0 = vector.broadcast %cst : f32 to vector<168x32xf32>
    %c0 = arith.constant 0 : index
    %c0_0 = arith.constant 0 : index
    %1 = vector.load %arg12[%c0, %c0_0] : memref<168x32xf32, #tpu.memory_space<vmem>>, vector<168x32xf32>
    tpu.vector_store %arg12[%c0, %c0_0], %0 {strides = array<i32>} : memref<168x32xf32, #tpu.memory_space<vmem>>, vector<168x32xf32>,
    %c0_1 = arith.constant 0 : index
    %c0_2 = arith.constant 0 : index
    %2 = vector.load %arg1[%c0_1, %c0_2] : memref<64x16xf32, #tpu.memory_space<vmem>>, vector<8x16xf32>
    %c24 = arith.constant 24 : index
    %c0_3 = arith.constant 0 : index
    %3 = vector.load %arg12[%c24, %c0_3] : memref<168x32xf32, #tpu.memory_space<vmem>>, vector<8x16xf32>
    tpu.vector_store %arg12[%c24, %c0_3], %2 {strides = array<i32>} : memref<168x32xf32, #tpu.memory_space<vmem>>, vector<8x16xf32>,
    %c8 = arith.constant 8 : index
    %c0_4 = arith.constant 0 : index
    %4 = vector.load %arg1[%c8, %c0_4] : memref<64x16xf32, #tpu.memory_space<vmem>>, vector<8x16xf32>
    %c40 = arith.constant 40 : index
    %c0_5 = arith.constant 0 : index
    %5 = vector.load %arg12[%c40, %c0_5] : memref<168x32xf32, #tpu.memory_space<vmem>>, vector<8x16xf32>
    tpu.vector_store %arg12[%c40, %c0_5], %4 {strides = array<i32>} : memref<168x32xf32, #tpu.memory_space<vmem>>, vector<8x16xf32>,
    %c16 = arith.constant 16 : index
    %c0_6 = arith.constant 0 : index
    %6 = vector.load %arg1[%c16, %c0_6] : memref<64x16xf32, #tpu.memory_space<vmem>>, vector<8x16xf32>
    %c56 = arith.constant 56 : index
    %c0_7 = arith.constant 0 : index
    %7 = vector.load %arg12[%c56, %c0_7] : memref<168x32xf32, #tpu.memory_space<vmem>>, vector<8x16xf32>
    tpu.vector_store %arg12[%c56, %c0_7], %6 {strides = array<i32>} : memref<168x32xf32, #tpu.memory_space<vmem>>, vector<8x16xf32>,
    %c24_8 = arith.constant 24 : index
    %c0_9 = arith.constant 0 : index
    %8 = vector.load %arg1[%c24_8, %c0_9] : memref<64x16xf32, #tpu.memory_space<vmem>>, vector<8x16xf32>
    %c72 = arith.constant 72 : index
    %c0_10 = arith.constant 0 : index
    %9 = vector.load %arg12[%c72, %c0_10] : memref<168x32xf32, #tpu.memory_space<vmem>>, vector<8x16xf32>
    tpu.vector_store %arg12[%c72, %c0_10], %8 {strides = array<i32>} : memref<168x32xf32, #tpu.memory_space<vmem>>, vector<8x16xf32>,
    %c32 = arith.constant 32 : index
    %c0_11 = arith.constant 0 : index
    %10 = vector.load %arg1[%c32, %c0_11] : memref<64x16xf32, #tpu.memory_space<vmem>>, vector<8x16xf32>
    %c88 = arith.constant 88 : index
    %c0_12 = arith.constant 0 : index
    %11 = vector.load %arg12[%c88, %c0_12] : memref<168x32xf32, #tpu.memory_space<vmem>>, vector<8x16xf32>
    tpu.vector_store %arg12[%c88, %c0_12], %10 {strides = array<i32>} : memref<168x32xf32, #tpu.memory_space<vmem>>, vector<8x16xf32>,
    %c40_13 = arith.constant 40 : index
    %c0_14 = arith.constant 0 : index
    %12 = vector.load %arg1[%c40_13, %c0_14] : memref<64x16xf32, #tpu.memory_space<vmem>>, vector<8x16xf32>
    %c104 = arith.constant 104 : index
    %c0_15 = arith.constant 0 : index
    %13 = vector.load %arg12[%c104, %c0_15] : memref<168x32xf32, #tpu.memory_space<vmem>>, vector<8x16xf32>
    tpu.vector_store %arg12[%c104, %c0_15], %12 {strides = array<i32>} : memref<168x32xf32, #tpu.memory_space<vmem>>, vector<8x16xf32>,
    %c48 = arith.constant 48 : index
    %c0_16 = arith.constant 0 : index
    %14 = vector.load %arg1[%c48, %c0_16] : memref<64x16xf32, #tpu.memory_space<vmem>>, vector<8x16xf32>
    %c120 = arith.constant 120 : index
    %c0_17 = arith.constant 0 : index
    %15 = vector.load %arg12[%c120, %c0_17] : memref<168x32xf32, #tpu.memory_space<vmem>>, vector<8x16xf32>
    tpu.vector_store %arg12[%c120, %c0_17], %14 {strides = array<i32>} : memref<168x32xf32, #tpu.memory_space<vmem>>, vector<8x16xf32>,
    %c56_18 = arith.constant 56 : index
    %c0_19 = arith.constant 0 : index
    %16 = vector.load %arg1[%c56_18, %c0_19] : memref<64x16xf32, #tpu.memory_space<vmem>>, vector<8x16xf32>
    %c136 = arith.constant 136 : index
    %c0_20 = arith.constant 0 : index
    %17 = vector.load %arg12[%c136, %c0_20] : memref<168x32xf32, #tpu.memory_space<vmem>>, vector<8x16xf32>
    tpu.vector_store %arg12[%c136, %c0_20], %16 {strides = array<i32>} : memref<168x32xf32, #tpu.memory_space<vmem>>, vector<8x16xf32>,
    %18 = tpu.iota {dimensions = array<i32: 0>} : vector<168x1xi32>
    %c7_i32 = arith.constant 7 : i32
    %19 = vector.broadcast %c7_i32 : i32 to vector<168x1xi32>
    %20 = arith.subi %18, %19 : vector<168x1xi32>
    %c4_i32 = arith.constant 4 : i32
    %21 = vector.broadcast %c4_i32 : i32 to vector<168x1xi32>
    %22 = arith.shrsi %20, %21 : vector<168x1xi32>
    %c15_i32 = arith.constant 15 : i32
    %23 = vector.broadcast %c15_i32 : i32 to vector<168x1xi32>
    %24 = arith.andi %20, %23 : vector<168x1xi32>
    %c0_i32 = arith.constant 0 : i32
    %25 = vector.broadcast %c0_i32 : i32 to vector<168x1xi32>
    %26 = arith.cmpi sge, %20, %25 : vector<168x1xi32>
    %c1_i32 = arith.constant 1 : i32
    %27 = vector.broadcast %c1_i32 : i32 to vector<168x1xi32>
    %28 = arith.cmpi sge, %22, %27 : vector<168x1xi32>
    %29 = arith.andi %26, %28 : vector<168x1xi1>
    %c8_i32 = arith.constant 8 : i32
    %30 = vector.broadcast %c8_i32 : i32 to vector<168x1xi32>
    %31 = arith.cmpi sle, %22, %30 : vector<168x1xi32>
    %32 = arith.andi %29, %31 : vector<168x1xi1>
    %c1_i32_21 = arith.constant 1 : i32
    %33 = vector.broadcast %c1_i32_21 : i32 to vector<168x1xi32>
    %34 = arith.cmpi sge, %24, %33 : vector<168x1xi32>
    %35 = arith.andi %32, %34 : vector<168x1xi1>
    %c8_i32_22 = arith.constant 8 : i32
    %36 = vector.broadcast %c8_i32_22 : i32 to vector<168x1xi32>
    %37 = arith.cmpi sle, %24, %36 : vector<168x1xi32>
    %38 = arith.andi %35, %37 : vector<168x1xi1>
    %cst_23 = arith.constant 1.000000e+00 : f32
    %cst_24 = arith.constant 0.000000e+00 : f32
    %39 = vector.broadcast %cst_23 : f32 to vector<168x1xf32>
    %40 = vector.broadcast %cst_24 : f32 to vector<168x1xf32>
    %41 = arith.select %38, %39, %40 : vector<168x1xi1>, vector<168x1xf32>
    %c0_25 = arith.constant 0 : index
    %c0_26 = arith.constant 0 : index
    %42 = vector.load %arg12[%c0_25, %c0_26] : memref<168x32xf32, #tpu.memory_space<vmem>>, vector<168x32xf32>
    %c0_27 = arith.constant 0 : index
    %c0_28 = arith.constant 0 : index
    %c0_29 = arith.constant 0 : index
    %43 = vector.load %arg2[%c0_27, %c0_28, %c0_29] : memref<2x1x32xf32, #tpu.memory_space<vmem>>, vector<1x1x32xf32>
    %44 = vector.shape_cast %43 : vector<1x1x32xf32> to vector<1x32xf32>
    %45 = vector.broadcast %44 : vector<1x32xf32> to vector<168x32xf32>
    %46 = arith.mulf %42, %45 : vector<168x32xf32>
    %c0_30 = arith.constant 0 : index
    %c0_31 = arith.constant 0 : index
    %c0_32 = arith.constant 0 : index
    %47 = vector.load %arg3[%c0_30, %c0_31, %c0_32] : memref<2x1x32xf32, #tpu.memory_space<vmem>>, vector<1x1x32xf32>
    %48 = vector.shape_cast %47 : vector<1x1x32xf32> to vector<1x32xf32>
    %49 = vector.broadcast %48 : vector<1x32xf32> to vector<168x32xf32>
    %50 = arith.addf %46, %49 : vector<168x32xf32>
    %cst_33 = arith.constant 0.000000e+00 : f32
    %51 = vector.broadcast %cst_33 : f32 to vector<168x32xf32>
    %52 = arith.maximumf %50, %51 : vector<168x32xf32>
    %53 = arith.truncf %52 : vector<168x32xf32> to vector<168x32xbf16>
    %c0_34 = arith.constant 0 : index
    %c0_35 = arith.constant 0 : index
    %c0_36 = arith.constant 0 : index
    %54 = vector.load %arg4[%c0_34, %c0_35, %c0_36] : memref<2x32x16xbf16, #tpu.memory_space<vmem>>, vector<1x32x16xbf16>
    %55 = vector.shape_cast %54 : vector<1x32x16xbf16> to vector<32x16xbf16>
    %cst_37 = arith.constant dense<0.000000e+00> : vector<168x16xf32>
    %56 = tpu.matmul %53, %55, %cst_37 {dimension_numbers = #tpu.dot_dimension_numbers<[1], [0], [0], [1], [0, 0, 1, 1], [], []>} : vector<168x32xbf16>, vector<32x16xbf16>, vector<168x16xf32> -> vector<168x16xf32>
    %c0_38 = arith.constant 0 : index
    %c0_39 = arith.constant 0 : index
    %c0_40 = arith.constant 0 : index
    %57 = vector.load %arg5[%c0_38, %c0_39, %c0_40] : memref<2x1x16xf32, #tpu.memory_space<vmem>>, vector<1x1x16xf32>
    %58 = vector.shape_cast %57 : vector<1x1x16xf32> to vector<1x16xf32>
    %59 = vector.broadcast %58 : vector<1x16xf32> to vector<168x16xf32>
    %60 = arith.mulf %56, %59 : vector<168x16xf32>
    %c0_41 = arith.constant 0 : index
    %c0_42 = arith.constant 0 : index
    %c0_43 = arith.constant 0 : index
    %61 = vector.load %arg6[%c0_41, %c0_42, %c0_43] : memref<2x1x16xf32, #tpu.memory_space<vmem>>, vector<1x1x16xf32>
    %62 = vector.shape_cast %61 : vector<1x1x16xf32> to vector<1x16xf32>
    %63 = vector.broadcast %62 : vector<1x16xf32> to vector<168x16xf32>
    %64 = arith.addf %60, %63 : vector<168x16xf32>
    %cst_44 = arith.constant 0.000000e+00 : f32
    %65 = vector.broadcast %cst_44 : f32 to vector<168x16xf32>
    %66 = arith.maximumf %64, %65 : vector<168x16xf32>
    %67 = vector.broadcast %41 : vector<168x1xf32> to vector<168x16xf32>
    %68 = arith.mulf %66, %67 : vector<168x16xf32>
    %c0_45 = arith.constant 0 : index
    %c0_46 = arith.constant 0 : index
    %69 = vector.load %arg13[%c0_45, %c0_46] : memref<168x16xf32, #tpu.memory_space<vmem>>, vector<168x16xf32>
    tpu.vector_store %arg13[%c0_45, %c0_46], %68 {strides = array<i32>} : memref<168x16xf32, #tpu.memory_space<vmem>>, vector<168x16xf32>,
    %c7 = arith.constant 7 : index
    %c0_47 = arith.constant 0 : index
    %70 = vector.load %arg13[%c7, %c0_47] : memref<168x16xf32, #tpu.memory_space<vmem>>, vector<120x16xf32>
    %71 = arith.truncf %70 : vector<120x16xf32> to vector<120x16xbf16>
    %c0_48 = arith.constant 0 : index
    %c0_49 = arith.constant 0 : index
    %72 = vector.load %arg14[%c0_48, %c0_49] : memref<120x144xbf16, #tpu.memory_space<vmem>>, vector<120x16xbf16>
    tpu.vector_store %arg14[%c0_48, %c0_49], %71 {strides = array<i32>} : memref<120x144xbf16, #tpu.memory_space<vmem>>, vector<120x16xbf16>,
    %c8_50 = arith.constant 8 : index
    %c0_51 = arith.constant 0 : index
    %73 = vector.load %arg13[%c8_50, %c0_51] : memref<168x16xf32, #tpu.memory_space<vmem>>, vector<120x16xf32>
    %74 = arith.truncf %73 : vector<120x16xf32> to vector<120x16xbf16>
    %c0_52 = arith.constant 0 : index
    %c16_53 = arith.constant 16 : index
    %75 = vector.load %arg14[%c0_52, %c16_53] : memref<120x144xbf16, #tpu.memory_space<vmem>>, vector<120x16xbf16>
    tpu.vector_store %arg14[%c0_52, %c16_53], %74 {strides = array<i32>} : memref<120x144xbf16, #tpu.memory_space<vmem>>, vector<120x16xbf16>,
    %c9 = arith.constant 9 : index
    %c0_54 = arith.constant 0 : index
    %76 = vector.load %arg13[%c9, %c0_54] : memref<168x16xf32, #tpu.memory_space<vmem>>, vector<120x16xf32>
    %77 = arith.truncf %76 : vector<120x16xf32> to vector<120x16xbf16>
    %c0_55 = arith.constant 0 : index
    %c32_56 = arith.constant 32 : index
    %78 = vector.load %arg14[%c0_55, %c32_56] : memref<120x144xbf16, #tpu.memory_space<vmem>>, vector<120x16xbf16>
    tpu.vector_store %arg14[%c0_55, %c32_56], %77 {strides = array<i32>} : memref<120x144xbf16, #tpu.memory_space<vmem>>, vector<120x16xbf16>,
    %c23 = arith.constant 23 : index
    %c0_57 = arith.constant 0 : index
    %79 = vector.load %arg13[%c23, %c0_57] : memref<168x16xf32, #tpu.memory_space<vmem>>, vector<120x16xf32>
    %80 = arith.truncf %79 : vector<120x16xf32> to vector<120x16xbf16>
    %c0_58 = arith.constant 0 : index
    %c48_59 = arith.constant 48 : index
    %81 = vector.load %arg14[%c0_58, %c48_59] : memref<120x144xbf16, #tpu.memory_space<vmem>>, vector<120x16xbf16>
    tpu.vector_store %arg14[%c0_58, %c48_59], %80 {strides = array<i32>} : memref<120x144xbf16, #tpu.memory_space<vmem>>, vector<120x16xbf16>,
    %c24_60 = arith.constant 24 : index
    %c0_61 = arith.constant 0 : index
    %82 = vector.load %arg13[%c24_60, %c0_61] : memref<168x16xf32, #tpu.memory_space<vmem>>, vector<120x16xf32>
    %83 = arith.truncf %82 : vector<120x16xf32> to vector<120x16xbf16>
    %c0_62 = arith.constant 0 : index
    %c64 = arith.constant 64 : index
    %84 = vector.load %arg14[%c0_62, %c64] : memref<120x144xbf16, #tpu.memory_space<vmem>>, vector<120x16xbf16>
    tpu.vector_store %arg14[%c0_62, %c64], %83 {strides = array<i32>} : memref<120x144xbf16, #tpu.memory_space<vmem>>, vector<120x16xbf16>,
    %c25 = arith.constant 25 : index
    %c0_63 = arith.constant 0 : index
    %85 = vector.load %arg13[%c25, %c0_63] : memref<168x16xf32, #tpu.memory_space<vmem>>, vector<120x16xf32>
    %86 = arith.truncf %85 : vector<120x16xf32> to vector<120x16xbf16>
    %c0_64 = arith.constant 0 : index
    %c80 = arith.constant 80 : index
    %87 = vector.load %arg14[%c0_64, %c80] : memref<120x144xbf16, #tpu.memory_space<vmem>>, vector<120x16xbf16>
    tpu.vector_store %arg14[%c0_64, %c80], %86 {strides = array<i32>} : memref<120x144xbf16, #tpu.memory_space<vmem>>, vector<120x16xbf16>,
    %c39 = arith.constant 39 : index
    %c0_65 = arith.constant 0 : index
    %88 = vector.load %arg13[%c39, %c0_65] : memref<168x16xf32, #tpu.memory_space<vmem>>, vector<120x16xf32>
    %89 = arith.truncf %88 : vector<120x16xf32> to vector<120x16xbf16>
    %c0_66 = arith.constant 0 : index
    %c96 = arith.constant 96 : index
    %90 = vector.load %arg14[%c0_66, %c96] : memref<120x144xbf16, #tpu.memory_space<vmem>>, vector<120x16xbf16>
    tpu.vector_store %arg14[%c0_66, %c96], %89 {strides = array<i32>} : memref<120x144xbf16, #tpu.memory_space<vmem>>, vector<120x16xbf16>,
    %c40_67 = arith.constant 40 : index
    %c0_68 = arith.constant 0 : index
    %91 = vector.load %arg13[%c40_67, %c0_68] : memref<168x16xf32, #tpu.memory_space<vmem>>, vector<120x16xf32>
    %92 = arith.truncf %91 : vector<120x16xf32> to vector<120x16xbf16>
    %c0_69 = arith.constant 0 : index
    %c112 = arith.constant 112 : index
    %93 = vector.load %arg14[%c0_69, %c112] : memref<120x144xbf16, #tpu.memory_space<vmem>>, vector<120x16xbf16>
    tpu.vector_store %arg14[%c0_69, %c112], %92 {strides = array<i32>} : memref<120x144xbf16, #tpu.memory_space<vmem>>, vector<120x16xbf16>,
    %c41 = arith.constant 41 : index
    %c0_70 = arith.constant 0 : index
    %94 = vector.load %arg13[%c41, %c0_70] : memref<168x16xf32, #tpu.memory_space<vmem>>, vector<120x16xf32>
    %95 = arith.truncf %94 : vector<120x16xf32> to vector<120x16xbf16>
    %c0_71 = arith.constant 0 : index
    %c128 = arith.constant 128 : index
    %96 = vector.load %arg14[%c0_71, %c128] : memref<120x144xbf16, #tpu.memory_space<vmem>>, vector<120x16xbf16>
    tpu.vector_store %arg14[%c0_71, %c128], %95 {strides = array<i32>} : memref<120x144xbf16, #tpu.memory_space<vmem>>, vector<120x16xbf16>,
    %c0_72 = arith.constant 0 : index
    %c0_73 = arith.constant 0 : index
    %97 = vector.load %arg14[%c0_72, %c0_73] : memref<120x144xbf16, #tpu.memory_space<vmem>>, vector<120x144xbf16>
    %c0_74 = arith.constant 0 : index
    %c0_75 = arith.constant 0 : index
    %c0_76 = arith.constant 0 : index
    %98 = vector.load %arg7[%c0_74, %c0_75, %c0_76] : memref<2x144x8xbf16, #tpu.memory_space<vmem>>, vector<1x144x8xbf16>
    %99 = vector.shape_cast %98 : vector<1x144x8xbf16> to vector<144x8xbf16>
    %cst_77 = arith.constant dense<0.000000e+00> : vector<120x8xf32>
    %100 = tpu.matmul %97, %99, %cst_77 {dimension_numbers = #tpu.dot_dimension_numbers<[1], [0], [0], [1], [0, 0, 1, 1], [], []>} : vector<120x144xbf16>, vector<144x8xbf16>, vector<120x8xf32> -> vector<120x8xf32>
    %c24_78 = arith.constant 24 : index
    %c16_79 = arith.constant 16 : index
    %101 = vector.load %arg12[%c24_78, %c16_79] : memref<168x32xf32, #tpu.memory_space<vmem>>, vector<120x8xf32>
    tpu.vector_store %arg12[%c24_78, %c16_79], %100 {strides = array<i32>} : memref<168x32xf32, #tpu.memory_space<vmem>>, vector<120x8xf32>,
    %c0_80 = arith.constant 0 : index
    %c0_81 = arith.constant 0 : index
    %102 = vector.load %arg12[%c0_80, %c0_81] : memref<168x32xf32, #tpu.memory_space<vmem>>, vector<168x32xf32>
    %c1 = arith.constant 1 : index
    %c0_82 = arith.constant 0 : index
    %c0_83 = arith.constant 0 : index
    %103 = vector.load %arg2[%c1, %c0_82, %c0_83] : memref<2x1x32xf32, #tpu.memory_space<vmem>>, vector<1x1x32xf32>
    %104 = vector.shape_cast %103 : vector<1x1x32xf32> to vector<1x32xf32>
    %105 = vector.broadcast %104 : vector<1x32xf32> to vector<168x32xf32>
    %106 = arith.mulf %102, %105 : vector<168x32xf32>
    %c1_84 = arith.constant 1 : index
    %c0_85 = arith.constant 0 : index
    %c0_86 = arith.constant 0 : index
    %107 = vector.load %arg3[%c1_84, %c0_85, %c0_86] : memref<2x1x32xf32, #tpu.memory_space<vmem>>, vector<1x1x32xf32>
    %108 = vector.shape_cast %107 : vector<1x1x32xf32> to vector<1x32xf32>
    %109 = vector.broadcast %108 : vector<1x32xf32> to vector<168x32xf32>
    %110 = arith.addf %106, %109 : vector<168x32xf32>
    %cst_87 = arith.constant 0.000000e+00 : f32
    %111 = vector.broadcast %cst_87 : f32 to vector<168x32xf32>
    %112 = arith.maximumf %110, %111 : vector<168x32xf32>
    %113 = arith.truncf %112 : vector<168x32xf32> to vector<168x32xbf16>
    %c1_88 = arith.constant 1 : index
    %c0_89 = arith.constant 0 : index
    %c0_90 = arith.constant 0 : index
    %114 = vector.load %arg4[%c1_88, %c0_89, %c0_90] : memref<2x32x16xbf16, #tpu.memory_space<vmem>>, vector<1x32x16xbf16>
    %115 = vector.shape_cast %114 : vector<1x32x16xbf16> to vector<32x16xbf16>
    %cst_91 = arith.constant dense<0.000000e+00> : vector<168x16xf32>
    %116 = tpu.matmul %113, %115, %cst_91 {dimension_numbers = #tpu.dot_dimension_numbers<[1], [0], [0], [1], [0, 0, 1, 1], [], []>} : vector<168x32xbf16>, vector<32x16xbf16>, vector<168x16xf32> -> vector<168x16xf32>
    %c1_92 = arith.constant 1 : index
    %c0_93 = arith.constant 0 : index
    %c0_94 = arith.constant 0 : index
    %117 = vector.load %arg5[%c1_92, %c0_93, %c0_94] : memref<2x1x16xf32, #tpu.memory_space<vmem>>, vector<1x1x16xf32>
    %118 = vector.shape_cast %117 : vector<1x1x16xf32> to vector<1x16xf32>
    %119 = vector.broadcast %118 : vector<1x16xf32> to vector<168x16xf32>
    %120 = arith.mulf %116, %119 : vector<168x16xf32>
    %c1_95 = arith.constant 1 : index
    %c0_96 = arith.constant 0 : index
    %c0_97 = arith.constant 0 : index
    %121 = vector.load %arg6[%c1_95, %c0_96, %c0_97] : memref<2x1x16xf32, #tpu.memory_space<vmem>>, vector<1x1x16xf32>
    %122 = vector.shape_cast %121 : vector<1x1x16xf32> to vector<1x16xf32>
    %123 = vector.broadcast %122 : vector<1x16xf32> to vector<168x16xf32>
    %124 = arith.addf %120, %123 : vector<168x16xf32>
    %cst_98 = arith.constant 0.000000e+00 : f32
    %125 = vector.broadcast %cst_98 : f32 to vector<168x16xf32>
    %126 = arith.maximumf %124, %125 : vector<168x16xf32>
    %127 = vector.broadcast %41 : vector<168x1xf32> to vector<168x16xf32>
    %128 = arith.mulf %126, %127 : vector<168x16xf32>
    %c0_99 = arith.constant 0 : index
    %c0_100 = arith.constant 0 : index
    %129 = vector.load %arg13[%c0_99, %c0_100] : memref<168x16xf32, #tpu.memory_space<vmem>>, vector<168x16xf32>
    tpu.vector_store %arg13[%c0_99, %c0_100], %128 {strides = array<i32>} : memref<168x16xf32, #tpu.memory_space<vmem>>, vector<168x16xf32>,
    %c7_101 = arith.constant 7 : index
    %c0_102 = arith.constant 0 : index
    %130 = vector.load %arg13[%c7_101, %c0_102] : memref<168x16xf32, #tpu.memory_space<vmem>>, vector<120x16xf32>
    %131 = arith.truncf %130 : vector<120x16xf32> to vector<120x16xbf16>
    %c0_103 = arith.constant 0 : index
    %c0_104 = arith.constant 0 : index
    %132 = vector.load %arg14[%c0_103, %c0_104] : memref<120x144xbf16, #tpu.memory_space<vmem>>, vector<120x16xbf16>
    tpu.vector_store %arg14[%c0_103, %c0_104], %131 {strides = array<i32>} : memref<120x144xbf16, #tpu.memory_space<vmem>>, vector<120x16xbf16>,
    %c8_105 = arith.constant 8 : index
    %c0_106 = arith.constant 0 : index
    %133 = vector.load %arg13[%c8_105, %c0_106] : memref<168x16xf32, #tpu.memory_space<vmem>>, vector<120x16xf32>
    %134 = arith.truncf %133 : vector<120x16xf32> to vector<120x16xbf16>
    %c0_107 = arith.constant 0 : index
    %c16_108 = arith.constant 16 : index
    %135 = vector.load %arg14[%c0_107, %c16_108] : memref<120x144xbf16, #tpu.memory_space<vmem>>, vector<120x16xbf16>
    tpu.vector_store %arg14[%c0_107, %c16_108], %134 {strides = array<i32>} : memref<120x144xbf16, #tpu.memory_space<vmem>>, vector<120x16xbf16>,
    %c9_109 = arith.constant 9 : index
    %c0_110 = arith.constant 0 : index
    %136 = vector.load %arg13[%c9_109, %c0_110] : memref<168x16xf32, #tpu.memory_space<vmem>>, vector<120x16xf32>
    %137 = arith.truncf %136 : vector<120x16xf32> to vector<120x16xbf16>
    %c0_111 = arith.constant 0 : index
    %c32_112 = arith.constant 32 : index
    %138 = vector.load %arg14[%c0_111, %c32_112] : memref<120x144xbf16, #tpu.memory_space<vmem>>, vector<120x16xbf16>
    tpu.vector_store %arg14[%c0_111, %c32_112], %137 {strides = array<i32>} : memref<120x144xbf16, #tpu.memory_space<vmem>>, vector<120x16xbf16>,
    %c23_113 = arith.constant 23 : index
    %c0_114 = arith.constant 0 : index
    %139 = vector.load %arg13[%c23_113, %c0_114] : memref<168x16xf32, #tpu.memory_space<vmem>>, vector<120x16xf32>
    %140 = arith.truncf %139 : vector<120x16xf32> to vector<120x16xbf16>
    %c0_115 = arith.constant 0 : index
    %c48_116 = arith.constant 48 : index
    %141 = vector.load %arg14[%c0_115, %c48_116] : memref<120x144xbf16, #tpu.memory_space<vmem>>, vector<120x16xbf16>
    tpu.vector_store %arg14[%c0_115, %c48_116], %140 {strides = array<i32>} : memref<120x144xbf16, #tpu.memory_space<vmem>>, vector<120x16xbf16>,
    %c24_117 = arith.constant 24 : index
    %c0_118 = arith.constant 0 : index
    %142 = vector.load %arg13[%c24_117, %c0_118] : memref<168x16xf32, #tpu.memory_space<vmem>>, vector<120x16xf32>
    %143 = arith.truncf %142 : vector<120x16xf32> to vector<120x16xbf16>
    %c0_119 = arith.constant 0 : index
    %c64_120 = arith.constant 64 : index
    %144 = vector.load %arg14[%c0_119, %c64_120] : memref<120x144xbf16, #tpu.memory_space<vmem>>, vector<120x16xbf16>
    tpu.vector_store %arg14[%c0_119, %c64_120], %143 {strides = array<i32>} : memref<120x144xbf16, #tpu.memory_space<vmem>>, vector<120x16xbf16>,
    %c25_121 = arith.constant 25 : index
    %c0_122 = arith.constant 0 : index
    %145 = vector.load %arg13[%c25_121, %c0_122] : memref<168x16xf32, #tpu.memory_space<vmem>>, vector<120x16xf32>
    %146 = arith.truncf %145 : vector<120x16xf32> to vector<120x16xbf16>
    %c0_123 = arith.constant 0 : index
    %c80_124 = arith.constant 80 : index
    %147 = vector.load %arg14[%c0_123, %c80_124] : memref<120x144xbf16, #tpu.memory_space<vmem>>, vector<120x16xbf16>
    tpu.vector_store %arg14[%c0_123, %c80_124], %146 {strides = array<i32>} : memref<120x144xbf16, #tpu.memory_space<vmem>>, vector<120x16xbf16>,
    %c39_125 = arith.constant 39 : index
    %c0_126 = arith.constant 0 : index
    %148 = vector.load %arg13[%c39_125, %c0_126] : memref<168x16xf32, #tpu.memory_space<vmem>>, vector<120x16xf32>
    %149 = arith.truncf %148 : vector<120x16xf32> to vector<120x16xbf16>
    %c0_127 = arith.constant 0 : index
    %c96_128 = arith.constant 96 : index
    %150 = vector.load %arg14[%c0_127, %c96_128] : memref<120x144xbf16, #tpu.memory_space<vmem>>, vector<120x16xbf16>
    tpu.vector_store %arg14[%c0_127, %c96_128], %149 {strides = array<i32>} : memref<120x144xbf16, #tpu.memory_space<vmem>>, vector<120x16xbf16>,
    %c40_129 = arith.constant 40 : index
    %c0_130 = arith.constant 0 : index
    %151 = vector.load %arg13[%c40_129, %c0_130] : memref<168x16xf32, #tpu.memory_space<vmem>>, vector<120x16xf32>
    %152 = arith.truncf %151 : vector<120x16xf32> to vector<120x16xbf16>
    %c0_131 = arith.constant 0 : index
    %c112_132 = arith.constant 112 : index
    %153 = vector.load %arg14[%c0_131, %c112_132] : memref<120x144xbf16, #tpu.memory_space<vmem>>, vector<120x16xbf16>
    tpu.vector_store %arg14[%c0_131, %c112_132], %152 {strides = array<i32>} : memref<120x144xbf16, #tpu.memory_space<vmem>>, vector<120x16xbf16>,
    %c41_133 = arith.constant 41 : index
    %c0_134 = arith.constant 0 : index
    %154 = vector.load %arg13[%c41_133, %c0_134] : memref<168x16xf32, #tpu.memory_space<vmem>>, vector<120x16xf32>
    %155 = arith.truncf %154 : vector<120x16xf32> to vector<120x16xbf16>
    %c0_135 = arith.constant 0 : index
    %c128_136 = arith.constant 128 : index
    %156 = vector.load %arg14[%c0_135, %c128_136] : memref<120x144xbf16, #tpu.memory_space<vmem>>, vector<120x16xbf16>
    tpu.vector_store %arg14[%c0_135, %c128_136], %155 {strides = array<i32>} : memref<120x144xbf16, #tpu.memory_space<vmem>>, vector<120x16xbf16>,
    %c0_137 = arith.constant 0 : index
    %c0_138 = arith.constant 0 : index
    %157 = vector.load %arg14[%c0_137, %c0_138] : memref<120x144xbf16, #tpu.memory_space<vmem>>, vector<120x144xbf16>
    %c1_139 = arith.constant 1 : index
    %c0_140 = arith.constant 0 : index
    %c0_141 = arith.constant 0 : index
    %158 = vector.load %arg7[%c1_139, %c0_140, %c0_141] : memref<2x144x8xbf16, #tpu.memory_space<vmem>>, vector<1x144x8xbf16>
    %159 = vector.shape_cast %158 : vector<1x144x8xbf16> to vector<144x8xbf16>
    %cst_142 = arith.constant dense<0.000000e+00> : vector<120x8xf32>
    %160 = tpu.matmul %157, %159, %cst_142 {dimension_numbers = #tpu.dot_dimension_numbers<[1], [0], [0], [1], [0, 0, 1, 1], [], []>} : vector<120x144xbf16>, vector<144x8xbf16>, vector<120x8xf32> -> vector<120x8xf32>
    %c24_143 = arith.constant 24 : index
    %c24_144 = arith.constant 24 : index
    %161 = vector.load %arg12[%c24_143, %c24_144] : memref<168x32xf32, #tpu.memory_space<vmem>>, vector<120x8xf32>
    tpu.vector_store %arg12[%c24_143, %c24_144], %160 {strides = array<i32>} : memref<168x32xf32, #tpu.memory_space<vmem>>, vector<120x8xf32>,
    %c24_145 = arith.constant 24 : index
    %c0_146 = arith.constant 0 : index
    %162 = vector.load %arg12[%c24_145, %c0_146] : memref<168x32xf32, #tpu.memory_space<vmem>>, vector<120x32xf32>
    %c0_147 = arith.constant 0 : index
    %c0_148 = arith.constant 0 : index
    %163 = vector.load %arg8[%c0_147, %c0_148] : memref<1x32xf32, #tpu.memory_space<vmem>>, vector<1x32xf32>
    %164 = vector.broadcast %163 : vector<1x32xf32> to vector<120x32xf32>
    %165 = arith.mulf %162, %164 : vector<120x32xf32>
    %c0_149 = arith.constant 0 : index
    %c0_150 = arith.constant 0 : index
    %166 = vector.load %arg9[%c0_149, %c0_150] : memref<1x32xf32, #tpu.memory_space<vmem>>, vector<1x32xf32>
    %167 = vector.broadcast %166 : vector<1x32xf32> to vector<120x32xf32>
    %168 = arith.addf %165, %167 : vector<120x32xf32>
    %cst_151 = arith.constant 0.000000e+00 : f32
    %169 = vector.broadcast %cst_151 : f32 to vector<120x32xf32>
    %170 = arith.maximumf %168, %169 : vector<120x32xf32>
    %171 = arith.truncf %170 : vector<120x32xf32> to vector<120x32xbf16>
    %c0_152 = arith.constant 0 : index
    %c0_153 = arith.constant 0 : index
    %172 = vector.load %arg10[%c0_152, %c0_153] : memref<32x16xbf16, #tpu.memory_space<vmem>>, vector<32x16xbf16>
    %cst_154 = arith.constant dense<0.000000e+00> : vector<120x16xf32>
    %173 = tpu.matmul %171, %172, %cst_154 {dimension_numbers = #tpu.dot_dimension_numbers<[1], [0], [0], [1], [0, 0, 1, 1], [], []>} : vector<120x32xbf16>, vector<32x16xbf16>, vector<120x16xf32> -> vector<120x16xf32>
    %c0_155 = arith.constant 0 : index
    %c0_156 = arith.constant 0 : index
    %174 = vector.load %arg11[%c0_155, %c0_156] : memref<128x16xf32, #tpu.memory_space<vmem>>, vector<120x16xf32>
    tpu.vector_store %arg11[%c0_155, %c0_156], %173 {strides = array<i32>} : memref<128x16xf32, #tpu.memory_space<vmem>>, vector<120x16xf32>,
    return
  }
  func.func @transform_0(%arg0: i32) -> (i32, i32) {
    %c0_i32 = arith.constant 0 : i32
    %c0_i32_0 = arith.constant 0 : i32
    return %arg0, %c0_i32 : i32, i32
  }
  func.func @transform_1(%arg0: i32) -> (i32, i32, i32) {
    %c0_i32 = arith.constant 0 : i32
    %c0_i32_0 = arith.constant 0 : i32
    %c0_i32_1 = arith.constant 0 : i32
    %c0_i32_2 = arith.constant 0 : i32
    return %c0_i32, %c0_i32_0, %c0_i32_1 : i32, i32, i32
  }
  func.func @transform_2(%arg0: i32) -> (i32, i32, i32) {
    %c0_i32 = arith.constant 0 : i32
    %c0_i32_0 = arith.constant 0 : i32
    %c0_i32_1 = arith.constant 0 : i32
    %c0_i32_2 = arith.constant 0 : i32
    return %c0_i32, %c0_i32_0, %c0_i32_1 : i32, i32, i32
  }
  func.func @transform_3(%arg0: i32) -> (i32, i32, i32) {
    %c0_i32 = arith.constant 0 : i32
    %c0_i32_0 = arith.constant 0 : i32
    %c0_i32_1 = arith.constant 0 : i32
    %c0_i32_2 = arith.constant 0 : i32
    return %c0_i32, %c0_i32_0, %c0_i32_1 : i32, i32, i32
  }
  func.func @transform_4(%arg0: i32) -> (i32, i32, i32) {
    %c0_i32 = arith.constant 0 : i32
    %c0_i32_0 = arith.constant 0 : i32
    %c0_i32_1 = arith.constant 0 : i32
    %c0_i32_2 = arith.constant 0 : i32
    return %c0_i32, %c0_i32_0, %c0_i32_1 : i32, i32, i32
  }
  func.func @transform_5(%arg0: i32) -> (i32, i32, i32) {
    %c0_i32 = arith.constant 0 : i32
    %c0_i32_0 = arith.constant 0 : i32
    %c0_i32_1 = arith.constant 0 : i32
    %c0_i32_2 = arith.constant 0 : i32
    return %c0_i32, %c0_i32_0, %c0_i32_1 : i32, i32, i32
  }
  func.func @transform_6(%arg0: i32) -> (i32, i32, i32) {
    %c0_i32 = arith.constant 0 : i32
    %c0_i32_0 = arith.constant 0 : i32
    %c0_i32_1 = arith.constant 0 : i32
    %c0_i32_2 = arith.constant 0 : i32
    return %c0_i32, %c0_i32_0, %c0_i32_1 : i32, i32, i32
  }
  func.func @transform_7(%arg0: i32) -> (i32, i32) {
    %c0_i32 = arith.constant 0 : i32
    %c0_i32_0 = arith.constant 0 : i32
    %c0_i32_1 = arith.constant 0 : i32
    return %c0_i32, %c0_i32_0 : i32, i32
  }
  func.func @transform_8(%arg0: i32) -> (i32, i32) {
    %c0_i32 = arith.constant 0 : i32
    %c0_i32_0 = arith.constant 0 : i32
    %c0_i32_1 = arith.constant 0 : i32
    return %c0_i32, %c0_i32_0 : i32, i32
  }
  func.func @transform_9(%arg0: i32) -> (i32, i32) {
    %c0_i32 = arith.constant 0 : i32
    %c0_i32_0 = arith.constant 0 : i32
    %c0_i32_1 = arith.constant 0 : i32
    return %c0_i32, %c0_i32_0 : i32, i32
  }
  func.func @transform_10(%arg0: i32) -> (i32, i32) {
    %c0_i32 = arith.constant 0 : i32
    %c0_i32_0 = arith.constant 0 : i32
    return %arg0, %c0_i32 : i32, i32
  }
}

module attributes {stable_mosaic.version = 11 : i64} {
  func.func @_dense_block_kernel(%arg0: i32, %arg1: memref<16x16xf32, #tpu.memory_space<vmem>>, %arg2: memref<2x1x32xf32, #tpu.memory_space<vmem>>, %arg3: memref<2x1x32xf32, #tpu.memory_space<vmem>>, %arg4: memref<2x32x16xbf16, #tpu.memory_space<vmem>>, %arg5: memref<2x1x16xf32, #tpu.memory_space<vmem>>, %arg6: memref<2x1x16xf32, #tpu.memory_space<vmem>>, %arg7: memref<2x144x8xbf16, #tpu.memory_space<vmem>>, %arg8: memref<1x32xf32, #tpu.memory_space<vmem>>, %arg9: memref<1x32xf32, #tpu.memory_space<vmem>>, %arg10: memref<32x32xf32, #tpu.memory_space<vmem>>, %arg11: memref<56x32xf32, #tpu.memory_space<vmem>>, %arg12: memref<56x16xf32, #tpu.memory_space<vmem>>, %arg13: memref<28x144xbf16, #tpu.memory_space<vmem>>) attributes {dimension_semantics = [#tpu.dimension_semantics<parallel>], iteration_bounds = array<i64: 2>, scalar_prefetch = 0 : i64, scratch_operands = 3 : i64, tpu.core_type = #tpu.core_type<tc>, window_params = [{transform_indices = @transform_0, window_bounds = array<i64: 16, 16>}, {pipeline_mode = #tpu.pipeline_mode<synchronous>, transform_indices = @transform_1, window_bounds = array<i64: 2, 1, 32>}, {pipeline_mode = #tpu.pipeline_mode<synchronous>, transform_indices = @transform_2, window_bounds = array<i64: 2, 1, 32>}, {pipeline_mode = #tpu.pipeline_mode<synchronous>, transform_indices = @transform_3, window_bounds = array<i64: 2, 32, 16>}, {pipeline_mode = #tpu.pipeline_mode<synchronous>, transform_indices = @transform_4, window_bounds = array<i64: 2, 1, 16>}, {pipeline_mode = #tpu.pipeline_mode<synchronous>, transform_indices = @transform_5, window_bounds = array<i64: 2, 1, 16>}, {pipeline_mode = #tpu.pipeline_mode<synchronous>, transform_indices = @transform_6, window_bounds = array<i64: 2, 144, 8>}, {pipeline_mode = #tpu.pipeline_mode<synchronous>, transform_indices = @transform_7, window_bounds = array<i64: 1, 32>}, {pipeline_mode = #tpu.pipeline_mode<synchronous>, transform_indices = @transform_8, window_bounds = array<i64: 1, 32>}, {transform_indices = @transform_9, window_bounds = array<i64: 32, 32>}]} {
    %cst = arith.constant 0.000000e+00 : f32
    %0 = vector.broadcast %cst : f32 to vector<56x32xf32>
    %c0 = arith.constant 0 : index
    %c0_0 = arith.constant 0 : index
    %1 = vector.load %arg11[%c0, %c0_0] : memref<56x32xf32, #tpu.memory_space<vmem>>, vector<56x32xf32>
    tpu.vector_store %arg11[%c0, %c0_0], %0 {strides = array<i32>} : memref<56x32xf32, #tpu.memory_space<vmem>>, vector<56x32xf32>,
    %c0_1 = arith.constant 0 : index
    %c0_2 = arith.constant 0 : index
    %2 = vector.load %arg1[%c0_1, %c0_2] : memref<16x16xf32, #tpu.memory_space<vmem>>, vector<4x16xf32>
    %c16 = arith.constant 16 : index
    %c0_3 = arith.constant 0 : index
    %3 = vector.load %arg11[%c16, %c0_3] : memref<56x32xf32, #tpu.memory_space<vmem>>, vector<4x16xf32>
    tpu.vector_store %arg11[%c16, %c0_3], %2 {strides = array<i32>} : memref<56x32xf32, #tpu.memory_space<vmem>>, vector<4x16xf32>,
    %c4 = arith.constant 4 : index
    %c0_4 = arith.constant 0 : index
    %4 = vector.load %arg1[%c4, %c0_4] : memref<16x16xf32, #tpu.memory_space<vmem>>, vector<4x16xf32>
    %c24 = arith.constant 24 : index
    %c0_5 = arith.constant 0 : index
    %5 = vector.load %arg11[%c24, %c0_5] : memref<56x32xf32, #tpu.memory_space<vmem>>, vector<4x16xf32>
    tpu.vector_store %arg11[%c24, %c0_5], %4 {strides = array<i32>} : memref<56x32xf32, #tpu.memory_space<vmem>>, vector<4x16xf32>,
    %c8 = arith.constant 8 : index
    %c0_6 = arith.constant 0 : index
    %6 = vector.load %arg1[%c8, %c0_6] : memref<16x16xf32, #tpu.memory_space<vmem>>, vector<4x16xf32>
    %c32 = arith.constant 32 : index
    %c0_7 = arith.constant 0 : index
    %7 = vector.load %arg11[%c32, %c0_7] : memref<56x32xf32, #tpu.memory_space<vmem>>, vector<4x16xf32>
    tpu.vector_store %arg11[%c32, %c0_7], %6 {strides = array<i32>} : memref<56x32xf32, #tpu.memory_space<vmem>>, vector<4x16xf32>,
    %c12 = arith.constant 12 : index
    %c0_8 = arith.constant 0 : index
    %8 = vector.load %arg1[%c12, %c0_8] : memref<16x16xf32, #tpu.memory_space<vmem>>, vector<4x16xf32>
    %c40 = arith.constant 40 : index
    %c0_9 = arith.constant 0 : index
    %9 = vector.load %arg11[%c40, %c0_9] : memref<56x32xf32, #tpu.memory_space<vmem>>, vector<4x16xf32>
    tpu.vector_store %arg11[%c40, %c0_9], %8 {strides = array<i32>} : memref<56x32xf32, #tpu.memory_space<vmem>>, vector<4x16xf32>,
    %10 = tpu.iota {dimensions = array<i32: 0>} : vector<56x1xi32>
    %c7_i32 = arith.constant 7 : i32
    %11 = vector.broadcast %c7_i32 : i32 to vector<56x1xi32>
    %12 = arith.subi %10, %11 : vector<56x1xi32>
    %c3_i32 = arith.constant 3 : i32
    %13 = vector.broadcast %c3_i32 : i32 to vector<56x1xi32>
    %14 = arith.shrsi %12, %13 : vector<56x1xi32>
    %c7_i32_10 = arith.constant 7 : i32
    %15 = vector.broadcast %c7_i32_10 : i32 to vector<56x1xi32>
    %16 = arith.andi %12, %15 : vector<56x1xi32>
    %c0_i32 = arith.constant 0 : i32
    %17 = vector.broadcast %c0_i32 : i32 to vector<56x1xi32>
    %18 = arith.cmpi sge, %12, %17 : vector<56x1xi32>
    %c1_i32 = arith.constant 1 : i32
    %19 = vector.broadcast %c1_i32 : i32 to vector<56x1xi32>
    %20 = arith.cmpi sge, %14, %19 : vector<56x1xi32>
    %21 = arith.andi %18, %20 : vector<56x1xi1>
    %c4_i32 = arith.constant 4 : i32
    %22 = vector.broadcast %c4_i32 : i32 to vector<56x1xi32>
    %23 = arith.cmpi sle, %14, %22 : vector<56x1xi32>
    %24 = arith.andi %21, %23 : vector<56x1xi1>
    %c1_i32_11 = arith.constant 1 : i32
    %25 = vector.broadcast %c1_i32_11 : i32 to vector<56x1xi32>
    %26 = arith.cmpi sge, %16, %25 : vector<56x1xi32>
    %27 = arith.andi %24, %26 : vector<56x1xi1>
    %c4_i32_12 = arith.constant 4 : i32
    %28 = vector.broadcast %c4_i32_12 : i32 to vector<56x1xi32>
    %29 = arith.cmpi sle, %16, %28 : vector<56x1xi32>
    %30 = arith.andi %27, %29 : vector<56x1xi1>
    %cst_13 = arith.constant 1.000000e+00 : f32
    %cst_14 = arith.constant 0.000000e+00 : f32
    %31 = vector.broadcast %cst_13 : f32 to vector<56x1xf32>
    %32 = vector.broadcast %cst_14 : f32 to vector<56x1xf32>
    %33 = arith.select %30, %31, %32 : vector<56x1xi1>, vector<56x1xf32>
    %c0_15 = arith.constant 0 : index
    %c0_16 = arith.constant 0 : index
    %34 = vector.load %arg11[%c0_15, %c0_16] : memref<56x32xf32, #tpu.memory_space<vmem>>, vector<56x32xf32>
    %c0_17 = arith.constant 0 : index
    %c0_18 = arith.constant 0 : index
    %c0_19 = arith.constant 0 : index
    %35 = vector.load %arg2[%c0_17, %c0_18, %c0_19] : memref<2x1x32xf32, #tpu.memory_space<vmem>>, vector<1x1x32xf32>
    %36 = vector.shape_cast %35 : vector<1x1x32xf32> to vector<1x32xf32>
    %37 = vector.broadcast %36 : vector<1x32xf32> to vector<56x32xf32>
    %38 = arith.mulf %34, %37 : vector<56x32xf32>
    %c0_20 = arith.constant 0 : index
    %c0_21 = arith.constant 0 : index
    %c0_22 = arith.constant 0 : index
    %39 = vector.load %arg3[%c0_20, %c0_21, %c0_22] : memref<2x1x32xf32, #tpu.memory_space<vmem>>, vector<1x1x32xf32>
    %40 = vector.shape_cast %39 : vector<1x1x32xf32> to vector<1x32xf32>
    %41 = vector.broadcast %40 : vector<1x32xf32> to vector<56x32xf32>
    %42 = arith.addf %38, %41 : vector<56x32xf32>
    %cst_23 = arith.constant 0.000000e+00 : f32
    %43 = vector.broadcast %cst_23 : f32 to vector<56x32xf32>
    %44 = arith.maximumf %42, %43 : vector<56x32xf32>
    %45 = arith.truncf %44 : vector<56x32xf32> to vector<56x32xbf16>
    %c0_24 = arith.constant 0 : index
    %c0_25 = arith.constant 0 : index
    %c0_26 = arith.constant 0 : index
    %46 = vector.load %arg4[%c0_24, %c0_25, %c0_26] : memref<2x32x16xbf16, #tpu.memory_space<vmem>>, vector<1x32x16xbf16>
    %47 = vector.shape_cast %46 : vector<1x32x16xbf16> to vector<32x16xbf16>
    %cst_27 = arith.constant dense<0.000000e+00> : vector<56x16xf32>
    %48 = tpu.matmul %45, %47, %cst_27 {dimension_numbers = #tpu.dot_dimension_numbers<[1], [0], [0], [1], [0, 0, 1, 1], [], []>} : vector<56x32xbf16>, vector<32x16xbf16>, vector<56x16xf32> -> vector<56x16xf32>
    %c0_28 = arith.constant 0 : index
    %c0_29 = arith.constant 0 : index
    %c0_30 = arith.constant 0 : index
    %49 = vector.load %arg5[%c0_28, %c0_29, %c0_30] : memref<2x1x16xf32, #tpu.memory_space<vmem>>, vector<1x1x16xf32>
    %50 = vector.shape_cast %49 : vector<1x1x16xf32> to vector<1x16xf32>
    %51 = vector.broadcast %50 : vector<1x16xf32> to vector<56x16xf32>
    %52 = arith.mulf %48, %51 : vector<56x16xf32>
    %c0_31 = arith.constant 0 : index
    %c0_32 = arith.constant 0 : index
    %c0_33 = arith.constant 0 : index
    %53 = vector.load %arg6[%c0_31, %c0_32, %c0_33] : memref<2x1x16xf32, #tpu.memory_space<vmem>>, vector<1x1x16xf32>
    %54 = vector.shape_cast %53 : vector<1x1x16xf32> to vector<1x16xf32>
    %55 = vector.broadcast %54 : vector<1x16xf32> to vector<56x16xf32>
    %56 = arith.addf %52, %55 : vector<56x16xf32>
    %cst_34 = arith.constant 0.000000e+00 : f32
    %57 = vector.broadcast %cst_34 : f32 to vector<56x16xf32>
    %58 = arith.maximumf %56, %57 : vector<56x16xf32>
    %59 = vector.broadcast %33 : vector<56x1xf32> to vector<56x16xf32>
    %60 = arith.mulf %58, %59 : vector<56x16xf32>
    %c0_35 = arith.constant 0 : index
    %c0_36 = arith.constant 0 : index
    %61 = vector.load %arg12[%c0_35, %c0_36] : memref<56x16xf32, #tpu.memory_space<vmem>>, vector<56x16xf32>
    tpu.vector_store %arg12[%c0_35, %c0_36], %60 {strides = array<i32>} : memref<56x16xf32, #tpu.memory_space<vmem>>, vector<56x16xf32>,
    %c7 = arith.constant 7 : index
    %c0_37 = arith.constant 0 : index
    %62 = vector.load %arg12[%c7, %c0_37] : memref<56x16xf32, #tpu.memory_space<vmem>>, vector<28x16xf32>
    %63 = arith.truncf %62 : vector<28x16xf32> to vector<28x16xbf16>
    %c0_38 = arith.constant 0 : index
    %c0_39 = arith.constant 0 : index
    %64 = vector.load %arg13[%c0_38, %c0_39] : memref<28x144xbf16, #tpu.memory_space<vmem>>, vector<28x16xbf16>
    tpu.vector_store %arg13[%c0_38, %c0_39], %63 {strides = array<i32>} : memref<28x144xbf16, #tpu.memory_space<vmem>>, vector<28x16xbf16>,
    %c8_40 = arith.constant 8 : index
    %c0_41 = arith.constant 0 : index
    %65 = vector.load %arg12[%c8_40, %c0_41] : memref<56x16xf32, #tpu.memory_space<vmem>>, vector<28x16xf32>
    %66 = arith.truncf %65 : vector<28x16xf32> to vector<28x16xbf16>
    %c0_42 = arith.constant 0 : index
    %c16_43 = arith.constant 16 : index
    %67 = vector.load %arg13[%c0_42, %c16_43] : memref<28x144xbf16, #tpu.memory_space<vmem>>, vector<28x16xbf16>
    tpu.vector_store %arg13[%c0_42, %c16_43], %66 {strides = array<i32>} : memref<28x144xbf16, #tpu.memory_space<vmem>>, vector<28x16xbf16>,
    %c9 = arith.constant 9 : index
    %c0_44 = arith.constant 0 : index
    %68 = vector.load %arg12[%c9, %c0_44] : memref<56x16xf32, #tpu.memory_space<vmem>>, vector<28x16xf32>
    %69 = arith.truncf %68 : vector<28x16xf32> to vector<28x16xbf16>
    %c0_45 = arith.constant 0 : index
    %c32_46 = arith.constant 32 : index
    %70 = vector.load %arg13[%c0_45, %c32_46] : memref<28x144xbf16, #tpu.memory_space<vmem>>, vector<28x16xbf16>
    tpu.vector_store %arg13[%c0_45, %c32_46], %69 {strides = array<i32>} : memref<28x144xbf16, #tpu.memory_space<vmem>>, vector<28x16xbf16>,
    %c15 = arith.constant 15 : index
    %c0_47 = arith.constant 0 : index
    %71 = vector.load %arg12[%c15, %c0_47] : memref<56x16xf32, #tpu.memory_space<vmem>>, vector<28x16xf32>
    %72 = arith.truncf %71 : vector<28x16xf32> to vector<28x16xbf16>
    %c0_48 = arith.constant 0 : index
    %c48 = arith.constant 48 : index
    %73 = vector.load %arg13[%c0_48, %c48] : memref<28x144xbf16, #tpu.memory_space<vmem>>, vector<28x16xbf16>
    tpu.vector_store %arg13[%c0_48, %c48], %72 {strides = array<i32>} : memref<28x144xbf16, #tpu.memory_space<vmem>>, vector<28x16xbf16>,
    %c16_49 = arith.constant 16 : index
    %c0_50 = arith.constant 0 : index
    %74 = vector.load %arg12[%c16_49, %c0_50] : memref<56x16xf32, #tpu.memory_space<vmem>>, vector<28x16xf32>
    %75 = arith.truncf %74 : vector<28x16xf32> to vector<28x16xbf16>
    %c0_51 = arith.constant 0 : index
    %c64 = arith.constant 64 : index
    %76 = vector.load %arg13[%c0_51, %c64] : memref<28x144xbf16, #tpu.memory_space<vmem>>, vector<28x16xbf16>
    tpu.vector_store %arg13[%c0_51, %c64], %75 {strides = array<i32>} : memref<28x144xbf16, #tpu.memory_space<vmem>>, vector<28x16xbf16>,
    %c17 = arith.constant 17 : index
    %c0_52 = arith.constant 0 : index
    %77 = vector.load %arg12[%c17, %c0_52] : memref<56x16xf32, #tpu.memory_space<vmem>>, vector<28x16xf32>
    %78 = arith.truncf %77 : vector<28x16xf32> to vector<28x16xbf16>
    %c0_53 = arith.constant 0 : index
    %c80 = arith.constant 80 : index
    %79 = vector.load %arg13[%c0_53, %c80] : memref<28x144xbf16, #tpu.memory_space<vmem>>, vector<28x16xbf16>
    tpu.vector_store %arg13[%c0_53, %c80], %78 {strides = array<i32>} : memref<28x144xbf16, #tpu.memory_space<vmem>>, vector<28x16xbf16>,
    %c23 = arith.constant 23 : index
    %c0_54 = arith.constant 0 : index
    %80 = vector.load %arg12[%c23, %c0_54] : memref<56x16xf32, #tpu.memory_space<vmem>>, vector<28x16xf32>
    %81 = arith.truncf %80 : vector<28x16xf32> to vector<28x16xbf16>
    %c0_55 = arith.constant 0 : index
    %c96 = arith.constant 96 : index
    %82 = vector.load %arg13[%c0_55, %c96] : memref<28x144xbf16, #tpu.memory_space<vmem>>, vector<28x16xbf16>
    tpu.vector_store %arg13[%c0_55, %c96], %81 {strides = array<i32>} : memref<28x144xbf16, #tpu.memory_space<vmem>>, vector<28x16xbf16>,
    %c24_56 = arith.constant 24 : index
    %c0_57 = arith.constant 0 : index
    %83 = vector.load %arg12[%c24_56, %c0_57] : memref<56x16xf32, #tpu.memory_space<vmem>>, vector<28x16xf32>
    %84 = arith.truncf %83 : vector<28x16xf32> to vector<28x16xbf16>
    %c0_58 = arith.constant 0 : index
    %c112 = arith.constant 112 : index
    %85 = vector.load %arg13[%c0_58, %c112] : memref<28x144xbf16, #tpu.memory_space<vmem>>, vector<28x16xbf16>
    tpu.vector_store %arg13[%c0_58, %c112], %84 {strides = array<i32>} : memref<28x144xbf16, #tpu.memory_space<vmem>>, vector<28x16xbf16>,
    %c25 = arith.constant 25 : index
    %c0_59 = arith.constant 0 : index
    %86 = vector.load %arg12[%c25, %c0_59] : memref<56x16xf32, #tpu.memory_space<vmem>>, vector<28x16xf32>
    %87 = arith.truncf %86 : vector<28x16xf32> to vector<28x16xbf16>
    %c0_60 = arith.constant 0 : index
    %c128 = arith.constant 128 : index
    %88 = vector.load %arg13[%c0_60, %c128] : memref<28x144xbf16, #tpu.memory_space<vmem>>, vector<28x16xbf16>
    tpu.vector_store %arg13[%c0_60, %c128], %87 {strides = array<i32>} : memref<28x144xbf16, #tpu.memory_space<vmem>>, vector<28x16xbf16>,
    %c0_61 = arith.constant 0 : index
    %c0_62 = arith.constant 0 : index
    %89 = vector.load %arg13[%c0_61, %c0_62] : memref<28x144xbf16, #tpu.memory_space<vmem>>, vector<28x144xbf16>
    %c0_63 = arith.constant 0 : index
    %c0_64 = arith.constant 0 : index
    %c0_65 = arith.constant 0 : index
    %90 = vector.load %arg7[%c0_63, %c0_64, %c0_65] : memref<2x144x8xbf16, #tpu.memory_space<vmem>>, vector<1x144x8xbf16>
    %91 = vector.shape_cast %90 : vector<1x144x8xbf16> to vector<144x8xbf16>
    %cst_66 = arith.constant dense<0.000000e+00> : vector<28x8xf32>
    %92 = tpu.matmul %89, %91, %cst_66 {dimension_numbers = #tpu.dot_dimension_numbers<[1], [0], [0], [1], [0, 0, 1, 1], [], []>} : vector<28x144xbf16>, vector<144x8xbf16>, vector<28x8xf32> -> vector<28x8xf32>
    %c16_67 = arith.constant 16 : index
    %c16_68 = arith.constant 16 : index
    %93 = vector.load %arg11[%c16_67, %c16_68] : memref<56x32xf32, #tpu.memory_space<vmem>>, vector<28x8xf32>
    tpu.vector_store %arg11[%c16_67, %c16_68], %92 {strides = array<i32>} : memref<56x32xf32, #tpu.memory_space<vmem>>, vector<28x8xf32>,
    %c0_69 = arith.constant 0 : index
    %c0_70 = arith.constant 0 : index
    %94 = vector.load %arg11[%c0_69, %c0_70] : memref<56x32xf32, #tpu.memory_space<vmem>>, vector<56x32xf32>
    %c1 = arith.constant 1 : index
    %c0_71 = arith.constant 0 : index
    %c0_72 = arith.constant 0 : index
    %95 = vector.load %arg2[%c1, %c0_71, %c0_72] : memref<2x1x32xf32, #tpu.memory_space<vmem>>, vector<1x1x32xf32>
    %96 = vector.shape_cast %95 : vector<1x1x32xf32> to vector<1x32xf32>
    %97 = vector.broadcast %96 : vector<1x32xf32> to vector<56x32xf32>
    %98 = arith.mulf %94, %97 : vector<56x32xf32>
    %c1_73 = arith.constant 1 : index
    %c0_74 = arith.constant 0 : index
    %c0_75 = arith.constant 0 : index
    %99 = vector.load %arg3[%c1_73, %c0_74, %c0_75] : memref<2x1x32xf32, #tpu.memory_space<vmem>>, vector<1x1x32xf32>
    %100 = vector.shape_cast %99 : vector<1x1x32xf32> to vector<1x32xf32>
    %101 = vector.broadcast %100 : vector<1x32xf32> to vector<56x32xf32>
    %102 = arith.addf %98, %101 : vector<56x32xf32>
    %cst_76 = arith.constant 0.000000e+00 : f32
    %103 = vector.broadcast %cst_76 : f32 to vector<56x32xf32>
    %104 = arith.maximumf %102, %103 : vector<56x32xf32>
    %105 = arith.truncf %104 : vector<56x32xf32> to vector<56x32xbf16>
    %c1_77 = arith.constant 1 : index
    %c0_78 = arith.constant 0 : index
    %c0_79 = arith.constant 0 : index
    %106 = vector.load %arg4[%c1_77, %c0_78, %c0_79] : memref<2x32x16xbf16, #tpu.memory_space<vmem>>, vector<1x32x16xbf16>
    %107 = vector.shape_cast %106 : vector<1x32x16xbf16> to vector<32x16xbf16>
    %cst_80 = arith.constant dense<0.000000e+00> : vector<56x16xf32>
    %108 = tpu.matmul %105, %107, %cst_80 {dimension_numbers = #tpu.dot_dimension_numbers<[1], [0], [0], [1], [0, 0, 1, 1], [], []>} : vector<56x32xbf16>, vector<32x16xbf16>, vector<56x16xf32> -> vector<56x16xf32>
    %c1_81 = arith.constant 1 : index
    %c0_82 = arith.constant 0 : index
    %c0_83 = arith.constant 0 : index
    %109 = vector.load %arg5[%c1_81, %c0_82, %c0_83] : memref<2x1x16xf32, #tpu.memory_space<vmem>>, vector<1x1x16xf32>
    %110 = vector.shape_cast %109 : vector<1x1x16xf32> to vector<1x16xf32>
    %111 = vector.broadcast %110 : vector<1x16xf32> to vector<56x16xf32>
    %112 = arith.mulf %108, %111 : vector<56x16xf32>
    %c1_84 = arith.constant 1 : index
    %c0_85 = arith.constant 0 : index
    %c0_86 = arith.constant 0 : index
    %113 = vector.load %arg6[%c1_84, %c0_85, %c0_86] : memref<2x1x16xf32, #tpu.memory_space<vmem>>, vector<1x1x16xf32>
    %114 = vector.shape_cast %113 : vector<1x1x16xf32> to vector<1x16xf32>
    %115 = vector.broadcast %114 : vector<1x16xf32> to vector<56x16xf32>
    %116 = arith.addf %112, %115 : vector<56x16xf32>
    %cst_87 = arith.constant 0.000000e+00 : f32
    %117 = vector.broadcast %cst_87 : f32 to vector<56x16xf32>
    %118 = arith.maximumf %116, %117 : vector<56x16xf32>
    %119 = vector.broadcast %33 : vector<56x1xf32> to vector<56x16xf32>
    %120 = arith.mulf %118, %119 : vector<56x16xf32>
    %c0_88 = arith.constant 0 : index
    %c0_89 = arith.constant 0 : index
    %121 = vector.load %arg12[%c0_88, %c0_89] : memref<56x16xf32, #tpu.memory_space<vmem>>, vector<56x16xf32>
    tpu.vector_store %arg12[%c0_88, %c0_89], %120 {strides = array<i32>} : memref<56x16xf32, #tpu.memory_space<vmem>>, vector<56x16xf32>,
    %c7_90 = arith.constant 7 : index
    %c0_91 = arith.constant 0 : index
    %122 = vector.load %arg12[%c7_90, %c0_91] : memref<56x16xf32, #tpu.memory_space<vmem>>, vector<28x16xf32>
    %123 = arith.truncf %122 : vector<28x16xf32> to vector<28x16xbf16>
    %c0_92 = arith.constant 0 : index
    %c0_93 = arith.constant 0 : index
    %124 = vector.load %arg13[%c0_92, %c0_93] : memref<28x144xbf16, #tpu.memory_space<vmem>>, vector<28x16xbf16>
    tpu.vector_store %arg13[%c0_92, %c0_93], %123 {strides = array<i32>} : memref<28x144xbf16, #tpu.memory_space<vmem>>, vector<28x16xbf16>,
    %c8_94 = arith.constant 8 : index
    %c0_95 = arith.constant 0 : index
    %125 = vector.load %arg12[%c8_94, %c0_95] : memref<56x16xf32, #tpu.memory_space<vmem>>, vector<28x16xf32>
    %126 = arith.truncf %125 : vector<28x16xf32> to vector<28x16xbf16>
    %c0_96 = arith.constant 0 : index
    %c16_97 = arith.constant 16 : index
    %127 = vector.load %arg13[%c0_96, %c16_97] : memref<28x144xbf16, #tpu.memory_space<vmem>>, vector<28x16xbf16>
    tpu.vector_store %arg13[%c0_96, %c16_97], %126 {strides = array<i32>} : memref<28x144xbf16, #tpu.memory_space<vmem>>, vector<28x16xbf16>,
    %c9_98 = arith.constant 9 : index
    %c0_99 = arith.constant 0 : index
    %128 = vector.load %arg12[%c9_98, %c0_99] : memref<56x16xf32, #tpu.memory_space<vmem>>, vector<28x16xf32>
    %129 = arith.truncf %128 : vector<28x16xf32> to vector<28x16xbf16>
    %c0_100 = arith.constant 0 : index
    %c32_101 = arith.constant 32 : index
    %130 = vector.load %arg13[%c0_100, %c32_101] : memref<28x144xbf16, #tpu.memory_space<vmem>>, vector<28x16xbf16>
    tpu.vector_store %arg13[%c0_100, %c32_101], %129 {strides = array<i32>} : memref<28x144xbf16, #tpu.memory_space<vmem>>, vector<28x16xbf16>,
    %c15_102 = arith.constant 15 : index
    %c0_103 = arith.constant 0 : index
    %131 = vector.load %arg12[%c15_102, %c0_103] : memref<56x16xf32, #tpu.memory_space<vmem>>, vector<28x16xf32>
    %132 = arith.truncf %131 : vector<28x16xf32> to vector<28x16xbf16>
    %c0_104 = arith.constant 0 : index
    %c48_105 = arith.constant 48 : index
    %133 = vector.load %arg13[%c0_104, %c48_105] : memref<28x144xbf16, #tpu.memory_space<vmem>>, vector<28x16xbf16>
    tpu.vector_store %arg13[%c0_104, %c48_105], %132 {strides = array<i32>} : memref<28x144xbf16, #tpu.memory_space<vmem>>, vector<28x16xbf16>,
    %c16_106 = arith.constant 16 : index
    %c0_107 = arith.constant 0 : index
    %134 = vector.load %arg12[%c16_106, %c0_107] : memref<56x16xf32, #tpu.memory_space<vmem>>, vector<28x16xf32>
    %135 = arith.truncf %134 : vector<28x16xf32> to vector<28x16xbf16>
    %c0_108 = arith.constant 0 : index
    %c64_109 = arith.constant 64 : index
    %136 = vector.load %arg13[%c0_108, %c64_109] : memref<28x144xbf16, #tpu.memory_space<vmem>>, vector<28x16xbf16>
    tpu.vector_store %arg13[%c0_108, %c64_109], %135 {strides = array<i32>} : memref<28x144xbf16, #tpu.memory_space<vmem>>, vector<28x16xbf16>,
    %c17_110 = arith.constant 17 : index
    %c0_111 = arith.constant 0 : index
    %137 = vector.load %arg12[%c17_110, %c0_111] : memref<56x16xf32, #tpu.memory_space<vmem>>, vector<28x16xf32>
    %138 = arith.truncf %137 : vector<28x16xf32> to vector<28x16xbf16>
    %c0_112 = arith.constant 0 : index
    %c80_113 = arith.constant 80 : index
    %139 = vector.load %arg13[%c0_112, %c80_113] : memref<28x144xbf16, #tpu.memory_space<vmem>>, vector<28x16xbf16>
    tpu.vector_store %arg13[%c0_112, %c80_113], %138 {strides = array<i32>} : memref<28x144xbf16, #tpu.memory_space<vmem>>, vector<28x16xbf16>,
    %c23_114 = arith.constant 23 : index
    %c0_115 = arith.constant 0 : index
    %140 = vector.load %arg12[%c23_114, %c0_115] : memref<56x16xf32, #tpu.memory_space<vmem>>, vector<28x16xf32>
    %141 = arith.truncf %140 : vector<28x16xf32> to vector<28x16xbf16>
    %c0_116 = arith.constant 0 : index
    %c96_117 = arith.constant 96 : index
    %142 = vector.load %arg13[%c0_116, %c96_117] : memref<28x144xbf16, #tpu.memory_space<vmem>>, vector<28x16xbf16>
    tpu.vector_store %arg13[%c0_116, %c96_117], %141 {strides = array<i32>} : memref<28x144xbf16, #tpu.memory_space<vmem>>, vector<28x16xbf16>,
    %c24_118 = arith.constant 24 : index
    %c0_119 = arith.constant 0 : index
    %143 = vector.load %arg12[%c24_118, %c0_119] : memref<56x16xf32, #tpu.memory_space<vmem>>, vector<28x16xf32>
    %144 = arith.truncf %143 : vector<28x16xf32> to vector<28x16xbf16>
    %c0_120 = arith.constant 0 : index
    %c112_121 = arith.constant 112 : index
    %145 = vector.load %arg13[%c0_120, %c112_121] : memref<28x144xbf16, #tpu.memory_space<vmem>>, vector<28x16xbf16>
    tpu.vector_store %arg13[%c0_120, %c112_121], %144 {strides = array<i32>} : memref<28x144xbf16, #tpu.memory_space<vmem>>, vector<28x16xbf16>,
    %c25_122 = arith.constant 25 : index
    %c0_123 = arith.constant 0 : index
    %146 = vector.load %arg12[%c25_122, %c0_123] : memref<56x16xf32, #tpu.memory_space<vmem>>, vector<28x16xf32>
    %147 = arith.truncf %146 : vector<28x16xf32> to vector<28x16xbf16>
    %c0_124 = arith.constant 0 : index
    %c128_125 = arith.constant 128 : index
    %148 = vector.load %arg13[%c0_124, %c128_125] : memref<28x144xbf16, #tpu.memory_space<vmem>>, vector<28x16xbf16>
    tpu.vector_store %arg13[%c0_124, %c128_125], %147 {strides = array<i32>} : memref<28x144xbf16, #tpu.memory_space<vmem>>, vector<28x16xbf16>,
    %c0_126 = arith.constant 0 : index
    %c0_127 = arith.constant 0 : index
    %149 = vector.load %arg13[%c0_126, %c0_127] : memref<28x144xbf16, #tpu.memory_space<vmem>>, vector<28x144xbf16>
    %c1_128 = arith.constant 1 : index
    %c0_129 = arith.constant 0 : index
    %c0_130 = arith.constant 0 : index
    %150 = vector.load %arg7[%c1_128, %c0_129, %c0_130] : memref<2x144x8xbf16, #tpu.memory_space<vmem>>, vector<1x144x8xbf16>
    %151 = vector.shape_cast %150 : vector<1x144x8xbf16> to vector<144x8xbf16>
    %cst_131 = arith.constant dense<0.000000e+00> : vector<28x8xf32>
    %152 = tpu.matmul %149, %151, %cst_131 {dimension_numbers = #tpu.dot_dimension_numbers<[1], [0], [0], [1], [0, 0, 1, 1], [], []>} : vector<28x144xbf16>, vector<144x8xbf16>, vector<28x8xf32> -> vector<28x8xf32>
    %c16_132 = arith.constant 16 : index
    %c24_133 = arith.constant 24 : index
    %153 = vector.load %arg11[%c16_132, %c24_133] : memref<56x32xf32, #tpu.memory_space<vmem>>, vector<28x8xf32>
    tpu.vector_store %arg11[%c16_132, %c24_133], %152 {strides = array<i32>} : memref<56x32xf32, #tpu.memory_space<vmem>>, vector<28x8xf32>,
    %c16_134 = arith.constant 16 : index
    %c0_135 = arith.constant 0 : index
    %154 = vector.load %arg11[%c16_134, %c0_135] : memref<56x32xf32, #tpu.memory_space<vmem>>, vector<28x32xf32>
    %c0_136 = arith.constant 0 : index
    %c0_137 = arith.constant 0 : index
    %155 = vector.load %arg8[%c0_136, %c0_137] : memref<1x32xf32, #tpu.memory_space<vmem>>, vector<1x32xf32>
    %156 = vector.broadcast %155 : vector<1x32xf32> to vector<28x32xf32>
    %157 = arith.mulf %154, %156 : vector<28x32xf32>
    %c0_138 = arith.constant 0 : index
    %c0_139 = arith.constant 0 : index
    %158 = vector.load %arg9[%c0_138, %c0_139] : memref<1x32xf32, #tpu.memory_space<vmem>>, vector<1x32xf32>
    %159 = vector.broadcast %158 : vector<1x32xf32> to vector<28x32xf32>
    %160 = arith.addf %157, %159 : vector<28x32xf32>
    %c0_140 = arith.constant 0 : index
    %c0_141 = arith.constant 0 : index
    %161 = vector.load %arg10[%c0_140, %c0_141] : memref<32x32xf32, #tpu.memory_space<vmem>>, vector<28x32xf32>
    tpu.vector_store %arg10[%c0_140, %c0_141], %160 {strides = array<i32>} : memref<32x32xf32, #tpu.memory_space<vmem>>, vector<28x32xf32>,
    return
  }
  func.func @transform_0(%arg0: i32) -> (i32, i32) {
    %c0_i32 = arith.constant 0 : i32
    %c0_i32_0 = arith.constant 0 : i32
    return %arg0, %c0_i32 : i32, i32
  }
  func.func @transform_1(%arg0: i32) -> (i32, i32, i32) {
    %c0_i32 = arith.constant 0 : i32
    %c0_i32_0 = arith.constant 0 : i32
    %c0_i32_1 = arith.constant 0 : i32
    %c0_i32_2 = arith.constant 0 : i32
    return %c0_i32, %c0_i32_0, %c0_i32_1 : i32, i32, i32
  }
  func.func @transform_2(%arg0: i32) -> (i32, i32, i32) {
    %c0_i32 = arith.constant 0 : i32
    %c0_i32_0 = arith.constant 0 : i32
    %c0_i32_1 = arith.constant 0 : i32
    %c0_i32_2 = arith.constant 0 : i32
    return %c0_i32, %c0_i32_0, %c0_i32_1 : i32, i32, i32
  }
  func.func @transform_3(%arg0: i32) -> (i32, i32, i32) {
    %c0_i32 = arith.constant 0 : i32
    %c0_i32_0 = arith.constant 0 : i32
    %c0_i32_1 = arith.constant 0 : i32
    %c0_i32_2 = arith.constant 0 : i32
    return %c0_i32, %c0_i32_0, %c0_i32_1 : i32, i32, i32
  }
  func.func @transform_4(%arg0: i32) -> (i32, i32, i32) {
    %c0_i32 = arith.constant 0 : i32
    %c0_i32_0 = arith.constant 0 : i32
    %c0_i32_1 = arith.constant 0 : i32
    %c0_i32_2 = arith.constant 0 : i32
    return %c0_i32, %c0_i32_0, %c0_i32_1 : i32, i32, i32
  }
  func.func @transform_5(%arg0: i32) -> (i32, i32, i32) {
    %c0_i32 = arith.constant 0 : i32
    %c0_i32_0 = arith.constant 0 : i32
    %c0_i32_1 = arith.constant 0 : i32
    %c0_i32_2 = arith.constant 0 : i32
    return %c0_i32, %c0_i32_0, %c0_i32_1 : i32, i32, i32
  }
  func.func @transform_6(%arg0: i32) -> (i32, i32, i32) {
    %c0_i32 = arith.constant 0 : i32
    %c0_i32_0 = arith.constant 0 : i32
    %c0_i32_1 = arith.constant 0 : i32
    %c0_i32_2 = arith.constant 0 : i32
    return %c0_i32, %c0_i32_0, %c0_i32_1 : i32, i32, i32
  }
  func.func @transform_7(%arg0: i32) -> (i32, i32) {
    %c0_i32 = arith.constant 0 : i32
    %c0_i32_0 = arith.constant 0 : i32
    %c0_i32_1 = arith.constant 0 : i32
    return %c0_i32, %c0_i32_0 : i32, i32
  }
  func.func @transform_8(%arg0: i32) -> (i32, i32) {
    %c0_i32 = arith.constant 0 : i32
    %c0_i32_0 = arith.constant 0 : i32
    %c0_i32_1 = arith.constant 0 : i32
    return %c0_i32, %c0_i32_0 : i32, i32
  }
  func.func @transform_9(%arg0: i32) -> (i32, i32) {
    %c0_i32 = arith.constant 0 : i32
    %c0_i32_0 = arith.constant 0 : i32
    return %arg0, %c0_i32 : i32, i32
  }
}

</mosaic_0001>

<bundles_post_ra>
// kernel: _forward.3
= control target key start
LH: loop header
LB: loop body
LE: loop exit
PB: predicated region body
PF: predicated region fallthrough
CT: control target
= control target key end

     0   :  { %s1069_s15 = smov 0   ;;  %s1313_s0 = inlined_call_operand.vmem [shape: bf16[512,147], index: 0, kind: input, shape index: {}]   ;;  %s1314_s1 = inlined_call_operand.vmem [shape: bf16[147,16], index: 1, kind: input, shape index: {}]   ;;  %s1315_s2 = inlined_call_operand.vmem [shape: f32[1,16], index: 2, kind: input, shape index: {}]   ;;  %s1316_s3 = inlined_call_operand.vmem [shape: f32[1,16], index: 3, kind: input, shape index: {}]   ;;  %s1317_s4 = inlined_call_operand.vmem [shape: f32[512,16], index: 4, kind: output, shape index: {}]  }
   0x1 LB: > { %s873_s16 = sadd.s32 4294967295, %s1040_s15   ;;  %p877_p0 = scmp.ge.s32.totalorder %s1040_s15, 1  ;;  %s1040_s15 = sphi %s1069_s15, %s14_s15  }
   0x2   : > { %p164_p1 = scmp.lt.s32.totalorder %s1040_s15, 3 }
   0x4   : > { %p165_p2 = pnand %p877_p0, %p164_p1 }
   0x5   : > { %v976_v0 = vld [vmem:[%s1314_s1] sm:$0xff] (!%p165_p2)   ;;  %v1042_v1 = vmov (!%p165_p2), 0   ;;  %v977_v2 = vld [vmem:[%s1314_s1 + $0x8] sm:$0xff] (!%p165_p2)   ;;  %v978_v3 = vld [vmem:[%s1314_s1 + $0x10] sm:$0xff] (!%p165_p2)   ;;  %s878_s23 = sshll.u32 (!%p165_p2), %s873_s16, 5  ;;  %vm457_vm0 = vcmask (!%p165_p2), 154624  }
   0x6   : > { %168 = sbr.rel (%p165_p2) target bundleno = 323 (0x143), region = 36  ;;  %513 = vmatprep.subr.bf16.mxu0 (!%p165_p2), %v1042_v1  ;;  %946 = vmatprep.subr.bf16.mxu1 (!%p165_p2), %v1042_v1  ;;  %p192_p3 = scmp.lt.s32.totalorder (!%p165_p2), %s878_s23, 63  ;;  %v979_v4 = vld [vmem:[%s1314_s1 + $0x18] sm:$0xff] (!%p165_p2)   ;;  %v980_v5 = vld [vmem:[%s1314_s1 + $0x20] sm:$0xff] (!%p165_p2)   ;;  %v981_v8 = vld [vmem:[%s1314_s1 + $0x28] sm:$0xff] (!%p165_p2)   ;;  %vm506_vm1 = vcmask (!%p165_p2), 1040384  }
   0x7   : > { %514 = vmatpush1.bf16.msra.mxu0 (!%p165_p2), %v976_v0  ;;  %956 = vmatpush1.bf16.msra.mxu1 (!%p165_p2), %v976_v0  ;;  %v982_v9 = vld [vmem:[%s1314_s1 + $0x30] sm:$0xff] (!%p165_p2)   ;;  %v983_v10 = vld [vmem:[%s1314_s1 + $0x38] sm:$0xff] (!%p165_p2)   ;;  %vm507_vm2 = vcmask (!%p165_p2), 1041408   ;;  %v1043_v11 = vmov (!%p165_p2), 65535   ;;  %v984_v13 = vld [vmem:[%s1314_s1 + $0x40] sm:$0xff] (!%p165_p2)   ;;  %vm784_vm3 = vcmask (!%p165_p2), 130048  }
   0x8   : > { %515 = vmatprep.subr.bf16.mxu0 (!%p165_p2), %v1042_v1  ;;  %947 = vmatprep.subr.bf16.mxu1 (!%p165_p2), %v1042_v1  ;;  %v508_v12 = vsel (!%p165_p2), %vm506_vm1, 4294967295, %v1043_v11  ;;  %v985_v14 = vld [vmem:[%s1314_s1 + $0x48] ss:$0 sps:$4 sm:$0x33] (!%p165_p2)   ;;  %v1168_v47 = vld [vmem:[%s1315_s2] ss:$0 sm:$0xff] (!%p165_p2) }
   0x9   : > { %v509_v15 = vsel (!%p165_p2), %vm507_vm2, %v508_v12, 0  ;;  %v1173_v49 = vld [vmem:[%s1316_s3] ss:$0 sm:$0xff] (!%p165_p2) }
   0xa   : > { %v511_v16 = vand.u32 (!%p165_p2), %v985_v14, %v509_v15 }
   0xb   : > { %516 = vmatpush1.bf16.msra.mxu0 (!%p165_p2), %v977_v2  ;;  %957 = vmatpush1.bf16.msra.mxu1 (!%p165_p2), %v977_v2 }
   0xc   : > { %517 = vmatprep.subr.bf16.mxu0 (!%p165_p2), %v1042_v1  ;;  %948 = vmatprep.subr.bf16.mxu1 (!%p165_p2), %v1042_v1 }
   0xd   : > { %s1319_s23 = smov (!%p192_p3, %s878_s23), 63 }
   0xe   : > { %s945_s26 = sshll.u32 %s1319_s23, 3 }
   0xf   : > { %518 = vmatpush1.bf16.msra.mxu0 %v978_v3  ;;  %958 = vmatpush1.bf16.msra.mxu1 %v978_v3  ;;  %s1097_s29 = scalar_lea.vmem %s1313_s0, %s945_s26  ;;  %s1186_s24 = scalar_lea.vmem %s1317_s4, %s945_s26 }
  0x10   : > { %519 = vmatprep.subr.bf16.mxu0 %v1042_v1  ;;  %949 = vmatprep.subr.bf16.mxu1 %v1042_v1  ;;  %v988_v6 = vld [vmem:[%s1097_s29 + $0x4] ss:$8 sps:$4 sm:$0xff]   ;;  %v986_v17 = vld [vmem:[%s1097_s29] ss:$8 sps:$4 sm:$0xff]   ;;  %v992_v19 = vld [vmem:[%s1097_s29 + $0x14] ss:$8 sps:$4 sm:$0xff]  }
  0x11   : > { %v991_v7 = vld [vmem:[%s1097_s29 + $0x84] ss:$8 sps:$4 sm:$0xff]   ;;  %925 = vmatprep.mubr.msk.bf16.mxu0 %vm457_vm0, %v988_v6  ;;  %v989_v18 = vld [vmem:[%s1097_s29 + $0x80] ss:$8 sps:$4 sm:$0xff]   ;;  %v994_v20 = vld [vmem:[%s1097_s29 + $0x94] ss:$8 sps:$4 sm:$0xff]  }
  0x12   : > { %933 = vmatprep.mubr.msk.bf16.mxu1 %vm457_vm0, %v991_v7  ;;  %v996_v21 = vld [vmem:[%s1097_s29 + $0x10] ss:$8 sps:$4 sm:$0xff]   ;;  %v998_v23 = vld [vmem:[%s1097_s29 + $0x24] ss:$8 sps:$4 sm:$0xff]   ;;  %v1002_v25 = vld [vmem:[%s1097_s29 + $0x20] ss:$8 sps:$4 sm:$0xff]  }
  0x13   : > { %520 = vmatpush1.bf16.msra.mxu0 %v979_v4  ;;  %959 = vmatpush1.bf16.msra.mxu1 %v979_v4  ;;  %v997_v22 = vld [vmem:[%s1097_s29 + $0x90] ss:$8 sps:$4 sm:$0xff]   ;;  %v1000_v24 = vld [vmem:[%s1097_s29 + $0xa4] ss:$8 sps:$4 sm:$0xff]   ;;  %v1003_v26 = vld [vmem:[%s1097_s29 + $0xa0] ss:$8 sps:$4 sm:$0xff]  }
  0x14   : > { %521 = vmatprep.subr.bf16.mxu0 %v1042_v1  ;;  %950 = vmatprep.subr.bf16.mxu1 %v1042_v1  ;;  %v1004_v27 = vld [vmem:[%s1097_s29 + $0x34] ss:$8 sps:$4 sm:$0xff]   ;;  %v1008_v29 = vld [vmem:[%s1097_s29 + $0x30] ss:$8 sps:$4 sm:$0xff]   ;;  %v1010_v31 = vld [vmem:[%s1097_s29 + $0x44] ss:$8 sps:$4 sm:$0xff]  }
  0x15   : > { %v1006_v28 = vld [vmem:[%s1097_s29 + $0xb4] ss:$8 sps:$4 sm:$0xff]   ;;  %v1009_v30 = vld [vmem:[%s1097_s29 + $0xb0] ss:$8 sps:$4 sm:$0xff]   ;;  %v1012_v32 = vld [vmem:[%s1097_s29 + $0xc4] ss:$8 sps:$4 sm:$0xff]  }
  0x16   : > { %v1014_v33 = vld [vmem:[%s1097_s29 + $0x40] ss:$8 sps:$4 sm:$0xff]   ;;  %v1016_v35 = vld [vmem:[%s1097_s29 + $0x54] ss:$8 sps:$4 sm:$0xff]   ;;  %v1020_v37 = vld [vmem:[%s1097_s29 + $0x50] ss:$8 sps:$4 sm:$0xff]  }
  0x17   : > { %522 = vmatpush1.bf16.msra.mxu0 %v980_v5  ;;  %960 = vmatpush1.bf16.msra.mxu1 %v980_v5  ;;  %v1015_v34 = vld [vmem:[%s1097_s29 + $0xc0] ss:$8 sps:$4 sm:$0xff]   ;;  %v1018_v36 = vld [vmem:[%s1097_s29 + $0xd4] ss:$8 sps:$4 sm:$0xff]   ;;  %v1021_v38 = vld [vmem:[%s1097_s29 + $0xd0] ss:$8 sps:$4 sm:$0xff]  }
  0x18   : > { %523 = vmatprep.subr.bf16.mxu0 %v1042_v1  ;;  %951 = vmatprep.subr.bf16.mxu1 %v1042_v1  ;;  %v1022_v39 = vld [vmem:[%s1097_s29 + $0x64] ss:$8 sps:$4 sm:$0xff]   ;;  %v1026_v41 = vld [vmem:[%s1097_s29 + $0x60] ss:$8 sps:$4 sm:$0xff]   ;;  %v1028_v43 = vld [vmem:[%s1097_s29 + $0x74] ss:$8 sps:$4 sm:$0xff]  }
  0x19   : > { %v1024_v40 = vld [vmem:[%s1097_s29 + $0xe4] ss:$8 sps:$4 sm:$0xff]   ;;  %v1027_v42 = vld [vmem:[%s1097_s29 + $0xe0] ss:$8 sps:$4 sm:$0xff]   ;;  %v1030_v44 = vld [vmem:[%s1097_s29 + $0xf4] ss:$8 sps:$4 sm:$0xff]  }
  0x1a   : > { %v1032_v45 = vld [vmem:[%s1097_s29 + $0x70] ss:$8 sps:$4 sm:$0xff]  }
  0x1b   : > { %524 = vmatpush1.bf16.msra.mxu0 %v981_v8  ;;  %961 = vmatpush1.bf16.msra.mxu1 %v981_v8  ;;  %v1033_v46 = vld [vmem:[%s1097_s29 + $0xf0] ss:$8 sps:$4 sm:$0xff]  }
  0x1c   : > { %525 = vmatprep.subr.bf16.mxu0 %v1042_v1  ;;  %952 = vmatprep.subr.bf16.mxu1 %v1042_v1 }
  0x1f   : > { %526 = vmatpush1.bf16.msra.mxu0 %v982_v9  ;;  %962 = vmatpush1.bf16.msra.mxu1 %v982_v9 }
  0x20   : > { %527 = vmatprep.subr.bf16.mxu0 %v1042_v1  ;;  %953 = vmatprep.subr.bf16.mxu1 %v1042_v1 }
  0x23   : > { %528 = vmatpush1.bf16.msra.mxu0 %v983_v10  ;;  %963 = vmatpush1.bf16.msra.mxu1 %v983_v10 }
  0x24   : > { %529 = vmatprep.subr.bf16.mxu0 %v1042_v1  ;;  %954 = vmatprep.subr.bf16.mxu1 %v1042_v1 }
  0x27   : > { %530 = vmatpush1.bf16.msra.mxu0 %v984_v13  ;;  %964 = vmatpush1.bf16.msra.mxu1 %v984_v13 }
  0x28   : > { %531 = vmatprep.subr.bf16.mxu0 %v1042_v1  ;;  %955 = vmatprep.subr.bf16.mxu1 %v1042_v1 }
  0x2b   : > { %532 = vmatpush1.bf16.msra.mxu0 %v511_v16  ;;  %965 = vmatpush1.bf16.msra.mxu1 %v511_v16 }
  0x2e   : > { %546 = vmatmul.mubr.bf16.vlgmr.msra.gmra.mrb[0].mxu0 %v986_v17  ;;  %610 = vmatmul.mubr.bf16.vlgmr.msra.gmra.mrb[0].mxu1 %v989_v18 }
  0x2f   : > { %926 = vmatprep.mubr.msk.bf16.mxu0 %vm457_vm0, %v992_v19  ;;  %934 = vmatprep.mubr.msk.bf16.mxu1 %vm457_vm0, %v994_v20 }
  0x36   : > { %554 = vmatmul.mubr.bf16.gmra.mrb[4].mxu0 %v996_v21  ;;  %618 = vmatmul.mubr.bf16.gmra.mrb[4].mxu1 %v997_v22 }
  0x37   : > { %927 = vmatprep.mubr.msk.bf16.mxu0 %vm457_vm0, %v998_v23  ;;  %935 = vmatprep.mubr.msk.bf16.mxu1 %vm457_vm0, %v1000_v24 }
  0x3e   : > { %562 = vmatmul.mubr.bf16.gmra.mrb[8].mxu0 %v1002_v25  ;;  %626 = vmatmul.mubr.bf16.gmra.mrb[8].mxu1 %v1003_v26 }
  0x3f   : > { %928 = vmatprep.mubr.msk.bf16.mxu0 %vm457_vm0, %v1004_v27  ;;  %936 = vmatprep.mubr.msk.bf16.mxu1 %vm457_vm0, %v1006_v28 }
  0x46   : > { %570 = vmatmul.mubr.bf16.gmra.mrb[12].mxu0 %v1008_v29  ;;  %634 = vmatmul.mubr.bf16.gmra.mrb[12].mxu1 %v1009_v30 }
  0x47   : > { %929 = vmatprep.mubr.msk.bf16.mxu0 %vm457_vm0, %v1010_v31  ;;  %937 = vmatprep.mubr.msk.bf16.mxu1 %vm457_vm0, %v1012_v32 }
  0x4e   : > { %578 = vmatmul.mubr.bf16.gmra.mrb[16].mxu0 %v1014_v33  ;;  %642 = vmatmul.mubr.bf16.gmra.mrb[16].mxu1 %v1015_v34 }
  0x4f   : > { %930 = vmatprep.mubr.msk.bf16.mxu0 %vm457_vm0, %v1016_v35  ;;  %938 = vmatprep.mubr.msk.bf16.mxu1 %vm457_vm0, %v1018_v36 }
  0x56   : > { %586 = vmatmul.mubr.bf16.gmra.mrb[20].mxu0 %v1020_v37  ;;  %650 = vmatmul.mubr.bf16.gmra.mrb[20].mxu1 %v1021_v38 }
  0x57   : > { %931 = vmatprep.mubr.msk.bf16.mxu0 %vm457_vm0, %v1022_v39  ;;  %939 = vmatprep.mubr.msk.bf16.mxu1 %vm457_vm0, %v1024_v40 }
  0x5e   : > { %594 = vmatmul.mubr.bf16.gmra.mrb[24].mxu0 %v1026_v41  ;;  %658 = vmatmul.mubr.bf16.gmra.mrb[24].mxu1 %v1027_v42 }
  0x5f   : > { %932 = vmatprep.mubr.msk.bf16.mxu0 %vm457_vm0, %v1028_v43  ;;  %940 = vmatprep.mubr.msk.bf16.mxu1 %vm457_vm0, %v1030_v44 }
  0x66   : > { %602 = vmatmul.mubr.bf16.gmra.mrb[28].mxu0 %v1032_v45  ;;  %666 = vmatmul.mubr.bf16.gmra.mrb[28].mxu1 %v1033_v46 }
 0x101   : > { %v547_v48 = vpop.f32.mrb[0].mxu0  ;;  %v611_v50 = vpop.f32.mrb[0].mxu1 }
 0x102   : > { %v681_v51 = vmul.f32 %v1168_v47, %v547_v48  ;;  %v697_v52 = vmul.f32 %v1168_v47, %v611_v50  ;;  %v549_v53 = vpop.f32.mrb[1].mxu0  ;;  %v613_v54 = vpop.f32.mrb[1].mxu1 }
 0x103   : > { %v550_v55 = vpop.f32.mrb[2].mxu0  ;;  %v614_v56 = vpop.f32.mrb[2].mxu1 }
 0x104   : > { %v720_v57 = vadd.f32 %v1173_v49, %v681_v51  ;;  %v736_v58 = vadd.f32 %v1173_v49, %v697_v52  ;;  %v682_v59 = vmul.f32 %v1168_v47, %v550_v55  ;;  %v698_v60 = vmul.f32 %v1168_v47, %v614_v56  ;;  %v552_v61 = vpop.f32.mrb[3].mxu0  ;;  %v616_v62 = vpop.f32.mrb[3].mxu1 }
 0x106   : > { %v752_v63 = vmax.f32 %v720_v57, 0.0  ;;  %v768_v0 = vmax.f32 %v736_v58, 0.0  ;;  %v721_v1 = vadd.f32 %v1173_v49, %v682_v59  ;;  %v737_v2 = vadd.f32 %v1173_v49, %v698_v60 }
 0x108   : > { %785 = vst.msk [vmem:[%s1186_s24] sm:$0xff] %vm784_vm3, %v752_v63  ;;  %801 = vst.msk [vmem:[%s1186_s24 + $0x80] sm:$0xff] %vm784_vm3, %v768_v0  ;;  %v753_v3 = vmax.f32 %v721_v1, 0.0  ;;  %v769_v4 = vmax.f32 %v737_v2, 0.0 }
 0x109   : > { %v555_v5 = vpop.f32.mrb[4].mxu0  ;;  %v619_v6 = vpop.f32.mrb[4].mxu1 }
 0x10a   : > { %786 = vst.msk [vmem:[%s1186_s24 + $0x8] sm:$0xff] %vm784_vm3, %v753_v3  ;;  %802 = vst.msk [vmem:[%s1186_s24 + $0x88] sm:$0xff] %vm784_vm3, %v769_v4  ;;  %v683_v7 = vmul.f32 %v1168_v47, %v555_v5  ;;  %v699_v8 = vmul.f32 %v1168_v47, %v619_v6  ;;  %v557_v9 = vpop.f32.mrb[5].mxu0  ;;  %v621_v10 = vpop.f32.mrb[5].mxu1 }
 0x10b   : > { %v558_v11 = vpop.f32.mrb[6].mxu0  ;;  %v622_v12 = vpop.f32.mrb[6].mxu1 }
 0x10c   : > { %v722_v13 = vadd.f32 %v1173_v49, %v683_v7  ;;  %v738_v14 = vadd.f32 %v1173_v49, %v699_v8  ;;  %v684_v15 = vmul.f32 %v1168_v47, %v558_v11  ;;  %v700_v16 = vmul.f32 %v1168_v47, %v622_v12  ;;  %v560_v17 = vpop.f32.mrb[7].mxu0  ;;  %v624_v18 = vpop.f32.mrb[7].mxu1 }
 0x10e   : > { %v754_v19 = vmax.f32 %v722_v13, 0.0  ;;  %v770_v20 = vmax.f32 %v738_v14, 0.0  ;;  %v723_v21 = vadd.f32 %v1173_v49, %v684_v15  ;;  %v739_v22 = vadd.f32 %v1173_v49, %v700_v16 }
 0x110   : > { %787 = vst.msk [vmem:[%s1186_s24 + $0x10] sm:$0xff] %vm784_vm3, %v754_v19  ;;  %803 = vst.msk [vmem:[%s1186_s24 + $0x90] sm:$0xff] %vm784_vm3, %v770_v20  ;;  %v755_v23 = vmax.f32 %v723_v21, 0.0  ;;  %v771_v24 = vmax.f32 %v739_v22, 0.0 }
 0x111   : > { %v563_v25 = vpop.f32.mrb[8].mxu0  ;;  %v627_v26 = vpop.f32.mrb[8].mxu1 }
 0x112   : > { %788 = vst.msk [vmem:[%s1186_s24 + $0x18] sm:$0xff] %vm784_vm3, %v755_v23  ;;  %804 = vst.msk [vmem:[%s1186_s24 + $0x98] sm:$0xff] %vm784_vm3, %v771_v24  ;;  %v685_v27 = vmul.f32 %v1168_v47, %v563_v25  ;;  %v701_v28 = vmul.f32 %v1168_v47, %v627_v26  ;;  %v565_v29 = vpop.f32.mrb[9].mxu0  ;;  %v629_v30 = vpop.f32.mrb[9].mxu1 }
 0x113   : > { %v566_v31 = vpop.f32.mrb[10].mxu0  ;;  %v630_v32 = vpop.f32.mrb[10].mxu1 }
 0x114   : > { %v724_v33 = vadd.f32 %v1173_v49, %v685_v27  ;;  %v740_v34 = vadd.f32 %v1173_v49, %v701_v28  ;;  %v686_v35 = vmul.f32 %v1168_v47, %v566_v31  ;;  %v702_v36 = vmul.f32 %v1168_v47, %v630_v32  ;;  %v568_v37 = vpop.f32.mrb[11].mxu0  ;;  %v632_v38 = vpop.f32.mrb[11].mxu1 }
 0x116   : > { %v756_v39 = vmax.f32 %v724_v33, 0.0  ;;  %v772_v40 = vmax.f32 %v740_v34, 0.0  ;;  %v725_v41 = vadd.f32 %v1173_v49, %v686_v35  ;;  %v741_v42 = vadd.f32 %v1173_v49, %v702_v36 }
 0x118   : > { %789 = vst.msk [vmem:[%s1186_s24 + $0x20] sm:$0xff] %vm784_vm3, %v756_v39  ;;  %805 = vst.msk [vmem:[%s1186_s24 + $0xa0] sm:$0xff] %vm784_vm3, %v772_v40  ;;  %v757_v43 = vmax.f32 %v725_v41, 0.0  ;;  %v773_v44 = vmax.f32 %v741_v42, 0.0 }
 0x119   : > { %v571_v45 = vpop.f32.mrb[12].mxu0  ;;  %v635_v46 = vpop.f32.mrb[12].mxu1 }
 0x11a   : > { %790 = vst.msk [vmem:[%s1186_s24 + $0x28] sm:$0xff] %vm784_vm3, %v757_v43  ;;  %806 = vst.msk [vmem:[%s1186_s24 + $0xa8] sm:$0xff] %vm784_vm3, %v773_v44  ;;  %v687_v48 = vmul.f32 %v1168_v47, %v571_v45  ;;  %v703_v50 = vmul.f32 %v1168_v47, %v635_v46  ;;  %v573_v51 = vpop.f32.mrb[13].mxu0  ;;  %v637_v52 = vpop.f32.mrb[13].mxu1 }
 0x11b   : > { %v574_v53 = vpop.f32.mrb[14].mxu0  ;;  %v638_v54 = vpop.f32.mrb[14].mxu1 }
 0x11c   : > { %v726_v55 = vadd.f32 %v1173_v49, %v687_v48  ;;  %v742_v56 = vadd.f32 %v1173_v49, %v703_v50  ;;  %v688_v57 = vmul.f32 %v1168_v47, %v574_v53  ;;  %v704_v58 = vmul.f32 %v1168_v47, %v638_v54  ;;  %v576_v59 = vpop.f32.mrb[15].mxu0  ;;  %v640_v60 = vpop.f32.mrb[15].mxu1 }
 0x11e   : > { %v758_v61 = vmax.f32 %v726_v55, 0.0  ;;  %v774_v62 = vmax.f32 %v742_v56, 0.0  ;;  %v727_v63 = vadd.f32 %v1173_v49, %v688_v57  ;;  %v743_v0 = vadd.f32 %v1173_v49, %v704_v58 }
 0x120   : > { %791 = vst.msk [vmem:[%s1186_s24 + $0x30] sm:$0xff] %vm784_vm3, %v758_v61  ;;  %807 = vst.msk [vmem:[%s1186_s24 + $0xb0] sm:$0xff] %vm784_vm3, %v774_v62  ;;  %v759_v1 = vmax.f32 %v727_v63, 0.0  ;;  %v775_v2 = vmax.f32 %v743_v0, 0.0 }
 0x121   : > { %v579_v3 = vpop.f32.mrb[16].mxu0  ;;  %v643_v4 = vpop.f32.mrb[16].mxu1 }
 0x122   : > { %792 = vst.msk [vmem:[%s1186_s24 + $0x38] sm:$0xff] %vm784_vm3, %v759_v1  ;;  %808 = vst.msk [vmem:[%s1186_s24 + $0xb8] sm:$0xff] %vm784_vm3, %v775_v2  ;;  %v689_v5 = vmul.f32 %v1168_v47, %v579_v3  ;;  %v705_v6 = vmul.f32 %v1168_v47, %v643_v4  ;;  %v581_v7 = vpop.f32.mrb[17].mxu0  ;;  %v645_v8 = vpop.f32.mrb[17].mxu1 }
 0x123   : > { %v582_v9 = vpop.f32.mrb[18].mxu0  ;;  %v646_v10 = vpop.f32.mrb[18].mxu1 }
 0x124   : > { %v728_v11 = vadd.f32 %v1173_v49, %v689_v5  ;;  %v744_v12 = vadd.f32 %v1173_v49, %v705_v6  ;;  %v690_v13 = vmul.f32 %v1168_v47, %v582_v9  ;;  %v706_v14 = vmul.f32 %v1168_v47, %v646_v10  ;;  %v584_v15 = vpop.f32.mrb[19].mxu0  ;;  %v648_v16 = vpop.f32.mrb[19].mxu1 }
 0x126   : > { %v760_v17 = vmax.f32 %v728_v11, 0.0  ;;  %v776_v18 = vmax.f32 %v744_v12, 0.0  ;;  %v729_v19 = vadd.f32 %v1173_v49, %v690_v13  ;;  %v745_v20 = vadd.f32 %v1173_v49, %v706_v14 }
 0x128   : > { %793 = vst.msk [vmem:[%s1186_s24 + $0x40] sm:$0xff] %vm784_vm3, %v760_v17  ;;  %809 = vst.msk [vmem:[%s1186_s24 + $0xc0] sm:$0xff] %vm784_vm3, %v776_v18  ;;  %v761_v21 = vmax.f32 %v729_v19, 0.0  ;;  %v777_v22 = vmax.f32 %v745_v20, 0.0 }
 0x129   : > { %v587_v23 = vpop.f32.mrb[20].mxu0  ;;  %v651_v24 = vpop.f32.mrb[20].mxu1 }
 0x12a   : > { %794 = vst.msk [vmem:[%s1186_s24 + $0x48] sm:$0xff] %vm784_vm3, %v761_v21  ;;  %810 = vst.msk [vmem:[%s1186_s24 + $0xc8] sm:$0xff] %vm784_vm3, %v777_v22  ;;  %v691_v25 = vmul.f32 %v1168_v47, %v587_v23  ;;  %v707_v26 = vmul.f32 %v1168_v47, %v651_v24  ;;  %v589_v27 = vpop.f32.mrb[21].mxu0  ;;  %v653_v28 = vpop.f32.mrb[21].mxu1 }
 0x12b   : > { %v590_v29 = vpop.f32.mrb[22].mxu0  ;;  %v654_v30 = vpop.f32.mrb[22].mxu1 }
 0x12c   : > { %v730_v31 = vadd.f32 %v1173_v49, %v691_v25  ;;  %v746_v32 = vadd.f32 %v1173_v49, %v707_v26  ;;  %v692_v33 = vmul.f32 %v1168_v47, %v590_v29  ;;  %v708_v34 = vmul.f32 %v1168_v47, %v654_v30  ;;  %v592_v35 = vpop.f32.mrb[23].mxu0  ;;  %v656_v36 = vpop.f32.mrb[23].mxu1 }
 0x12e   : > { %v762_v37 = vmax.f32 %v730_v31, 0.0  ;;  %v778_v38 = vmax.f32 %v746_v32, 0.0  ;;  %v731_v39 = vadd.f32 %v1173_v49, %v692_v33  ;;  %v747_v40 = vadd.f32 %v1173_v49, %v708_v34 }
 0x130   : > { %795 = vst.msk [vmem:[%s1186_s24 + $0x50] sm:$0xff] %vm784_vm3, %v762_v37  ;;  %811 = vst.msk [vmem:[%s1186_s24 + $0xd0] sm:$0xff] %vm784_vm3, %v778_v38  ;;  %v763_v41 = vmax.f32 %v731_v39, 0.0  ;;  %v779_v42 = vmax.f32 %v747_v40, 0.0 }
 0x131   : > { %v595_v43 = vpop.f32.mrb[24].mxu0  ;;  %v659_v44 = vpop.f32.mrb[24].mxu1 }
 0x132   : > { %796 = vst.msk [vmem:[%s1186_s24 + $0x58] sm:$0xff] %vm784_vm3, %v763_v41  ;;  %812 = vst.msk [vmem:[%s1186_s24 + $0xd8] sm:$0xff] %vm784_vm3, %v779_v42  ;;  %v693_v45 = vmul.f32 %v1168_v47, %v595_v43  ;;  %v709_v46 = vmul.f32 %v1168_v47, %v659_v44  ;;  %v597_v48 = vpop.f32.mrb[25].mxu0  ;;  %v661_v50 = vpop.f32.mrb[25].mxu1 }
 0x133   : > { %v598_v51 = vpop.f32.mrb[26].mxu0  ;;  %v662_v52 = vpop.f32.mrb[26].mxu1 }
 0x134   : > { %v732_v53 = vadd.f32 %v1173_v49, %v693_v45  ;;  %v748_v54 = vadd.f32 %v1173_v49, %v709_v46  ;;  %v694_v55 = vmul.f32 %v1168_v47, %v598_v51  ;;  %v710_v56 = vmul.f32 %v1168_v47, %v662_v52  ;;  %v600_v57 = vpop.f32.mrb[27].mxu0  ;;  %v664_v58 = vpop.f32.mrb[27].mxu1 }
 0x136   : > { %v764_v59 = vmax.f32 %v732_v53, 0.0  ;;  %v780_v60 = vmax.f32 %v748_v54, 0.0  ;;  %v733_v61 = vadd.f32 %v1173_v49, %v694_v55  ;;  %v749_v62 = vadd.f32 %v1173_v49, %v710_v56 }
 0x138   : > { %797 = vst.msk [vmem:[%s1186_s24 + $0x60] sm:$0xff] %vm784_vm3, %v764_v59  ;;  %813 = vst.msk [vmem:[%s1186_s24 + $0xe0] sm:$0xff] %vm784_vm3, %v780_v60  ;;  %v765_v63 = vmax.f32 %v733_v61, 0.0  ;;  %v781_v0 = vmax.f32 %v749_v62, 0.0 }
 0x139   : > { %v603_v1 = vpop.f32.mrb[28].mxu0  ;;  %v667_v2 = vpop.f32.mrb[28].mxu1 }
 0x13a   : > { %798 = vst.msk [vmem:[%s1186_s24 + $0x68] sm:$0xff] %vm784_vm3, %v765_v63  ;;  %814 = vst.msk [vmem:[%s1186_s24 + $0xe8] sm:$0xff] %vm784_vm3, %v781_v0  ;;  %v695_v3 = vmul.f32 %v1168_v47, %v603_v1  ;;  %v711_v4 = vmul.f32 %v1168_v47, %v667_v2  ;;  %v605_v5 = vpop.f32.mrb[29].mxu0  ;;  %v669_v6 = vpop.f32.mrb[29].mxu1 }
 0x13b   : > { %v606_v7 = vpop.f32.mrb[30].mxu0  ;;  %v670_v8 = vpop.f32.mrb[30].mxu1 }
 0x13c   : > { %v734_v9 = vadd.f32 %v1173_v49, %v695_v3  ;;  %v750_v10 = vadd.f32 %v1173_v49, %v711_v4  ;;  %v696_v11 = vmul.f32 %v1168_v47, %v606_v7  ;;  %v712_v12 = vmul.f32 %v1168_v47, %v670_v8  ;;  %v608_v13 = vpop.f32.mrb[31].mxu0  ;;  %v672_v14 = vpop.f32.mrb[31].mxu1 }
 0x13e   : > { %v766_v15 = vmax.f32 %v734_v9, 0.0  ;;  %v782_v16 = vmax.f32 %v750_v10, 0.0  ;;  %v735_v17 = vadd.f32 %v1173_v49, %v696_v11  ;;  %v751_v18 = vadd.f32 %v1173_v49, %v712_v12 }
 0x140   : > { %799 = vst.msk [vmem:[%s1186_s24 + $0x70] sm:$0xff] %vm784_vm3, %v766_v15  ;;  %815 = vst.msk [vmem:[%s1186_s24 + $0xf0] sm:$0xff] %vm784_vm3, %v782_v16  ;;  %v767_v19 = vmax.f32 %v735_v17, 0.0  ;;  %v783_v20 = vmax.f32 %v751_v18, 0.0 }
 0x142   : > { %800 = vst.msk [vmem:[%s1186_s24 + $0x78] sm:$0xff] %vm784_vm3, %v767_v19  ;;  %816 = vst.msk [vmem:[%s1186_s24 + $0xf8] sm:$0xff] %vm784_vm3, %v783_v20 }
 0x143 PF: > { %s14_s15 = sadd.s32 1, %s1040_s15  }
 0x144   : > { %p11_p4 = scmp.ge.s32.totalorder %s14_s15, 4  }
 0x146   :  { %13 = sbr.rel (!%p11_p4) target bundleno = 1 (0x1), region = 66 }

// kernel: _forward.5
= control target key start
LH: loop header
LB: loop body
LE: loop exit
PB: predicated region body
PF: predicated region fallthrough
CT: control target
= control target key end

     0   :  { %s2212_s30 = smov 0   ;;  %s2826_s0 = inlined_call_operand.vmem [shape: f32[32,16], index: 0, kind: input, shape index: {}]   ;;  %s2827_s1 = inlined_call_operand.vmem [shape: f32[2,1,32], index: 1, kind: input, shape index: {}]   ;;  %s2828_s2 = inlined_call_operand.vmem [shape: f32[2,1,32], index: 2, kind: input, shape index: {}]   ;;  %s2829_s3 = inlined_call_operand.vmem [shape: bf16[2,32,16], index: 3, kind: input, shape index: {}]   ;;  %s2830_s4 = inlined_call_operand.vmem [shape: f32[2,1,16], index: 4, kind: input, shape index: {}]   ;;  %s2831_s5 = inlined_call_operand.vmem [shape: f32[2,1,16], index: 5, kind: input, shape index: {}]   ;;  %s2832_s6 = inlined_call_operand.vmem [shape: bf16[2,144,8], index: 6, kind: input, shape index: {}]   ;;  %s2833_s7 = inlined_call_operand.vmem [shape: f32[1,32], index: 7, kind: input, shape index: {}]   ;;  %s2834_s8 = inlined_call_operand.vmem [shape: f32[1,32], index: 8, kind: input, shape index: {}]   ;;  %s2835_s9 = inlined_call_operand.vmem [shape: f32[64,32], index: 9, kind: output, shape index: {}]  }
   0x1 LB: > { %s1822_s10 = sadd.s32 4294967295, %s2150_s30   ;;  %p1826_p0 = scmp.ge.s32.totalorder %s2150_s30, 1  ;;  %s2150_s30 = sphi %s2212_s30, %s19_s30  }
   0x2   : > { %p288_p1 = scmp.lt.s32.totalorder %s2150_s30, 3 }
   0x4   : > { %p289_p2 = pnand %p1826_p0, %p288_p1 }
   0x5   : > { %v2116_v0 = vld [vmem:[%s2829_s3] sm:$0xff] (!%p289_p2)   ;;  %vm2836_vm0 = vcmask (!%p289_p2), 261120   ;;  %v2117_v1 = vld [vmem:[%s2829_s3 + $0x8] sm:$0xff] (!%p289_p2)   ;;  %v2152_v2 = vmov (!%p289_p2), 0.0   ;;  %s1827_s15 = sshll.u32 (!%p289_p2), %s1822_s10, 1  ;;  %vm2837_vm1 = vcmask (!%p289_p2), 125952   ;;  %v354_v41 = vlaneseq (!%p289_p2) }
   0x6   : > { %292 = sbr.rel (%p289_p2) target bundleno = 1521 (0x5f1), region = 56  ;;  %2074 = vmatprep.subr.bf16.mxu1 (!%p289_p2), %v2116_v0  ;;  %338 = vst.msk [vmem:[#allocation2] sm:$0xff] (!%p289_p2), %vm2836_vm0, %v2152_v2  ;;  %339 = vst.msk [vmem:[#allocation2 + $0x8] sm:$0xff] (!%p289_p2), %vm2836_vm0, %v2152_v2  ;;  %p325_p3 = scmp.lt.s32.totalorder (!%p289_p2), %s1827_s15, 3  ;;  %v1838_v3 = vld [vmem:[%s2827_s1] ss:$0 sm:$0xff] (!%p289_p2) }
   0x7   : > { %340 = vst.msk [vmem:[#allocation2 + $0x10] sm:$0xff] (!%p289_p2), %vm2836_vm0, %v2152_v2  ;;  %341 = vst.msk [vmem:[#allocation2 + $0x18] sm:$0xff] (!%p289_p2), %vm2836_vm0, %v2152_v2  ;;  %2075 = vmatpush3.bf16.msra.mxu1 (!%p289_p2), %v2116_v0  ;;  %v1839_v4 = vld [vmem:[%s2828_s2] ss:$0 sm:$0xff] (!%p289_p2)  ;;  %v355_v42 = vshrl.u32 (!%p289_p2), %v354_v41, 7  ;;  %s2154_s13 = smov (!%p289_p2), 16  }
   0x8   : > { %342 = vst.msk [vmem:[#allocation2 + $0x20] sm:$0xff] (!%p289_p2), %vm2836_vm0, %v2152_v2  ;;  %343 = vst.msk [vmem:[#allocation2 + $0x28] sm:$0xff] (!%p289_p2), %vm2836_vm0, %v2152_v2  ;;  %2076 = vmatprep.subr.bf16.mxu1 (!%p289_p2), %v2117_v1  ;;  %s2155_s16 = smov (!%p289_p2), 32   ;;  %s2156_s17 = smov (!%p289_p2), 64  }
   0x9   : > { %344 = vst.msk [vmem:[#allocation2 + $0x30] sm:$0xff] (!%p289_p2), %vm2836_vm0, %v2152_v2  ;;  %v357_v43 = vadd.s32 (!%p289_p2), 16, %v355_v42  ;;  %v1831_v45 = vadd.s32 (!%p289_p2), 4294967289, %v355_v42  ;;  %v358_v46 = vadd.s32 (!%p289_p2), 24, %v355_v42  ;;  %v356_v48 = vadd.s32 (!%p289_p2), 8, %v355_v42  ;;  %s2158_s21 = smov (!%p289_p2), 80  }
   0xa   : > { %v361_v54 = vadd.s32 (!%p289_p2), 48, %v355_v42  ;;  %v359_v57 = vadd.s32 (!%p289_p2), 32, %v355_v42  ;;  %s2159_s24 = smov (!%p289_p2), 96   ;;  %s2160_s27 = smov (!%p289_p2), 112  }
   0xb   : > { %2077 = vmatpush3.bf16.msra.mxu1 (!%p289_p2), %v2117_v1  ;;  %v1833_v44 = vadd.s32 (!%p289_p2), 4294967289, %v357_v43  ;;  %v369_v49 = vshra.s32 (!%p289_p2), %v1831_v45, 3  ;;  %v1834_v51 = vadd.s32 (!%p289_p2), 4294967289, %v358_v46  ;;  %v1832_v53 = vadd.s32 (!%p289_p2), 4294967289, %v356_v48 }
   0xc   : > { %vm383_vm4 = vcmp.ge.s32.totalorder (!%p289_p2), %v1831_v45, 0  ;;  %v376_v56 = vand.u32 (!%p289_p2), 7, %v1831_v45  ;;  %v1837_v0 = vadd.s32 (!%p289_p2), 4294967289, %v361_v54  ;;  %v360_v1 = vadd.s32 (!%p289_p2), 40, %v355_v42 }
   0xd   : > { %s2942_s15 = smov (!%p325_p3, %s1827_s15), 3  ;;  %v2251_v5 = vld [vmem:[#allocation2] sm:$0xff]  ;;  %v2253_v6 = vld [vmem:[#allocation2 + $0x8] sm:$0xff]  ;;  %v371_v47 = vshra.s32 %v1833_v44, 3  ;;  %v378_v50 = vand.u32 7, %v1833_v44  ;;  %vm390_vm5 = vcmp.ge.s32.totalorder %v369_v49, 1 }
   0xe   : > { %s1828_s20 = sshll.u32 %s2942_s15, 3  ;;  %v467_v8 = vmul.f32 %v1838_v3, %v2251_v5  ;;  %v468_v9 = vmul.f32 %v1838_v3, %v2253_v6  ;;  %v372_v55 = vshra.s32 %v1834_v51, 3  ;;  %vm2274_vm8 = vmand %vm383_vm4, %vm390_vm5  ;;  %vm2278_vm9 = vcmp.le.s32.totalorder %v369_v49, 4 }
   0xf   : > { %s328_s23 = scalar_lea.vmem %s2826_s0, %s1828_s20  ;;  %vm2268_vm2 = vcmp.ge.s32.totalorder %v371_v47, 1  ;;  %vm406_vm3 = vcmp.le.s32.totalorder %v371_v47, 4  ;;  %vm420_vm7 = vcmp.ge.s32.totalorder %v378_v50, 1  ;;  %v370_v60 = vshra.s32 %v1832_v53, 3  ;;  %vm411_vm14 = vmand %vm2274_vm8, %vm2278_vm9  ;;  %s2157_s20 = smov 48  }
  0x10   : > { %v345_v7 = vld [vmem:[%s328_s23] sm:$0xf]  ;;  %v348_v10 = vld [vmem:[%s328_s23 + $0x4] sm:$0xf]  ;;  %v350_v11 = vld [vmem:[%s328_s23 + $0x8] sm:$0xf]  ;;  %v481_v13 = vadd.f32 %v1839_v4, %v467_v8  ;;  %v482_v14 = vadd.f32 %v1839_v4, %v468_v9 }
  0x11   : > { %347 = vst.msk [vmem:[#allocation2 + $0x10] sm:$0xf] %vm2837_vm1, %v345_v7  ;;  %v352_v12 = vld [vmem:[%s328_s23 + $0xc] sm:$0xf]  ;;  %349 = vst.msk [vmem:[#allocation2 + $0x18] sm:$0xf] %vm2837_vm1, %v348_v10 }
  0x12   : > { %351 = vst.msk [vmem:[#allocation2 + $0x20] sm:$0xf] %vm2837_vm1, %v350_v11  ;;  %353 = vst.msk [vmem:[#allocation2 + $0x28] sm:$0xf] %vm2837_vm1, %v352_v12  ;;  %v488_v15 = vmax.f32 %v481_v13, 0.0  ;;  %v489_v16 = vmax.f32 %v482_v14, 0.0 }
  0x13   : > { %v2261_v18 = vld [vmem:[#allocation2 + $0x30] sm:$0xff]  ;;  %vm413_vm6 = vmand %vm2268_vm2, %vm406_vm3  ;;  %vm2286_vm11 = vcmp.le.s32.totalorder %v378_v50, 4  ;;  %v379_v63 = vand.u32 7, %v1834_v51  ;;  %vm2290_vm12 = vcmp.ge.s32.totalorder %v372_v55, 1  ;;  %vm2294_vm13 = vcmp.le.s32.totalorder %v372_v55, 4  ;;  %v2118_v13 = vld [vmem:[%s2832_s6] sm:$0xff]  }
  0x14   : > { %v495_v17 = vpack.c.bf16 %v489_v16, %v488_v15  ;;  %v473_v27 = vmul.f32 %v1838_v3, %v2261_v18  ;;  %vm2282_vm10 = vmand %vm413_vm6, %vm420_vm7  ;;  %vm418_vm15 = vcmp.ge.s32.totalorder %v376_v56, 1  ;;  %v377_v7 = vand.u32 7, %v1832_v53  ;;  %v2335_v16 = vld [vmem:[%s2830_s4] ss:$0 sm:$0xff] }
  0x15   : > { %v1835_v8 = vadd.s32 4294967289, %v359_v57  ;;  %vm441_vm2 = vmand %vm2282_vm10, %vm2286_vm11  ;;  %vm2306_vm3 = vcmp.ge.s32.totalorder %v370_v60, 1  ;;  %vm2310_vm4 = vcmp.le.s32.totalorder %v370_v60, 4  ;;  %vm421_vm6 = vcmp.ge.s32.totalorder %v379_v63, 1 }
  0x16   : > { %2078 = vmatprep.mubr.msk.bf16.mxu1 %vm2836_vm0, %v495_v17  ;;  %v487_v36 = vadd.f32 %v1839_v4, %v473_v27  ;;  %vm414_vm5 = vmand %vm2290_vm12, %vm2294_vm13  ;;  %v375_v11 = vshra.s32 %v1837_v0, 3  ;;  %v2318_v12 = vadd.s32 4294967289, %v360_v1  ;;  %vm2324_vm8 = vcmp.le.s32.totalorder %v376_v56, 4  ;;  %v2123_v56 = vld [vmem:[%s2832_s6 + $0x28] sm:$0xff]  }
  0x17   : > { %vm2320_vm7 = vmand %vm411_vm14, %vm418_vm15  ;;  %v373_v15 = vshra.s32 %v1835_v8, 3  ;;  %vm2341_vm13 = vcmp.le.s32.totalorder %v379_v63, 4  ;;  %v2875_v27 = vmov 0  ;;  %v2153_v17 = vmov 0  }
  0x18   : > { %v455_v19 = vld [vmem:[#allocation2 + $0x10] sm:$0xff]  ;;  %v456_v20 = vld [vmem:[#allocation2 + $0x18] sm:$0xff]  ;;  %v494_v39 = vmax.f32 %v487_v36, 0.0  ;;  %vm412_vm9 = vmand %vm2306_vm3, %vm2310_vm4  ;;  %vm2349_vm15 = vcmp.ge.s32.totalorder %v375_v11, 1  ;;  %vm2353_vm3 = vcmp.le.s32.totalorder %v375_v11, 4  ;;  %1028 = vmatprep.subr.bf16.mxu1 %v2153_v17 }
  0x19   : > { %v469_v21 = vmul.f32 %v1838_v3, %v455_v19  ;;  %v457_v22 = vld [vmem:[#allocation2 + $0x20] sm:$0xff]  ;;  %v458_v23 = vld [vmem:[#allocation2 + $0x28] sm:$0xff]  ;;  %v470_v24 = vmul.f32 %v1838_v3, %v456_v20  ;;  %vm2337_vm12 = vmand %vm414_vm5, %vm421_vm6  ;;  %v382_v20 = vand.u32 7, %v1837_v0  ;;  %vm2367_vm5 = vcmp.le.s32.totalorder %v377_v7, 4 }
  0x1a   : > { %v471_v25 = vmul.f32 %v1838_v3, %v457_v22  ;;  %v472_v26 = vmul.f32 %v1838_v3, %v458_v23  ;;  %v498_v40 = vpack.c.bf16 %v494_v39, %v494_v39  ;;  %v374_v23 = vshra.s32 %v2318_v12, 3 }
  0x1b   : > { %v483_v28 = vadd.f32 %v1839_v4, %v469_v21  ;;  %v484_v29 = vadd.f32 %v1839_v4, %v470_v24  ;;  %v2876_v27 = vsel %vm2367_vm5, 4294967295, %v2875_v27  ;;  %vm2376_vm1 = vcmp.ge.s32.totalorder %v373_v15, 1  ;;  %vm2887_vm5 = vmand %vm2320_vm7, %vm2324_vm8 }
  0x1c   : > { %v485_v30 = vadd.f32 %v1839_v4, %v471_v25  ;;  %v486_v31 = vadd.f32 %v1839_v4, %v472_v26  ;;  %v2361_v25 = vld [vmem:[%s2831_s5] ss:$0 sm:$0xff]  ;;  %vm2397_vm6 = vcmp.ge.s32.totalorder %v382_v20, 1  ;;  %vm2408_vm11 = vcmp.ge.s32.totalorder %v374_v23, 1  ;;  %vm2893_vm7 = vmand %vm2337_vm12, %vm2341_vm13  ;;  %v2119_v26 = vld [vmem:[%s2832_s6 + $0x8] sm:$0xff]  }
  0x1d   : > { %v490_v32 = vmax.f32 %v483_v28, 0.0  ;;  %v491_v33 = vmax.f32 %v484_v29, 0.0  ;;  %v380_v28 = vand.u32 7, %v1835_v8  ;;  %v2428_v46 = vsel %vm2887_vm5, 1.0, %v2152_v2 }
  0x1e   : > { %v492_v34 = vmax.f32 %v485_v30, 0.0  ;;  %v493_v35 = vmax.f32 %v486_v31, 0.0  ;;  %v2452_v51 = vsel %vm2893_vm7, 1.0, %v2152_v2  ;;  %vm2902_vm7 = vcmask 130048  }
  0x1f   : > { %v496_v37 = vpack.c.bf16 %v491_v33, %v490_v32  ;;  %v2879_v32 = vmov 0  ;;  %v2390_v33 = vsel %vm441_vm2, 1.0, %v2152_v2  ;;  %vm2412_vm2 = vcmp.le.s32.totalorder %v374_v23, 4 }
  0x20   : > { %v497_v38 = vpack.c.bf16 %v493_v35, %v492_v34  ;;  %vm422_vm10 = vcmp.ge.s32.totalorder %v380_v28, 1  ;;  %vm416_vm8 = vmand %vm2408_vm11, %vm2412_vm2 }
  0x21   : > { %2079 = vmatmul.mubr.msk.bf16.vlgmr.msra.gmra.mrb[0].mxu1 %vm2836_vm0, %v496_v37  ;;  %v381_v37 = vand.u32 7, %v2318_v12 }
  0x22   : > { %2082 = vmatprep.mubr.msk.bf16.mxu1 %vm2836_vm0, %v497_v38  ;;  %1029 = vmatpush1.bf16.msra.mxu1 %v2118_v13 }
  0x23   : > { %1030 = vmatprep.subr.bf16.mxu1 %v2153_v17 }
  0x26   : > { %1031 = vmatpush1.bf16.msra.mxu1 %v2119_v26 }
  0x27   : > { %1032 = vmatprep.subr.bf16.mxu1 %v2153_v17 }
  0x29   : > { %2083 = vmatmul.mubr.msk.bf16.gmra.mrb[4].mxu1 %vm2836_vm0, %v498_v40  ;;  %vm419_vm0 = vcmp.ge.s32.totalorder %v377_v7, 1 }
  0x2a   : > { %vm2363_vm4 = vmand %vm412_vm9, %vm419_vm0  ;;  %vm2380_vm0 = vcmp.le.s32.totalorder %v373_v15, 4 }
  0x2b   : > { %v2880_v32 = vsel %vm2380_vm0, 4294967295, %v2879_v32  ;;  %vm2888_vm9 = vmand %vm2349_vm15, %vm2353_vm3  ;;  %vm2442_vm0 = vcmp.le.s32.totalorder %v382_v20, 4  ;;  %vm423_vm15 = vcmp.ge.s32.totalorder %v381_v37, 1  ;;  %vm2894_vm3 = vnez %v2876_v27 }
  0x2c   : > { %vm2438_vm14 = vmand %vm2888_vm9, %vm2397_vm6  ;;  %vm2896_vm12 = vnez %v2880_v32  ;;  %vm2477_vm9 = vcmp.le.s32.totalorder %v380_v28, 4 }
  0x2d   : > { %vm2895_vm5 = vmand %vm2363_vm4, %vm2894_vm3 }
  0x2e   : > { %v2466_v55 = vsel %vm2895_vm5, 1.0, %v2152_v2  ;;  %vm2897_vm13 = vmand %vm2376_vm1, %vm2896_vm12  ;;  %vm2913_vm12 = vcmask 125952  }
  0x2f   : > { %vm2473_vm6 = vmand %vm2897_vm13, %vm422_vm10  ;;  %vm2498_vm10 = vcmp.le.s32.totalorder %v381_v37, 4 }
  0x30   : > { %vm445_vm4 = vmand %vm2438_vm14, %vm2442_vm0 }
  0x31   : > { %vm2494_vm1 = vmand %vm416_vm8, %vm423_vm15  ;;  %v2518_v10 = vsel %vm445_vm4, 1.0, %v2152_v2 }
  0x32   : > { %vm2907_vm3 = vmmov %vm2902_vm7 }
  0x33   : > { %vm443_vm5 = vmand %vm2473_vm6, %vm2477_vm9  ;;  %vm664_vm9 = vcmask 123904  }
  0x34   : > { %vm2908_vm11 = vmmov %vm2907_vm3  ;;  %v2530_v15 = vsel %vm443_vm5, 1.0, %v2152_v2  ;;  %vm762_vm5 = vcmask 519552  }
  0x35   : > { %vm2909_vm2 = vmmov %vm2907_vm3 }
  0x36   : > { %vm444_vm8 = vmand %vm2494_vm1, %vm2498_vm10  ;;  %vm694_vm10 = vcmask 257152  }
  0x37   : > { %v2536_v22 = vsel %vm444_vm8, 1.0, %v2152_v2  ;;  %vm2910_vm14 = vmmov %vm2909_vm2  ;;  %vm864_vm8 = vcmask 913152  }
  0x38   : > { %vm2911_vm0 = vmmov %vm2909_vm2 }
  0x39   : > { %vm2912_vm15 = vmmov %vm2911_vm0 }
  0x3a   : > { %vm2914_vm13 = vmmov %vm2913_vm12 }
  0x3b   : > { %vm2915_vm6 = vmmov %vm2913_vm12 }
  0x3c   : > { %vm2916_vm4 = vmmov %vm2915_vm6 }
  0x3d   : > { %vm2918_vm1 = vmmov %vm2916_vm4 }
  0xf4   : > { %v2080_v24 = vpop.f32.mrb[0].mxu1 }
  0xf5   : > { %v600_v29 = vmul.f32 %v2080_v24, %v2335_v16  ;;  %v561_v30 = vpop.f32.mrb[1].mxu1 }
  0xf6   : > { %v598_v34 = vmul.f32 %v2335_v16, %v561_v30  ;;  %v2081_v35 = vpop.f32.mrb[2].mxu1 }
  0xf7   : > { %v614_v38 = vadd.f32 %v2361_v25, %v600_v29  ;;  %v601_v39 = vmul.f32 %v2081_v35, %v2335_v16  ;;  %v564_v40 = vpop.f32.mrb[3].mxu1 }
  0xf8   : > { %v612_v43 = vadd.f32 %v2361_v25, %v598_v34  ;;  %v599_v44 = vmul.f32 %v2335_v16, %v564_v40  ;;  %v2120_v34 = vld [vmem:[%s2832_s6 + $0x10] sm:$0xff]  }
  0xf9   : > { %v621_v45 = vmax.f32 %v614_v38, 0.0  ;;  %v615_v47 = vadd.f32 %v2361_v25, %v601_v39  ;;  %1033 = vmatpush1.bf16.msra.mxu1 %v2120_v34  ;;  %v2121_v38 = vld [vmem:[%s2832_s6 + $0x18] sm:$0xff]  }
  0xfa   : > { %v619_v50 = vmax.f32 %v612_v43, 0.0  ;;  %v613_v52 = vadd.f32 %v2361_v25, %v599_v44  ;;  %1034 = vmatprep.subr.bf16.mxu1 %v2153_v17 }
  0xfb   : > { %v628_v53 = vmul.f32 %v621_v45, %v2390_v33  ;;  %v622_v54 = vmax.f32 %v615_v47, 0.0 }
  0xfc   : > { %v626_v58 = vmul.f32 %v619_v50, %v2428_v46  ;;  %v620_v59 = vmax.f32 %v613_v52, 0.0  ;;  %v2084_v60 = vpop.f32.mrb[4].mxu1  ;;  %v2122_v50 = vld [vmem:[%s2832_s6 + $0x20] sm:$0xff]  }
  0xfd   : > { %636 = vst.msk [vmem:[#allocation3 + $0x10] sm:$0xff] %vm2902_vm7, %v628_v53  ;;  %v629_v61 = vmul.f32 %v622_v54, %v2452_v51  ;;  %v604_v62 = vmul.f32 %v2084_v60, %v2335_v16  ;;  %v577_v63 = vpop.f32.mrb[5].mxu1  ;;  %1035 = vmatpush1.bf16.msra.mxu1 %v2121_v38  ;;  %vm2917_vm7 = vmmov %vm2916_vm4  ;;  %v2124_v60 = vld [vmem:[%s2832_s6 + $0x30] sm:$0xff]  }
  0xfe   : > { %634 = vst.msk [vmem:[#allocation3] sm:$0xff] %vm2907_vm3, %v626_v58  ;;  %v627_v3 = vmul.f32 %v620_v59, %v2466_v55  ;;  %v602_v4 = vmul.f32 %v2335_v16, %v577_v63  ;;  %v2085_v7 = vpop.f32.mrb[6].mxu1  ;;  %1036 = vmatprep.subr.bf16.mxu1 %v2153_v17  ;;  %v2125_v63 = vld [vmem:[%s2832_s6 + $0x38] sm:$0xff]   ;;  %vm728_vm3 = vcmask 388352  }
  0xff   : > { %637 = vst.msk [vmem:[#allocation3 + $0x18] sm:$0xff] %vm2908_vm11, %v629_v61  ;;  %v618_v8 = vadd.f32 %v2361_v25, %v604_v62  ;;  %v580_v9 = vpop.f32.mrb[7].mxu1  ;;  %vm796_vm11 = vcmask 650752  }
 0x100   : > { %635 = vst.msk [vmem:[#allocation3 + $0x8] sm:$0xff] %vm2909_vm2, %v627_v3  ;;  %v616_v11 = vadd.f32 %v2361_v25, %v602_v4  ;;  %v603_v12 = vmul.f32 %v2335_v16, %v580_v9  ;;  %v2126_v3 = vld [vmem:[%s2832_s6 + $0x40] sm:$0xff]   ;;  %vm830_vm2 = vcmask 781952  }
 0x101   : > { %v625_v14 = vmax.f32 %v618_v8, 0.0  ;;  %1037 = vmatpush1.bf16.msra.mxu1 %v2122_v50 }
 0x102   : > { %v623_v19 = vmax.f32 %v616_v11, 0.0  ;;  %v617_v20 = vadd.f32 %v2361_v25, %v603_v12  ;;  %1038 = vmatprep.subr.bf16.mxu1 %v2153_v17 }
 0x103   : > { %v632_v21 = vmul.f32 %v625_v14, %v2518_v10 }
 0x104   : > { %v630_v16 = vmul.f32 %v623_v19, %v2530_v15  ;;  %v624_v23 = vmax.f32 %v617_v20, 0.0  ;;  %v667_v24 = vld [vmem:[#allocation3 + $0x10] sm:$0xff] }
 0x105   : > { %640 = vst.msk [vmem:[#allocation3 + $0x30] sm:$0xff] %vm2910_vm14, %v632_v21  ;;  %v1995_v27 = vpack.c.bf16 %v667_v24, %v667_v24  ;;  %1039 = vmatpush1.bf16.msra.mxu1 %v2123_v56  ;;  %vm898_vm14 = vcmask 1044352  }
 0x106   : > { %638 = vst.msk [vmem:[#allocation3 + $0x20] sm:$0xff] %vm2911_vm0, %v630_v16  ;;  %v631_v25 = vmul.f32 %v624_v23, %v2536_v22  ;;  %v701_v28 = vld [vmem:[#allocation3 + $0x11] sm:$0xff]  ;;  %1040 = vmatprep.subr.bf16.mxu1 %v2153_v17  ;;  %vm698_vm0 = vcmask 255104  }
 0x107   : > { %v735_v2 = vld [vmem:[#allocation3 + $0x17] sm:$0xff]  ;;  %684 = vrot.lane.b32.xlu0 %v1995_v27, %s2154_s13  ;;  %v1999_v29 = vpack.c.bf16 %v701_v28, %v701_v28  ;;  %v734_v31 = vld [vmem:[#allocation3 + $0xf] sm:$0xff]  ;;  %v641_v35 = vld [vmem:[#allocation3 + $0x7] sm:$0xff] }
 0x108   : > { %v2003_v30 = vpack.c.bf16 %v735_v2, %v735_v2  ;;  %639 = vst.msk [vmem:[#allocation3 + $0x28] sm:$0xff] %vm2912_vm15, %v631_v25  ;;  %v2549_v32 = vpack.c.bf16 %v734_v31, %v734_v31  ;;  %v1990_v36 = vpack.c.bf16 %v641_v35, %v641_v35  ;;  %v769_v37 = vld [vmem:[#allocation3 + $0x18] sm:$0xff]  ;;  %v700_v49 = vld [vmem:[#allocation3 + $0x9] sm:$0xff]  ;;  %vm732_vm15 = vcmask 386304  }
 0x109   : > { %718 = vrot.lane.b32.xlu1 %v1999_v29, %s2155_s16  ;;  %v2007_v45 = vpack.c.bf16 %v769_v37, %v769_v37  ;;  %v1998_v53 = vpack.c.bf16 %v700_v49, %v700_v49  ;;  %v666_v58 = vld [vmem:[#allocation3 + $0x8] sm:$0xff]  ;;  %1041 = vmatpush1.bf16.msra.mxu1 %v2124_v60 }
 0x10a   : > { %663 = vst.msk [vmem:[#allocation4 + $0x10] sm:$0xf] %vm2913_vm12, %v2003_v30  ;;  %v1994_v62 = vpack.c.bf16 %v666_v58, %v666_v58  ;;  %1042 = vmatprep.subr.bf16.mxu1 %v2153_v17  ;;  %vm766_vm12 = vcmask 517504  }
 0x10b   : > { %662 = vst.msk [vmem:[#allocation4 + $0x8] sm:$0xf] %vm2914_vm13, %v2549_v32  ;;  %784 = vrot.lane.b32.xlu0 %v1995_v27, %s2156_s17  ;;  %vm800_vm13 = vcmask 648704  }
 0x10c   : > { %661 = vst.msk [vmem:[#allocation4] sm:$0xf] %vm2915_vm6, %v1990_v36  ;;  %v907_v39 = vld [vmem:[#allocation3 + $0x31] sm:$0xf]  ;;  %vm2919_vm6 = vcmask 130048  }
 0x10d   : > { %v904_v40 = vld [vmem:[#allocation3 + $0x19] sm:$0xff]  ;;  %752 = vrot.lane.b32.xlu1 %v2003_v30, %s2157_s20  ;;  %v2025_v41 = vpack.c.bf16 %v907_v39, %v907_v39  ;;  %1043 = vmatpush1.bf16.msra.mxu1 %v2125_v63  ;;  %v703_v7 = vld [vmem:[#allocation3 + $0x21] sm:$0xf]  ;;  %v873_v26 = vld [vmem:[#allocation3 + $0x30] sm:$0xf] }
 0x10e   : > { %v2022_v42 = vpack.c.bf16 %v904_v40, %v904_v40  ;;  %v644_v52 = vld [vmem:[#allocation3 + $0x1f] sm:$0xf]  ;;  %1044 = vmatprep.subr.bf16.mxu1 %v2153_v17  ;;  %v2001_v8 = vpack.c.bf16 %v703_v7, %v703_v7  ;;  %v2021_v25 = vpack.c.bf16 %v873_v26, %v873_v26 }
 0x10f   : > { %v905_v43 = vld [vmem:[#allocation3 + $0x21] sm:$0xff]  ;;  %v906_v44 = vld [vmem:[#allocation3 + $0x29] sm:$0xff]  ;;  %818 = vrot.lane.b32.xlu0 %v1999_v29, %s2158_s21  ;;  %927 = vst.msk [vmem:[#allocation4 + $0x1c] sm:$0x3] %vm664_vm9, %v2025_v41  ;;  %v1993_v54 = vpack.c.bf16 %v644_v52, %v644_v52 }
 0x110   : > { %924 = vst.msk [vmem:[#allocation4 + $0x4] sm:$0xf] %vm2916_vm4, %v2022_v42  ;;  %v2023_v47 = vpack.c.bf16 %v905_v43, %v905_v43  ;;  %v2024_v48 = vpack.c.bf16 %v906_v44, %v906_v44  ;;  %v837_v57 = vld [vmem:[#allocation3 + $0x1f] sm:$0xff]  ;;  %v737_v9 = vld [vmem:[#allocation3 + $0x27] sm:$0xf]  ;;  %vm2842_vm4 = vcmask 779904  }
 0x111   : > { %786 = vrot.lane.b32.xlu1 %v2007_v45, %s2156_s17  ;;  %665 = vst.msk [vmem:[#allocation4 + $0x18] sm:$0x3] %vm664_vm9, %v1993_v54  ;;  %v2015_v59 = vpack.c.bf16 %v837_v57, %v837_v57  ;;  %v871_v61 = vld [vmem:[#allocation3 + $0x20] sm:$0xff]  ;;  %1045 = vmatpush1.bf16.msra.mxu1 %v2126_v3  ;;  %v2005_v11 = vpack.c.bf16 %v737_v9, %v737_v9  ;;  %v771_v12 = vld [vmem:[#allocation3 + $0x28] sm:$0xf] }
 0x112   : > { %925 = vst.msk [vmem:[#allocation4 + $0xc] sm:$0xf] %vm2917_vm7, %v2023_v47  ;;  %v2019_v0 = vpack.c.bf16 %v871_v61, %v871_v61  ;;  %v669_v1 = vld [vmem:[#allocation3 + $0x20] sm:$0xf]  ;;  %v2009_v13 = vpack.c.bf16 %v771_v12, %v771_v12  ;;  %v805_v14 = vld [vmem:[#allocation3 + $0x29] sm:$0xf] }
 0x113   : > { %926 = vst.msk [vmem:[#allocation4 + $0x14] sm:$0xf] %vm2918_vm1, %v2024_v48  ;;  %852 = vrot.lane.b32.xlu0 %v2003_v30, %s2159_s24  ;;  %v1997_v4 = vpack.c.bf16 %v669_v1, %v669_v1  ;;  %v838_v19 = vld [vmem:[#allocation3 + $0x27] sm:$0xff]  ;;  %v2013_v20 = vpack.c.bf16 %v805_v14, %v805_v14  ;;  %v839_v21 = vld [vmem:[#allocation3 + $0x2f] sm:$0xf]  ;;  %vm2841_vm7 = vcmask 911104  }
 0x114   : > { %v2016_v16 = vpack.c.bf16 %v838_v19, %v838_v19  ;;  %v872_v23 = vld [vmem:[#allocation3 + $0x28] sm:$0xff]  ;;  %v2017_v24 = vpack.c.bf16 %v839_v21, %v839_v21  ;;  %vm2840_vm1 = vcmask 1042304   ;;  %v2128_v7 = vld [vmem:[%s2829_s3 + $0x18] sm:$0xff]  }
 0x115   : > { %716 = vrot.lane.b32.xlu1 %v1998_v53, %s2155_s16  ;;  %v2020_v27 = vpack.c.bf16 %v872_v23, %v872_v23  ;;  %v1902_v12 = vld [vmem:[%s2828_s2 + $0x1] ss:$0 sm:$0xff] }
 0x117   : > { %886 = vrot.lane.b32.xlu0 %v2007_v45, %s2160_s27 }
 0x119   : > { %820 = vrot.lane.b32.xlu1 %v2022_v42, %s2158_s21 }
 0x11b   : > { %686 = vrot.lane.b32.xlu0 %v2007_v45, %s2154_s13 }
 0x11d   : > { %854 = vrot.lane.b32.xlu1 %v2015_v59, %s2159_s24 }
 0x11f   : > { %682 = vrot.lane.b32.xlu0 %v1994_v62, %s2154_s13 }
 0x121   : > { %888 = vrot.lane.b32.xlu1 %v2019_v0, %s2160_s27 }
 0x123   : > { %750 = vrot.lane.b32.xlu0 %v2549_v32, %s2157_s20 }
 0x125   : > { %688 = vrot.lane.b32.xlu1 %v1997_v4, %s2154_s13  ;;  %v2127_v4 = vld [vmem:[%s2829_s3 + $0x10] sm:$0xff]  }
 0x126   : > { %2086 = vmatprep.subr.bf16.mxu0 %v2127_v4 }
 0x127   : > { %720 = vrot.lane.b32.xlu0 %v2022_v42, %s2155_s16  ;;  %2087 = vmatpush3.bf16.msra.mxu0 %v2127_v4 }
 0x128   : > { %2088 = vmatprep.subr.bf16.mxu0 %v2128_v7 }
 0x129   : > { %722 = vrot.lane.b32.xlu1 %v2001_v8, %s2155_s16  ;;  %v1900_v8 = vld [vmem:[%s2827_s1 + $0x1] ss:$0 sm:$0xff] }
 0x12a   : > { %v1114_v9 = vmul.f32 %v1900_v8, %v2251_v5 }
 0x12b   : > { %754 = vrot.lane.b32.xlu0 %v2015_v59, %s2157_s20  ;;  %2089 = vmatpush3.bf16.msra.mxu0 %v2128_v7 }
 0x12c   : > { %1664 = vmatprep.subr.bf16.mxu0 %v2153_v17 }
 0x12d   : > { %756 = vrot.lane.b32.xlu1 %v2005_v11, %s2157_s20  ;;  %v1115_v11 = vmul.f32 %v1900_v8, %v2253_v6 }
 0x12f   : > { %788 = vrot.lane.b32.xlu0 %v2019_v0, %s2156_s17  ;;  %v1130_v14 = vadd.f32 %v1902_v12, %v1115_v11 }
 0x131   : > { %790 = vrot.lane.b32.xlu1 %v2009_v13, %s2156_s17  ;;  %v1129_v13 = vadd.f32 %v1902_v12, %v1114_v9 }
 0x133   : > { %822 = vrot.lane.b32.xlu0 %v2023_v47, %s2158_s21  ;;  %v1136_v19 = vmax.f32 %v1129_v13, 0.0 }
 0x135   : > { %824 = vrot.lane.b32.xlu1 %v2013_v20, %s2158_s21  ;;  %v1137_v20 = vmax.f32 %v1130_v14, 0.0 }
 0x137   : > { %856 = vrot.lane.b32.xlu0 %v2016_v16, %s2159_s24  ;;  %v1143_v21 = vpack.c.bf16 %v1137_v20, %v1136_v19 }
 0x139   : > { %858 = vrot.lane.b32.xlu1 %v2017_v24, %s2159_s24 }
 0x13b   : > { %890 = vrot.lane.b32.xlu0 %v2020_v27, %s2160_s27 }
 0x13d   : > { %892 = vrot.lane.b32.xlu1 %v2021_v25, %s2160_s27 }
 0x179   : > { %v685_v28 = vpop.permute.xlu0 %684 }
 0x17a   : > { %696 = vst.msk [vmem:[#allocation4 + $0x8] sm:$0xf] %vm694_vm10, %v685_v28 }
 0x17b   : > { %v719_v2 = vpop.permute.xlu1 %718 }
 0x17c   : > { %730 = vst.msk [vmem:[#allocation4 + $0x8] sm:$0xf] %vm728_vm3, %v719_v2 }
 0x17d   : > { %v785_v29 = vpop.permute.xlu0 %784 }
 0x17f   : > { %v753_v30 = vpop.permute.xlu1 %752 }
 0x180   : > { %764 = vst.msk [vmem:[#allocation4 + $0x8] sm:$0xf] %vm762_vm5, %v753_v30 }
 0x181   : > { %v819_v31 = vpop.permute.xlu0 %818 }
 0x183   : > { %v787_v32 = vpop.permute.xlu1 %786 }
 0x184   : > { %798 = vst.msk [vmem:[#allocation4 + $0x8] sm:$0xf] %vm796_vm11, %v787_v32 }
 0x185   : > { %v853_v34 = vpop.permute.xlu0 %852 }
 0x187   : > { %v717_v35 = vpop.permute.xlu1 %716 }
 0x189   : > { %v887_v36 = vpop.permute.xlu0 %886 }
 0x18b   : > { %v821_v37 = vpop.permute.xlu1 %820 }
 0x18c   : > { %832 = vst.msk [vmem:[#allocation4 + $0x8] sm:$0xf] %vm830_vm2, %v821_v37 }
 0x18d   : > { %v687_v38 = vpop.permute.xlu0 %686 }
 0x18e   : > { %697 = vst.msk [vmem:[#allocation4 + $0x10] sm:$0xf] %vm694_vm10, %v687_v38 }
 0x18f   : > { %v855_v39 = vpop.permute.xlu1 %854 }
 0x190   : > { %866 = vst.msk [vmem:[#allocation4 + $0x8] sm:$0xf] %vm864_vm8, %v855_v39 }
 0x191   : > { %v683_v40 = vpop.permute.xlu0 %682 }
 0x192   : > { %695 = vst.msk [vmem:[#allocation4] sm:$0xf] %vm694_vm10, %v683_v40 }
 0x193   : > { %729 = vst.msk [vmem:[#allocation4] sm:$0xf] %vm728_vm3, %v717_v35  ;;  %v889_v41 = vpop.permute.xlu1 %888 }
 0x194   : > { %900 = vst.msk [vmem:[#allocation4 + $0x8] sm:$0xf] %vm898_vm14, %v889_v41  ;;  %v1120_v41 = vmul.f32 %v1900_v8, %v2261_v18  ;;  %v1914_v18 = vld [vmem:[%s2830_s4 + $0x1] ss:$0 sm:$0xff] }
 0x195   : > { %v751_v42 = vpop.permute.xlu0 %750 }
 0x196   : > { %763 = vst.msk [vmem:[#allocation4] sm:$0xf] %vm762_vm5, %v751_v42 }
 0x197   : > { %797 = vst.msk [vmem:[#allocation4] sm:$0xf] %vm796_vm11, %v785_v29  ;;  %v689_v43 = vpop.permute.xlu1 %688 }
 0x198   : > { %831 = vst.msk [vmem:[#allocation4] sm:$0xf] %vm830_vm2, %v819_v31 }
 0x199   : > { %699 = vst.msk [vmem:[#allocation4 + $0x18] sm:$0x3] %vm698_vm0, %v689_v43  ;;  %v721_v44 = vpop.permute.xlu0 %720  ;;  %v1135_v43 = vadd.f32 %v1902_v12, %v1120_v41 }
 0x19a   : > { %865 = vst.msk [vmem:[#allocation4] sm:$0xf] %vm864_vm8, %v853_v34 }
 0x19b   : > { %899 = vst.msk [vmem:[#allocation4] sm:$0xf] %vm898_vm14, %v887_v36  ;;  %v723_v45 = vpop.permute.xlu1 %722  ;;  %v929_v49 = vld [vmem:[#allocation4 + $0x8] sm:$0xff] }
 0x19c   : > { %731 = vst.msk [vmem:[#allocation4 + $0x10] sm:$0xf] %vm728_vm3, %v721_v44 }
 0x19d   : > { %733 = vst.msk [vmem:[#allocation4 + $0x18] sm:$0x3] %vm732_vm15, %v723_v45  ;;  %v755_v47 = vpop.permute.xlu0 %754 }
 0x19e   : > { %765 = vst.msk [vmem:[#allocation4 + $0x10] sm:$0xf] %vm762_vm5, %v755_v47 }
 0x19f   : > { %v757_v48 = vpop.permute.xlu1 %756 }
 0x1a0   : > { %767 = vst.msk [vmem:[#allocation4 + $0x18] sm:$0x3] %vm766_vm12, %v757_v48 }
 0x1a1   : > { %v789_v50 = vpop.permute.xlu0 %788 }
 0x1a2   : > { %v928_v52 = vld [vmem:[#allocation4] sm:$0xff]  ;;  %799 = vst.msk [vmem:[#allocation4 + $0x10] sm:$0xf] %vm796_vm11, %v789_v50 }
 0x1a3   : > { %v1885_v53 = vcombine.high %v928_v52, %v929_v49  ;;  %v1884_v54 = vcombine.low %v928_v52, %v929_v49  ;;  %v791_v56 = vpop.permute.xlu1 %790  ;;  %v1142_v49 = vmax.f32 %v1135_v43, 0.0 }
 0x1a4   : > { %801 = vst.msk [vmem:[#allocation4 + $0x18] sm:$0x3] %vm800_vm13, %v791_v56 }
 0x1a5   : > { %1897 = vmatprep.mubr.msk.bf16.mxu1 %vm2919_vm6, %v1885_v53  ;;  %v823_v57 = vpop.permute.xlu0 %822 }
 0x1a6   : > { %1061 = vmatmul.mubr.bf16.vlgmr.msra.gmra.mrb[8].mxu1 %v1884_v54  ;;  %833 = vst.msk [vmem:[#allocation4 + $0x10] sm:$0xf] %vm830_vm2, %v823_v57  ;;  %v1146_v54 = vpack.c.bf16 %v1142_v49, %v1142_v49 }
 0x1a7   : > { %v825_v58 = vpop.permute.xlu1 %824 }
 0x1a8   : > { %835 = vst.msk [vmem:[#allocation4 + $0x18] sm:$0x3] %vm2842_vm4, %v825_v58  ;;  %v2678_v58 = vld [vmem:[%s2831_s5 + $0x1] ss:$0 sm:$0xff] }
 0x1a9   : > { %v857_v59 = vpop.permute.xlu0 %856 }
 0x1aa   : > { %867 = vst.msk [vmem:[#allocation4 + $0x10] sm:$0xf] %vm864_vm8, %v857_v59 }
 0x1ab   : > { %v859_v60 = vpop.permute.xlu1 %858 }
 0x1ac   : > { %869 = vst.msk [vmem:[#allocation4 + $0x18] sm:$0x3] %vm2841_vm7, %v859_v60  ;;  %vm1097_vm7 = vcmask 191616  }
 0x1ad   : > { %v891_v61 = vpop.permute.xlu0 %890 }
 0x1ae   : > { %901 = vst.msk [vmem:[#allocation4 + $0x10] sm:$0xf] %vm898_vm14, %v891_v61 }
 0x1af   : > { %v893_v62 = vpop.permute.xlu1 %892 }
 0x1b0   : > { %903 = vst.msk [vmem:[#allocation4 + $0x18] sm:$0x3] %vm2840_vm1, %v893_v62  ;;  %vm1093_vm1 = vcmask 195712  }
 0x1b5   : > { %v930_v63 = vld [vmem:[#allocation4 + $0x10] sm:$0xff] }
 0x1b7   : > { %v931_v0 = vld [vmem:[#allocation4 + $0x18] sm:$0x33] }
 0x1b8   : > { %v1887_v1 = vcombine.high %v930_v63, %v931_v0  ;;  %v1886_v3 = vcombine.low %v930_v63, %v931_v0 }
 0x1ba   : > { %1898 = vmatprep.mubr.msk.bf16.mxu1 %vm2919_vm6, %v1887_v1  ;;  %vm2920_vm6 = vcmask 261120  }
 0x1bb   : > { %1069 = vmatmul.mubr.bf16.gmra.mrb[12].mxu1 %v1886_v3  ;;  %2090 = vmatprep.mubr.msk.bf16.mxu0 %vm2920_vm6, %v1143_v21  ;;  %vm2921_vm4 = vmmov %vm2920_vm6 }
 0x279   : > { %v1062_v5 = vpop.f32.mrb[8].mxu1 }
 0x27a   : > { %v1064_v16 = vpop.f32.mrb[9].mxu1  ;;  %1081 = vrot.lane.b32.xlu0 %v1062_v5, %s2154_s13 }
 0x27b   : > { %v1065_v6 = vpop.f32.mrb[10].mxu1 }
 0x27c   : > { %v1067_v23 = vpop.f32.mrb[11].mxu1  ;;  %1083 = vrot.lane.b32.xlu1 %v1065_v6, %s2154_s13 }
 0x28e   : > { %v1070_v24 = vpop.f32.mrb[12].mxu1 }
 0x28f   : > { %1085 = vrot.lane.b32.xlu0 %v1070_v24, %s2154_s13  ;;  %v1072_v26 = vpop.f32.mrb[13].mxu1  ;;  %v2130_v24 = vld [vmem:[%s2832_s6 + $0x50] sm:$0xff]  }
 0x290   : > { %v1073_v27 = vpop.f32.mrb[14].mxu1 }
 0x291   : > { %1087 = vrot.lane.b32.xlu1 %v1073_v27, %s2154_s13  ;;  %v1075_v25 = vpop.f32.mrb[15].mxu1 }
 0x2ec   : > { %v1082_v28 = vpop.permute.xlu0 %1081 }
 0x2ed   : > { %1094 = vst.msk [vmem:[#allocation2 + $0x10] sm:$0xff] %vm1093_vm1, %v1082_v28  ;;  %v2131_v28 = vld [vmem:[%s2832_s6 + $0x58] sm:$0xff]  }
 0x2ee   : > { %v1084_v2 = vpop.permute.xlu1 %1083 }
 0x2ef   : > { %1095 = vst.msk [vmem:[#allocation2 + $0x18] sm:$0xff] %vm1093_vm1, %v1084_v2 }
 0x2f4   : > { %v1101_v29 = vld [vmem:[#allocation2 + $0x10] sm:$0xff] }
 0x2f5   : > { %v1116_v30 = vmul.f32 %v1900_v8, %v1101_v29 }
 0x2f6   : > { %v1102_v31 = vld [vmem:[#allocation2 + $0x18] sm:$0xff] }
 0x2f7   : > { %v1117_v32 = vmul.f32 %v1900_v8, %v1102_v31  ;;  %v1131_v34 = vadd.f32 %v1902_v12, %v1116_v30 }
 0x2f9   : > { %v1132_v35 = vadd.f32 %v1902_v12, %v1117_v32  ;;  %v1138_v36 = vmax.f32 %v1131_v34, 0.0 }
 0x2fb   : > { %v1139_v37 = vmax.f32 %v1132_v35, 0.0 }
 0x2fd   : > { %v1144_v38 = vpack.c.bf16 %v1139_v37, %v1138_v36  ;;  %v2132_v37 = vld [vmem:[%s2832_s6 + $0x60] sm:$0xff]  }
 0x2ff   : > { %2091 = vmatmul.mubr.msk.bf16.vlgmr.msra.gmra.mrb[0].mxu0 %vm2920_vm6, %v1144_v38 }
 0x301   : > { %v1086_v39 = vpop.permute.xlu0 %1085 }
 0x302   : > { %1096 = vst.msk [vmem:[#allocation2 + $0x20] sm:$0xff] %vm1093_vm1, %v1086_v39 }
 0x303   : > { %v1088_v40 = vpop.permute.xlu1 %1087 }
 0x304   : > { %1098 = vst.msk [vmem:[#allocation2 + $0x28] sm:$0xf] %vm1097_vm7, %v1088_v40 }
 0x309   : > { %v1103_v42 = vld [vmem:[#allocation2 + $0x20] sm:$0xff] }
 0x30a   : > { %v1118_v44 = vmul.f32 %v1900_v8, %v1103_v42 }
 0x30b   : > { %v1104_v45 = vld [vmem:[#allocation2 + $0x28] sm:$0xff] }
 0x30c   : > { %v1119_v47 = vmul.f32 %v1900_v8, %v1104_v45  ;;  %v1133_v48 = vadd.f32 %v1902_v12, %v1118_v44  ;;  %v2133_v45 = vld [vmem:[%s2832_s6 + $0x68] sm:$0xff]  }
 0x30e   : > { %v1134_v50 = vadd.f32 %v1902_v12, %v1119_v47  ;;  %v1140_v52 = vmax.f32 %v1133_v48, 0.0 }
 0x310   : > { %v1141_v53 = vmax.f32 %v1134_v50, 0.0 }
 0x312   : > { %v1145_v56 = vpack.c.bf16 %v1141_v53, %v1140_v52  ;;  %v2135_v53 = vld [vmem:[%s2832_s6 + $0x78] sm:$0xff]  }
 0x314   : > { %2094 = vmatprep.mubr.msk.bf16.mxu0 %vm2920_vm6, %v1145_v56 }
 0x315   : > { %2095 = vmatmul.mubr.msk.bf16.gmra.mrb[4].mxu0 %vm2921_vm4, %v1146_v54  ;;  %vm2922_vm4 = vcmask 130048  }
 0x316   : > { %vm2923_vm7 = vmmov %vm2922_vm4 }
 0x317   : > { %vm2924_vm1 = vmmov %vm2922_vm4 }
 0x318   : > { %vm2925_vm6 = vmmov %vm2924_vm1 }
 0x3d2   : > { %v2092_v57 = vpop.f32.mrb[0].mxu0 }
 0x3d3   : > { %v1250_v59 = vmul.f32 %v2092_v57, %v1914_v18  ;;  %v1210_v60 = vpop.f32.mrb[1].mxu0 }
 0x3d4   : > { %v1248_v61 = vmul.f32 %v1914_v18, %v1210_v60  ;;  %v2093_v62 = vpop.f32.mrb[2].mxu0 }
 0x3d5   : > { %v1265_v63 = vadd.f32 %v2678_v58, %v1250_v59  ;;  %v1251_v0 = vmul.f32 %v2093_v62, %v1914_v18  ;;  %v1213_v1 = vpop.f32.mrb[3].mxu0 }
 0x3d6   : > { %v1263_v3 = vadd.f32 %v2678_v58, %v1248_v61  ;;  %v1249_v4 = vmul.f32 %v1914_v18, %v1213_v1 }
 0x3d7   : > { %v1272_v7 = vmax.f32 %v1265_v63, 0.0  ;;  %v1266_v8 = vadd.f32 %v2678_v58, %v1251_v0  ;;  %v2136_v63 = vld [vmem:[%s2832_s6 + $0x80] sm:$0xff]  }
 0x3d8   : > { %v1270_v9 = vmax.f32 %v1263_v3, 0.0  ;;  %v1264_v11 = vadd.f32 %v2678_v58, %v1249_v4 }
 0x3d9   : > { %v1279_v12 = vmul.f32 %v1272_v7, %v2390_v33  ;;  %v1273_v13 = vmax.f32 %v1266_v8, 0.0  ;;  %v2129_v33 = vld [vmem:[%s2832_s6 + $0x48] sm:$0xff]  }
 0x3da   : > { %v1277_v14 = vmul.f32 %v1270_v9, %v2428_v46  ;;  %v1271_v19 = vmax.f32 %v1264_v11, 0.0  ;;  %1665 = vmatpush1.bf16.msra.mxu0 %v2129_v33  ;;  %v2137_v7 = vld [vmem:[%s2832_s6 + $0x88] sm:$0xff]  }
 0x3db   : > { %1286 = vst.msk [vmem:[#allocation3 + $0x10] sm:$0xff] %vm2922_vm4, %v1279_v12  ;;  %v1280_v20 = vmul.f32 %v1273_v13, %v2452_v51  ;;  %1666 = vmatprep.subr.bf16.mxu0 %v2153_v17  ;;  %vm2926_vm4 = vcmask 125952  }
 0x3dc   : > { %1284 = vst.msk [vmem:[#allocation3] sm:$0xff] %vm2923_vm7, %v1277_v14  ;;  %v1278_v21 = vmul.f32 %v1271_v19, %v2466_v55  ;;  %vm2927_vm7 = vmmov %vm2926_vm4 }
 0x3dd   : > { %1287 = vst.msk [vmem:[#allocation3 + $0x18] sm:$0xff] %vm2924_vm1, %v1280_v20  ;;  %vm2928_vm1 = vmmov %vm2926_vm4 }
 0x3de   : > { %1285 = vst.msk [vmem:[#allocation3 + $0x8] sm:$0xff] %vm2925_vm6, %v1278_v21  ;;  %1667 = vmatpush1.bf16.msra.mxu0 %v2130_v24 }
 0x3df   : > { %1668 = vmatprep.subr.bf16.mxu0 %v2153_v17 }
 0x3e2   : > { %v1411_v5 = vld [vmem:[#allocation3 + $0x10] sm:$0xff]  ;;  %1669 = vmatpush1.bf16.msra.mxu0 %v2131_v28 }
 0x3e3   : > { %v2042_v46 = vpack.c.bf16 %v1411_v5, %v1411_v5  ;;  %1670 = vmatprep.subr.bf16.mxu0 %v2153_v17 }
 0x3e4   : > { %v1443_v16 = vld [vmem:[#allocation3 + $0x11] sm:$0xff] }
 0x3e5   : > { %v1475_v6 = vld [vmem:[#allocation3 + $0x17] sm:$0xff]  ;;  %1427 = vrot.lane.b32.xlu0 %v2042_v46, %s2156_s17  ;;  %1333 = vrot.lane.b32.xlu1 %v2042_v46, %s2154_s13  ;;  %v1379_v55 = vld [vmem:[#allocation3 + $0xf] sm:$0xff]  ;;  %v1291_v26 = vld [vmem:[#allocation3 + $0x7] sm:$0xff]  ;;  %v2046_v27 = vpack.c.bf16 %v1443_v16, %v1443_v16 }
 0x3e6   : > { %v2050_v51 = vpack.c.bf16 %v1475_v6, %v1475_v6  ;;  %v2698_v23 = vpack.c.bf16 %v1379_v55, %v1379_v55  ;;  %v2026_v25 = vpack.c.bf16 %v1291_v26, %v1291_v26  ;;  %v1507_v36 = vld [vmem:[#allocation3 + $0x18] sm:$0xff]  ;;  %1671 = vmatpush1.bf16.msra.mxu0 %v2132_v37  ;;  %v1315_v49 = vld [vmem:[#allocation3 + $0x8] sm:$0xff] }
 0x3e7   : > { %v2054_v43 = vpack.c.bf16 %v1507_v36, %v1507_v36  ;;  %1672 = vmatprep.subr.bf16.mxu0 %v2153_v17  ;;  %v2030_v50 = vpack.c.bf16 %v1315_v49, %v1315_v49  ;;  %v1347_v52 = vld [vmem:[#allocation3 + $0x9] sm:$0xff] }
 0x3e8   : > { %1313 = vst.msk [vmem:[#allocation4 + $0x10] sm:$0xf] %vm2926_vm4, %v2050_v51  ;;  %v2096_v2 = vpop.f32.mrb[4].mxu0  ;;  %vm2929_vm4 = vmmov %vm2925_vm6 }
 0x3e9   : > { %1312 = vst.msk [vmem:[#allocation4 + $0x8] sm:$0xf] %vm2927_vm7, %v2698_v23  ;;  %1459 = vrot.lane.b32.xlu0 %v2046_v27, %s2158_s21  ;;  %1365 = vrot.lane.b32.xlu1 %v2046_v27, %s2155_s16  ;;  %v1254_v29 = vmul.f32 %v2096_v2, %v1914_v18  ;;  %v1226_v30 = vpop.f32.mrb[5].mxu0  ;;  %vm2930_vm7 = vmmov %vm2929_vm4 }
 0x3ea   : > { %1311 = vst.msk [vmem:[#allocation4] sm:$0xf] %vm2928_vm1, %v2026_v25  ;;  %v1252_v31 = vmul.f32 %v1914_v18, %v1226_v30  ;;  %v2097_v32 = vpop.f32.mrb[6].mxu0  ;;  %1673 = vmatpush1.bf16.msra.mxu0 %v2133_v45 }
 0x3eb   : > { %v1269_v34 = vadd.f32 %v2678_v58, %v1254_v29  ;;  %v1229_v35 = vpop.f32.mrb[7].mxu0  ;;  %1674 = vmatprep.subr.bf16.mxu0 %v2153_v17 }
 0x3ec   : > { %v1267_v38 = vadd.f32 %v2678_v58, %v1252_v31  ;;  %v1253_v39 = vmul.f32 %v1914_v18, %v1229_v35  ;;  %v2034_v18 = vpack.c.bf16 %v1347_v52, %v1347_v52 }
 0x3ed   : > { %1491 = vrot.lane.b32.xlu0 %v2050_v51, %s2159_s24  ;;  %1397 = vrot.lane.b32.xlu1 %v2050_v51, %s2157_s20  ;;  %v1276_v40 = vmax.f32 %v1269_v34, 0.0 }
 0x3ee   : > { %v1274_v41 = vmax.f32 %v1267_v38, 0.0  ;;  %v1268_v42 = vadd.f32 %v2678_v58, %v1253_v39 }
 0x3ef   : > { %v1283_v44 = vmul.f32 %v1276_v40, %v2518_v10 }
 0x3f0   : > { %v1281_v47 = vmul.f32 %v1274_v41, %v2530_v15  ;;  %v1275_v48 = vmax.f32 %v1268_v42, 0.0  ;;  %v2134_v15 = vld [vmem:[%s2832_s6 + $0x70] sm:$0xff]  }
 0x3f1   : > { %1523 = vrot.lane.b32.xlu0 %v2054_v43, %s2160_s27  ;;  %1429 = vrot.lane.b32.xlu1 %v2054_v43, %s2156_s17  ;;  %1290 = vst.msk [vmem:[#allocation3 + $0x30] sm:$0xff] %vm2925_vm6, %v1283_v44  ;;  %vm2931_vm6 = vmmov %vm2928_vm1 }
 0x3f2   : > { %1288 = vst.msk [vmem:[#allocation3 + $0x20] sm:$0xff] %vm2929_vm4, %v1281_v47  ;;  %v1282_v10 = vmul.f32 %v1275_v48, %v2536_v22  ;;  %1675 = vmatpush1.bf16.msra.mxu0 %v2134_v15 }
 0x3f3   : > { %1676 = vmatprep.subr.bf16.mxu0 %v2153_v17 }
 0x3f4   : > { %1289 = vst.msk [vmem:[#allocation3 + $0x28] sm:$0xff] %vm2930_vm7, %v1282_v10 }
 0x3f5   : > { %1335 = vrot.lane.b32.xlu0 %v2054_v43, %s2154_s13 }
 0x3f6   : > { %1677 = vmatpush1.bf16.msra.mxu0 %v2135_v53 }
 0x3f7   : > { %1678 = vmatprep.subr.bf16.mxu0 %v2153_v17 }
 0x3f8   : > { %v1542_v22 = vld [vmem:[#allocation3 + $0x31] sm:$0xf] }
 0x3f9   : > { %1331 = vrot.lane.b32.xlu0 %v2030_v50, %s2154_s13  ;;  %v1444_v54 = vld [vmem:[#allocation3 + $0x19] sm:$0xff]  ;;  %v2061_v56 = vpack.c.bf16 %v1542_v22, %v1542_v22  ;;  %v1350_v12 = vld [vmem:[#allocation3 + $0x21] sm:$0xf] }
 0x3fa   : > { %v2047_v57 = vpack.c.bf16 %v1444_v54, %v1444_v54  ;;  %v1294_v58 = vld [vmem:[#allocation3 + $0x1f] sm:$0xf]  ;;  %1679 = vmatpush1.bf16.msra.mxu0 %v2136_v63  ;;  %v2037_v13 = vpack.c.bf16 %v1350_v12, %v1350_v12 }
 0x3fb   : > { %v1476_v59 = vld [vmem:[#allocation3 + $0x1f] sm:$0xff]  ;;  %v2029_v61 = vpack.c.bf16 %v1294_v58, %v1294_v58  ;;  %1562 = vst.msk [vmem:[#allocation4 + $0x1c] sm:$0x3] %vm664_vm9, %v2061_v56  ;;  %v1541_v0 = vld [vmem:[#allocation3 + $0x29] sm:$0xff]  ;;  %1680 = vmatprep.subr.bf16.mxu0 %v2153_v17 }
 0x3fc   : > { %v1445_v60 = vld [vmem:[#allocation3 + $0x21] sm:$0xff]  ;;  %1461 = vrot.lane.b32.xlu1 %v2047_v57, %s2158_s21  ;;  %1559 = vst.msk [vmem:[#allocation4 + $0x4] sm:$0xf] %vm2928_vm1, %v2047_v57  ;;  %v2051_v1 = vpack.c.bf16 %v1476_v59, %v1476_v59  ;;  %v2060_v3 = vpack.c.bf16 %v1541_v0, %v1541_v0  ;;  %v1446_v46 = vld [vmem:[#allocation3 + $0x29] sm:$0xf] }
 0x3fd   : > { %1363 = vrot.lane.b32.xlu0 %v2034_v18, %s2155_s16  ;;  %v2048_v62 = vpack.c.bf16 %v1445_v60, %v1445_v60  ;;  %1314 = vst.msk [vmem:[#allocation4 + $0x18] sm:$0x3] %vm664_vm9, %v2029_v61  ;;  %v1508_v4 = vld [vmem:[#allocation3 + $0x20] sm:$0xff]  ;;  %vm2932_vm9 = vmmov %vm2928_vm1  ;;  %v1414_v20 = vld [vmem:[#allocation3 + $0x28] sm:$0xf]  ;;  %v2049_v6 = vpack.c.bf16 %v1446_v46, %v1446_v46 }
 0x3fe   : > { %1561 = vst.msk [vmem:[#allocation4 + $0x14] sm:$0xf] %vm2932_vm9, %v2060_v3  ;;  %v2055_v8 = vpack.c.bf16 %v1508_v4, %v1508_v4  ;;  %v1318_v9 = vld [vmem:[#allocation3 + $0x20] sm:$0xf]  ;;  %1681 = vmatpush1.bf16.msra.mxu0 %v2137_v7  ;;  %v1382_v14 = vld [vmem:[#allocation3 + $0x27] sm:$0xf]  ;;  %v2045_v33 = vpack.c.bf16 %v1414_v20, %v1414_v20 }
 0x3ff   : > { %1560 = vst.msk [vmem:[#allocation4 + $0xc] sm:$0xf] %vm2931_vm6, %v2048_v62  ;;  %v2033_v11 = vpack.c.bf16 %v1318_v9, %v1318_v9  ;;  %v2041_v17 = vpack.c.bf16 %v1382_v14, %v1382_v14  ;;  %v1477_v19 = vld [vmem:[#allocation3 + $0x27] sm:$0xff]  ;;  %v1478_v51 = vld [vmem:[#allocation3 + $0x2f] sm:$0xf] }
 0x400   : > { %1493 = vrot.lane.b32.xlu1 %v2051_v1, %s2159_s24  ;;  %v2052_v21 = vpack.c.bf16 %v1477_v19, %v1477_v19  ;;  %v1509_v5 = vld [vmem:[#allocation3 + $0x28] sm:$0xff]  ;;  %v2053_v55 = vpack.c.bf16 %v1478_v51, %v1478_v51 }
 0x401   : > { %1395 = vrot.lane.b32.xlu0 %v2698_v23, %s2157_s20  ;;  %v2056_v16 = vpack.c.bf16 %v1509_v5, %v1509_v5  ;;  %v1510_v23 = vld [vmem:[#allocation3 + $0x30] sm:$0xf]  ;;  %v1986_v3 = vld [vmem:[%s2833_s7] ss:$0 sm:$0xff] }
 0x402   : > { %v2057_v24 = vpack.c.bf16 %v1510_v23, %v1510_v23  ;;  %v1987_v4 = vld [vmem:[%s2834_s8] ss:$0 sm:$0xff] }
 0x404   : > { %1525 = vrot.lane.b32.xlu1 %v2055_v8, %s2160_s27 }
 0x405   : > { %1367 = vrot.lane.b32.xlu0 %v2047_v57, %s2155_s16  ;;  %v2141_v54 = vld [vmem:[#allocation4 + $0x14] ss:$8 sps:$4 sm:$0x3f]  }
 0x406   : > { %v2140_v47 = vld [vmem:[#allocation4 + $0x4] ss:$8 sps:$4 sm:$0xff]  }
 0x408   : > { %1337 = vrot.lane.b32.xlu1 %v2033_v11, %s2154_s13  ;;  %s2161_s13 = smov 24  }
 0x409   : > { %1399 = vrot.lane.b32.xlu0 %v2051_v1, %s2157_s20 }
 0x40c   : > { %1369 = vrot.lane.b32.xlu1 %v2037_v13, %s2155_s16  ;;  %s1829_s16 = sshll.u32 %s1822_s10, 2 }
 0x40d   : > { %1431 = vrot.lane.b32.xlu0 %v2055_v8, %s2156_s17  ;;  %p331_p4 = scmp.lt.s32.totalorder %s1829_s16, 7 }
 0x40f   : > { %s2944_s16 = smov (!%p331_p4, %s1829_s16), 7 }
 0x410   : > { %1401 = vrot.lane.b32.xlu1 %v2041_v17, %s2157_s20 }
 0x411   : > { %1463 = vrot.lane.b32.xlu0 %v2048_v62, %s2158_s21 }
 0x414   : > { %1433 = vrot.lane.b32.xlu1 %v2045_v33, %s2156_s17 }
 0x415   : > { %1495 = vrot.lane.b32.xlu0 %v2052_v21, %s2159_s24 }
 0x418   : > { %1465 = vrot.lane.b32.xlu1 %v2049_v6, %s2158_s21  ;;  %s1830_s21 = sshll.u32 %s2944_s16, 3 }
 0x419   : > { %1527 = vrot.lane.b32.xlu0 %v2056_v16, %s2160_s27  ;;  %s334_s29 = scalar_lea.vmem %s2835_s9, %s1830_s21 }
 0x41c   : > { %1497 = vrot.lane.b32.xlu1 %v2053_v55, %s2159_s24 }
 0x420   : > { %1529 = vrot.lane.b32.xlu1 %v2057_v24, %s2160_s27 }
 0x457   : > { %v1428_v26 = vpop.permute.xlu0 %1427  ;;  %v1334_v27 = vpop.permute.xlu1 %1333 }
 0x458   : > { %1344 = vst.msk [vmem:[#allocation4 + $0x8] sm:$0xf] %vm694_vm10, %v1334_v27 }
 0x45b   : > { %v1460_v25 = vpop.permute.xlu0 %1459  ;;  %v1366_v28 = vpop.permute.xlu1 %1365 }
 0x45c   : > { %1376 = vst.msk [vmem:[#allocation4 + $0x8] sm:$0xf] %vm728_vm3, %v1366_v28 }
 0x45f   : > { %v1492_v2 = vpop.permute.xlu0 %1491  ;;  %v1398_v29 = vpop.permute.xlu1 %1397 }
 0x460   : > { %1408 = vst.msk [vmem:[#allocation4 + $0x8] sm:$0xf] %vm762_vm5, %v1398_v29 }
 0x463   : > { %v1524_v30 = vpop.permute.xlu0 %1523  ;;  %v1430_v31 = vpop.permute.xlu1 %1429 }
 0x464   : > { %1440 = vst.msk [vmem:[#allocation4 + $0x8] sm:$0xf] %vm796_vm11, %v1430_v31 }
 0x467   : > { %v1336_v32 = vpop.permute.xlu0 %1335 }
 0x468   : > { %1345 = vst.msk [vmem:[#allocation4 + $0x10] sm:$0xf] %vm694_vm10, %v1336_v32 }
 0x46b   : > { %v1332_v34 = vpop.permute.xlu0 %1331 }
 0x46c   : > { %1343 = vst.msk [vmem:[#allocation4] sm:$0xf] %vm694_vm10, %v1332_v34  ;;  %vm2933_vm10 = vmmov %vm2929_vm4 }
 0x46d   : > { %1984 = vmatprep.mubr.msk.bf16.mxu0 %vm2933_vm10, %v2140_v47 }
 0x46e   : > { %v1462_v36 = vpop.permute.xlu1 %1461 }
 0x46f   : > { %v1364_v35 = vpop.permute.xlu0 %1363  ;;  %1472 = vst.msk [vmem:[#allocation4 + $0x8] sm:$0xf] %vm830_vm2, %v1462_v36 }
 0x470   : > { %1375 = vst.msk [vmem:[#allocation4] sm:$0xf] %vm728_vm3, %v1364_v35 }
 0x472   : > { %v1494_v38 = vpop.permute.xlu1 %1493 }
 0x473   : > { %v1396_v37 = vpop.permute.xlu0 %1395  ;;  %1504 = vst.msk [vmem:[#allocation4 + $0x8] sm:$0xf] %vm864_vm8, %v1494_v38 }
 0x474   : > { %1407 = vst.msk [vmem:[#allocation4] sm:$0xf] %vm762_vm5, %v1396_v37 }
 0x475   : > { %1439 = vst.msk [vmem:[#allocation4] sm:$0xf] %vm796_vm11, %v1428_v26 }
 0x476   : > { %1471 = vst.msk [vmem:[#allocation4] sm:$0xf] %vm830_vm2, %v1460_v25  ;;  %v1526_v40 = vpop.permute.xlu1 %1525 }
 0x477   : > { %1503 = vst.msk [vmem:[#allocation4] sm:$0xf] %vm864_vm8, %v1492_v2  ;;  %v1368_v39 = vpop.permute.xlu0 %1367 }
 0x478   : > { %1535 = vst.msk [vmem:[#allocation4] sm:$0xf] %vm898_vm14, %v1524_v30  ;;  %1536 = vst.msk [vmem:[#allocation4 + $0x8] sm:$0xf] %vm898_vm14, %v1526_v40 }
 0x479   : > { %1377 = vst.msk [vmem:[#allocation4 + $0x10] sm:$0xf] %vm728_vm3, %v1368_v39  ;;  %vm2934_vm3 = vcmask 779904  }
 0x47a   : > { %v1338_v42 = vpop.permute.xlu1 %1337 }
 0x47b   : > { %v1400_v41 = vpop.permute.xlu0 %1399  ;;  %1346 = vst.msk [vmem:[#allocation4 + $0x18] sm:$0x3] %vm698_vm0, %v1338_v42 }
 0x47c   : > { %1409 = vst.msk [vmem:[#allocation4 + $0x10] sm:$0xf] %vm762_vm5, %v1400_v41  ;;  %vm2935_vm5 = vcmask 911104  }
 0x47e   : > { %v1370_v44 = vpop.permute.xlu1 %1369 }
 0x47f   : > { %v1432_v43 = vpop.permute.xlu0 %1431  ;;  %v2138_v45 = vld [vmem:[#allocation4] ss:$8 sps:$4 sm:$0xff]   ;;  %1378 = vst.msk [vmem:[#allocation4 + $0x18] sm:$0x3] %vm732_vm15, %v1370_v44  ;;  %vm1733_vm15 = vcmask 257216  }
 0x480   : > { %1441 = vst.msk [vmem:[#allocation4 + $0x10] sm:$0xf] %vm796_vm11, %v1432_v43  ;;  %1697 = vmatmul.mubr.bf16.vlgmr.msra.gmra.mrb[8].mxu0 %v2138_v45  ;;  %vm2936_vm11 = vcmask 1042304  }
 0x482   : > { %v1402_v10 = vpop.permute.xlu1 %1401 }
 0x483   : > { %v1464_v48 = vpop.permute.xlu0 %1463  ;;  %1410 = vst.msk [vmem:[#allocation4 + $0x18] sm:$0x3] %vm766_vm12, %v1402_v10  ;;  %vm1764_vm12 = vcmask 257024  }
 0x484   : > { %1473 = vst.msk [vmem:[#allocation4 + $0x10] sm:$0xf] %vm830_vm2, %v1464_v48  ;;  %vm2937_vm2 = vmmov %vm2929_vm4 }
 0x485   : > { %1985 = vmatprep.mubr.msk.bf16.mxu0 %vm2937_vm2, %v2141_v54 }
 0x486   : > { %v1434_v15 = vpop.permute.xlu1 %1433 }
 0x487   : > { %v1496_v49 = vpop.permute.xlu0 %1495  ;;  %1442 = vst.msk [vmem:[#allocation4 + $0x18] sm:$0x3] %vm800_vm13, %v1434_v15 }
 0x488   : > { %1505 = vst.msk [vmem:[#allocation4 + $0x10] sm:$0xf] %vm864_vm8, %v1496_v49  ;;  %vm1729_vm8 = vcmask 261312  }
 0x48a   : > { %v1466_v52 = vpop.permute.xlu1 %1465 }
 0x48b   : > { %v1528_v50 = vpop.permute.xlu0 %1527  ;;  %1474 = vst.msk [vmem:[#allocation4 + $0x18] sm:$0x3] %vm2934_vm3, %v1466_v52 }
 0x48c   : > { %1537 = vst.msk [vmem:[#allocation4 + $0x10] sm:$0xf] %vm898_vm14, %v1528_v50  ;;  %vm2938_vm14 = vcmask 261120  }
 0x48d   : > { %vm2939_vm0 = vmmov %vm2938_vm14 }
 0x48e   : > { %v1498_v53 = vpop.permute.xlu1 %1497  ;;  %vm2940_vm13 = vmmov %vm2939_vm0 }
 0x48f   : > { %1506 = vst.msk [vmem:[#allocation4 + $0x18] sm:$0x3] %vm2935_vm5, %v1498_v53 }
 0x492   : > { %v1530_v22 = vpop.permute.xlu1 %1529 }
 0x493   : > { %1538 = vst.msk [vmem:[#allocation4 + $0x18] sm:$0x3] %vm2936_vm11, %v1530_v22 }
 0x49a   : > { %v2143_v56 = vld [vmem:[#allocation4 + $0x10] ss:$8 sps:$4 sm:$0x3f]  }
 0x49b   : > { %1705 = vmatmul.mubr.bf16.gmra.mrb[12].mxu0 %v2143_v56 }
 0x553   : > { %v1698_v18 = vpop.f32.mrb[8].mxu0 }
 0x554   : > { %1717 = vrot.lane.b32.xlu0 %v1698_v18, %s2161_s13  ;;  %v1700_v57 = vpop.f32.mrb[9].mxu0 }
 0x555   : > { %v1701_v58 = vpop.f32.mrb[10].mxu0 }
 0x556   : > { %1719 = vrot.lane.b32.xlu1 %v1701_v58, %s2161_s13  ;;  %v1703_v59 = vpop.f32.mrb[11].mxu0 }
 0x56e   : > { %v1706_v60 = vpop.f32.mrb[12].mxu0 }
 0x56f   : > { %1721 = vrot.lane.b32.xlu0 %v1706_v60, %s2161_s13  ;;  %v1708_v61 = vpop.f32.mrb[13].mxu0 }
 0x570   : > { %v1709_v62 = vpop.f32.mrb[14].mxu0 }
 0x571   : > { %1723 = vrot.lane.b32.xlu1 %v1709_v62, %s2161_s13  ;;  %v1711_v63 = vpop.f32.mrb[15].mxu0 }
 0x5c6   : > { %v1718_v0 = vpop.permute.xlu0 %1717 }
 0x5c7   : > { %1730 = vst.msk [vmem:[#allocation2 + $0x10] sm:$0xff] %vm1729_vm8, %v1718_v0 }
 0x5c8   : > { %v1720_v1 = vpop.permute.xlu1 %1719 }
 0x5c9   : > { %1731 = vst.msk [vmem:[#allocation2 + $0x18] sm:$0xff] %vm1729_vm8, %v1720_v1 }
 0x5ce   : > { %v1735_v7 = vld [vmem:[#allocation2 + $0x10] sm:$0xff] }
 0x5cf   : > { %v1746_v8 = vmul.f32 %v1986_v3, %v1735_v7 }
 0x5d0   : > { %v1736_v9 = vld [vmem:[#allocation2 + $0x18] sm:$0xff] }
 0x5d1   : > { %v1757_v11 = vadd.f32 %v1987_v4, %v1746_v8  ;;  %v1747_v12 = vmul.f32 %v1986_v3, %v1736_v9 }
 0x5d3   : > { %1761 = vst.msk [vmem:[%s334_s29] sm:$0xff] %vm2938_vm14, %v1757_v11  ;;  %v1758_v13 = vadd.f32 %v1987_v4, %v1747_v12 }
 0x5d5   : > { %1762 = vst.msk [vmem:[%s334_s29 + $0x8] sm:$0xff] %vm2939_vm0, %v1758_v13 }
 0x5e1   : > { %v1722_v14 = vpop.permute.xlu0 %1721 }
 0x5e2   : > { %1732 = vst.msk [vmem:[#allocation2 + $0x20] sm:$0xff] %vm1729_vm8, %v1722_v14 }
 0x5e3   : > { %v1724_v17 = vpop.permute.xlu1 %1723 }
 0x5e4   : > { %1734 = vst.msk [vmem:[#allocation2 + $0x28] sm:$0xf] %vm1733_vm15, %v1724_v17 }
 0x5e9   : > { %v1737_v19 = vld [vmem:[#allocation2 + $0x20] sm:$0xff] }
 0x5ea   : > { %v1748_v20 = vmul.f32 %v1986_v3, %v1737_v19 }
 0x5eb   : > { %v1738_v21 = vld [vmem:[#allocation2 + $0x28] sm:$0xf] }
 0x5ec   : > { %v1759_v33 = vadd.f32 %v1987_v4, %v1748_v20  ;;  %v1749_v5 = vmul.f32 %v1986_v3, %v1738_v21 }
 0x5ee   : > { %1763 = vst.msk [vmem:[%s334_s29 + $0x10] sm:$0xff] %vm2940_vm13, %v1759_v33  ;;  %v1760_v46 = vadd.f32 %v1987_v4, %v1749_v5 }
 0x5f0   : > { %1765 = vst.msk [vmem:[%s334_s29 + $0x18] sm:$0xf] %vm1764_vm12, %v1760_v46 }
 0x5f1 PF: > { %s19_s30 = sadd.s32 1, %s2150_s30  }
 0x5f2   : > { %p16_p5 = scmp.ge.s32.totalorder %s19_s30, 4  }
 0x5f4   :  { %18 = sbr.rel (!%p16_p5) target bundleno = 1 (0x1), region = 92 }

// kernel: _forward.4
= control target key start
LH: loop header
LB: loop body
LE: loop exit
PB: predicated region body
PF: predicated region fallthrough
CT: control target
= control target key end

     0   :  { %s5558_s13 = smov 0   ;;  %s7456_s0 = inlined_call_operand.vmem [shape: f32[128,16], index: 0, kind: input, shape index: {}]   ;;  %s7457_s1 = inlined_call_operand.vmem [shape: f32[2,1,32], index: 1, kind: input, shape index: {}]   ;;  %s7458_s2 = inlined_call_operand.vmem [shape: f32[2,1,32], index: 2, kind: input, shape index: {}]   ;;  %s7459_s3 = inlined_call_operand.vmem [shape: bf16[2,32,16], index: 3, kind: input, shape index: {}]   ;;  %s7460_s4 = inlined_call_operand.vmem [shape: f32[2,1,16], index: 4, kind: input, shape index: {}]   ;;  %s7461_s5 = inlined_call_operand.vmem [shape: f32[2,1,16], index: 5, kind: input, shape index: {}]   ;;  %s7462_s6 = inlined_call_operand.vmem [shape: bf16[2,144,8], index: 6, kind: input, shape index: {}]   ;;  %s7463_s7 = inlined_call_operand.vmem [shape: f32[1,32], index: 7, kind: input, shape index: {}]   ;;  %s7464_s8 = inlined_call_operand.vmem [shape: f32[1,32], index: 8, kind: input, shape index: {}]   ;;  %s7465_s9 = inlined_call_operand.vmem [shape: bf16[32,16], index: 9, kind: input, shape index: {}]   ;;  %s7466_s10 = inlined_call_operand.vmem [shape: f32[256,16], index: 10, kind: output, shape index: {}]  }
   0x1 LB: > { %s4557_s14 = sadd.s32 4294967295, %s5490_s13   ;;  %p4561_p0 = scmp.ge.s32.totalorder %s5490_s13, 1  ;;  %s5490_s13 = sphi %s5558_s13, %s20_s13  }
   0x2   : > { %p313_p1 = scmp.lt.s32.totalorder %s5490_s13, 3 }
   0x4   : > { %p314_p2 = pnand %p4561_p0, %p313_p1 }
   0x5   : > { %v5438_v0 = vld [vmem:[%s7459_s3] sm:$0xff] (!%p314_p2)   ;;  %v5492_v1 = vmov (!%p314_p2), 0.0   ;;  %v5439_v2 = vld [vmem:[%s7459_s3 + $0x8] sm:$0xff] (!%p314_p2)   ;;  %vm5493_vm0 = vmmov (!%p314_p2), 0   ;;  %vm364_vm1 = vcmask (!%p314_p2), 261120   ;;  %s4562_s19 = sshll.u32 (!%p314_p2), %s4557_s14, 3 }
   0x6   : > { %317 = sbr.rel (%p314_p2) target bundleno = 1912 (0x778), region = 60  ;;  %5303 = vmatprep.subr.bf16.mxu0 (!%p314_p2), %v5492_v1  ;;  %5307 = vmatprep.mubr.msk.bf16.mxu0 (!%p314_p2), %vm5493_vm0, %v5492_v1  ;;  %365 = vst.msk [vmem:[#allocation2] sm:$0xff] (!%p314_p2), %vm364_vm1, %v5492_v1  ;;  %366 = vst.msk [vmem:[#allocation2 + $0x8] sm:$0xff] (!%p314_p2), %vm364_vm1, %v5492_v1  ;;  %p352_p3 = scmp.lt.s32.totalorder (!%p314_p2), %s4562_s19, 15  ;;  %v5623_v3 = vld [vmem:[%s7457_s1] ss:$0 sm:$0xff] (!%p314_p2) }
   0x7   : > { %5304 = vmatpush3.bf16.msra.mxu0 (!%p314_p2), %v5438_v0  ;;  %367 = vst.msk [vmem:[#allocation2 + $0x10] sm:$0xff] (!%p314_p2), %vm364_vm1, %v5492_v1  ;;  %368 = vst.msk [vmem:[#allocation2 + $0x18] sm:$0xff] (!%p314_p2), %vm364_vm1, %v5492_v1  ;;  %vm387_vm2 = vcmask (!%p314_p2), 130048   ;;  %v5629_v4 = vld [vmem:[%s7458_s2] ss:$0 sm:$0xff] (!%p314_p2)  ;;  %s5494_s16 = smov (!%p314_p2), 16  }
   0x8   : > { %5305 = vmatprep.subr.bf16.mxu0 (!%p314_p2), %v5492_v1  ;;  %369 = vst.msk [vmem:[#allocation2 + $0x20] sm:$0xff] (!%p314_p2), %vm364_vm1, %v5492_v1  ;;  %370 = vst.msk [vmem:[#allocation2 + $0x28] sm:$0xff] (!%p314_p2), %vm364_vm1, %v5492_v1  ;;  %s5498_s25 = smov (!%p314_p2), 64   ;;  %s5499_s30 = smov (!%p314_p2), 80  }
   0x9   : > { %371 = vst.msk [vmem:[#allocation2 + $0x30] sm:$0xff] (!%p314_p2), %vm364_vm1, %v5492_v1  ;;  %372 = vst.msk [vmem:[#allocation2 + $0x38] sm:$0xff] (!%p314_p2), %vm364_vm1, %v5492_v1  ;;  %s5500_s18 = smov (!%p314_p2), 96   ;;  %s5501_s23 = smov (!%p314_p2), 112  }
   0xa   : > { %373 = vst.msk [vmem:[#allocation2 + $0x40] sm:$0xff] (!%p314_p2), %vm364_vm1, %v5492_v1  ;;  %374 = vst.msk [vmem:[#allocation2 + $0x48] sm:$0xff] (!%p314_p2), %vm364_vm1, %v5492_v1  ;;  %s4564_s21 = sshll.u32 (!%p314_p2), %s4557_s14, 4 }
   0xb   : > { %375 = vst.msk [vmem:[#allocation2 + $0x50] sm:$0xff] (!%p314_p2), %vm364_vm1, %v5492_v1  ;;  %376 = vst.msk [vmem:[#allocation2 + $0x58] sm:$0xff] (!%p314_p2), %vm364_vm1, %v5492_v1  ;;  %5306 = vmatpush3.bf16.msra.mxu0 (!%p314_p2), %v5439_v2  ;;  %p358_p4 = scmp.lt.s32.totalorder (!%p314_p2), %s4564_s21, 31 }
   0xc   : > { %377 = vst.msk [vmem:[#allocation2 + $0x60] sm:$0xff] (!%p314_p2), %vm364_vm1, %v5492_v1  ;;  %378 = vst.msk [vmem:[#allocation2 + $0x68] sm:$0xff] (!%p314_p2), %vm364_vm1, %v5492_v1  ;;  %5351 = vmatprep.subr.bf16.mxu0 (!%p314_p2), %v5492_v1 }
   0xd   : > { %379 = vst.msk [vmem:[#allocation2 + $0x70] sm:$0xff] %vm364_vm1, %v5492_v1  ;;  %380 = vst.msk [vmem:[#allocation2 + $0x78] sm:$0xff] %vm364_vm1, %v5492_v1  ;;  %s7600_s19 = smov (!%p352_p3, %s4562_s19), 15  ;;  %v698_v8 = vld [vmem:[#allocation2] sm:$0xff]  ;;  %v699_v9 = vld [vmem:[#allocation2 + $0x8] sm:$0xff]  ;;  %s7602_s21 = smov (!%p358_p4, %s4564_s21), 31 }
   0xe   : > { %381 = vst.msk [vmem:[#allocation2 + $0x80] sm:$0xff] %vm364_vm1, %v5492_v1  ;;  %382 = vst.msk [vmem:[#allocation2 + $0x88] sm:$0xff] %vm364_vm1, %v5492_v1  ;;  %s4563_s22 = sshll.u32 %s7600_s19, 3  ;;  %v700_v10 = vld [vmem:[#allocation2 + $0x10] sm:$0xff]  ;;  %v726_v11 = vmul.f32 %v5623_v3, %v698_v8  ;;  %v727_v12 = vmul.f32 %v5623_v3, %v699_v9  ;;  %s5496_s19 = smov 32  }
   0xf   : > { %383 = vst.msk [vmem:[#allocation2 + $0x90] sm:$0xff] %vm364_vm1, %v5492_v1  ;;  %384 = vst.msk [vmem:[#allocation2 + $0x98] sm:$0xff] %vm364_vm1, %v5492_v1  ;;  %s355_s27 = scalar_lea.vmem %s7456_s0, %s4563_s22  ;;  %v728_v14 = vmul.f32 %v5623_v3, %v700_v10  ;;  %v702_v25 = vld [vmem:[#allocation2 + $0x20] sm:$0xff]  ;;  %s5497_s22 = smov 48  }
  0x10   : > { %385 = vst.msk [vmem:[#allocation2 + $0xa0] sm:$0xff] %vm364_vm1, %v5492_v1  ;;  %v386_v5 = vld [vmem:[%s355_s27] sm:$0xff]  ;;  %v389_v6 = vld [vmem:[%s355_s27 + $0x8] sm:$0xff]  ;;  %v391_v7 = vld [vmem:[%s355_s27 + $0x10] sm:$0xff]  ;;  %v754_v16 = vadd.f32 %v5629_v4, %v726_v11  ;;  %v755_v17 = vadd.f32 %v5629_v4, %v727_v12  ;;  %v730_v31 = vmul.f32 %v5623_v3, %v702_v25  ;;  %s4565_s24 = sshll.u32 %s7602_s21, 3 }
  0x11   : > { %388 = vst.msk [vmem:[#allocation2 + $0x18] sm:$0xff] %vm387_vm2, %v386_v5  ;;  %390 = vst.msk [vmem:[#allocation2 + $0x28] sm:$0xff] %vm387_vm2, %v389_v6  ;;  %v393_v13 = vld [vmem:[%s355_s27 + $0x18] sm:$0xff]  ;;  %v395_v15 = vld [vmem:[%s355_s27 + $0x20] sm:$0xff]  ;;  %v756_v24 = vadd.f32 %v5629_v4, %v728_v14  ;;  %s7421_s28 = scalar_lea.vmem %s7466_s10, %s4565_s24 }
  0x12   : > { %392 = vst.msk [vmem:[#allocation2 + $0x38] sm:$0xff] %vm387_vm2, %v391_v7  ;;  %394 = vst.msk [vmem:[#allocation2 + $0x48] sm:$0xff] %vm387_vm2, %v393_v13  ;;  %v397_v18 = vld [vmem:[%s355_s27 + $0x28] sm:$0xff]  ;;  %v399_v19 = vld [vmem:[%s355_s27 + $0x30] sm:$0xff]  ;;  %v775_v22 = vmax.f32 %v754_v16, 0.0  ;;  %v776_v23 = vmax.f32 %v755_v17, 0.0  ;;  %v758_v44 = vadd.f32 %v5629_v4, %v730_v31 }
  0x13   : > { %396 = vst.msk [vmem:[#allocation2 + $0x58] sm:$0xff] %vm387_vm2, %v395_v15  ;;  %398 = vst.msk [vmem:[#allocation2 + $0x68] sm:$0xff] %vm387_vm2, %v397_v18  ;;  %v401_v20 = vld [vmem:[%s355_s27 + $0x38] sm:$0xff]  ;;  %v777_v37 = vmax.f32 %v756_v24, 0.0  ;;  %v704_v38 = vld [vmem:[#allocation2 + $0x30] sm:$0xff] }
  0x14   : > { %400 = vst.msk [vmem:[#allocation2 + $0x78] sm:$0xff] %vm387_vm2, %v399_v19  ;;  %402 = vst.msk [vmem:[#allocation2 + $0x88] sm:$0xff] %vm387_vm2, %v401_v20  ;;  %v796_v26 = vpack.c.bf16 %v776_v23, %v775_v22  ;;  %v732_v51 = vmul.f32 %v5623_v3, %v704_v38  ;;  %v779_v55 = vmax.f32 %v758_v44, 0.0  ;;  %v706_v63 = vld [vmem:[#allocation2 + $0x40] sm:$0xff]  ;;  %v708_v15 = vld [vmem:[#allocation2 + $0x50] sm:$0xff] }
  0x15   : > { %v714_v21 = vld [vmem:[#allocation2 + $0x80] sm:$0xff]  ;;  %v734_v10 = vmul.f32 %v5623_v3, %v706_v63  ;;  %v736_v19 = vmul.f32 %v5623_v3, %v708_v15 }
  0x16   : > { %v742_v29 = vmul.f32 %v5623_v3, %v714_v21  ;;  %5308 = vmatmul.mubr.msk.bf16.vlgmr.msra.gmra.mrb[0].mxu0 %vm364_vm1, %v796_v26  ;;  %v716_v34 = vld [vmem:[#allocation2 + $0x90] sm:$0xff]  ;;  %v717_v35 = vld [vmem:[#allocation2 + $0x98] sm:$0xff]  ;;  %v760_v6 = vadd.f32 %v5629_v4, %v732_v51  ;;  %v710_v24 = vld [vmem:[#allocation2 + $0x60] sm:$0xff] }
  0x17   : > { %5311 = vmatprep.mubr.msk.bf16.mxu0 %vm5493_vm0, %v5492_v1  ;;  %v744_v41 = vmul.f32 %v5623_v3, %v716_v34  ;;  %v745_v42 = vmul.f32 %v5623_v3, %v717_v35  ;;  %v718_v43 = vld [vmem:[#allocation2 + $0xa0] sm:$0xff]  ;;  %v762_v13 = vadd.f32 %v5629_v4, %v734_v10  ;;  %v764_v22 = vadd.f32 %v5629_v4, %v736_v19 }
  0x18   : > { %v701_v27 = vld [vmem:[#allocation2 + $0x18] sm:$0xff]  ;;  %v703_v28 = vld [vmem:[#allocation2 + $0x28] sm:$0xff]  ;;  %v770_v33 = vadd.f32 %v5629_v4, %v742_v29  ;;  %v746_v54 = vmul.f32 %v5623_v3, %v718_v43  ;;  %v781_v8 = vmax.f32 %v760_v6, 0.0 }
  0x19   : > { %v729_v30 = vmul.f32 %v5623_v3, %v701_v27  ;;  %v731_v32 = vmul.f32 %v5623_v3, %v703_v28  ;;  %v705_v48 = vld [vmem:[#allocation2 + $0x38] sm:$0xff]  ;;  %v772_v52 = vadd.f32 %v5629_v4, %v744_v41  ;;  %v773_v53 = vadd.f32 %v5629_v4, %v745_v42  ;;  %v707_v0 = vld [vmem:[#allocation2 + $0x48] sm:$0xff] }
  0x1a   : > { %v791_v50 = vmax.f32 %v770_v33, 0.0  ;;  %v733_v57 = vmul.f32 %v5623_v3, %v705_v48  ;;  %v5672_v61 = vadd.f32 %v5629_v4, %v746_v54  ;;  %v735_v11 = vmul.f32 %v5623_v3, %v707_v0  ;;  %v709_v16 = vld [vmem:[#allocation2 + $0x58] sm:$0xff]  ;;  %v711_v25 = vld [vmem:[#allocation2 + $0x68] sm:$0xff]  ;;  %v712_v33 = vld [vmem:[#allocation2 + $0x70] sm:$0xff] }
  0x1b   : > { %v757_v36 = vadd.f32 %v5629_v4, %v729_v30  ;;  %v715_v40 = vld [vmem:[#allocation2 + $0x88] sm:$0xff]  ;;  %v759_v45 = vadd.f32 %v5629_v4, %v731_v32  ;;  %v793_v59 = vmax.f32 %v772_v52, 0.0  ;;  %v794_v60 = vmax.f32 %v773_v53, 0.0  ;;  %v713_v34 = vld [vmem:[#allocation2 + $0x78] sm:$0xff] }
  0x1c   : > { %v743_v46 = vmul.f32 %v5623_v3, %v715_v40  ;;  %v761_v7 = vadd.f32 %v5629_v4, %v733_v57  ;;  %v763_v14 = vadd.f32 %v5629_v4, %v735_v11  ;;  %v783_v17 = vmax.f32 %v762_v13, 0.0 }
  0x1d   : > { %v778_v39 = vmax.f32 %v757_v36, 0.0  ;;  %v780_v56 = vmax.f32 %v759_v45, 0.0  ;;  %v805_v2 = vpack.c.bf16 %v794_v60, %v793_v59  ;;  %v737_v20 = vmul.f32 %v5623_v3, %v709_v16  ;;  %v5738_v60 = vld [vmem:[%s7460_s4] ss:$0 sm:$0xff] }
  0x1e   : > { %v771_v49 = vadd.f32 %v5629_v4, %v743_v46  ;;  %v782_v9 = vmax.f32 %v761_v7, 0.0  ;;  %v784_v18 = vmax.f32 %v763_v14, 0.0  ;;  %v785_v26 = vmax.f32 %v764_v22, 0.0 }
  0x1f   : > { %v797_v47 = vpack.c.bf16 %v778_v39, %v777_v37  ;;  %v798_v5 = vpack.c.bf16 %v780_v56, %v779_v55  ;;  %v765_v23 = vadd.f32 %v5629_v4, %v737_v20  ;;  %v738_v28 = vmul.f32 %v5623_v3, %v710_v24 }
  0x20   : > { %v792_v58 = vmax.f32 %v771_v49, 0.0  ;;  %v799_v12 = vpack.c.bf16 %v782_v9, %v781_v8  ;;  %v800_v21 = vpack.c.bf16 %v784_v18, %v783_v17  ;;  %v739_v29 = vmul.f32 %v5623_v3, %v711_v25 }
  0x21   : > { %5312 = vmatmul.mubr.msk.bf16.gmra.mrb[4].mxu0 %vm364_vm1, %v797_v47  ;;  %v786_v27 = vmax.f32 %v765_v23, 0.0  ;;  %v766_v31 = vadd.f32 %v5629_v4, %v738_v28  ;;  %v740_v37 = vmul.f32 %v5623_v3, %v712_v33  ;;  %v741_v38 = vmul.f32 %v5623_v3, %v713_v34 }
  0x22   : > { %5315 = vmatprep.mubr.msk.bf16.mxu0 %vm5493_vm0, %v5492_v1  ;;  %v804_v62 = vpack.c.bf16 %v792_v58, %v791_v50  ;;  %v767_v32 = vadd.f32 %v5629_v4, %v739_v29  ;;  %v795_v3 = vmax.f32 %v5672_v61, 0.0  ;;  %v403_v45 = vlaneseq }
  0x23   : > { %v801_v30 = vpack.c.bf16 %v786_v27, %v785_v26  ;;  %v787_v35 = vmax.f32 %v766_v31, 0.0  ;;  %v768_v40 = vadd.f32 %v5629_v4, %v740_v37  ;;  %v769_v41 = vadd.f32 %v5629_v4, %v741_v38 }
  0x24   : > { %v788_v36 = vmax.f32 %v767_v32, 0.0  ;;  %v806_v4 = vpack.c.bf16 %v795_v3, %v795_v3  ;;  %v5720_v46 = vshrl.u32 %v403_v45, 7  ;;  %v5495_v25 = vmov 0  }
  0x25   : > { %v789_v42 = vmax.f32 %v768_v40, 0.0  ;;  %v790_v43 = vmax.f32 %v769_v41, 0.0  ;;  %2312 = vmatprep.subr.bf16.mxu1 %v5495_v25 }
  0x26   : > { %v802_v39 = vpack.c.bf16 %v788_v36, %v787_v35  ;;  %v4566_v47 = vadd.s32 4294967289, %v5720_v46  ;;  %v405_v49 = vadd.s32 8, %v5720_v46  ;;  %v406_v50 = vadd.s32 16, %v5720_v46 }
  0x27   : > { %v803_v44 = vpack.c.bf16 %v790_v43, %v789_v42  ;;  %v407_v54 = vadd.s32 24, %v5720_v46  ;;  %v408_v57 = vadd.s32 32, %v5720_v46  ;;  %v409_v16 = vadd.s32 40, %v5720_v46 }
  0x28   : > { %v446_v48 = vshra.s32 %v4566_v47, 4  ;;  %vm488_vm3 = vcmp.ge.s32.totalorder %v4566_v47, 0  ;;  %v467_v51 = vand.u32 15, %v4566_v47  ;;  %v4567_v52 = vadd.s32 4294967289, %v405_v49 }
  0x29   : > { %5316 = vmatmul.mubr.msk.bf16.gmra.mrb[8].mxu0 %vm364_vm1, %v798_v5  ;;  %v4568_v53 = vadd.s32 4294967289, %v406_v50  ;;  %v4569_v61 = vadd.s32 4294967289, %v407_v54  ;;  %v5751_v5 = vld [vmem:[%s7461_s5] ss:$0 sm:$0xff]  ;;  %v4570_v8 = vadd.s32 4294967289, %v408_v57  ;;  %v410_v19 = vadd.s32 48, %v5720_v46 }
  0x2a   : > { %5319 = vmatprep.mubr.msk.bf16.mxu0 %vm5493_vm0, %v5492_v1  ;;  %vm509_vm4 = vcmp.ge.s32.totalorder %v446_v48, 1  ;;  %vm551_vm6 = vcmp.le.s32.totalorder %v446_v48, 8  ;;  %vm593_vm8 = vcmp.ge.s32.totalorder %v467_v51, 1  ;;  %v447_v55 = vshra.s32 %v4567_v52, 4 }
  0x2b   : > { %vm530_vm5 = vmand %vm488_vm3, %vm509_vm4  ;;  %v448_v56 = vshra.s32 %v4568_v53, 4  ;;  %vm5731_vm10 = vcmp.le.s32.totalorder %v467_v51, 8  ;;  %v469_v0 = vand.u32 15, %v4568_v53  ;;  %v450_v18 = vshra.s32 %v4570_v8, 4 }
  0x2c   : > { %vm572_vm7 = vmand %vm530_vm5, %vm551_vm6  ;;  %vm5740_vm11 = vcmp.ge.s32.totalorder %v447_v55, 1  ;;  %vm5744_vm12 = vcmp.le.s32.totalorder %v447_v55, 8  ;;  %v471_v29 = vand.u32 15, %v4570_v8  ;;  %v5810_v34 = vadd.s32 4294967289, %v410_v19 }
  0x2d   : > { %vm5727_vm9 = vmand %vm572_vm7, %vm593_vm8  ;;  %vm5753_vm13 = vcmp.ge.s32.totalorder %v448_v56, 1  ;;  %vm5757_vm14 = vcmp.le.s32.totalorder %v448_v56, 8  ;;  %vm595_vm5 = vcmp.ge.s32.totalorder %v469_v0, 1  ;;  %vm5789_vm7 = vcmp.le.s32.totalorder %v469_v0, 8 }
  0x2e   : > { %vm656_vm15 = vmand %vm5727_vm9, %vm5731_vm10  ;;  %vm5802_vm10 = vcmp.ge.s32.totalorder %v450_v18, 1  ;;  %v412_v40 = vadd.s32 64, %v5720_v46  ;;  %v473_v48 = vand.u32 15, %v5810_v34  ;;  %v413_v19 = vadd.s32 72, %v5720_v46 }
  0x2f   : > { %vm573_vm3 = vmand %vm5740_vm11, %vm5744_vm12  ;;  %v5778_v17 = vsel %vm656_vm15, 1.0, %v5492_v1  ;;  %vm5806_vm11 = vcmp.le.s32.totalorder %v450_v18, 8  ;;  %vm597_vm15 = vcmp.ge.s32.totalorder %v471_v29, 1 }
  0x30   : > { %vm574_vm4 = vmand %vm5753_vm13, %vm5757_vm14  ;;  %v5783_v22 = vsel %vm573_vm3, 1.0, %v5492_v1  ;;  %v5854_v53 = vadd.s32 4294967289, %v412_v40 }
  0x31   : > { %5320 = vmatmul.mubr.msk.bf16.gmra.mrb[12].mxu0 %vm364_vm1, %v799_v12  ;;  %v449_v12 = vshra.s32 %v4569_v61, 4  ;;  %vm5785_vm6 = vmand %vm574_vm4, %vm595_vm5  ;;  %vm5850_vm4 = vcmp.le.s32.totalorder %v471_v29, 8 }
  0x32   : > { %5323 = vmatprep.mubr.msk.bf16.mxu0 %vm5493_vm0, %v5492_v1  ;;  %vm658_vm12 = vmand %vm5785_vm6, %vm5789_vm7 }
  0x33   : > { %vm5793_vm8 = vcmp.ge.s32.totalorder %v449_v12, 1  ;;  %vm5797_vm9 = vcmp.le.s32.totalorder %v449_v12, 8  ;;  %vm576_vm14 = vmand %vm5802_vm10, %vm5806_vm11  ;;  %v5833_v3 = vsel %vm658_vm12, 1.0, %v5492_v1  ;;  %vm5880_vm10 = vcmp.ge.s32.totalorder %v473_v48, 1 }
  0x34   : > { %vm575_vm13 = vmand %vm5793_vm8, %vm5797_vm9  ;;  %vm1171_vm11 = vcmask 125952  }
  0x35   : > { %v5844_v49 = vsel %vm575_vm13, 1.0, %v5492_v1  ;;  %vm5846_vm3 = vmand %vm576_vm14, %vm597_vm15  ;;  %vm5927_vm15 = vcmp.le.s32.totalorder %v473_v48, 8 }
  0x36   : > { %vm660_vm9 = vmand %vm5846_vm3, %vm5850_vm4 }
  0x37   : > { %v5903_v18 = vsel %vm660_vm9, 1.0, %v5492_v1 }
  0x39   : > { %5324 = vmatmul.mubr.msk.bf16.gmra.mrb[16].mxu0 %vm364_vm1, %v800_v21 }
  0x3a   : > { %5327 = vmatprep.mubr.msk.bf16.mxu0 %vm5493_vm0, %v5492_v1 }
  0x41   : > { %5328 = vmatmul.mubr.msk.bf16.gmra.mrb[20].mxu0 %vm364_vm1, %v801_v30  ;;  %v4571_v30 = vadd.s32 4294967289, %v409_v16 }
  0x42   : > { %5331 = vmatprep.mubr.msk.bf16.mxu0 %vm5493_vm0, %v5492_v1 }
  0x49   : > { %5332 = vmatmul.mubr.msk.bf16.gmra.mrb[24].mxu0 %vm364_vm1, %v802_v39  ;;  %v411_v39 = vadd.s32 56, %v5720_v46 }
  0x4a   : > { %5335 = vmatprep.mubr.msk.bf16.mxu0 %vm5493_vm0, %v5492_v1 }
  0x4b   : > { %v4573_v52 = vadd.s32 4294967289, %v411_v39  ;;  %v4575_v39 = vadd.s32 4294967289, %v413_v19 }
  0x4d   : > { %v453_v8 = vshra.s32 %v4573_v52, 4 }
  0x4f   : > { %vm5939_vm4 = vcmp.ge.s32.totalorder %v453_v8, 1 }
  0x51   : > { %5336 = vmatmul.mubr.msk.bf16.gmra.mrb[28].mxu0 %vm364_vm1, %v803_v44  ;;  %v451_v44 = vshra.s32 %v4571_v30, 4 }
  0x52   : > { %5339 = vmatprep.mubr.msk.bf16.mxu0 %vm5493_vm0, %v5492_v1 }
  0x53   : > { %vm5857_vm5 = vcmp.ge.s32.totalorder %v451_v44, 1  ;;  %vm5861_vm6 = vcmp.le.s32.totalorder %v451_v44, 8 }
  0x54   : > { %vm577_vm12 = vmand %vm5857_vm5, %vm5861_vm6  ;;  %vm5948_vm6 = vcmp.le.s32.totalorder %v453_v8, 8 }
  0x55   : > { %v5915_v23 = vsel %vm577_vm12, 1.0, %v5492_v1 }
  0x59   : > { %5340 = vmatmul.mubr.msk.bf16.gmra.mrb[32].mxu0 %vm364_vm1, %v804_v62 }
  0x5a   : > { %5343 = vmatprep.mubr.msk.bf16.mxu0 %vm5493_vm0, %v5492_v1 }
  0x61   : > { %5344 = vmatmul.mubr.msk.bf16.gmra.mrb[36].mxu0 %vm364_vm1, %v805_v2 }
  0x62   : > { %5347 = vmatprep.mubr.msk.bf16.mxu0 %vm5493_vm0, %v5492_v1 }
  0x69   : > { %5348 = vmatmul.mubr.msk.bf16.gmra.mrb[40].mxu0 %vm364_vm1, %v806_v4  ;;  %v452_v4 = vshra.s32 %v5810_v34, 4 }
  0x6a   : > { %5355 = vmatprep.mubr.msk.bf16.mxu0 %vm5493_vm0, %v5492_v1 }
  0x6b   : > { %vm5865_vm7 = vcmp.ge.s32.totalorder %v452_v4, 1  ;;  %vm5869_vm8 = vcmp.le.s32.totalorder %v452_v4, 8 }
  0x6c   : > { %vm578_vm13 = vmand %vm5865_vm7, %vm5869_vm8 }
  0x6d   : > { %vm5923_vm14 = vmand %vm578_vm13, %vm5880_vm10 }
  0x6e   : > { %vm662_vm7 = vmand %vm5923_vm14, %vm5927_vm15 }
  0x6f   : > { %v5983_v59 = vsel %vm662_vm7, 1.0, %v5492_v1  ;;  %vm579_vm10 = vmand %vm5939_vm4, %vm5948_vm6 }
  0xe9   : > { %v890_v2 = vpop.f32.mrb[0].mxu0 }
  0xea   : > { %v983_v9 = vmul.f32 %v5738_v60, %v890_v2  ;;  %v5309_v10 = vpop.f32.mrb[1].mxu0 }
  0xeb   : > { %v893_v11 = vpop.f32.mrb[2].mxu0  ;;  %v414_v10 = vadd.s32 80, %v5720_v46 }
  0xec   : > { %v1011_v13 = vadd.f32 %v5751_v5, %v983_v9  ;;  %v984_v14 = vmul.f32 %v5738_v60, %v893_v11  ;;  %v5310_v15 = vpop.f32.mrb[3].mxu0  ;;  %v454_v9 = vshra.s32 %v5854_v53, 4 }
  0xed   : > { %v5936_v30 = vadd.s32 4294967289, %v414_v10 }
  0xee   : > { %v1032_v20 = vmax.f32 %v1011_v13, 0.0  ;;  %v1012_v21 = vadd.f32 %v5751_v5, %v984_v14  ;;  %vm5932_vm3 = vcmp.ge.s32.totalorder %v454_v9, 1  ;;  %vm5943_vm5 = vcmp.le.s32.totalorder %v454_v9, 8 }
  0xef   : > { %vm580_vm8 = vmand %vm5932_vm3, %vm5943_vm5  ;;  %v456_v52 = vshra.s32 %v5936_v30, 4  ;;  %v477_v8 = vand.u32 15, %v5936_v30 }
  0xf0   : > { %v1053_v27 = vmul.f32 %v1032_v20, %v5778_v17  ;;  %v1033_v28 = vmax.f32 %v1012_v21, 0.0  ;;  %v5440_v20 = vld [vmem:[%s7462_s6] sm:$0xff]  }
  0xf1   : > { %2313 = vmatpush1.bf16.msra.mxu1 %v5440_v20  ;;  %vm6013_vm14 = vcmp.ge.s32.totalorder %v456_v52, 1  ;;  %vm6017_vm15 = vcmp.le.s32.totalorder %v456_v52, 8  ;;  %vm6052_vm6 = vcmp.ge.s32.totalorder %v477_v8, 1 }
  0xf2   : > { %1074 = vst.msk [vmem:[#allocation3] sm:$0xff] %vm387_vm2, %v1053_v27  ;;  %v1054_v35 = vmul.f32 %v1033_v28, %v5783_v22  ;;  %v475_v28 = vand.u32 15, %v5854_v53  ;;  %2314 = vmatprep.subr.bf16.mxu1 %v5495_v25  ;;  %v415_v53 = vadd.s32 88, %v5720_v46  ;;  %vm582_vm4 = vmand %vm6013_vm14, %vm6017_vm15 }
  0xf4   : > { %v898_v31 = vpop.f32.mrb[4].mxu0  ;;  %1075 = vst.msk [vmem:[#allocation3 + $0x8] sm:$0xff] %vm387_vm2, %v1054_v35  ;;  %vm5966_vm9 = vcmp.ge.s32.totalorder %v475_v28, 1  ;;  %vm6005_vm13 = vcmp.le.s32.totalorder %v475_v28, 8 }
  0xf5   : > { %v985_v36 = vmul.f32 %v5738_v60, %v898_v31  ;;  %v5313_v37 = vpop.f32.mrb[5].mxu0  ;;  %vm6001_vm12 = vmand %vm580_vm8, %vm5966_vm9 }
  0xf6   : > { %v901_v38 = vpop.f32.mrb[6].mxu0  ;;  %vm664_vm3 = vmand %vm6001_vm12, %vm6005_vm13 }
  0xf7   : > { %v1013_v41 = vadd.f32 %v5751_v5, %v985_v36  ;;  %v986_v42 = vmul.f32 %v5738_v60, %v901_v38  ;;  %v5314_v43 = vpop.f32.mrb[7].mxu0  ;;  %v6069_v38 = vsel %vm664_vm3, 1.0, %v5492_v1  ;;  %vm6089_vm9 = vmand %vm582_vm4, %vm6052_vm6 }
  0xf9   : > { %v1034_v45 = vmax.f32 %v1013_v41, 0.0  ;;  %v1014_v47 = vadd.f32 %v5751_v5, %v986_v42 }
  0xfb   : > { %v1055_v54 = vmul.f32 %v1034_v45, %v5833_v3  ;;  %v1035_v55 = vmax.f32 %v1014_v47, 0.0  ;;  %v1187_v7 = vld [vmem:[#allocation3 + $0x8] sm:$0xff]  ;;  %v5441_v45 = vld [vmem:[%s7462_s6 + $0x8] sm:$0xff]  }
  0xfc   : > { %v906_v58 = vpop.f32.mrb[8].mxu0  ;;  %v1095_v11 = vld [vmem:[#allocation3 + $0x7] sm:$0xff]  ;;  %v5012_v15 = vpack.c.bf16 %v1187_v7, %v1187_v7  ;;  %2315 = vmatpush1.bf16.msra.mxu1 %v5441_v45  ;;  %v417_v45 = vadd.s32 104, %v5720_v46 }
  0xfd   : > { %1076 = vst.msk [vmem:[#allocation3 + $0x10] sm:$0xff] %vm387_vm2, %v1055_v54  ;;  %v1056_v62 = vmul.f32 %v1035_v55, %v5844_v49  ;;  %v987_v63 = vmul.f32 %v5738_v60, %v906_v58  ;;  %v5317_v0 = vpop.f32.mrb[9].mxu0  ;;  %v4997_v16 = vpack.c.bf16 %v1095_v11, %v1095_v11  ;;  %v416_v58 = vadd.s32 96, %v5720_v46  ;;  %2316 = vmatprep.subr.bf16.mxu1 %v5495_v25 }
  0xfe   : > { %v909_v6 = vpop.f32.mrb[10].mxu0  ;;  %1248 = vrot.lane.b32.xlu0 %v5012_v15, %s5494_s16  ;;  %v6030_v15 = vsel %vm579_vm10, 1.0, %v5492_v1  ;;  %vm6093_vm10 = vcmp.le.s32.totalorder %v477_v8, 8  ;;  %v4579_v7 = vadd.s32 4294967289, %v417_v45 }
  0xff   : > { %1077 = vst.msk [vmem:[#allocation3 + $0x18] sm:$0xff] %vm387_vm2, %v1056_v62  ;;  %v1015_v12 = vadd.f32 %v5751_v5, %v987_v63  ;;  %v988_v13 = vmul.f32 %v5738_v60, %v909_v6  ;;  %v5318_v14 = vpop.f32.mrb[11].mxu0  ;;  %v455_v62 = vshra.s32 %v4575_v39, 4  ;;  %v5442_v63 = vld [vmem:[%s7462_s6 + $0x10] sm:$0xff]   ;;  %vm666_vm14 = vmand %vm6089_vm9, %vm6093_vm10 }
 0x100   : > { %1172 = vst.msk [vmem:[#allocation4] sm:$0xf] %vm1171_vm11, %v4997_v16  ;;  %v6032_v16 = vadd.s32 4294967289, %v416_v58  ;;  %2317 = vmatpush1.bf16.msra.mxu1 %v5442_v63 }
 0x101   : > { %v1036_v21 = vmax.f32 %v1015_v12, 0.0  ;;  %v1016_v24 = vadd.f32 %v5751_v5, %v988_v13  ;;  %v4577_v13 = vadd.s32 4294967289, %v415_v53  ;;  %vm6038_vm5 = vcmp.ge.s32.totalorder %v455_v62, 1  ;;  %2318 = vmatprep.subr.bf16.mxu1 %v5495_v25 }
 0x102   : > { %vm6042_vm7 = vcmp.le.s32.totalorder %v455_v62, 8  ;;  %v479_v58 = vand.u32 15, %v6032_v16 }
 0x103   : > { %v1057_v31 = vmul.f32 %v1036_v21, %v5903_v18  ;;  %v1037_v32 = vmax.f32 %v1016_v24, 0.0  ;;  %vm581_vm8 = vmand %vm6038_vm5, %vm6042_vm7 }
 0x104   : > { %v914_v35 = vpop.f32.mrb[12].mxu0  ;;  %v1309_v36 = vld [vmem:[#allocation3 + $0x9] sm:$0xff]  ;;  %v6111_v53 = vsel %vm581_vm8, 1.0, %v5492_v1  ;;  %vm6169_vm7 = vcmp.ge.s32.totalorder %v479_v58, 1  ;;  %vm6200_vm6 = vcmp.le.s32.totalorder %v479_v58, 8 }
 0x105   : > { %v1188_v37 = vld [vmem:[#allocation3 + $0x10] sm:$0xff]  ;;  %1078 = vst.msk [vmem:[#allocation3 + $0x20] sm:$0xff] %vm387_vm2, %v1057_v31  ;;  %v1058_v41 = vmul.f32 %v1037_v32, %v5915_v23  ;;  %v989_v42 = vmul.f32 %v5738_v60, %v914_v35  ;;  %v5027_v43 = vpack.c.bf16 %v1309_v36, %v1309_v36  ;;  %v5321_v4 = vpop.f32.mrb[13].mxu0 }
 0x106   : > { %v1096_v40 = vld [vmem:[#allocation3 + $0xf] sm:$0xff]  ;;  %v5013_v44 = vpack.c.bf16 %v1188_v37, %v1188_v37  ;;  %v1431_v47 = vld [vmem:[#allocation3 + $0x17] sm:$0xff]  ;;  %v917_v50 = vpop.f32.mrb[14].mxu0  ;;  %v457_v37 = vshra.s32 %v4577_v13, 4 }
 0x107   : > { %v1310_v48 = vld [vmem:[#allocation3 + $0x11] sm:$0xff]  ;;  %v4998_v54 = vpack.c.bf16 %v1096_v40, %v1096_v40  ;;  %1079 = vst.msk [vmem:[#allocation3 + $0x28] sm:$0xff] %vm387_vm2, %v1058_v41  ;;  %v1017_v55 = vadd.f32 %v5751_v5, %v989_v42  ;;  %1370 = vrot.lane.b32.xlu1 %v5027_v43, %s5496_s19  ;;  %v5042_v56 = vpack.c.bf16 %v1431_v47, %v1431_v47  ;;  %v5322_v57 = vpop.f32.mrb[15].mxu0  ;;  %v458_v42 = vshra.s32 %v6032_v16, 4 }
 0x108   : > { %1250 = vrot.lane.b32.xlu0 %v5013_v44, %s5494_s16  ;;  %v990_v61 = vmul.f32 %v5738_v60, %v917_v50  ;;  %v5028_v2 = vpack.c.bf16 %v1310_v48, %v1310_v48  ;;  %v1553_v10 = vld [vmem:[#allocation3 + $0x18] sm:$0xff]  ;;  %v5443_v32 = vld [vmem:[%s7462_s6 + $0x18] sm:$0xff]   ;;  %v418_v47 = vadd.s32 112, %v5720_v46  ;;  %vm6114_vm12 = vcmp.ge.s32.totalorder %v457_v37, 1 }
 0x109   : > { %1173 = vst.msk [vmem:[#allocation4 + $0x8] sm:$0xf] %vm1171_vm11, %v4998_v54  ;;  %v1038_v0 = vmax.f32 %v1017_v55, 0.0  ;;  %1174 = vst.msk [vmem:[#allocation4 + $0x10] sm:$0xf] %vm1171_vm11, %v5042_v56  ;;  %v5057_v27 = vpack.c.bf16 %v1553_v10, %v1553_v10  ;;  %2319 = vmatpush1.bf16.msra.mxu1 %v5443_v32  ;;  %v5444_v48 = vld [vmem:[%s7462_s6 + $0x20] sm:$0xff]  }
 0x10a   : > { %v1018_v9 = vadd.f32 %v5751_v5, %v990_v61  ;;  %2320 = vmatprep.subr.bf16.mxu1 %v5495_v25  ;;  %vm6118_vm13 = vcmp.le.s32.totalorder %v457_v37, 8  ;;  %vm6130_vm15 = vcmp.ge.s32.totalorder %v458_v42, 1  ;;  %vm6134_vm3 = vcmp.le.s32.totalorder %v458_v42, 8 }
 0x10b   : > { %v1059_v14 = vmul.f32 %v1038_v0, %v5983_v59  ;;  %1372 = vrot.lane.b32.xlu1 %v5028_v2, %s5496_s19  ;;  %v6138_v8 = vadd.s32 4294967289, %v418_v47  ;;  %vm583_vm5 = vmand %vm6114_vm12, %vm6118_vm13  ;;  %v459_v32 = vshra.s32 %v4579_v7, 4 }
 0x10c   : > { %1492 = vrot.lane.b32.xlu0 %v5042_v56, %s5497_s22  ;;  %v1039_v19 = vmax.f32 %v1018_v9, 0.0  ;;  %v1432_v20 = vld [vmem:[#allocation3 + $0x1f] sm:$0xff]  ;;  %v922_v21 = vpop.f32.mrb[16].mxu0  ;;  %vm584_vm4 = vmand %vm6130_vm15, %vm6134_vm3 }
 0x10d   : > { %1080 = vst.msk [vmem:[#allocation3 + $0x30] sm:$0xff] %vm387_vm2, %v1059_v14  ;;  %v5043_v28 = vpack.c.bf16 %v1432_v20, %v1432_v20  ;;  %v991_v29 = vmul.f32 %v5738_v60, %v922_v21  ;;  %v5325_v30 = vpop.f32.mrb[17].mxu0  ;;  %v1554_v34 = vld [vmem:[#allocation3 + $0x20] sm:$0xff]  ;;  %2321 = vmatpush1.bf16.msra.mxu1 %v5444_v48  ;;  %v6157_v20 = vsel %vm666_vm14, 1.0, %v5492_v1  ;;  %vm6214_vm8 = vmand %vm584_vm4, %vm6169_vm7  ;;  %v481_v48 = vand.u32 15, %v6138_v8 }
 0x10e   : > { %v1060_v33 = vmul.f32 %v1039_v19, %v6030_v15  ;;  %v1797_v35 = vld [vmem:[#allocation3 + $0x27] sm:$0xff]  ;;  %v925_v36 = vpop.f32.mrb[18].mxu0  ;;  %v5058_v51 = vpack.c.bf16 %v1554_v34, %v1554_v34  ;;  %v1675_v52 = vld [vmem:[#allocation3 + $0x19] sm:$0xff]  ;;  %2322 = vmatprep.subr.bf16.mxu1 %v5495_v25  ;;  %v419_v30 = vadd.s32 120, %v5720_v46  ;;  %v420_v34 = vadd.s32 128, %v5720_v46  ;;  %vm668_vm14 = vmand %vm6214_vm8, %vm6200_vm6 }
 0x10f   : > { %1494 = vrot.lane.b32.xlu1 %v5043_v28, %s5497_s22  ;;  %v1019_v39 = vadd.f32 %v5751_v5, %v991_v29  ;;  %v6072_v40 = vpack.c.bf16 %v1797_v35, %v1797_v35  ;;  %v5326_v41 = vpop.f32.mrb[19].mxu0  ;;  %1175 = vst.msk [vmem:[#allocation4 + $0x18] sm:$0xf] %vm1171_vm11, %v5043_v28  ;;  %v992_v43 = vmul.f32 %v5738_v60, %v925_v36  ;;  %v5445_v14 = vld [vmem:[%s7462_s6 + $0x28] sm:$0xff]   ;;  %v5446_v35 = vld [vmem:[%s7462_s6 + $0x30] sm:$0xff]   ;;  %vm6220_vm9 = vcmp.ge.s32.totalorder %v459_v32, 1 }
 0x110   : > { %1614 = vrot.lane.b32.xlu0 %v5057_v27, %s5498_s25  ;;  %1081 = vst.msk [vmem:[#allocation3 + $0x38] sm:$0xff] %vm387_vm2, %v1060_v33  ;;  %v5072_v10 = vpack.c.bf16 %v1675_v52, %v1675_v52  ;;  %v1676_v16 = vld [vmem:[#allocation3 + $0x21] sm:$0xff]  ;;  %v460_v33 = vshra.s32 %v6138_v8, 4  ;;  %vm6224_vm10 = vcmp.le.s32.totalorder %v459_v32, 8  ;;  %v6228_v56 = vadd.s32 4294967289, %v420_v34 }
 0x111   : > { %v1040_v50 = vmax.f32 %v1019_v39, 0.0  ;;  %1176 = vst.msk [vmem:[#allocation4 + $0x20] sm:$0xf] %vm1171_vm11, %v6072_v40  ;;  %v1020_v54 = vadd.f32 %v5751_v5, %v992_v43  ;;  %2323 = vmatpush1.bf16.msra.mxu1 %v5445_v14  ;;  %v5073_v37 = vpack.c.bf16 %v1676_v16, %v1676_v16  ;;  %v6198_v43 = vsel %vm583_vm5, 1.0, %v5492_v1  ;;  %vm585_vm15 = vmand %vm6220_vm9, %vm6224_vm10 }
 0x112   : > { %2324 = vmatprep.subr.bf16.mxu1 %v5495_v25  ;;  %vm6234_vm12 = vcmp.ge.s32.totalorder %v460_v33, 1  ;;  %vm6238_vm13 = vcmp.le.s32.totalorder %v460_v33, 8  ;;  %vm6262_vm3 = vcmp.ge.s32.totalorder %v481_v48, 1  ;;  %v6286_v32 = vsel %vm668_vm14, 1.0, %v5492_v1 }
 0x113   : > { %v1061_v57 = vmul.f32 %v1040_v50, %v6069_v38  ;;  %1616 = vrot.lane.b32.xlu1 %v5058_v51, %s5498_s25  ;;  %v1041_v2 = vmax.f32 %v1020_v54, 0.0  ;;  %v4581_v50 = vadd.s32 4294967289, %v419_v30  ;;  %vm586_vm5 = vmand %vm6234_vm12, %vm6238_vm13  ;;  %v421_v34 = vadd.s32 136, %v5720_v46 }
 0x114   : > { %1252 = vrot.lane.b32.xlu0 %v5057_v27, %s5494_s16  ;;  %v2041_v63 = vld [vmem:[#allocation3 + $0x29] sm:$0xff]  ;;  %v930_v6 = vpop.f32.mrb[20].mxu0  ;;  %vm6302_vm7 = vcmp.le.s32.totalorder %v481_v48, 8  ;;  %vm6318_vm4 = vmand %vm586_vm5, %vm6262_vm3 }
 0x115   : > { %v1798_v0 = vld [vmem:[#allocation3 + $0x2f] sm:$0xff]  ;;  %v6140_v9 = vpack.c.bf16 %v2041_v63, %v2041_v63  ;;  %1082 = vst.msk [vmem:[#allocation3 + $0x40] sm:$0xff] %vm387_vm2, %v1061_v57  ;;  %v993_v12 = vmul.f32 %v5738_v60, %v930_v6  ;;  %v5329_v13 = vpop.f32.mrb[21].mxu0  ;;  %v1062_v19 = vmul.f32 %v1041_v2, %v6111_v53  ;;  %2325 = vmatpush1.bf16.msra.mxu1 %v5446_v35  ;;  %v461_v16 = vshra.s32 %v4581_v50, 4  ;;  %vm670_vm12 = vmand %vm6318_vm4, %vm6302_vm7 }
 0x116   : > { %v6143_v11 = vpack.c.bf16 %v1798_v0, %v1798_v0  ;;  %v933_v21 = vpop.f32.mrb[22].mxu0  ;;  %2326 = vmatprep.subr.bf16.mxu1 %v5495_v25  ;;  %v5447_v0 = vld [vmem:[%s7462_s6 + $0x38] sm:$0xff]   ;;  %v1919_v6 = vld [vmem:[#allocation3 + $0x28] sm:$0xff]  ;;  %v4583_v63 = vadd.s32 4294967289, %v421_v34 }
 0x117   : > { %2117 = vst.msk [vmem:[#allocation4 + $0x4] sm:$0xf] %vm1171_vm11, %v6140_v9  ;;  %v2042_v24 = vld [vmem:[#allocation3 + $0x31] sm:$0xff]  ;;  %1254 = vrot.lane.b32.xlu1 %v5058_v51, %s5494_s16  ;;  %v1021_v26 = vadd.f32 %v5751_v5, %v993_v12  ;;  %v994_v27 = vmul.f32 %v5738_v60, %v933_v21  ;;  %v5330_v28 = vpop.f32.mrb[23].mxu0  ;;  %v6278_v30 = vpack.c.bf16 %v1919_v6, %v1919_v6  ;;  %vm6322_vm6 = vcmp.ge.s32.totalorder %v461_v16, 1 }
 0x118   : > { %1736 = vrot.lane.b32.xlu0 %v5072_v10, %s5499_s30  ;;  %1177 = vst.msk [vmem:[#allocation4 + $0x28] sm:$0xf] %vm1171_vm11, %v6143_v11  ;;  %v6176_v31 = vpack.c.bf16 %v2042_v24, %v2042_v24  ;;  %v1101_v36 = vld [vmem:[#allocation3 + $0x37] sm:$0xff]  ;;  %vm6326_vm8 = vcmp.le.s32.totalorder %v461_v16, 8 }
 0x119   : > { %1083 = vst.msk [vmem:[#allocation3 + $0x48] sm:$0xff] %vm387_vm2, %v1062_v19  ;;  %v1042_v39 = vmax.f32 %v1021_v26, 0.0  ;;  %v1022_v41 = vadd.f32 %v5751_v5, %v994_v27  ;;  %v5003_v42 = vpack.c.bf16 %v1101_v36, %v1101_v36  ;;  %v462_v26 = vshra.s32 %v6228_v56, 4  ;;  %2327 = vmatpush1.bf16.msra.mxu1 %v5447_v0  ;;  %v5448_v28 = vld [vmem:[%s7462_s6 + $0x40] sm:$0xff]   ;;  %v1920_v35 = vld [vmem:[#allocation3 + $0x30] sm:$0xff] }
 0x11a   : > { %2118 = vst.msk [vmem:[#allocation4 + $0xc] sm:$0xf] %vm1171_vm11, %v6176_v31  ;;  %v422_v27 = vadd.s32 144, %v5720_v46  ;;  %2328 = vmatprep.subr.bf16.mxu1 %v5495_v25 }
 0x11b   : > { %1738 = vrot.lane.b32.xlu1 %v5073_v37, %s5499_s30  ;;  %v1063_v4 = vmul.f32 %v1042_v39, %v6157_v20  ;;  %v1043_v45 = vmax.f32 %v1022_v41, 0.0  ;;  %1178 = vst.msk [vmem:[#allocation4 + $0x30] sm:$0xf] %vm1171_vm11, %v5003_v42  ;;  %v483_v41 = vand.u32 15, %v6228_v56  ;;  %vm6331_vm9 = vcmp.ge.s32.totalorder %v462_v26, 1 }
 0x11c   : > { %1374 = vrot.lane.b32.xlu0 %v5072_v10, %s5496_s19  ;;  %v2043_v51 = vld [vmem:[#allocation3 + $0x39] sm:$0xff]  ;;  %v938_v52 = vpop.f32.mrb[24].mxu0  ;;  %vm6335_vm10 = vcmp.le.s32.totalorder %v462_v26, 8  ;;  %v6339_v55 = vadd.s32 4294967289, %v422_v27  ;;  %v6341_v56 = vpack.c.bf16 %v1920_v35, %v1920_v35  ;;  %v463_v26 = vshra.s32 %v4583_v63, 4 }
 0x11d   : > { %v6230_v57 = vpack.c.bf16 %v2043_v51, %v2043_v51  ;;  %1084 = vst.msk [vmem:[#allocation3 + $0x50] sm:$0xff] %vm387_vm2, %v1063_v4  ;;  %v1064_v58 = vmul.f32 %v1043_v45, %v6198_v43  ;;  %v5333_v61 = vpop.f32.mrb[25].mxu0  ;;  %v1102_v2 = vld [vmem:[#allocation3 + $0x3f] sm:$0xff]  ;;  %v995_v7 = vmul.f32 %v5738_v60, %v938_v52  ;;  %2329 = vmatpush1.bf16.msra.mxu1 %v5448_v28  ;;  %vm588_vm13 = vmand %vm6331_vm9, %vm6335_vm10  ;;  %vm609_vm14 = vcmp.ge.s32.totalorder %v483_v41, 1 }
 0x11e   : > { %v941_v8 = vpop.f32.mrb[26].mxu0  ;;  %v5004_v19 = vpack.c.bf16 %v1102_v2, %v1102_v2  ;;  %4096 = vmatprep.subr.bf16.mxu1 %v5495_v25  ;;  %vm6390_vm3 = vmand %vm588_vm13, %vm609_vm14  ;;  %vm6394_vm5 = vcmp.le.s32.totalorder %v483_v41, 8  ;;  %v485_v35 = vand.u32 15, %v6339_v55  ;;  %vm6424_vm9 = vcmp.le.s32.totalorder %v463_v26, 8 }
 0x11f   : > { %2119 = vst.msk [vmem:[#allocation4 + $0x14] sm:$0xf] %vm1171_vm11, %v6230_v57  ;;  %1376 = vrot.lane.b32.xlu1 %v5073_v37, %s5496_s19  ;;  %v996_v12 = vmul.f32 %v5738_v60, %v941_v8  ;;  %v5334_v13 = vpop.f32.mrb[27].mxu0  ;;  %v1023_v24 = vadd.f32 %v5751_v5, %v995_v7  ;;  %v6300_v37 = vsel %vm585_vm15, 1.0, %v5492_v1  ;;  %vm587_vm15 = vmand %vm6322_vm6, %vm6326_vm8  ;;  %vm6420_vm8 = vcmp.ge.s32.totalorder %v463_v26, 1 }
 0x120   : > { %1858 = vrot.lane.b32.xlu0 %v6072_v40, %s5500_s18  ;;  %v2044_v10 = vld [vmem:[#allocation3 + $0x41] sm:$0xff]  ;;  %1085 = vst.msk [vmem:[#allocation3 + $0x58] sm:$0xff] %vm387_vm2, %v1064_v58  ;;  %v6403_v34 = vsel %vm587_vm15, 1.0, %v5492_v1  ;;  %vm672_vm6 = vmand %vm6390_vm3, %vm6394_vm5  ;;  %vm6474_vm15 = vcmp.le.s32.totalorder %v485_v35, 8 }
 0x121   : > { %v6266_v21 = vpack.c.bf16 %v2044_v10, %v2044_v10  ;;  %v1103_v29 = vld [vmem:[#allocation3 + $0x47] sm:$0xff]  ;;  %v1024_v33 = vadd.f32 %v5751_v5, %v996_v12  ;;  %1179 = vst.msk [vmem:[#allocation4 + $0x38] sm:$0xf] %vm1171_vm11, %v5004_v19  ;;  %v1044_v36 = vmax.f32 %v1023_v24, 0.0  ;;  %v464_v19 = vshra.s32 %v6339_v55, 4  ;;  %vm589_vm13 = vmand %vm6420_vm8, %vm6424_vm9 }
 0x122   : > { %v5005_v47 = vpack.c.bf16 %v1103_v29, %v1103_v29  ;;  %v6385_v24 = vsel %vm670_vm12, 1.0, %v5492_v1  ;;  %vm611_vm12 = vcmp.ge.s32.totalorder %v485_v35, 1 }
 0x123   : > { %2120 = vst.msk [vmem:[#allocation4 + $0x1c] sm:$0xf] %vm1171_vm11, %v6266_v21  ;;  %1860 = vrot.lane.b32.xlu1 %v6143_v11, %s5500_s18  ;;  %v1045_v42 = vmax.f32 %v1024_v33, 0.0  ;;  %v1065_v50 = vmul.f32 %v1044_v36, %v6286_v32  ;;  %vm6407_vm7 = vcmp.ge.s32.totalorder %v464_v19, 1  ;;  %vm6411_vm4 = vcmp.le.s32.totalorder %v464_v19, 8 }
 0x124   : > { %1980 = vrot.lane.b32.xlu0 %v6278_v30, %s5501_s23  ;;  %v2045_v48 = vld [vmem:[#allocation3 + $0x49] sm:$0xff]  ;;  %v946_v51 = vpop.f32.mrb[28].mxu0  ;;  %1180 = vst.msk [vmem:[#allocation4 + $0x40] sm:$0xf] %vm1171_vm11, %v5005_v47  ;;  %vm590_vm10 = vmand %vm6407_vm7, %vm6411_vm4  ;;  %v6484_v19 = vsel %vm589_vm13, 1.0, %v5492_v1 }
 0x125   : > { %v6343_v58 = vpack.c.bf16 %v2045_v48, %v2045_v48  ;;  %v1066_v61 = vmul.f32 %v1045_v42, %v6300_v37  ;;  %v5337_v62 = vpop.f32.mrb[29].mxu0  ;;  %v1104_v0 = vld [vmem:[#allocation3 + $0x4f] sm:$0xff]  ;;  %1086 = vst.msk [vmem:[#allocation3 + $0x60] sm:$0xff] %vm387_vm2, %v1065_v50  ;;  %v997_v6 = vmul.f32 %v5738_v60, %v946_v51  ;;  %vm6470_vm14 = vmand %vm590_vm10, %vm611_vm12 }
 0x126   : > { %v949_v8 = vpop.f32.mrb[30].mxu0  ;;  %v5006_v10 = vpack.c.bf16 %v1104_v0, %v1104_v0  ;;  %vm674_vm3 = vmand %vm6470_vm14, %vm6474_vm15  ;;  %vm1293_vm15 = vcmask 257152  }
 0x127   : > { %v2046_v2 = vld [vmem:[#allocation3 + $0x51] sm:$0xff]  ;;  %1982 = vrot.lane.b32.xlu1 %v6341_v56, %s5501_s23  ;;  %2121 = vst.msk [vmem:[#allocation4 + $0x24] sm:$0xf] %vm1171_vm11, %v6343_v58  ;;  %v5338_v14 = vpop.f32.mrb[31].mxu0  ;;  %v998_v16 = vmul.f32 %v5738_v60, %v949_v8 }
 0x128   : > { %v1803_v7 = vld [vmem:[#allocation3 + $0x57] sm:$0xff]  ;;  %1496 = vrot.lane.b32.xlu0 %v6072_v40, %s5497_s22  ;;  %v6360_v12 = vpack.c.bf16 %v2046_v2, %v2046_v2  ;;  %1087 = vst.msk [vmem:[#allocation3 + $0x68] sm:$0xff] %vm387_vm2, %v1066_v61  ;;  %v1025_v40 = vadd.f32 %v5751_v5, %v997_v6 }
 0x129   : > { %v6363_v13 = vpack.c.bf16 %v1803_v7, %v1803_v7  ;;  %1181 = vst.msk [vmem:[#allocation4 + $0x48] sm:$0xf] %vm1171_vm11, %v5006_v10  ;;  %v1026_v28 = vadd.f32 %v5751_v5, %v998_v16 }
 0x12a   : > { %2122 = vst.msk [vmem:[#allocation4 + $0x2c] sm:$0xf] %vm1171_vm11, %v6360_v12  ;;  %v1046_v27 = vmax.f32 %v1025_v40, 0.0 }
 0x12b   : > { %1182 = vst.msk [vmem:[#allocation4 + $0x50] sm:$0xf] %vm1171_vm11, %v6363_v13  ;;  %1498 = vrot.lane.b32.xlu1 %v6143_v11, %s5497_s22  ;;  %v1047_v39 = vmax.f32 %v1026_v28, 0.0 }
 0x12c   : > { %1618 = vrot.lane.b32.xlu0 %v6278_v30, %s5498_s25  ;;  %v1067_v36 = vmul.f32 %v1046_v27, %v6385_v24  ;;  %v954_v42 = vpop.f32.mrb[32].mxu0  ;;  %v2047_v4 = vld [vmem:[#allocation3 + $0x59] sm:$0xff] }
 0x12d   : > { %v1804_v45 = vld [vmem:[#allocation3 + $0x5f] sm:$0xff]  ;;  %v999_v11 = vmul.f32 %v5738_v60, %v954_v42  ;;  %v5341_v47 = vpop.f32.mrb[33].mxu0  ;;  %v6428_v51 = vpack.c.bf16 %v2047_v4, %v2047_v4  ;;  %v1068_v55 = vmul.f32 %v1047_v39, %v6403_v34 }
 0x12e   : > { %1088 = vst.msk [vmem:[#allocation3 + $0x70] sm:$0xff] %vm387_vm2, %v1067_v36  ;;  %v6431_v54 = vpack.c.bf16 %v1804_v45, %v1804_v45  ;;  %v957_v62 = vpop.f32.mrb[34].mxu0  ;;  %v1799_v36 = vld [vmem:[#allocation3 + $0x37] sm:$0xff] }
 0x12f   : > { %v2048_v52 = vld [vmem:[#allocation3 + $0x61] sm:$0xff]  ;;  %1620 = vrot.lane.b32.xlu1 %v6341_v56, %s5498_s25  ;;  %v1027_v0 = vadd.f32 %v5751_v5, %v999_v11  ;;  %v5342_v6 = vpop.f32.mrb[35].mxu0  ;;  %2123 = vst.msk [vmem:[#allocation4 + $0x34] sm:$0xf] %vm1171_vm11, %v6428_v51  ;;  %v1000_v7 = vmul.f32 %v5738_v60, %v957_v62  ;;  %v423_v11 = vadd.s32 152, %v5720_v46 }
 0x130   : > { %v1805_v61 = vld [vmem:[#allocation3 + $0x67] sm:$0xff]  ;;  %1256 = vrot.lane.b32.xlu0 %v6278_v30, %s5494_s16  ;;  %v6438_v63 = vpack.c.bf16 %v2048_v52, %v2048_v52  ;;  %1089 = vst.msk [vmem:[#allocation3 + $0x78] sm:$0xff] %vm387_vm2, %v1068_v55  ;;  %v6456_v30 = vsel %vm672_vm6, 1.0, %v5492_v1  ;;  %v5089_v55 = vpack.c.bf16 %v1799_v36, %v1799_v36  ;;  %v1921_v6 = vld [vmem:[#allocation3 + $0x38] sm:$0xff] }
 0x131   : > { %v6441_v2 = vpack.c.bf16 %v1805_v61, %v1805_v61  ;;  %1183 = vst.msk [vmem:[#allocation4 + $0x58] sm:$0xf] %vm1171_vm11, %v6431_v54  ;;  %v1048_v8 = vmax.f32 %v1027_v0, 0.0  ;;  %v1028_v10 = vadd.f32 %v5751_v5, %v1000_v7  ;;  %v4585_v62 = vadd.s32 4294967289, %v423_v11  ;;  %v1800_v7 = vld [vmem:[#allocation3 + $0x3f] sm:$0xff] }
 0x132   : > { %2124 = vst.msk [vmem:[#allocation4 + $0x3c] sm:$0xf] %vm1171_vm11, %v6438_v63 }
 0x133   : > { %1184 = vst.msk [vmem:[#allocation4 + $0x60] sm:$0xf] %vm1171_vm11, %v6441_v2  ;;  %1258 = vrot.lane.b32.xlu1 %v6341_v56, %s5494_s16  ;;  %v1069_v16 = vmul.f32 %v1048_v8, %v6456_v30  ;;  %v1049_v26 = vmax.f32 %v1028_v10, 0.0  ;;  %v424_v56 = vadd.s32 160, %v5720_v46  ;;  %v465_v40 = vshra.s32 %v4585_v62, 4 }
 0x134   : > { %1740 = vrot.lane.b32.xlu0 %v6140_v9, %s5499_s30  ;;  %v962_v27 = vpop.f32.mrb[36].mxu0 }
 0x135   : > { %v2049_v28 = vld [vmem:[#allocation3 + $0x69] sm:$0xff]  ;;  %1090 = vst.msk [vmem:[#allocation3 + $0x80] sm:$0xff] %vm387_vm2, %v1069_v16  ;;  %v1001_v33 = vmul.f32 %v5738_v60, %v962_v27  ;;  %v5345_v35 = vpop.f32.mrb[37].mxu0  ;;  %v1070_v41 = vmul.f32 %v1049_v26, %v6484_v19  ;;  %v4586_v48 = vadd.s32 4294967289, %v424_v56  ;;  %vm6542_vm6 = vcmp.ge.s32.totalorder %v465_v40, 1 }
 0x136   : > { %v1806_v29 = vld [vmem:[#allocation3 + $0x6f] sm:$0xff]  ;;  %v6493_v39 = vpack.c.bf16 %v2049_v28, %v2049_v28  ;;  %v965_v47 = vpop.f32.mrb[38].mxu0  ;;  %v5090_v35 = vpack.c.bf16 %v1800_v7, %v1800_v7  ;;  %vm570_vm9 = vcmp.le.s32.totalorder %v465_v40, 8 }
 0x137   : > { %v6495_v42 = vpack.c.bf16 %v1806_v29, %v1806_v29  ;;  %1742 = vrot.lane.b32.xlu1 %v6176_v31, %s5499_s30  ;;  %v2050_v44 = vld [vmem:[#allocation3 + $0x71] sm:$0xff]  ;;  %v1029_v4 = vadd.f32 %v5751_v5, %v1001_v33  ;;  %1091 = vst.msk [vmem:[#allocation3 + $0x88] sm:$0xff] %vm387_vm2, %v1070_v41  ;;  %v5346_v46 = vpop.f32.mrb[39].mxu0  ;;  %v466_v0 = vshra.s32 %v4586_v48, 4  ;;  %v1002_v8 = vmul.f32 %v5738_v60, %v965_v47  ;;  %v1922_v41 = vld [vmem:[#allocation3 + $0x40] sm:$0xff]  ;;  %vm591_vm13 = vmand %vm6542_vm6, %vm570_vm9 }
 0x138   : > { %1378 = vrot.lane.b32.xlu0 %v6140_v9, %s5496_s19  ;;  %v1807_v45 = vld [vmem:[#allocation3 + $0x77] sm:$0xff]  ;;  %2125 = vst.msk [vmem:[#allocation4 + $0x44] sm:$0xf] %vm1171_vm11, %v6493_v39  ;;  %v6506_v50 = vpack.c.bf16 %v2050_v44, %v2050_v44  ;;  %v6515_v9 = vsel %vm674_vm3, 1.0, %v5492_v1  ;;  %v487_v10 = vand.u32 15, %v4586_v48  ;;  %v5104_v33 = vpack.c.bf16 %v1921_v6, %v1921_v6 }
 0x139   : > { %v6517_v52 = vpack.c.bf16 %v1807_v45, %v1807_v45  ;;  %1185 = vst.msk [vmem:[#allocation4 + $0x68] sm:$0xf] %vm1171_vm11, %v6495_v42  ;;  %v1050_v61 = vmax.f32 %v1029_v4, 0.0  ;;  %vm6530_vm5 = vcmp.ge.s32.totalorder %v466_v0, 1  ;;  %vm6534_vm7 = vcmp.le.s32.totalorder %v466_v0, 8  ;;  %v1926_v4 = vld [vmem:[#allocation3 + $0x60] sm:$0xff] }
 0x13a   : > { %2126 = vst.msk [vmem:[#allocation4 + $0x4c] sm:$0xf] %vm1171_vm11, %v6506_v50  ;;  %v1030_v28 = vadd.f32 %v5751_v5, %v1002_v8  ;;  %vm613_vm4 = vcmp.ge.s32.totalorder %v487_v10, 1  ;;  %vm592_vm8 = vmand %vm6530_vm5, %vm6534_vm7  ;;  %vm6554_vm12 = vcmp.le.s32.totalorder %v487_v10, 8  ;;  %v6568_v62 = vsel %vm591_vm13, 1.0, %v5492_v1 }
 0x13b   : > { %1186 = vst.msk [vmem:[#allocation4 + $0x70] sm:$0xf] %vm1171_vm11, %v6517_v52  ;;  %1380 = vrot.lane.b32.xlu1 %v6176_v31, %s5496_s19  ;;  %v1071_v14 = vmul.f32 %v1050_v61, %v6515_v9  ;;  %vm6550_vm10 = vmand %vm592_vm8, %vm613_vm4  ;;  %v5105_v0 = vpack.c.bf16 %v1922_v41, %v1922_v41  ;;  %vm1415_vm3 = vcmask 388352   ;;  %vm1537_vm5 = vcmask 519552  }
 0x13c   : > { %1862 = vrot.lane.b32.xlu0 %v5089_v55, %s5500_s18  ;;  %v2051_v27 = vld [vmem:[#allocation3 + $0x79] sm:$0xff]  ;;  %v970_v29 = vpop.f32.mrb[40].mxu0  ;;  %v1051_v44 = vmax.f32 %v1030_v28, 0.0  ;;  %vm676_vm14 = vmand %vm6550_vm10, %vm6554_vm12  ;;  %vm1659_vm7 = vcmask 650752   ;;  %vm1781_vm4 = vcmask 781952   ;;  %vm1903_vm6 = vcmask 913152  }
 0x13d   : > { %v6539_v56 = vpack.c.bf16 %v2051_v27, %v2051_v27  ;;  %1092 = vst.msk [vmem:[#allocation3 + $0x90] sm:$0xff] %vm387_vm2, %v1071_v14  ;;  %v5349_v36 = vpop.f32.mrb[41].mxu0  ;;  %v1003_v11 = vmul.f32 %v5738_v60, %v970_v29  ;;  %v6577_v7 = vsel %vm676_vm14, 1.0, %v5492_v1  ;;  %v1801_v27 = vld [vmem:[#allocation3 + $0x47] sm:$0xff]  ;;  %vm2025_vm8 = vcmask 1044352  }
 0x13e   : > { %v973_v47 = vpop.f32.mrb[42].mxu0  ;;  %v2052_v48 = vld [vmem:[#allocation3 + $0x81] sm:$0xff]  ;;  %v1072_v6 = vmul.f32 %v1051_v44, %v6568_v62  ;;  %v5091_v28 = vpack.c.bf16 %v1801_v27, %v1801_v27  ;;  %v1924_v36 = vld [vmem:[#allocation3 + $0x50] sm:$0xff]  ;;  %vm2468_vm9 = vcmask 195712  }
 0x13f   : > { %1864 = vrot.lane.b32.xlu1 %v5090_v35, %s5500_s18  ;;  %2127 = vst.msk [vmem:[#allocation4 + $0x54] sm:$0xf] %vm1171_vm11, %v6539_v56  ;;  %v5350_v46 = vpop.f32.mrb[43].mxu0  ;;  %v6565_v61 = vpack.c.bf16 %v2052_v48, %v2052_v48  ;;  %v1031_v60 = vadd.f32 %v5751_v5, %v1003_v11  ;;  %v1923_v29 = vld [vmem:[#allocation3 + $0x48] sm:$0xff]  ;;  %v5107_v41 = vpack.c.bf16 %v1924_v36, %v1924_v36 }
 0x140   : > { %1984 = vrot.lane.b32.xlu0 %v5104_v33, %s5501_s23  ;;  %1093 = vst.msk [vmem:[#allocation3 + $0x98] sm:$0xff] %vm387_vm2, %v1072_v6  ;;  %v5109_v11 = vpack.c.bf16 %v1926_v4, %v1926_v4 }
 0x141   : > { %2128 = vst.msk [vmem:[#allocation4 + $0x5c] sm:$0xf] %vm1171_vm11, %v6565_v61  ;;  %v1052_v8 = vmax.f32 %v1031_v60, 0.0 }
 0x143   : > { %1986 = vrot.lane.b32.xlu1 %v5105_v0, %s5501_s23  ;;  %v1073_v14 = vmul.f32 %v1052_v8, %v6577_v7 }
 0x144   : > { %1500 = vrot.lane.b32.xlu0 %v5089_v55, %s5497_s22  ;;  %v2053_v10 = vld [vmem:[#allocation3 + $0x89] sm:$0xff] }
 0x145   : > { %v6585_v5 = vpack.c.bf16 %v2053_v10, %v2053_v10  ;;  %1094 = vst.msk [vmem:[#allocation3 + $0xa0] sm:$0xff] %vm387_vm2, %v1073_v14  ;;  %v1927_v10 = vld [vmem:[#allocation3 + $0x68] sm:$0xff] }
 0x147   : > { %1502 = vrot.lane.b32.xlu1 %v5090_v35, %s5497_s22  ;;  %2129 = vst.msk [vmem:[#allocation4 + $0x64] sm:$0xf] %vm1171_vm11, %v6585_v5  ;;  %v2054_v40 = vld [vmem:[#allocation3 + $0x91] sm:$0xff]  ;;  %v5106_v35 = vpack.c.bf16 %v1923_v29, %v1923_v29 }
 0x148   : > { %1622 = vrot.lane.b32.xlu0 %v5104_v33, %s5498_s25  ;;  %v5130_v55 = vpack.c.bf16 %v2054_v40, %v2054_v40 }
 0x14a   : > { %2130 = vst.msk [vmem:[#allocation4 + $0x6c] sm:$0xf] %vm1171_vm11, %v5130_v55  ;;  %v1928_v55 = vld [vmem:[#allocation3 + $0x70] sm:$0xff] }
 0x14b   : > { %1624 = vrot.lane.b32.xlu1 %v5105_v0, %s5498_s25  ;;  %v5111_v27 = vpack.c.bf16 %v1928_v55, %v1928_v55  ;;  %v1809_v55 = vld [vmem:[#allocation3 + $0x87] sm:$0xff] }
 0x14c   : > { %1260 = vrot.lane.b32.xlu0 %v5104_v33, %s5494_s16  ;;  %v2055_v16 = vld [vmem:[#allocation3 + $0x99] sm:$0xff]  ;;  %v1802_v33 = vld [vmem:[#allocation3 + $0x4f] sm:$0xff] }
 0x14d   : > { %v5131_v26 = vpack.c.bf16 %v2055_v16, %v2055_v16  ;;  %v5092_v31 = vpack.c.bf16 %v1802_v33, %v1802_v33 }
 0x14f   : > { %1262 = vrot.lane.b32.xlu1 %v5105_v0, %s5494_s16  ;;  %2131 = vst.msk [vmem:[#allocation4 + $0x74] sm:$0xf] %vm1171_vm11, %v5131_v26 }
 0x150   : > { %1744 = vrot.lane.b32.xlu0 %v6230_v57, %s5499_s30 }
 0x153   : > { %1746 = vrot.lane.b32.xlu1 %v6266_v21, %s5499_s30 }
 0x154   : > { %1382 = vrot.lane.b32.xlu0 %v6230_v57, %s5496_s19  ;;  %v1925_v57 = vld [vmem:[#allocation3 + $0x58] sm:$0xff] }
 0x155   : > { %v5108_v44 = vpack.c.bf16 %v1925_v57, %v1925_v57 }
 0x157   : > { %1384 = vrot.lane.b32.xlu1 %v6266_v21, %s5496_s19 }
 0x158   : > { %1866 = vrot.lane.b32.xlu0 %v5091_v28, %s5500_s18 }
 0x15b   : > { %1868 = vrot.lane.b32.xlu1 %v5092_v31, %s5500_s18 }
 0x15c   : > { %1988 = vrot.lane.b32.xlu0 %v5106_v35, %s5501_s23 }
 0x15f   : > { %1990 = vrot.lane.b32.xlu1 %v5107_v41, %s5501_s23 }
 0x160   : > { %1504 = vrot.lane.b32.xlu0 %v5091_v28, %s5497_s22 }
 0x163   : > { %1506 = vrot.lane.b32.xlu1 %v5092_v31, %s5497_s22 }
 0x164   : > { %1626 = vrot.lane.b32.xlu0 %v5106_v35, %s5498_s25 }
 0x167   : > { %1628 = vrot.lane.b32.xlu1 %v5107_v41, %s5498_s25 }
 0x168   : > { %1264 = vrot.lane.b32.xlu0 %v5106_v35, %s5494_s16 }
 0x16b   : > { %1266 = vrot.lane.b32.xlu1 %v5107_v41, %s5494_s16  ;;  %v5449_v41 = vld [vmem:[#allocation4 + $0x4] ss:$8 sps:$4 sm:$0xff]  }
 0x16c   : > { %1748 = vrot.lane.b32.xlu0 %v6343_v58, %s5499_s30  ;;  %4764 = vmatprep.mubr.msk.bf16.mxu1 %vm387_vm2, %v5449_v41 }
 0x16f   : > { %1750 = vrot.lane.b32.xlu1 %v6360_v12, %s5499_s30 }
 0x170   : > { %1386 = vrot.lane.b32.xlu0 %v6343_v58, %s5496_s19  ;;  %v1249_v21 = vpop.permute.xlu0 %1248 }
 0x171   : > { %1294 = vst.msk [vmem:[#allocation4] sm:$0xf] %vm1293_vm15, %v1249_v21 }
 0x173   : > { %1388 = vrot.lane.b32.xlu1 %v6360_v12, %s5496_s19 }
 0x174   : > { %1870 = vrot.lane.b32.xlu0 %v6363_v13, %s5500_s18 }
 0x177   : > { %1872 = vrot.lane.b32.xlu1 %v6431_v54, %s5500_s18 }
 0x178   : > { %1992 = vrot.lane.b32.xlu0 %v5108_v44, %s5501_s23 }
 0x179   : > { %v1371_v58 = vpop.permute.xlu1 %1370 }
 0x17a   : > { %v1251_v45 = vpop.permute.xlu0 %1250  ;;  %1416 = vst.msk [vmem:[#allocation4] sm:$0xf] %vm1415_vm3, %v1371_v58  ;;  %v1929_v58 = vld [vmem:[#allocation3 + $0x78] sm:$0xff] }
 0x17b   : > { %1295 = vst.msk [vmem:[#allocation4 + $0x8] sm:$0xf] %vm1293_vm15, %v1251_v45  ;;  %1994 = vrot.lane.b32.xlu1 %v5109_v11, %s5501_s23  ;;  %v1808_v45 = vld [vmem:[#allocation3 + $0x7f] sm:$0xff] }
 0x17c   : > { %1508 = vrot.lane.b32.xlu0 %v6363_v13, %s5497_s22 }
 0x17d   : > { %v1373_v47 = vpop.permute.xlu1 %1372 }
 0x17e   : > { %v1493_v12 = vpop.permute.xlu0 %1492  ;;  %1417 = vst.msk [vmem:[#allocation4 + $0x8] sm:$0xf] %vm1415_vm3, %v1373_v47  ;;  %v5098_v47 = vpack.c.bf16 %v1808_v45, %v1808_v45 }
 0x17f   : > { %1538 = vst.msk [vmem:[#allocation4] sm:$0xf] %vm1537_vm5, %v1493_v12  ;;  %1510 = vrot.lane.b32.xlu1 %v6431_v54, %s5497_s22 }
 0x180   : > { %1630 = vrot.lane.b32.xlu0 %v5108_v44, %s5498_s25 }
 0x181   : > { %v1495_v46 = vpop.permute.xlu1 %1494 }
 0x182   : > { %v1615_v48 = vpop.permute.xlu0 %1614  ;;  %1539 = vst.msk [vmem:[#allocation4 + $0x8] sm:$0xf] %vm1537_vm5, %v1495_v46 }
 0x183   : > { %1660 = vst.msk [vmem:[#allocation4] sm:$0xf] %vm1659_vm7, %v1615_v48  ;;  %1632 = vrot.lane.b32.xlu1 %v5109_v11, %s5498_s25  ;;  %v1930_v48 = vld [vmem:[#allocation3 + $0x80] sm:$0xff] }
 0x184   : > { %1268 = vrot.lane.b32.xlu0 %v5108_v44, %s5494_s16 }
 0x185   : > { %v1617_v60 = vpop.permute.xlu1 %1616 }
 0x186   : > { %v1253_v13 = vpop.permute.xlu0 %1252  ;;  %1661 = vst.msk [vmem:[#allocation4 + $0x8] sm:$0xf] %vm1659_vm7, %v1617_v60  ;;  %v5113_v60 = vpack.c.bf16 %v1930_v48, %v1930_v48 }
 0x187   : > { %1296 = vst.msk [vmem:[#allocation4 + $0x10] sm:$0xf] %vm1293_vm15, %v1253_v13  ;;  %1270 = vrot.lane.b32.xlu1 %v5109_v11, %s5494_s16 }
 0x188   : > { %1752 = vrot.lane.b32.xlu0 %v6428_v51, %s5499_s30 }
 0x189   : > { %v1255_v0 = vpop.permute.xlu1 %1254 }
 0x18a   : > { %v1737_v54 = vpop.permute.xlu0 %1736  ;;  %1297 = vst.msk [vmem:[#allocation4 + $0x18] sm:$0xf] %vm1293_vm15, %v1255_v0 }
 0x18b   : > { %1782 = vst.msk [vmem:[#allocation4] sm:$0xf] %vm1781_vm4, %v1737_v54  ;;  %1754 = vrot.lane.b32.xlu1 %v6438_v63, %s5499_s30 }
 0x18c   : > { %1390 = vrot.lane.b32.xlu0 %v6428_v51, %s5496_s19  ;;  %v5110_v51 = vpack.c.bf16 %v1927_v10, %v1927_v10 }
 0x18d   : > { %v1739_v8 = vpop.permute.xlu1 %1738 }
 0x18e   : > { %v1375_v6 = vpop.permute.xlu0 %1374  ;;  %1783 = vst.msk [vmem:[#allocation4 + $0x8] sm:$0xf] %vm1781_vm4, %v1739_v8 }
 0x18f   : > { %1418 = vst.msk [vmem:[#allocation4 + $0x10] sm:$0xf] %vm1415_vm3, %v1375_v6  ;;  %1392 = vrot.lane.b32.xlu1 %v6438_v63, %s5496_s19 }
 0x190   : > { %1874 = vrot.lane.b32.xlu0 %v6441_v2, %s5500_s18 }
 0x191   : > { %v1377_v40 = vpop.permute.xlu1 %1376 }
 0x192   : > { %v1859_v14 = vpop.permute.xlu0 %1858  ;;  %1419 = vst.msk [vmem:[#allocation4 + $0x18] sm:$0xf] %vm1415_vm3, %v1377_v40 }
 0x193   : > { %1904 = vst.msk [vmem:[#allocation4] sm:$0xf] %vm1903_vm6, %v1859_v14  ;;  %1876 = vrot.lane.b32.xlu1 %v6495_v42, %s5500_s18 }
 0x194   : > { %1996 = vrot.lane.b32.xlu0 %v5110_v51, %s5501_s23 }
 0x195   : > { %v1861_v26 = vpop.permute.xlu1 %1860 }
 0x196   : > { %v1981_v16 = vpop.permute.xlu0 %1980  ;;  %1905 = vst.msk [vmem:[#allocation4 + $0x8] sm:$0xf] %vm1903_vm6, %v1861_v26 }
 0x197   : > { %2026 = vst.msk [vmem:[#allocation4] sm:$0xf] %vm2025_vm8, %v1981_v16  ;;  %1998 = vrot.lane.b32.xlu1 %v5111_v27, %s5501_s23 }
 0x198   : > { %1512 = vrot.lane.b32.xlu0 %v6441_v2, %s5497_s22 }
 0x199   : > { %v1983_v28 = vpop.permute.xlu1 %1982 }
 0x19a   : > { %v1497_v63 = vpop.permute.xlu0 %1496  ;;  %2027 = vst.msk [vmem:[#allocation4 + $0x8] sm:$0xf] %vm2025_vm8, %v1983_v28  ;;  %v1810_v28 = vld [vmem:[#allocation3 + $0x8f] sm:$0xff] }
 0x19b   : > { %1540 = vst.msk [vmem:[#allocation4 + $0x10] sm:$0xf] %vm1537_vm5, %v1497_v63  ;;  %1514 = vrot.lane.b32.xlu1 %v6495_v42, %s5497_s22  ;;  %v1931_v63 = vld [vmem:[#allocation3 + $0x88] sm:$0xff] }
 0x19c   : > { %1634 = vrot.lane.b32.xlu0 %v5110_v51, %s5498_s25 }
 0x19d   : > { %v1499_v33 = vpop.permute.xlu1 %1498 }
 0x19e   : > { %v1619_v29 = vpop.permute.xlu0 %1618  ;;  %1541 = vst.msk [vmem:[#allocation4 + $0x18] sm:$0xf] %vm1537_vm5, %v1499_v33  ;;  %v2132_v31 = vld [vmem:[#allocation4] sm:$0xff] }
 0x19f   : > { %1662 = vst.msk [vmem:[#allocation4 + $0x10] sm:$0xf] %vm1659_vm7, %v1619_v29  ;;  %1636 = vrot.lane.b32.xlu1 %v5111_v27, %s5498_s25  ;;  %v1932_v29 = vld [vmem:[#allocation3 + $0x90] sm:$0xff] }
 0x1a0   : > { %1272 = vrot.lane.b32.xlu0 %v5110_v51, %s5494_s16 }
 0x1a1   : > { %v1621_v35 = vpop.permute.xlu1 %1620  ;;  %v2133_v36 = vld [vmem:[#allocation4 + $0x8] sm:$0xff] }
 0x1a2   : > { %v1257_v2 = vpop.permute.xlu0 %1256  ;;  %1663 = vst.msk [vmem:[#allocation4 + $0x18] sm:$0xf] %vm1659_vm7, %v1621_v35  ;;  %v4739_v42 = vcombine.low %v2132_v31, %v2133_v36  ;;  %v5100_v35 = vpack.c.bf16 %v1810_v28, %v1810_v28  ;;  %v5115_v31 = vpack.c.bf16 %v1932_v29, %v1932_v29 }
 0x1a3   : > { %1298 = vst.msk [vmem:[#allocation4 + $0x20] sm:$0xf] %vm1293_vm15, %v1257_v2  ;;  %1274 = vrot.lane.b32.xlu1 %v5111_v27, %s5494_s16  ;;  %v5099_v27 = vpack.c.bf16 %v1809_v55, %v1809_v55  ;;  %v5114_v2 = vpack.c.bf16 %v1931_v63, %v1931_v63 }
 0x1a4   : > { %1756 = vrot.lane.b32.xlu0 %v6493_v39, %s5499_s30  ;;  %2345 = vmatmul.mubr.bf16.vlgmr.msra.gmra.mrb[0].mxu1 %v4739_v42 }
 0x1a5   : > { %v1259_v21 = vpop.permute.xlu1 %1258 }
 0x1a6   : > { %v1741_v57 = vpop.permute.xlu0 %1740  ;;  %1299 = vst.msk [vmem:[#allocation4 + $0x28] sm:$0xf] %vm1293_vm15, %v1259_v21  ;;  %v1811_v21 = vld [vmem:[#allocation3 + $0x97] sm:$0xff] }
 0x1a7   : > { %1784 = vst.msk [vmem:[#allocation4 + $0x10] sm:$0xf] %vm1781_vm4, %v1741_v57  ;;  %1758 = vrot.lane.b32.xlu1 %v6506_v50, %s5499_s30  ;;  %v1933_v57 = vld [vmem:[#allocation3 + $0x98] sm:$0xff]  ;;  %v5101_v45 = vpack.c.bf16 %v1811_v21, %v1811_v21 }
 0x1a8   : > { %1394 = vrot.lane.b32.xlu0 %v6493_v39, %s5496_s19  ;;  %v5112_v39 = vpack.c.bf16 %v1929_v58, %v1929_v58  ;;  %v5116_v58 = vpack.c.bf16 %v1933_v57, %v1933_v57 }
 0x1a9   : > { %v1743_v4 = vpop.permute.xlu1 %1742 }
 0x1aa   : > { %v1379_v44 = vpop.permute.xlu0 %1378  ;;  %1785 = vst.msk [vmem:[#allocation4 + $0x18] sm:$0xf] %vm1781_vm4, %v1743_v4 }
 0x1ab   : > { %1420 = vst.msk [vmem:[#allocation4 + $0x20] sm:$0xf] %vm1415_vm3, %v1379_v44  ;;  %1396 = vrot.lane.b32.xlu1 %v6506_v50, %s5496_s19 }
 0x1ac   : > { %1878 = vrot.lane.b32.xlu0 %v6517_v52, %s5500_s18 }
 0x1ad   : > { %v1381_v12 = vpop.permute.xlu1 %1380 }
 0x1ae   : > { %v1863_v11 = vpop.permute.xlu0 %1862  ;;  %1421 = vst.msk [vmem:[#allocation4 + $0x28] sm:$0xf] %vm1415_vm3, %v1381_v12 }
 0x1af   : > { %1906 = vst.msk [vmem:[#allocation4 + $0x10] sm:$0xf] %vm1903_vm6, %v1863_v11  ;;  %1880 = vrot.lane.b32.xlu1 %v5098_v47, %s5500_s18 }
 0x1b0   : > { %2000 = vrot.lane.b32.xlu0 %v5112_v39, %s5501_s23 }
 0x1b1   : > { %v1865_v13 = vpop.permute.xlu1 %1864 }
 0x1b2   : > { %v1985_v46 = vpop.permute.xlu0 %1984  ;;  %1907 = vst.msk [vmem:[#allocation4 + $0x18] sm:$0xf] %vm1903_vm6, %v1865_v13 }
 0x1b3   : > { %2028 = vst.msk [vmem:[#allocation4 + $0x10] sm:$0xf] %vm2025_vm8, %v1985_v46  ;;  %2002 = vrot.lane.b32.xlu1 %v5113_v60, %s5501_s23 }
 0x1b4   : > { %1516 = vrot.lane.b32.xlu0 %v6517_v52, %s5497_s22 }
 0x1b5   : > { %v1987_v54 = vpop.permute.xlu1 %1986 }
 0x1b6   : > { %v1501_v50 = vpop.permute.xlu0 %1500  ;;  %2029 = vst.msk [vmem:[#allocation4 + $0x18] sm:$0xf] %vm2025_vm8, %v1987_v54 }
 0x1b7   : > { %1542 = vst.msk [vmem:[#allocation4 + $0x20] sm:$0xf] %vm1537_vm5, %v1501_v50  ;;  %1518 = vrot.lane.b32.xlu1 %v5098_v47, %s5497_s22 }
 0x1b8   : > { %1638 = vrot.lane.b32.xlu0 %v5112_v39, %s5498_s25 }
 0x1b9   : > { %v1503_v6 = vpop.permute.xlu1 %1502 }
 0x1ba   : > { %v1623_v0 = vpop.permute.xlu0 %1622  ;;  %1543 = vst.msk [vmem:[#allocation4 + $0x28] sm:$0xf] %vm1537_vm5, %v1503_v6  ;;  %v2134_v52 = vld [vmem:[#allocation4 + $0x10] sm:$0xff] }
 0x1bb   : > { %1664 = vst.msk [vmem:[#allocation4 + $0x20] sm:$0xf] %vm1659_vm7, %v1623_v0  ;;  %1640 = vrot.lane.b32.xlu1 %v5113_v60, %s5498_s25 }
 0x1bc   : > { %1276 = vrot.lane.b32.xlu0 %v5112_v39, %s5494_s16 }
 0x1bd   : > { %v2135_v8 = vld [vmem:[#allocation4 + $0x18] sm:$0xff]  ;;  %v1625_v14 = vpop.permute.xlu1 %1624 }
 0x1be   : > { %v1261_v10 = vpop.permute.xlu0 %1260  ;;  %1665 = vst.msk [vmem:[#allocation4 + $0x28] sm:$0xf] %vm1659_vm7, %v1625_v14  ;;  %v4742_v40 = vcombine.high %v2134_v52, %v2135_v8  ;;  %v4741_v51 = vcombine.low %v2134_v52, %v2135_v8 }
 0x1bf   : > { %1300 = vst.msk [vmem:[#allocation4 + $0x30] sm:$0xf] %vm1293_vm15, %v1261_v10  ;;  %1398 = vrot.lane.b32.xlu1 %v6539_v56, %s5496_s19 }
 0x1c0   : > { %1760 = vrot.lane.b32.xlu0 %v6539_v56, %s5499_s30  ;;  %4765 = vmatprep.mubr.msk.bf16.mxu1 %vm387_vm2, %v4742_v40 }
 0x1c1   : > { %v1263_v26 = vpop.permute.xlu1 %1262  ;;  %2353 = vmatmul.mubr.bf16.gmra.mrb[4].mxu1 %v4741_v51 }
 0x1c2   : > { %v1745_v16 = vpop.permute.xlu0 %1744  ;;  %1301 = vst.msk [vmem:[#allocation4 + $0x38] sm:$0xf] %vm1293_vm15, %v1263_v26 }
 0x1c3   : > { %1786 = vst.msk [vmem:[#allocation4 + $0x20] sm:$0xf] %vm1781_vm4, %v1745_v16  ;;  %1762 = vrot.lane.b32.xlu1 %v6565_v61, %s5499_s30 }
 0x1c4   : > { %1882 = vrot.lane.b32.xlu0 %v5099_v27, %s5500_s18 }
 0x1c5   : > { %v1747_v56 = vpop.permute.xlu1 %1746 }
 0x1c6   : > { %v1383_v33 = vpop.permute.xlu0 %1382  ;;  %1787 = vst.msk [vmem:[#allocation4 + $0x28] sm:$0xf] %vm1781_vm4, %v1747_v56 }
 0x1c7   : > { %1422 = vst.msk [vmem:[#allocation4 + $0x30] sm:$0xf] %vm1415_vm3, %v1383_v33  ;;  %1884 = vrot.lane.b32.xlu1 %v5100_v35, %s5500_s18 }
 0x1c8   : > { %2004 = vrot.lane.b32.xlu0 %v5114_v2, %s5501_s23 }
 0x1c9   : > { %v1385_v41 = vpop.permute.xlu1 %1384 }
 0x1ca   : > { %v1867_v36 = vpop.permute.xlu0 %1866  ;;  %1423 = vst.msk [vmem:[#allocation4 + $0x38] sm:$0xf] %vm1415_vm3, %v1385_v41 }
 0x1cb   : > { %1908 = vst.msk [vmem:[#allocation4 + $0x20] sm:$0xf] %vm1903_vm6, %v1867_v36  ;;  %2006 = vrot.lane.b32.xlu1 %v5115_v31, %s5501_s23 }
 0x1cc   : > { %1520 = vrot.lane.b32.xlu0 %v5099_v27, %s5497_s22 }
 0x1cd   : > { %v1869_v42 = vpop.permute.xlu1 %1868 }
 0x1ce   : > { %v1989_v61 = vpop.permute.xlu0 %1988  ;;  %1909 = vst.msk [vmem:[#allocation4 + $0x28] sm:$0xf] %vm1903_vm6, %v1869_v42 }
 0x1cf   : > { %2030 = vst.msk [vmem:[#allocation4 + $0x20] sm:$0xf] %vm2025_vm8, %v1989_v61  ;;  %1642 = vrot.lane.b32.xlu1 %v5114_v2, %s5498_s25 }
 0x1d0   : > { %1764 = vrot.lane.b32.xlu0 %v6585_v5, %s5499_s30 }
 0x1d1   : > { %v1991_v4 = vpop.permute.xlu1 %1990 }
 0x1d2   : > { %v1505_v44 = vpop.permute.xlu0 %1504  ;;  %2031 = vst.msk [vmem:[#allocation4 + $0x28] sm:$0xf] %vm2025_vm8, %v1991_v4 }
 0x1d3   : > { %1544 = vst.msk [vmem:[#allocation4 + $0x30] sm:$0xf] %vm1537_vm5, %v1505_v44  ;;  %1886 = vrot.lane.b32.xlu1 %v5101_v45, %s5500_s18 }
 0x1d4   : > { %2008 = vrot.lane.b32.xlu0 %v5116_v58, %s5501_s23 }
 0x1d5   : > { %v1507_v12 = vpop.permute.xlu1 %1506 }
 0x1d6   : > { %v1627_v11 = vpop.permute.xlu0 %1626  ;;  %1545 = vst.msk [vmem:[#allocation4 + $0x38] sm:$0xf] %vm1537_vm5, %v1507_v12  ;;  %v2136_v39 = vld [vmem:[#allocation4 + $0x20] sm:$0xff] }
 0x1d7   : > { %1666 = vst.msk [vmem:[#allocation4 + $0x30] sm:$0xf] %vm1659_vm7, %v1627_v11 }
 0x1d9   : > { %v2137_v5 = vld [vmem:[#allocation4 + $0x28] sm:$0xff]  ;;  %v1629_v48 = vpop.permute.xlu1 %1628 }
 0x1da   : > { %v1265_v47 = vpop.permute.xlu0 %1264  ;;  %1667 = vst.msk [vmem:[#allocation4 + $0x38] sm:$0xf] %vm1659_vm7, %v1629_v48  ;;  %v4744_v46 = vcombine.high %v2136_v39, %v2137_v5  ;;  %v4743_v13 = vcombine.low %v2136_v39, %v2137_v5 }
 0x1db   : > { %1302 = vst.msk [vmem:[#allocation4 + $0x40] sm:$0xf] %vm1293_vm15, %v1265_v47 }
 0x1dc   : > { %4766 = vmatprep.mubr.msk.bf16.mxu1 %vm387_vm2, %v4744_v46 }
 0x1dd   : > { %v1267_v50 = vpop.permute.xlu1 %1266  ;;  %2361 = vmatmul.mubr.bf16.gmra.mrb[8].mxu1 %v4743_v13 }
 0x1de   : > { %v1749_v60 = vpop.permute.xlu0 %1748  ;;  %1303 = vst.msk [vmem:[#allocation4 + $0x48] sm:$0xf] %vm1293_vm15, %v1267_v50 }
 0x1df   : > { %1788 = vst.msk [vmem:[#allocation4 + $0x30] sm:$0xf] %vm1781_vm4, %v1749_v60 }
 0x1e1   : > { %v1751_v0 = vpop.permute.xlu1 %1750 }
 0x1e2   : > { %v1387_v54 = vpop.permute.xlu0 %1386  ;;  %1789 = vst.msk [vmem:[#allocation4 + $0x38] sm:$0xf] %vm1781_vm4, %v1751_v0 }
 0x1e3   : > { %1424 = vst.msk [vmem:[#allocation4 + $0x40] sm:$0xf] %vm1415_vm3, %v1387_v54 }
 0x1e5   : > { %v1389_v52 = vpop.permute.xlu1 %1388 }
 0x1e6   : > { %v1871_v6 = vpop.permute.xlu0 %1870  ;;  %1425 = vst.msk [vmem:[#allocation4 + $0x48] sm:$0xf] %vm1415_vm3, %v1389_v52 }
 0x1e7   : > { %1910 = vst.msk [vmem:[#allocation4 + $0x30] sm:$0xf] %vm1903_vm6, %v1871_v6 }
 0x1e9   : > { %v1873_v10 = vpop.permute.xlu1 %1872 }
 0x1ea   : > { %v1993_v8 = vpop.permute.xlu0 %1992  ;;  %1911 = vst.msk [vmem:[#allocation4 + $0x38] sm:$0xf] %vm1903_vm6, %v1873_v10 }
 0x1eb   : > { %2032 = vst.msk [vmem:[#allocation4 + $0x30] sm:$0xf] %vm2025_vm8, %v1993_v8 }
 0x1ed   : > { %v1995_v40 = vpop.permute.xlu1 %1994 }
 0x1ee   : > { %v1509_v14 = vpop.permute.xlu0 %1508  ;;  %2033 = vst.msk [vmem:[#allocation4 + $0x38] sm:$0xf] %vm2025_vm8, %v1995_v40 }
 0x1ef   : > { %1546 = vst.msk [vmem:[#allocation4 + $0x40] sm:$0xf] %vm1537_vm5, %v1509_v14 }
 0x1f1   : > { %v1511_v55 = vpop.permute.xlu1 %1510 }
 0x1f2   : > { %v1631_v51 = vpop.permute.xlu0 %1630  ;;  %1547 = vst.msk [vmem:[#allocation4 + $0x48] sm:$0xf] %vm1537_vm5, %v1511_v55  ;;  %v2138_v16 = vld [vmem:[#allocation4 + $0x30] sm:$0xff] }
 0x1f3   : > { %1668 = vst.msk [vmem:[#allocation4 + $0x40] sm:$0xf] %vm1659_vm7, %v1631_v51 }
 0x1f5   : > { %v2139_v26 = vld [vmem:[#allocation4 + $0x38] sm:$0xff]  ;;  %v1633_v63 = vpop.permute.xlu1 %1632 }
 0x1f6   : > { %v1269_v27 = vpop.permute.xlu0 %1268  ;;  %1669 = vst.msk [vmem:[#allocation4 + $0x48] sm:$0xf] %vm1659_vm7, %v1633_v63  ;;  %v4746_v28 = vcombine.high %v2138_v16, %v2139_v26  ;;  %v4745_v29 = vcombine.low %v2138_v16, %v2139_v26  ;;  %v5453_v63 = vld [vmem:[%s7459_s3 + $0x10] sm:$0xff]  }
 0x1f7   : > { %1304 = vst.msk [vmem:[#allocation4 + $0x50] sm:$0xf] %vm1293_vm15, %v1269_v27  ;;  %5352 = vmatpush3.bf16.msra.mxu0 %v5453_v63 }
 0x1f8   : > { %4767 = vmatprep.mubr.msk.bf16.mxu1 %vm387_vm2, %v4746_v28  ;;  %5353 = vmatprep.subr.bf16.mxu0 %v5492_v1 }
 0x1f9   : > { %v1271_v56 = vpop.permute.xlu1 %1270  ;;  %2369 = vmatmul.mubr.bf16.gmra.mrb[12].mxu1 %v4745_v29 }
 0x1fa   : > { %v1753_v33 = vpop.permute.xlu0 %1752  ;;  %1305 = vst.msk [vmem:[#allocation4 + $0x58] sm:$0xf] %vm1293_vm15, %v1271_v56 }
 0x1fb   : > { %1790 = vst.msk [vmem:[#allocation4 + $0x40] sm:$0xf] %vm1781_vm4, %v1753_v33 }
 0x1fd   : > { %v1755_v35 = vpop.permute.xlu1 %1754 }
 0x1fe   : > { %v1391_v2 = vpop.permute.xlu0 %1390  ;;  %1791 = vst.msk [vmem:[#allocation4 + $0x48] sm:$0xf] %vm1781_vm4, %v1755_v35 }
 0x1ff   : > { %1426 = vst.msk [vmem:[#allocation4 + $0x50] sm:$0xf] %vm1415_vm3, %v1391_v2 }
 0x201   : > { %v1393_v36 = vpop.permute.xlu1 %1392 }
 0x202   : > { %v1875_v31 = vpop.permute.xlu0 %1874  ;;  %1427 = vst.msk [vmem:[#allocation4 + $0x58] sm:$0xf] %vm1415_vm3, %v1393_v36 }
 0x203   : > { %1912 = vst.msk [vmem:[#allocation4 + $0x40] sm:$0xf] %vm1903_vm6, %v1875_v31 }
 0x205   : > { %v1877_v61 = vpop.permute.xlu1 %1876 }
 0x206   : > { %v1997_v41 = vpop.permute.xlu0 %1996  ;;  %1913 = vst.msk [vmem:[#allocation4 + $0x48] sm:$0xf] %vm1903_vm6, %v1877_v61 }
 0x207   : > { %2034 = vst.msk [vmem:[#allocation4 + $0x40] sm:$0xf] %vm2025_vm8, %v1997_v41 }
 0x209   : > { %v1999_v57 = vpop.permute.xlu1 %1998 }
 0x20a   : > { %v1513_v42 = vpop.permute.xlu0 %1512  ;;  %2035 = vst.msk [vmem:[#allocation4 + $0x48] sm:$0xf] %vm2025_vm8, %v1999_v57 }
 0x20b   : > { %1548 = vst.msk [vmem:[#allocation4 + $0x50] sm:$0xf] %vm1537_vm5, %v1513_v42 }
 0x20d   : > { %v1515_v44 = vpop.permute.xlu1 %1514 }
 0x20e   : > { %v1635_v21 = vpop.permute.xlu0 %1634  ;;  %1549 = vst.msk [vmem:[#allocation4 + $0x58] sm:$0xf] %vm1537_vm5, %v1515_v44  ;;  %v2140_v4 = vld [vmem:[#allocation4 + $0x40] sm:$0xff] }
 0x20f   : > { %1670 = vst.msk [vmem:[#allocation4 + $0x50] sm:$0xf] %vm1659_vm7, %v1635_v21 }
 0x211   : > { %v2141_v58 = vld [vmem:[#allocation4 + $0x48] sm:$0xff]  ;;  %v1637_v11 = vpop.permute.xlu1 %1636 }
 0x212   : > { %v1273_v45 = vpop.permute.xlu0 %1272  ;;  %1671 = vst.msk [vmem:[#allocation4 + $0x58] sm:$0xf] %vm1659_vm7, %v1637_v11  ;;  %v4748_v12 = vcombine.high %v2140_v4, %v2141_v58  ;;  %v4747_v39 = vcombine.low %v2140_v4, %v2141_v58  ;;  %v5454_v11 = vld [vmem:[%s7459_s3 + $0x18] sm:$0xff]  }
 0x213   : > { %1306 = vst.msk [vmem:[#allocation4 + $0x60] sm:$0xf] %vm1293_vm15, %v1273_v45  ;;  %5354 = vmatpush3.bf16.msra.mxu0 %v5454_v11 }
 0x214   : > { %4768 = vmatprep.mubr.msk.bf16.mxu1 %vm387_vm2, %v4748_v12  ;;  %v2484_v12 = vld [vmem:[#allocation2] sm:$0xff] }
 0x215   : > { %v1275_v47 = vpop.permute.xlu1 %1274  ;;  %2377 = vmatmul.mubr.bf16.gmra.mrb[16].mxu1 %v4747_v39  ;;  %v2485_v39 = vld [vmem:[#allocation2 + $0x8] sm:$0xff] }
 0x216   : > { %v1757_v5 = vpop.permute.xlu0 %1756  ;;  %1307 = vst.msk [vmem:[#allocation4 + $0x68] sm:$0xf] %vm1293_vm15, %v1275_v47 }
 0x217   : > { %1792 = vst.msk [vmem:[#allocation4 + $0x50] sm:$0xf] %vm1781_vm4, %v1757_v5  ;;  %v6817_v5 = vld [vmem:[%s7457_s1 + $0x1] ss:$0 sm:$0xff] }
 0x218   : > { %v2513_v47 = vmul.f32 %v6817_v5, %v2484_v12 }
 0x219   : > { %v1759_v46 = vpop.permute.xlu1 %1758 }
 0x21a   : > { %v1395_v48 = vpop.permute.xlu0 %1394  ;;  %1793 = vst.msk [vmem:[#allocation4 + $0x58] sm:$0xf] %vm1781_vm4, %v1759_v46  ;;  %v6824_v46 = vld [vmem:[%s7458_s2 + $0x1] ss:$0 sm:$0xff] }
 0x21b   : > { %1428 = vst.msk [vmem:[#allocation4 + $0x60] sm:$0xf] %vm1415_vm3, %v1395_v48  ;;  %v2514_v48 = vmul.f32 %v6817_v5, %v2485_v39 }
 0x21d   : > { %v1397_v60 = vpop.permute.xlu1 %1396 }
 0x21e   : > { %v1879_v13 = vpop.permute.xlu0 %1878  ;;  %1429 = vst.msk [vmem:[#allocation4 + $0x68] sm:$0xf] %vm1415_vm3, %v1397_v60  ;;  %v2543_v60 = vadd.f32 %v6824_v46, %v2514_v48 }
 0x21f   : > { %1914 = vst.msk [vmem:[#allocation4 + $0x50] sm:$0xf] %vm1903_vm6, %v1879_v13  ;;  %v2542_v13 = vadd.f32 %v6824_v46, %v2513_v47 }
 0x221   : > { %v1881_v54 = vpop.permute.xlu1 %1880 }
 0x222   : > { %v2001_v50 = vpop.permute.xlu0 %2000  ;;  %1915 = vst.msk [vmem:[#allocation4 + $0x58] sm:$0xf] %vm1903_vm6, %v1881_v54  ;;  %v2564_v54 = vmax.f32 %v2543_v60, 0.0 }
 0x223   : > { %2036 = vst.msk [vmem:[#allocation4 + $0x50] sm:$0xf] %vm2025_vm8, %v2001_v50  ;;  %v2563_v50 = vmax.f32 %v2542_v13, 0.0 }
 0x225   : > { %v2003_v6 = vpop.permute.xlu1 %2002 }
 0x226   : > { %v1517_v0 = vpop.permute.xlu0 %1516  ;;  %2037 = vst.msk [vmem:[#allocation4 + $0x58] sm:$0xf] %vm2025_vm8, %v2003_v6 }
 0x227   : > { %1550 = vst.msk [vmem:[#allocation4 + $0x60] sm:$0xf] %vm1537_vm5, %v1517_v0  ;;  %v2584_v0 = vpack.c.bf16 %v2564_v54, %v2563_v50 }
 0x229   : > { %v1519_v8 = vpop.permute.xlu1 %1518  ;;  %5356 = vmatmul.mubr.msk.bf16.vlgmr.msra.gmra.mrb[44].mxu0 %vm364_vm1, %v2584_v0 }
 0x22a   : > { %v1639_v52 = vpop.permute.xlu0 %1638  ;;  %1551 = vst.msk [vmem:[#allocation4 + $0x68] sm:$0xf] %vm1537_vm5, %v1519_v8  ;;  %v2142_v10 = vld [vmem:[#allocation4 + $0x50] sm:$0xff]  ;;  %5359 = vmatprep.mubr.msk.bf16.mxu0 %vm5493_vm0, %v5492_v1 }
 0x22b   : > { %1672 = vst.msk [vmem:[#allocation4 + $0x60] sm:$0xf] %vm1659_vm7, %v1639_v52 }
 0x22d   : > { %v2143_v14 = vld [vmem:[#allocation4 + $0x58] sm:$0xff]  ;;  %v1641_v51 = vpop.permute.xlu1 %1640 }
 0x22e   : > { %v1277_v40 = vpop.permute.xlu0 %1276  ;;  %1673 = vst.msk [vmem:[#allocation4 + $0x68] sm:$0xf] %vm1659_vm7, %v1641_v51  ;;  %v4750_v55 = vcombine.high %v2142_v10, %v2143_v14  ;;  %v4749_v16 = vcombine.low %v2142_v10, %v2143_v14 }
 0x22f   : > { %1308 = vst.msk [vmem:[#allocation4 + $0x70] sm:$0xf] %vm1293_vm15, %v1277_v40 }
 0x230   : > { %4769 = vmatprep.mubr.msk.bf16.mxu1 %vm387_vm2, %v4750_v55 }
 0x231   : > { %v1399_v27 = vpop.permute.xlu1 %1398  ;;  %2385 = vmatmul.mubr.bf16.gmra.mrb[20].mxu1 %v4749_v16 }
 0x232   : > { %v1761_v26 = vpop.permute.xlu0 %1760  ;;  %1430 = vst.msk [vmem:[#allocation4 + $0x70] sm:$0xf] %vm1415_vm3, %v1399_v27 }
 0x233   : > { %1794 = vst.msk [vmem:[#allocation4 + $0x60] sm:$0xf] %vm1781_vm4, %v1761_v26 }
 0x235   : > { %v1763_v29 = vpop.permute.xlu1 %1762 }
 0x236   : > { %v1883_v28 = vpop.permute.xlu0 %1882  ;;  %1795 = vst.msk [vmem:[#allocation4 + $0x68] sm:$0xf] %vm1781_vm4, %v1763_v29 }
 0x237   : > { %1916 = vst.msk [vmem:[#allocation4 + $0x60] sm:$0xf] %vm1903_vm6, %v1883_v28 }
 0x239   : > { %v1885_v56 = vpop.permute.xlu1 %1884 }
 0x23a   : > { %v2005_v33 = vpop.permute.xlu0 %2004  ;;  %1917 = vst.msk [vmem:[#allocation4 + $0x68] sm:$0xf] %vm1903_vm6, %v1885_v56 }
 0x23b   : > { %2038 = vst.msk [vmem:[#allocation4 + $0x60] sm:$0xf] %vm2025_vm8, %v2005_v33 }
 0x23d   : > { %v2007_v35 = vpop.permute.xlu1 %2006 }
 0x23e   : > { %v1521_v2 = vpop.permute.xlu0 %1520  ;;  %2039 = vst.msk [vmem:[#allocation4 + $0x68] sm:$0xf] %vm2025_vm8, %v2007_v35 }
 0x23f   : > { %1552 = vst.msk [vmem:[#allocation4 + $0x70] sm:$0xf] %vm1537_vm5, %v1521_v2 }
 0x241   : > { %v1643_v31 = vpop.permute.xlu1 %1642 }
 0x242   : > { %v1765_v36 = vpop.permute.xlu0 %1764  ;;  %1674 = vst.msk [vmem:[#allocation4 + $0x70] sm:$0xf] %vm1659_vm7, %v1643_v31  ;;  %v2144_v41 = vld [vmem:[#allocation4 + $0x60] sm:$0xff] }
 0x243   : > { %1796 = vst.msk [vmem:[#allocation4 + $0x70] sm:$0xf] %vm1781_vm4, %v1765_v36 }
 0x245   : > { %v2145_v61 = vld [vmem:[#allocation4 + $0x68] sm:$0xff]  ;;  %v1887_v57 = vpop.permute.xlu1 %1886 }
 0x246   : > { %v2009_v42 = vpop.permute.xlu0 %2008  ;;  %1918 = vst.msk [vmem:[#allocation4 + $0x70] sm:$0xf] %vm1903_vm6, %v1887_v57  ;;  %v4752_v21 = vcombine.high %v2144_v41, %v2145_v61  ;;  %v4751_v44 = vcombine.low %v2144_v41, %v2145_v61  ;;  %v2486_v61 = vld [vmem:[#allocation2 + $0x10] sm:$0xff] }
 0x247   : > { %2040 = vst.msk [vmem:[#allocation4 + $0x70] sm:$0xf] %vm2025_vm8, %v2009_v42  ;;  %v2515_v57 = vmul.f32 %v6817_v5, %v2486_v61 }
 0x248   : > { %4770 = vmatprep.mubr.msk.bf16.mxu1 %vm387_vm2, %v4752_v21 }
 0x249   : > { %2393 = vmatmul.mubr.bf16.gmra.mrb[24].mxu1 %v4751_v44  ;;  %v2544_v21 = vadd.f32 %v6824_v46, %v2515_v57 }
 0x24e   : > { %v2146_v4 = vld [vmem:[#allocation4 + $0x70] sm:$0xff] }
 0x24f   : > { %v4754_v58 = vcombine.high %v2146_v4, %v2146_v4  ;;  %v4753_v45 = vcombine.low %v2146_v4, %v2146_v4 }
 0x251   : > { %4771 = vmatprep.mubr.msk.bf16.mxu1 %vm387_vm2, %v4754_v58 }
 0x252   : > { %2401 = vmatmul.mubr.bf16.gmra.mrb[28].mxu1 %v4753_v45  ;;  %v2565_v45 = vmax.f32 %v2544_v21, 0.0 }
 0x277   : > { %v2346_v6 = vpop.f32.mrb[0].mxu1 }
 0x278   : > { %v2348_v52 = vpop.f32.mrb[1].mxu1  ;;  %2423 = vrot.lane.b32.xlu1 %v2346_v6, %s5494_s16 }
 0x279   : > { %v2349_v8 = vpop.f32.mrb[2].mxu1 }
 0x27a   : > { %v2351_v10 = vpop.f32.mrb[3].mxu1  ;;  %2425 = vrot.lane.b32.xlu0 %v2349_v8, %s5494_s16 }
 0x294   : > { %v2354_v14 = vpop.f32.mrb[4].mxu1 }
 0x295   : > { %v2356_v40 = vpop.f32.mrb[5].mxu1  ;;  %2427 = vrot.lane.b32.xlu1 %v2354_v14, %s5494_s16 }
 0x296   : > { %v2357_v51 = vpop.f32.mrb[6].mxu1 }
 0x297   : > { %v2359_v55 = vpop.f32.mrb[7].mxu1  ;;  %2429 = vrot.lane.b32.xlu0 %v2357_v51, %s5494_s16 }
 0x2b0   : > { %v2362_v16 = vpop.f32.mrb[8].mxu1 }
 0x2b1   : > { %v2364_v26 = vpop.f32.mrb[9].mxu1  ;;  %2431 = vrot.lane.b32.xlu1 %v2362_v16, %s5494_s16 }
 0x2b2   : > { %v2365_v27 = vpop.f32.mrb[10].mxu1 }
 0x2b3   : > { %v2367_v63 = vpop.f32.mrb[11].mxu1  ;;  %2433 = vrot.lane.b32.xlu0 %v2365_v27, %s5494_s16 }
 0x2cc   : > { %v2370_v28 = vpop.f32.mrb[12].mxu1 }
 0x2cd   : > { %v2372_v29 = vpop.f32.mrb[13].mxu1  ;;  %2435 = vrot.lane.b32.xlu1 %v2370_v28, %s5494_s16 }
 0x2ce   : > { %v2373_v33 = vpop.f32.mrb[14].mxu1 }
 0x2cf   : > { %v2375_v56 = vpop.f32.mrb[15].mxu1  ;;  %2437 = vrot.lane.b32.xlu0 %v2373_v33, %s5494_s16 }
 0x2e8   : > { %v2378_v2 = vpop.f32.mrb[16].mxu1 }
 0x2e9   : > { %v2380_v35 = vpop.f32.mrb[17].mxu1  ;;  %2439 = vrot.lane.b32.xlu1 %v2378_v2, %s5494_s16 }
 0x2ea   : > { %v2381_v31 = vpop.f32.mrb[18].mxu1  ;;  %v2424_v41 = vpop.permute.xlu1 %2423 }
 0x2eb   : > { %v2383_v36 = vpop.f32.mrb[19].mxu1  ;;  %2441 = vrot.lane.b32.xlu0 %v2381_v31, %s5494_s16  ;;  %2469 = vst.msk [vmem:[#allocation2 + $0x18] sm:$0xff] %vm2468_vm9, %v2424_v41 }
 0x2ec   : > { %v2426_v42 = vpop.permute.xlu0 %2425 }
 0x2ed   : > { %2470 = vst.msk [vmem:[#allocation2 + $0x20] sm:$0xff] %vm2468_vm9, %v2426_v42 }
 0x2f2   : > { %v2487_v44 = vld [vmem:[#allocation2 + $0x18] sm:$0xff] }
 0x2f3   : > { %v2516_v4 = vmul.f32 %v6817_v5, %v2487_v44 }
 0x2f4   : > { %v2488_v54 = vld [vmem:[#allocation2 + $0x20] sm:$0xff] }
 0x2f5   : > { %v2545_v58 = vadd.f32 %v6824_v46, %v2516_v4  ;;  %v2517_v0 = vmul.f32 %v6817_v5, %v2488_v54  ;;  %v6887_v54 = vld [vmem:[%s7461_s5 + $0x1] ss:$0 sm:$0xff] }
 0x2f7   : > { %v2566_v11 = vmax.f32 %v2545_v58, 0.0  ;;  %v2546_v8 = vadd.f32 %v6824_v46, %v2517_v0 }
 0x2f9   : > { %v2585_v12 = vpack.c.bf16 %v2566_v11, %v2565_v45  ;;  %v2567_v14 = vmax.f32 %v2546_v8, 0.0 }
 0x2fb   : > { %5360 = vmatmul.mubr.msk.bf16.gmra.mrb[48].mxu0 %vm364_vm1, %v2585_v12 }
 0x2fc   : > { %5363 = vmatprep.mubr.msk.bf16.mxu0 %vm5493_vm0, %v5492_v1 }
 0x304   : > { %v2386_v39 = vpop.f32.mrb[20].mxu1 }
 0x305   : > { %v2388_v47 = vpop.f32.mrb[21].mxu1  ;;  %2443 = vrot.lane.b32.xlu1 %v2386_v39, %s5494_s16  ;;  %v2679_v39 = vpop.f32.mrb[44].mxu0 }
 0x306   : > { %v2389_v48 = vpop.f32.mrb[22].mxu1  ;;  %v6879_v47 = vld [vmem:[%s7460_s4 + $0x1] ss:$0 sm:$0xff] }
 0x307   : > { %v2391_v13 = vpop.f32.mrb[23].mxu1  ;;  %2445 = vrot.lane.b32.xlu0 %v2389_v48, %s5494_s16  ;;  %v2428_v60 = vpop.permute.xlu1 %2427 }
 0x308   : > { %2471 = vst.msk [vmem:[#allocation2 + $0x28] sm:$0xff] %vm2468_vm9, %v2428_v60  ;;  %v2773_v60 = vmul.f32 %v6879_v47, %v2679_v39 }
 0x309   : > { %v2430_v50 = vpop.permute.xlu0 %2429 }
 0x30a   : > { %2472 = vst.msk [vmem:[#allocation2 + $0x30] sm:$0xff] %vm2468_vm9, %v2430_v50  ;;  %v5357_v50 = vpop.f32.mrb[45].mxu0 }
 0x30b   : > { %v2682_v0 = vpop.f32.mrb[46].mxu0 }
 0x30c   : > { %v2774_v8 = vmul.f32 %v6879_v47, %v2682_v0 }
 0x30f   : > { %v2489_v6 = vld [vmem:[#allocation2 + $0x28] sm:$0xff] }
 0x310   : > { %v2518_v52 = vmul.f32 %v6817_v5, %v2489_v6 }
 0x311   : > { %v2490_v33 = vld [vmem:[#allocation2 + $0x30] sm:$0xff] }
 0x312   : > { %v2547_v10 = vadd.f32 %v6824_v46, %v2518_v52  ;;  %v2519_v31 = vmul.f32 %v6817_v5, %v2490_v33  ;;  %v2802_v52 = vadd.f32 %v6887_v54, %v2773_v60 }
 0x314   : > { %v2568_v40 = vmax.f32 %v2547_v10, 0.0  ;;  %v2548_v61 = vadd.f32 %v6824_v46, %v2519_v31  ;;  %v5358_v10 = vpop.f32.mrb[47].mxu0 }
 0x316   : > { %v2586_v51 = vpack.c.bf16 %v2568_v40, %v2567_v14  ;;  %v2569_v57 = vmax.f32 %v2548_v61, 0.0 }
 0x318   : > { %5364 = vmatmul.mubr.msk.bf16.gmra.mrb[52].mxu0 %vm364_vm1, %v2586_v51  ;;  %v2823_v51 = vmax.f32 %v2802_v52, 0.0 }
 0x319   : > { %5367 = vmatprep.mubr.msk.bf16.mxu0 %vm5493_vm0, %v5492_v1 }
 0x31c   : > { %v2394_v55 = vpop.f32.mrb[24].mxu1 }
 0x31d   : > { %v2396_v16 = vpop.f32.mrb[25].mxu1  ;;  %2447 = vrot.lane.b32.xlu1 %v2394_v55, %s5494_s16  ;;  %v2803_v55 = vadd.f32 %v6887_v54, %v2774_v8 }
 0x31e   : > { %v2397_v26 = vpop.f32.mrb[26].mxu1 }
 0x31f   : > { %v2399_v27 = vpop.f32.mrb[27].mxu1  ;;  %2449 = vrot.lane.b32.xlu0 %v2397_v26, %s5494_s16  ;;  %v2844_v26 = vmul.f32 %v2823_v51, %v5778_v17 }
 0x320   : > { %v2824_v27 = vmax.f32 %v2803_v55, 0.0 }
 0x321   : > { %2865 = vst.msk [vmem:[#allocation3] sm:$0xff] %vm387_vm2, %v2844_v26 }
 0x323   : > { %v2432_v63 = vpop.permute.xlu1 %2431 }
 0x324   : > { %2473 = vst.msk [vmem:[#allocation2 + $0x38] sm:$0xff] %vm2468_vm9, %v2432_v63  ;;  %v2845_v63 = vmul.f32 %v2824_v27, %v5783_v22 }
 0x325   : > { %v2434_v28 = vpop.permute.xlu0 %2433  ;;  %v2402_v29 = vpop.f32.mrb[28].mxu1 }
 0x326   : > { %2474 = vst.msk [vmem:[#allocation2 + $0x40] sm:$0xff] %vm2468_vm9, %v2434_v28  ;;  %2451 = vrot.lane.b32.xlu1 %v2402_v29, %s5494_s16  ;;  %v2404_v56 = vpop.f32.mrb[29].mxu1 }
 0x327   : > { %v2405_v2 = vpop.f32.mrb[30].mxu1  ;;  %2866 = vst.msk [vmem:[#allocation3 + $0x8] sm:$0xff] %vm387_vm2, %v2845_v63 }
 0x328   : > { %v2406_v35 = vpop.f32.mrb[31].mxu1 }
 0x32b   : > { %v2491_v36 = vld [vmem:[#allocation2 + $0x38] sm:$0xff] }
 0x32c   : > { %v2520_v41 = vmul.f32 %v6817_v5, %v2491_v36 }
 0x32d   : > { %v2492_v45 = vld [vmem:[#allocation2 + $0x40] sm:$0xff] }
 0x32e   : > { %v2549_v42 = vadd.f32 %v6824_v46, %v2520_v41  ;;  %v2521_v11 = vmul.f32 %v6817_v5, %v2492_v45  ;;  %v2977_v28 = vld [vmem:[#allocation3 + $0x8] sm:$0xff] }
 0x32f   : > { %v5147_v33 = vpack.c.bf16 %v2977_v28, %v2977_v28 }
 0x330   : > { %v2570_v21 = vmax.f32 %v2549_v42, 0.0  ;;  %v2550_v13 = vadd.f32 %v6824_v46, %v2521_v11 }
 0x331   : > { %3038 = vrot.lane.b32.xlu0 %v5147_v33, %s5494_s16  ;;  %v2503_v33 = vld [vmem:[#allocation2 + $0x98] sm:$0xff] }
 0x332   : > { %v2587_v44 = vpack.c.bf16 %v2570_v21, %v2569_v57  ;;  %v2571_v14 = vmax.f32 %v2550_v13, 0.0  ;;  %v2886_v57 = vld [vmem:[#allocation3 + $0x7] sm:$0xff] }
 0x333   : > { %v5132_v21 = vpack.c.bf16 %v2886_v57, %v2886_v57  ;;  %v2504_v57 = vld [vmem:[#allocation2 + $0xa0] sm:$0xff] }
 0x334   : > { %5368 = vmatmul.mubr.msk.bf16.gmra.mrb[56].mxu0 %vm364_vm1, %v2587_v44 }
 0x335   : > { %5371 = vmatprep.mubr.msk.bf16.mxu0 %vm5493_vm0, %v5492_v1  ;;  %2962 = vst.msk [vmem:[#allocation4] sm:$0xf] %vm1171_vm11, %v5132_v21 }
 0x33f   : > { %v2436_v4 = vpop.permute.xlu1 %2435 }
 0x340   : > { %2475 = vst.msk [vmem:[#allocation2 + $0x48] sm:$0xff] %vm2468_vm9, %v2436_v4 }
 0x341   : > { %v2438_v58 = vpop.permute.xlu0 %2437 }
 0x342   : > { %2476 = vst.msk [vmem:[#allocation2 + $0x50] sm:$0xff] %vm2468_vm9, %v2438_v58 }
 0x347   : > { %v2493_v12 = vld [vmem:[#allocation2 + $0x48] sm:$0xff] }
 0x348   : > { %v2522_v48 = vmul.f32 %v6817_v5, %v2493_v12 }
 0x349   : > { %v2494_v2 = vld [vmem:[#allocation2 + $0x50] sm:$0xff] }
 0x34a   : > { %v2551_v6 = vadd.f32 %v6824_v46, %v2522_v48  ;;  %v2523_v17 = vmul.f32 %v6817_v5, %v2494_v2 }
 0x34c   : > { %v2572_v40 = vmax.f32 %v2551_v6, 0.0  ;;  %v2552_v31 = vadd.f32 %v6824_v46, %v2523_v17 }
 0x34e   : > { %v2588_v16 = vpack.c.bf16 %v2572_v40, %v2571_v14  ;;  %v2573_v41 = vmax.f32 %v2552_v31, 0.0 }
 0x350   : > { %5372 = vmatmul.mubr.msk.bf16.gmra.mrb[60].mxu0 %vm364_vm1, %v2588_v16 }
 0x351   : > { %5375 = vmatprep.mubr.msk.bf16.mxu0 %vm5493_vm0, %v5492_v1 }
 0x35b   : > { %v2440_v29 = vpop.permute.xlu1 %2439 }
 0x35c   : > { %2477 = vst.msk [vmem:[#allocation2 + $0x58] sm:$0xff] %vm2468_vm9, %v2440_v29  ;;  %v2502_v29 = vld [vmem:[#allocation2 + $0x90] sm:$0xff] }
 0x35d   : > { %v2442_v56 = vpop.permute.xlu0 %2441 }
 0x35e   : > { %2478 = vst.msk [vmem:[#allocation2 + $0x60] sm:$0xff] %vm2468_vm9, %v2442_v56 }
 0x363   : > { %v2495_v35 = vld [vmem:[#allocation2 + $0x58] sm:$0xff] }
 0x364   : > { %v2524_v22 = vmul.f32 %v6817_v5, %v2495_v35  ;;  %v2531_v35 = vmul.f32 %v6817_v5, %v2502_v29 }
 0x365   : > { %v2496_v58 = vld [vmem:[#allocation2 + $0x60] sm:$0xff] }
 0x366   : > { %v2553_v36 = vadd.f32 %v6824_v46, %v2524_v22  ;;  %v2525_v45 = vmul.f32 %v6817_v5, %v2496_v58  ;;  %v2532_v22 = vmul.f32 %v6817_v5, %v2503_v33  ;;  %v2533_v58 = vmul.f32 %v6817_v5, %v2504_v57 }
 0x368   : > { %v2574_v61 = vmax.f32 %v2553_v36, 0.0  ;;  %v2554_v39 = vadd.f32 %v6824_v46, %v2525_v45 }
 0x36a   : > { %v2589_v42 = vpack.c.bf16 %v2574_v61, %v2573_v41  ;;  %v2575_v13 = vmax.f32 %v2554_v39, 0.0  ;;  %v2560_v61 = vadd.f32 %v6824_v46, %v2531_v35 }
 0x36c   : > { %5376 = vmatmul.mubr.msk.bf16.gmra.mrb[64].mxu0 %vm364_vm1, %v2589_v42  ;;  %v2561_v42 = vadd.f32 %v6824_v46, %v2532_v22 }
 0x36d   : > { %5379 = vmatprep.mubr.msk.bf16.mxu0 %vm5493_vm0, %v5492_v1 }
 0x377   : > { %v2444_v44 = vpop.permute.xlu1 %2443 }
 0x378   : > { %2479 = vst.msk [vmem:[#allocation2 + $0x68] sm:$0xff] %vm2468_vm9, %v2444_v44  ;;  %v2581_v44 = vmax.f32 %v2560_v61, 0.0 }
 0x379   : > { %v2446_v4 = vpop.permute.xlu0 %2445 }
 0x37a   : > { %2480 = vst.msk [vmem:[#allocation2 + $0x70] sm:$0xff] %vm2468_vm9, %v2446_v4  ;;  %v2582_v4 = vmax.f32 %v2561_v42, 0.0 }
 0x37c   : > { %v2593_v45 = vpack.c.bf16 %v2582_v4, %v2581_v44  ;;  %v5455_v44 = vld [vmem:[%s7462_s6 + $0x48] sm:$0xff]  }
 0x37d   : > { %4097 = vmatpush1.bf16.msra.mxu1 %v5455_v44 }
 0x37e   : > { %4098 = vmatprep.subr.bf16.mxu1 %v5495_v25 }
 0x37f   : > { %v2497_v11 = vld [vmem:[#allocation2 + $0x68] sm:$0xff] }
 0x380   : > { %v2526_v12 = vmul.f32 %v6817_v5, %v2497_v11  ;;  %v2562_v11 = vadd.f32 %v6824_v46, %v2533_v58 }
 0x381   : > { %v2498_v52 = vld [vmem:[#allocation2 + $0x70] sm:$0xff] }
 0x382   : > { %v2555_v48 = vadd.f32 %v6824_v46, %v2526_v12  ;;  %v2527_v8 = vmul.f32 %v6817_v5, %v2498_v52  ;;  %v2583_v12 = vmax.f32 %v2562_v11, 0.0 }
 0x384   : > { %v2576_v60 = vmax.f32 %v2555_v48, 0.0  ;;  %v2556_v51 = vadd.f32 %v6824_v46, %v2527_v8  ;;  %v2594_v39 = vpack.c.bf16 %v2583_v12, %v2583_v12 }
 0x386   : > { %v2590_v50 = vpack.c.bf16 %v2576_v60, %v2575_v13  ;;  %v2577_v26 = vmax.f32 %v2556_v51, 0.0 }
 0x388   : > { %5380 = vmatmul.mubr.msk.bf16.gmra.mrb[68].mxu0 %vm364_vm1, %v2590_v50 }
 0x389   : > { %5383 = vmatprep.mubr.msk.bf16.mxu0 %vm5493_vm0, %v5492_v1 }
 0x38f   : > { %v2448_v0 = vpop.permute.xlu1 %2447 }
 0x390   : > { %2481 = vst.msk [vmem:[#allocation2 + $0x78] sm:$0xff] %vm2468_vm9, %v2448_v0 }
 0x391   : > { %v2450_v6 = vpop.permute.xlu0 %2449 }
 0x392   : > { %2482 = vst.msk [vmem:[#allocation2 + $0x80] sm:$0xff] %vm2468_vm9, %v2450_v6 }
 0x397   : > { %v2499_v10 = vld [vmem:[#allocation2 + $0x78] sm:$0xff] }
 0x398   : > { %v2452_v14 = vpop.permute.xlu1 %2451  ;;  %v2528_v40 = vmul.f32 %v6817_v5, %v2499_v10 }
 0x399   : > { %2483 = vst.msk [vmem:[#allocation2 + $0x88] sm:$0xff] %vm2468_vm9, %v2452_v14  ;;  %v2500_v16 = vld [vmem:[#allocation2 + $0x80] sm:$0xff] }
 0x39a   : > { %v2557_v55 = vadd.f32 %v6824_v46, %v2528_v40  ;;  %v2529_v63 = vmul.f32 %v6817_v5, %v2500_v16 }
 0x39c   : > { %v2578_v27 = vmax.f32 %v2557_v55, 0.0  ;;  %v2558_v17 = vadd.f32 %v6824_v46, %v2529_v63 }
 0x39e   : > { %v2591_v28 = vpack.c.bf16 %v2578_v27, %v2577_v26  ;;  %v2579_v36 = vmax.f32 %v2558_v17, 0.0 }
 0x3a0   : > { %5384 = vmatmul.mubr.msk.bf16.gmra.mrb[72].mxu0 %vm364_vm1, %v2591_v28  ;;  %v2501_v56 = vld [vmem:[#allocation2 + $0x88] sm:$0xff] }
 0x3a1   : > { %5387 = vmatprep.mubr.msk.bf16.mxu0 %vm5493_vm0, %v5492_v1  ;;  %v2530_v2 = vmul.f32 %v6817_v5, %v2501_v56 }
 0x3a3   : > { %v2559_v31 = vadd.f32 %v6824_v46, %v2530_v2  ;;  %v3039_v13 = vpop.permute.xlu0 %3038 }
 0x3a4   : > { %3083 = vst.msk [vmem:[#allocation4] sm:$0xf] %vm1293_vm15, %v3039_v13 }
 0x3a5   : > { %v2580_v41 = vmax.f32 %v2559_v31, 0.0 }
 0x3a7   : > { %v2592_v21 = vpack.c.bf16 %v2580_v41, %v2579_v36 }
 0x3a9   : > { %5388 = vmatmul.mubr.msk.bf16.gmra.mrb[76].mxu0 %vm364_vm1, %v2592_v21 }
 0x3aa   : > { %5391 = vmatprep.mubr.msk.bf16.mxu0 %vm5493_vm0, %v5492_v1 }
 0x3b1   : > { %5392 = vmatmul.mubr.msk.bf16.gmra.mrb[80].mxu0 %vm364_vm1, %v2593_v45 }
 0x3b2   : > { %5395 = vmatprep.mubr.msk.bf16.mxu0 %vm5493_vm0, %v5492_v1  ;;  %vm4252_vm0 = vcmask 261312  }
 0x3b9   : > { %5396 = vmatmul.mubr.msk.bf16.gmra.mrb[84].mxu0 %vm364_vm1, %v2594_v39 }
 0x3ce   : > { %v2687_v48 = vpop.f32.mrb[48].mxu0 }
 0x3cf   : > { %v2775_v60 = vmul.f32 %v6879_v47, %v2687_v48  ;;  %v5361_v5 = vpop.f32.mrb[49].mxu0  ;;  %v5457_v48 = vld [vmem:[%s7462_s6 + $0x58] sm:$0xff]  }
 0x3d0   : > { %v2690_v50 = vpop.f32.mrb[50].mxu0 }
 0x3d1   : > { %v2804_v0 = vadd.f32 %v6887_v54, %v2775_v60  ;;  %v2776_v46 = vmul.f32 %v6879_v47, %v2690_v50  ;;  %v5362_v6 = vpop.f32.mrb[51].mxu0  ;;  %v5458_v60 = vld [vmem:[%s7462_s6 + $0x60] sm:$0xff]  }
 0x3d3   : > { %v2825_v52 = vmax.f32 %v2804_v0, 0.0  ;;  %v2805_v8 = vadd.f32 %v6887_v54, %v2776_v46  ;;  %v5459_v46 = vld [vmem:[%s7462_s6 + $0x68] sm:$0xff]  }
 0x3d5   : > { %v2846_v1 = vmul.f32 %v2825_v52, %v5833_v3  ;;  %v2826_v10 = vmax.f32 %v2805_v8, 0.0 }
 0x3d7   : > { %2867 = vst.msk [vmem:[#allocation3 + $0x10] sm:$0xff] %vm387_vm2, %v2846_v1  ;;  %v2847_v14 = vmul.f32 %v2826_v10, %v5844_v49 }
 0x3d9   : > { %2868 = vst.msk [vmem:[#allocation3 + $0x18] sm:$0xff] %vm387_vm2, %v2847_v14 }
 0x3de   : > { %v3098_v40 = vld [vmem:[#allocation3 + $0x9] sm:$0xff] }
 0x3df   : > { %v2978_v51 = vld [vmem:[#allocation3 + $0x10] sm:$0xff]  ;;  %v5162_v16 = vpack.c.bf16 %v3098_v40, %v3098_v40 }
 0x3e0   : > { %v2887_v55 = vld [vmem:[#allocation3 + $0xf] sm:$0xff]  ;;  %v5148_v26 = vpack.c.bf16 %v2978_v51, %v2978_v51  ;;  %v3219_v63 = vld [vmem:[#allocation3 + $0x17] sm:$0xff] }
 0x3e1   : > { %v5133_v27 = vpack.c.bf16 %v2887_v55, %v2887_v55  ;;  %v3099_v28 = vld [vmem:[#allocation3 + $0x11] sm:$0xff]  ;;  %3159 = vrot.lane.b32.xlu0 %v5162_v16, %s5496_s19  ;;  %v5177_v3 = vpack.c.bf16 %v3219_v63, %v3219_v63  ;;  %v5460_v55 = vld [vmem:[%s7462_s6 + $0x70] sm:$0xff]  }
 0x3e2   : > { %3040 = vrot.lane.b32.xlu1 %v5148_v26, %s5494_s16  ;;  %v5163_v29 = vpack.c.bf16 %v3099_v28, %v3099_v28  ;;  %v3340_v49 = vld [vmem:[#allocation3 + $0x18] sm:$0xff]  ;;  %v5461_v28 = vld [vmem:[%s7462_s6 + $0x78] sm:$0xff]  }
 0x3e3   : > { %2963 = vst.msk [vmem:[#allocation4 + $0x8] sm:$0xf] %vm1171_vm11, %v5133_v27  ;;  %2964 = vst.msk [vmem:[#allocation4 + $0x10] sm:$0xf] %vm1171_vm11, %v5177_v3  ;;  %v5192_v33 = vpack.c.bf16 %v3340_v49, %v3340_v49 }
 0x3e5   : > { %3280 = vrot.lane.b32.xlu0 %v5177_v3, %s5497_s22 }
 0x3e6   : > { %3161 = vrot.lane.b32.xlu1 %v5163_v29, %s5496_s19 }
 0x3e9   : > { %3401 = vrot.lane.b32.xlu0 %v5192_v33, %s5498_s25 }
 0x3eb   : > { %v2695_v56 = vpop.f32.mrb[52].mxu0 }
 0x3ec   : > { %v2777_v2 = vmul.f32 %v6879_v47, %v2695_v56  ;;  %v5365_v17 = vpop.f32.mrb[53].mxu0  ;;  %v5463_v56 = vld [vmem:[%s7462_s6 + $0x88] sm:$0xff]  }
 0x3ed   : > { %v2698_v35 = vpop.f32.mrb[54].mxu0  ;;  %3042 = vrot.lane.b32.xlu0 %v5192_v33, %s5494_s16 }
 0x3ee   : > { %v2806_v22 = vadd.f32 %v6887_v54, %v2777_v2  ;;  %v2778_v31 = vmul.f32 %v6879_v47, %v2698_v35  ;;  %v5366_v36 = vpop.f32.mrb[55].mxu0 }
 0x3f0   : > { %v2827_v41 = vmax.f32 %v2806_v22, 0.0  ;;  %v2807_v61 = vadd.f32 %v6887_v54, %v2778_v31 }
 0x3f2   : > { %v2848_v42 = vmul.f32 %v2827_v41, %v5903_v18  ;;  %v2828_v57 = vmax.f32 %v2807_v61, 0.0  ;;  %v5456_v18 = vld [vmem:[%s7462_s6 + $0x50] sm:$0xff]  }
 0x3f3   : > { %4099 = vmatpush1.bf16.msra.mxu1 %v5456_v18 }
 0x3f4   : > { %2869 = vst.msk [vmem:[#allocation3 + $0x20] sm:$0xff] %vm387_vm2, %v2848_v42  ;;  %v2849_v21 = vmul.f32 %v2828_v57, %v5915_v23  ;;  %4100 = vmatprep.subr.bf16.mxu1 %v5495_v25 }
 0x3f6   : > { %2870 = vst.msk [vmem:[#allocation3 + $0x28] sm:$0xff] %vm387_vm2, %v2849_v21 }
 0x3f7   : > { %4101 = vmatpush1.bf16.msra.mxu1 %v5457_v48 }
 0x3f8   : > { %4102 = vmatprep.subr.bf16.mxu1 %v5495_v25 }
 0x3fb   : > { %v3461_v4 = vld [vmem:[#allocation3 + $0x19] sm:$0xff]  ;;  %4103 = vmatpush1.bf16.msra.mxu1 %v5458_v60 }
 0x3fc   : > { %v3220_v58 = vld [vmem:[#allocation3 + $0x1f] sm:$0xff]  ;;  %v5207_v45 = vpack.c.bf16 %v3461_v4, %v3461_v4  ;;  %4104 = vmatprep.subr.bf16.mxu1 %v5495_v25 }
 0x3fd   : > { %v5178_v11 = vpack.c.bf16 %v3220_v58, %v3220_v58  ;;  %v3341_v12 = vld [vmem:[#allocation3 + $0x20] sm:$0xff]  ;;  %v3703_v5 = vld [vmem:[#allocation3 + $0x28] sm:$0xff] }
 0x3fe   : > { %v3582_v39 = vld [vmem:[#allocation3 + $0x27] sm:$0xff]  ;;  %3522 = vrot.lane.b32.xlu0 %v5207_v45, %s5499_s30  ;;  %v5193_v13 = vpack.c.bf16 %v3341_v12, %v3341_v12  ;;  %v5237_v8 = vpack.c.bf16 %v3703_v5, %v3703_v5 }
 0x3ff   : > { %3282 = vrot.lane.b32.xlu1 %v5178_v11, %s5497_s22  ;;  %v5222_v23 = vpack.c.bf16 %v3582_v39, %v3582_v39  ;;  %2965 = vst.msk [vmem:[#allocation4 + $0x18] sm:$0xf] %vm1171_vm11, %v5178_v11  ;;  %v3462_v50 = vld [vmem:[#allocation3 + $0x21] sm:$0xff]  ;;  %4105 = vmatpush1.bf16.msra.mxu1 %v5459_v46 }
 0x400   : > { %v5208_v1 = vpack.c.bf16 %v3462_v50, %v3462_v50  ;;  %4106 = vmatprep.subr.bf16.mxu1 %v5495_v25 }
 0x401   : > { %2966 = vst.msk [vmem:[#allocation4 + $0x20] sm:$0xf] %vm1171_vm11, %v5222_v23 }
 0x402   : > { %3163 = vrot.lane.b32.xlu0 %v5207_v45, %s5496_s19 }
 0x403   : > { %3403 = vrot.lane.b32.xlu1 %v5193_v13, %s5498_s25  ;;  %4107 = vmatpush1.bf16.msra.mxu1 %v5460_v55 }
 0x404   : > { %4108 = vmatprep.subr.bf16.mxu1 %v5495_v25 }
 0x406   : > { %3643 = vrot.lane.b32.xlu0 %v5222_v23, %s5500_s18 }
 0x407   : > { %3044 = vrot.lane.b32.xlu1 %v5193_v13, %s5494_s16  ;;  %v2703_v0 = vpop.f32.mrb[56].mxu0  ;;  %4109 = vmatpush1.bf16.msra.mxu1 %v5461_v28 }
 0x408   : > { %v2779_v6 = vmul.f32 %v6879_v47, %v2703_v0  ;;  %v5369_v52 = vpop.f32.mrb[57].mxu0  ;;  %4110 = vmatprep.subr.bf16.mxu1 %v5495_v25 }
 0x409   : > { %v2706_v10 = vpop.f32.mrb[58].mxu0 }
 0x40a   : > { %v2808_v14 = vadd.f32 %v6887_v54, %v2779_v6  ;;  %v2780_v40 = vmul.f32 %v6879_v47, %v2706_v10  ;;  %3764 = vrot.lane.b32.xlu0 %v5237_v8, %s5501_s23  ;;  %v5370_v51 = vpop.f32.mrb[59].mxu0 }
 0x40b   : > { %3524 = vrot.lane.b32.xlu1 %v5208_v1, %s5499_s30 }
 0x40c   : > { %v2829_v16 = vmax.f32 %v2808_v14, 0.0  ;;  %v2809_v26 = vadd.f32 %v6887_v54, %v2780_v40 }
 0x40e   : > { %v2850_v27 = vmul.f32 %v2829_v16, %v5983_v59  ;;  %v2830_v63 = vmax.f32 %v2809_v26, 0.0  ;;  %3284 = vrot.lane.b32.xlu0 %v5222_v23, %s5497_s22  ;;  %v5462_v59 = vld [vmem:[%s7462_s6 + $0x80] sm:$0xff]  }
 0x40f   : > { %3165 = vrot.lane.b32.xlu1 %v5208_v1, %s5496_s19  ;;  %4111 = vmatpush1.bf16.msra.mxu1 %v5462_v59 }
 0x410   : > { %2871 = vst.msk [vmem:[#allocation3 + $0x30] sm:$0xff] %vm387_vm2, %v2850_v27  ;;  %v2851_v3 = vmul.f32 %v2830_v63, %v6030_v15  ;;  %4112 = vmatprep.subr.bf16.mxu1 %v5495_v25 }
 0x412   : > { %2872 = vst.msk [vmem:[#allocation3 + $0x38] sm:$0xff] %vm387_vm2, %v2851_v3  ;;  %3405 = vrot.lane.b32.xlu0 %v5237_v8, %s5498_s25 }
 0x413   : > { %4113 = vmatpush1.bf16.msra.mxu1 %v5463_v56 }
 0x416   : > { %3046 = vrot.lane.b32.xlu0 %v5237_v8, %s5494_s16 }
 0x417   : > { %v3583_v29 = vld [vmem:[#allocation3 + $0x2f] sm:$0xff] }
 0x418   : > { %v3463_v49 = vld [vmem:[#allocation3 + $0x29] sm:$0xff]  ;;  %v5223_v33 = vpack.c.bf16 %v3583_v29, %v3583_v29 }
 0x419   : > { %v5209_v15 = vpack.c.bf16 %v3463_v49, %v3463_v49  ;;  %v3704_v2 = vld [vmem:[#allocation3 + $0x30] sm:$0xff]  ;;  %v3705_v25 = vld [vmem:[#allocation3 + $0x38] sm:$0xff] }
 0x41a   : > { %v3584_v17 = vld [vmem:[#allocation3 + $0x37] sm:$0xff]  ;;  %3645 = vrot.lane.b32.xlu1 %v5223_v33, %s5500_s18  ;;  %2967 = vst.msk [vmem:[#allocation4 + $0x28] sm:$0xf] %vm1171_vm11, %v5223_v33  ;;  %v5238_v36 = vpack.c.bf16 %v3704_v2, %v3704_v2  ;;  %v5239_v57 = vpack.c.bf16 %v3705_v25, %v3705_v25 }
 0x41b   : > { %v3464_v35 = vld [vmem:[#allocation3 + $0x31] sm:$0xff]  ;;  %3526 = vrot.lane.b32.xlu0 %v5209_v15, %s5499_s30  ;;  %v5224_v22 = vpack.c.bf16 %v3584_v17, %v3584_v17  ;;  %3900 = vst.msk [vmem:[#allocation4 + $0x4] sm:$0xf] %vm1171_vm11, %v5209_v15 }
 0x41c   : > { %v5210_v31 = vpack.c.bf16 %v3464_v35, %v3464_v35 }
 0x41d   : > { %2968 = vst.msk [vmem:[#allocation4 + $0x30] sm:$0xf] %vm1171_vm11, %v5224_v22 }
 0x41e   : > { %3901 = vst.msk [vmem:[#allocation4 + $0xc] sm:$0xf] %vm1171_vm11, %v5210_v31  ;;  %3766 = vrot.lane.b32.xlu1 %v5238_v36, %s5501_s23 }
 0x41f   : > { %3167 = vrot.lane.b32.xlu0 %v5209_v15, %s5496_s19 }
 0x422   : > { %3286 = vrot.lane.b32.xlu1 %v5223_v33, %s5497_s22 }
 0x423   : > { %3647 = vrot.lane.b32.xlu0 %v5224_v22, %s5500_s18  ;;  %v2711_v41 = vpop.f32.mrb[60].mxu0 }
 0x424   : > { %v2781_v61 = vmul.f32 %v6879_v47, %v2711_v41  ;;  %v5373_v42 = vpop.f32.mrb[61].mxu0 }
 0x425   : > { %v2714_v21 = vpop.f32.mrb[62].mxu0 }
 0x426   : > { %v2810_v44 = vadd.f32 %v6887_v54, %v2781_v61  ;;  %v2782_v4 = vmul.f32 %v6879_v47, %v2714_v21  ;;  %3407 = vrot.lane.b32.xlu1 %v5238_v36, %s5498_s25  ;;  %v5374_v58 = vpop.f32.mrb[63].mxu0 }
 0x427   : > { %3768 = vrot.lane.b32.xlu0 %v5239_v57, %s5501_s23 }
 0x428   : > { %v2831_v45 = vmax.f32 %v2810_v44, 0.0  ;;  %v2811_v11 = vadd.f32 %v6887_v54, %v2782_v4 }
 0x42a   : > { %v2852_v18 = vmul.f32 %v2831_v45, %v6069_v38  ;;  %v2832_v12 = vmax.f32 %v2811_v11, 0.0  ;;  %3048 = vrot.lane.b32.xlu1 %v5238_v36, %s5494_s16 }
 0x42b   : > { %3288 = vrot.lane.b32.xlu0 %v5224_v22, %s5497_s22 }
 0x42c   : > { %2873 = vst.msk [vmem:[#allocation3 + $0x40] sm:$0xff] %vm387_vm2, %v2852_v18  ;;  %v2853_v39 = vmul.f32 %v2832_v12, %v6111_v53 }
 0x42e   : > { %2874 = vst.msk [vmem:[#allocation3 + $0x48] sm:$0xff] %vm387_vm2, %v2853_v39  ;;  %3528 = vrot.lane.b32.xlu1 %v5210_v31, %s5499_s30 }
 0x42f   : > { %3409 = vrot.lane.b32.xlu0 %v5239_v57, %s5498_s25 }
 0x432   : > { %3169 = vrot.lane.b32.xlu1 %v5210_v31, %s5496_s19 }
 0x433   : > { %3050 = vrot.lane.b32.xlu0 %v5239_v57, %s5494_s16  ;;  %v3585_v38 = vld [vmem:[#allocation3 + $0x3f] sm:$0xff] }
 0x434   : > { %v3465_v23 = vld [vmem:[#allocation3 + $0x39] sm:$0xff]  ;;  %v5225_v48 = vpack.c.bf16 %v3585_v38, %v3585_v38 }
 0x435   : > { %v5211_v13 = vpack.c.bf16 %v3465_v23, %v3465_v23  ;;  %v3706_v60 = vld [vmem:[#allocation3 + $0x40] sm:$0xff]  ;;  %v3707_v6 = vld [vmem:[#allocation3 + $0x48] sm:$0xff] }
 0x436   : > { %v3586_v5 = vld [vmem:[#allocation3 + $0x47] sm:$0xff]  ;;  %3649 = vrot.lane.b32.xlu1 %v5225_v48, %s5500_s18  ;;  %2969 = vst.msk [vmem:[#allocation4 + $0x38] sm:$0xf] %vm1171_vm11, %v5225_v48  ;;  %v5240_v46 = vpack.c.bf16 %v3706_v60, %v3706_v60  ;;  %v5241_v10 = vpack.c.bf16 %v3707_v6, %v3707_v6 }
 0x437   : > { %v3466_v50 = vld [vmem:[#allocation3 + $0x41] sm:$0xff]  ;;  %3530 = vrot.lane.b32.xlu0 %v5211_v13, %s5499_s30  ;;  %v5226_v53 = vpack.c.bf16 %v3586_v5, %v3586_v5  ;;  %3902 = vst.msk [vmem:[#allocation4 + $0x14] sm:$0xf] %vm1171_vm11, %v5211_v13 }
 0x438   : > { %v5212_v0 = vpack.c.bf16 %v3466_v50, %v3466_v50 }
 0x439   : > { %2970 = vst.msk [vmem:[#allocation4 + $0x40] sm:$0xf] %vm1171_vm11, %v5226_v53 }
 0x43a   : > { %3903 = vst.msk [vmem:[#allocation4 + $0x1c] sm:$0xf] %vm1171_vm11, %v5212_v0  ;;  %3770 = vrot.lane.b32.xlu1 %v5240_v46, %s5501_s23 }
 0x43b   : > { %3171 = vrot.lane.b32.xlu0 %v5211_v13, %s5496_s19 }
 0x43e   : > { %3290 = vrot.lane.b32.xlu1 %v5225_v48, %s5497_s22 }
 0x43f   : > { %3651 = vrot.lane.b32.xlu0 %v5226_v53, %s5500_s18  ;;  %v2719_v52 = vpop.f32.mrb[64].mxu0 }
 0x440   : > { %v2783_v8 = vmul.f32 %v6879_v47, %v2719_v52  ;;  %v5377_v1 = vpop.f32.mrb[65].mxu0 }
 0x441   : > { %v2722_v14 = vpop.f32.mrb[66].mxu0 }
 0x442   : > { %v2812_v40 = vadd.f32 %v6887_v54, %v2783_v8  ;;  %v2784_v51 = vmul.f32 %v6879_v47, %v2722_v14  ;;  %3411 = vrot.lane.b32.xlu1 %v5240_v46, %s5498_s25  ;;  %v5378_v55 = vpop.f32.mrb[67].mxu0 }
 0x443   : > { %3772 = vrot.lane.b32.xlu0 %v5241_v10, %s5501_s23 }
 0x444   : > { %v2833_v16 = vmax.f32 %v2812_v40, 0.0  ;;  %v2813_v26 = vadd.f32 %v6887_v54, %v2784_v51 }
 0x446   : > { %v2854_v27 = vmul.f32 %v2833_v16, %v6157_v20  ;;  %v2834_v63 = vmax.f32 %v2813_v26, 0.0  ;;  %3052 = vrot.lane.b32.xlu1 %v5240_v46, %s5494_s16 }
 0x447   : > { %3292 = vrot.lane.b32.xlu0 %v5226_v53, %s5497_s22 }
 0x448   : > { %2875 = vst.msk [vmem:[#allocation3 + $0x50] sm:$0xff] %vm387_vm2, %v2854_v27  ;;  %v2855_v28 = vmul.f32 %v2834_v63, %v6198_v43 }
 0x44a   : > { %2876 = vst.msk [vmem:[#allocation3 + $0x58] sm:$0xff] %vm387_vm2, %v2855_v28  ;;  %3532 = vrot.lane.b32.xlu1 %v5212_v0, %s5499_s30 }
 0x44b   : > { %3413 = vrot.lane.b32.xlu0 %v5241_v10, %s5498_s25 }
 0x44e   : > { %3173 = vrot.lane.b32.xlu1 %v5212_v0, %s5496_s19 }
 0x44f   : > { %3054 = vrot.lane.b32.xlu0 %v5241_v10, %s5494_s16  ;;  %v3587_v20 = vld [vmem:[#allocation3 + $0x4f] sm:$0xff] }
 0x450   : > { %v3467_v3 = vld [vmem:[#allocation3 + $0x49] sm:$0xff]  ;;  %v5227_v59 = vpack.c.bf16 %v3587_v20, %v3587_v20 }
 0x451   : > { %v5213_v29 = vpack.c.bf16 %v3467_v3, %v3467_v3  ;;  %v3708_v49 = vld [vmem:[#allocation3 + $0x50] sm:$0xff]  ;;  %v3709_v36 = vld [vmem:[#allocation3 + $0x58] sm:$0xff] }
 0x452   : > { %v3588_v33 = vld [vmem:[#allocation3 + $0x57] sm:$0xff]  ;;  %3653 = vrot.lane.b32.xlu1 %v5227_v59, %s5500_s18  ;;  %2971 = vst.msk [vmem:[#allocation4 + $0x48] sm:$0xf] %vm1171_vm11, %v5227_v59  ;;  %v5242_v35 = vpack.c.bf16 %v3708_v49, %v3708_v49  ;;  %v5243_v57 = vpack.c.bf16 %v3709_v36, %v3709_v36 }
 0x453   : > { %v3468_v15 = vld [vmem:[#allocation3 + $0x51] sm:$0xff]  ;;  %3534 = vrot.lane.b32.xlu0 %v5213_v29, %s5499_s30  ;;  %v5228_v43 = vpack.c.bf16 %v3588_v33, %v3588_v33  ;;  %3904 = vst.msk [vmem:[#allocation4 + $0x24] sm:$0xf] %vm1171_vm11, %v5213_v29  ;;  %v3160_v2 = vpop.permute.xlu0 %3159 }
 0x454   : > { %v5214_v56 = vpack.c.bf16 %v3468_v15, %v3468_v15  ;;  %v3041_v17 = vpop.permute.xlu1 %3040  ;;  %3204 = vst.msk [vmem:[#allocation4] sm:$0xf] %vm1415_vm3, %v3160_v2 }
 0x455   : > { %2972 = vst.msk [vmem:[#allocation4 + $0x50] sm:$0xf] %vm1171_vm11, %v5228_v43 }
 0x456   : > { %3905 = vst.msk [vmem:[#allocation4 + $0x2c] sm:$0xf] %vm1171_vm11, %v5214_v56  ;;  %3774 = vrot.lane.b32.xlu1 %v5242_v35, %s5501_s23 }
 0x457   : > { %3084 = vst.msk [vmem:[#allocation4 + $0x8] sm:$0xf] %vm1293_vm15, %v3041_v17  ;;  %3175 = vrot.lane.b32.xlu0 %v5213_v29, %s5496_s19  ;;  %v3281_v22 = vpop.permute.xlu0 %3280 }
 0x458   : > { %v3162_v31 = vpop.permute.xlu1 %3161  ;;  %3325 = vst.msk [vmem:[#allocation4] sm:$0xf] %vm1537_vm5, %v3281_v22 }
 0x459   : > { %3205 = vst.msk [vmem:[#allocation4 + $0x8] sm:$0xf] %vm1415_vm3, %v3162_v31 }
 0x45a   : > { %3294 = vrot.lane.b32.xlu1 %v5227_v59, %s5497_s22 }
 0x45b   : > { %3655 = vrot.lane.b32.xlu0 %v5228_v43, %s5500_s18  ;;  %v2727_v25 = vpop.f32.mrb[68].mxu0  ;;  %v3402_v61 = vpop.permute.xlu0 %3401 }
 0x45c   : > { %v2785_v41 = vmul.f32 %v6879_v47, %v2727_v25  ;;  %v5381_v42 = vpop.f32.mrb[69].mxu0  ;;  %3446 = vst.msk [vmem:[#allocation4] sm:$0xf] %vm1659_vm7, %v3402_v61 }
 0x45d   : > { %v2730_v21 = vpop.f32.mrb[70].mxu0 }
 0x45e   : > { %v2814_v44 = vadd.f32 %v6887_v54, %v2785_v41  ;;  %v2786_v4 = vmul.f32 %v6879_v47, %v2730_v21  ;;  %3415 = vrot.lane.b32.xlu1 %v5242_v35, %s5498_s25  ;;  %v5382_v58 = vpop.f32.mrb[71].mxu0 }
 0x45f   : > { %3776 = vrot.lane.b32.xlu0 %v5243_v57, %s5501_s23  ;;  %v3043_v18 = vpop.permute.xlu0 %3042 }
 0x460   : > { %v2835_v45 = vmax.f32 %v2814_v44, 0.0  ;;  %v2815_v11 = vadd.f32 %v6887_v54, %v2786_v4  ;;  %3085 = vst.msk [vmem:[#allocation4 + $0x10] sm:$0xf] %vm1293_vm15, %v3043_v18 }
 0x462   : > { %v2856_v12 = vmul.f32 %v2835_v45, %v6286_v32  ;;  %v2836_v39 = vmax.f32 %v2815_v11, 0.0  ;;  %3056 = vrot.lane.b32.xlu1 %v5242_v35, %s5494_s16 }
 0x463   : > { %3296 = vrot.lane.b32.xlu0 %v5228_v43, %s5497_s22 }
 0x464   : > { %2877 = vst.msk [vmem:[#allocation3 + $0x60] sm:$0xff] %vm387_vm2, %v2856_v12  ;;  %v2857_v38 = vmul.f32 %v2836_v39, %v6300_v37 }
 0x466   : > { %2878 = vst.msk [vmem:[#allocation3 + $0x68] sm:$0xff] %vm387_vm2, %v2857_v38  ;;  %3536 = vrot.lane.b32.xlu1 %v5214_v56, %s5499_s30 }
 0x467   : > { %3417 = vrot.lane.b32.xlu0 %v5243_v57, %s5498_s25 }
 0x46a   : > { %3177 = vrot.lane.b32.xlu1 %v5214_v56, %s5496_s19 }
 0x46b   : > { %3058 = vrot.lane.b32.xlu0 %v5243_v57, %s5494_s16  ;;  %v3589_v32 = vld [vmem:[#allocation3 + $0x5f] sm:$0xff] }
 0x46c   : > { %v3469_v23 = vld [vmem:[#allocation3 + $0x59] sm:$0xff]  ;;  %v5229_v48 = vpack.c.bf16 %v3589_v32, %v3589_v32 }
 0x46d   : > { %v5215_v13 = vpack.c.bf16 %v3469_v23, %v3469_v23  ;;  %v3710_v60 = vld [vmem:[#allocation3 + $0x60] sm:$0xff]  ;;  %v3711_v40 = vld [vmem:[#allocation3 + $0x68] sm:$0xff] }
 0x46e   : > { %v3590_v5 = vld [vmem:[#allocation3 + $0x67] sm:$0xff]  ;;  %3657 = vrot.lane.b32.xlu1 %v5229_v48, %s5500_s18  ;;  %2973 = vst.msk [vmem:[#allocation4 + $0x58] sm:$0xf] %vm1171_vm11, %v5229_v48  ;;  %v5244_v6 = vpack.c.bf16 %v3710_v60, %v3710_v60  ;;  %v5245_v20 = vpack.c.bf16 %v3711_v40, %v3711_v40 }
 0x46f   : > { %v3470_v50 = vld [vmem:[#allocation3 + $0x61] sm:$0xff]  ;;  %3538 = vrot.lane.b32.xlu0 %v5215_v13, %s5499_s30  ;;  %v5230_v37 = vpack.c.bf16 %v3590_v5, %v3590_v5  ;;  %3906 = vst.msk [vmem:[#allocation4 + $0x34] sm:$0xf] %vm1171_vm11, %v5215_v13 }
 0x470   : > { %v7115_v53 = vpack.c.bf16 %v3470_v50, %v3470_v50  ;;  %v3523_v0 = vpop.permute.xlu0 %3522 }
 0x471   : > { %v3283_v46 = vpop.permute.xlu1 %3282  ;;  %2974 = vst.msk [vmem:[#allocation4 + $0x60] sm:$0xf] %vm1171_vm11, %v5230_v37 }
 0x472   : > { %3907 = vst.msk [vmem:[#allocation4 + $0x3c] sm:$0xf] %vm1171_vm11, %v7115_v53  ;;  %3778 = vrot.lane.b32.xlu1 %v5244_v6, %s5501_s23 }
 0x473   : > { %3567 = vst.msk [vmem:[#allocation4] sm:$0xf] %vm1781_vm4, %v3523_v0  ;;  %3179 = vrot.lane.b32.xlu0 %v5215_v13, %s5496_s19  ;;  %v2735_v52 = vpop.f32.mrb[72].mxu0 }
 0x474   : > { %3326 = vst.msk [vmem:[#allocation4 + $0x8] sm:$0xf] %vm1537_vm5, %v3283_v46  ;;  %v2787_v8 = vmul.f32 %v6879_v47, %v2735_v52  ;;  %v3164_v10 = vpop.permute.xlu0 %3163  ;;  %v5385_v14 = vpop.f32.mrb[73].mxu0 }
 0x475   : > { %v3404_v1 = vpop.permute.xlu1 %3403  ;;  %3206 = vst.msk [vmem:[#allocation4 + $0x10] sm:$0xf] %vm1415_vm3, %v3164_v10  ;;  %v2738_v55 = vpop.f32.mrb[74].mxu0 }
 0x476   : > { %3447 = vst.msk [vmem:[#allocation4 + $0x8] sm:$0xf] %vm1659_vm7, %v3404_v1  ;;  %v2816_v51 = vadd.f32 %v6887_v54, %v2787_v8  ;;  %3298 = vrot.lane.b32.xlu1 %v5229_v48, %s5497_s22  ;;  %v2788_v16 = vmul.f32 %v6879_v47, %v2738_v55  ;;  %v5386_v26 = vpop.f32.mrb[75].mxu0 }
 0x477   : > { %3659 = vrot.lane.b32.xlu0 %v5230_v37, %s5500_s18 }
 0x478   : > { %v2837_v27 = vmax.f32 %v2816_v51, 0.0  ;;  %v3644_v28 = vpop.permute.xlu0 %3643  ;;  %v2817_v3 = vadd.f32 %v6887_v54, %v2788_v16 }
 0x479   : > { %v3045_v63 = vpop.permute.xlu1 %3044  ;;  %3688 = vst.msk [vmem:[#allocation4] sm:$0xf] %vm1903_vm6, %v3644_v28 }
 0x47a   : > { %3086 = vst.msk [vmem:[#allocation4 + $0x18] sm:$0xf] %vm1293_vm15, %v3045_v63  ;;  %v2858_v59 = vmul.f32 %v2837_v27, %v6385_v24  ;;  %3419 = vrot.lane.b32.xlu1 %v5244_v6, %s5498_s25  ;;  %v2838_v29 = vmax.f32 %v2817_v3, 0.0 }
 0x47b   : > { %3780 = vrot.lane.b32.xlu0 %v5245_v20, %s5501_s23 }
 0x47c   : > { %2879 = vst.msk [vmem:[#allocation3 + $0x70] sm:$0xff] %vm387_vm2, %v2858_v59  ;;  %v3765_v49 = vpop.permute.xlu0 %3764  ;;  %v2859_v15 = vmul.f32 %v2838_v29, %v6403_v34  ;;  %v2743_v43 = vpop.f32.mrb[76].mxu0 }
 0x47d   : > { %v3525_v33 = vpop.permute.xlu1 %3524  ;;  %3809 = vst.msk [vmem:[#allocation4] sm:$0xf] %vm2025_vm8, %v3765_v49  ;;  %v2789_v56 = vmul.f32 %v6879_v47, %v2743_v43  ;;  %v5389_v2 = vpop.f32.mrb[77].mxu0 }
 0x47e   : > { %3568 = vst.msk [vmem:[#allocation4 + $0x8] sm:$0xf] %vm1781_vm4, %v3525_v33  ;;  %3060 = vrot.lane.b32.xlu1 %v5244_v6, %s5494_s16  ;;  %v2746_v24 = vpop.f32.mrb[78].mxu0 }
 0x47f   : > { %3300 = vrot.lane.b32.xlu0 %v5230_v37, %s5497_s22  ;;  %2880 = vst.msk [vmem:[#allocation3 + $0x78] sm:$0xff] %vm387_vm2, %v2859_v15  ;;  %v2818_v17 = vadd.f32 %v6887_v54, %v2789_v56  ;;  %v2790_v35 = vmul.f32 %v6879_v47, %v2746_v24  ;;  %v5390_v34 = vpop.f32.mrb[79].mxu0  ;;  %v5466_v56 = vld [vmem:[#allocation4 + $0x4] ss:$8 sps:$4 sm:$0xff]  }
 0x480   : > { %v3285_v22 = vpop.permute.xlu0 %3284  ;;  %4975 = vmatprep.mubr.msk.bf16.mxu1 %vm387_vm2, %v5466_v56 }
 0x481   : > { %3327 = vst.msk [vmem:[#allocation4 + $0x10] sm:$0xf] %vm1537_vm5, %v3285_v22  ;;  %v3166_v31 = vpop.permute.xlu1 %3165  ;;  %v2839_v36 = vmax.f32 %v2818_v17, 0.0  ;;  %v2819_v25 = vadd.f32 %v6887_v54, %v2790_v35 }
 0x482   : > { %3207 = vst.msk [vmem:[#allocation4 + $0x18] sm:$0xf] %vm1415_vm3, %v3166_v31  ;;  %3540 = vrot.lane.b32.xlu1 %v7115_v53, %s5499_s30 }
 0x483   : > { %3421 = vrot.lane.b32.xlu0 %v5245_v20, %s5498_s25  ;;  %v3591_v41 = vld [vmem:[#allocation3 + $0x6f] sm:$0xff]  ;;  %v2860_v42 = vmul.f32 %v2839_v36, %v6456_v30  ;;  %v2840_v57 = vmax.f32 %v2819_v25, 0.0 }
 0x484   : > { %v3471_v61 = vld [vmem:[#allocation3 + $0x69] sm:$0xff]  ;;  %v3406_v21 = vpop.permute.xlu0 %3405  ;;  %v2751_v44 = vpop.f32.mrb[80].mxu0  ;;  %v5231_v4 = vpack.c.bf16 %v3591_v41, %v3591_v41 }
 0x485   : > { %v5217_v58 = vpack.c.bf16 %v3471_v61, %v3471_v61  ;;  %3448 = vst.msk [vmem:[#allocation4 + $0x10] sm:$0xf] %vm1659_vm7, %v3406_v21  ;;  %v2791_v45 = vmul.f32 %v6879_v47, %v2751_v44  ;;  %v5393_v11 = vpop.f32.mrb[81].mxu0  ;;  %v2861_v18 = vmul.f32 %v2840_v57, %v6484_v19  ;;  %v3712_v5 = vld [vmem:[#allocation3 + $0x70] sm:$0xff] }
 0x486   : > { %2881 = vst.msk [vmem:[#allocation3 + $0x80] sm:$0xff] %vm387_vm2, %v2860_v42  ;;  %3181 = vrot.lane.b32.xlu1 %v7115_v53, %s5496_s19  ;;  %v3592_v30 = vld [vmem:[#allocation3 + $0x77] sm:$0xff]  ;;  %v2754_v39 = vpop.f32.mrb[82].mxu0  ;;  %v5246_v46 = vpack.c.bf16 %v3712_v5, %v3712_v5 }
 0x487   : > { %3062 = vrot.lane.b32.xlu0 %v5245_v20, %s5494_s16  ;;  %v3472_v12 = vld [vmem:[#allocation3 + $0x71] sm:$0xff]  ;;  %3908 = vst.msk [vmem:[#allocation4 + $0x44] sm:$0xf] %vm1171_vm11, %v5217_v58  ;;  %2975 = vst.msk [vmem:[#allocation4 + $0x68] sm:$0xf] %vm1171_vm11, %v5231_v4  ;;  %v2820_v38 = vadd.f32 %v6887_v54, %v2791_v45  ;;  %v7166_v32 = vpack.c.bf16 %v3592_v30, %v3592_v30  ;;  %v5394_v48 = vpop.f32.mrb[83].mxu0  ;;  %v2792_v13 = vmul.f32 %v6879_v47, %v2754_v39 }
 0x488   : > { %v7168_v23 = vpack.c.bf16 %v3472_v12, %v3472_v12  ;;  %2882 = vst.msk [vmem:[#allocation3 + $0x88] sm:$0xff] %vm387_vm2, %v2861_v18  ;;  %v3047_v19 = vpop.permute.xlu0 %3046  ;;  %v3713_v27 = vld [vmem:[#allocation3 + $0x78] sm:$0xff] }
 0x489   : > { %v2841_v60 = vmax.f32 %v2820_v38, 0.0  ;;  %3087 = vst.msk [vmem:[#allocation4 + $0x20] sm:$0xf] %vm1293_vm15, %v3047_v19  ;;  %v2821_v50 = vadd.f32 %v6887_v54, %v2792_v13  ;;  %v5247_v3 = vpack.c.bf16 %v3713_v27, %v3713_v27  ;;  %v5467_v19 = vld [vmem:[#allocation4 + $0x14] ss:$8 sps:$4 sm:$0xff]  }
 0x48a   : > { %3909 = vst.msk [vmem:[#allocation4 + $0x4c] sm:$0xf] %vm1171_vm11, %v7168_v23  ;;  %2976 = vst.msk [vmem:[#allocation4 + $0x70] sm:$0xf] %vm1171_vm11, %v7166_v32  ;;  %3661 = vrot.lane.b32.xlu1 %v5231_v4, %s5500_s18 }
 0x48b   : > { %3542 = vrot.lane.b32.xlu0 %v5217_v58, %s5499_s30  ;;  %v2862_v37 = vmul.f32 %v2841_v60, %v6515_v9  ;;  %v2842_v6 = vmax.f32 %v2821_v50, 0.0 }
 0x48c   : > { %v3646_v53 = vpop.permute.xlu1 %3645  ;;  %v2759_v8 = vpop.f32.mrb[84].mxu0 }
 0x48d   : > { %v3527_v0 = vpop.permute.xlu0 %3526  ;;  %2883 = vst.msk [vmem:[#allocation3 + $0x90] sm:$0xff] %vm387_vm2, %v2862_v37  ;;  %v3473_v52 = vld [vmem:[#allocation3 + $0x79] sm:$0xff]  ;;  %v2863_v9 = vmul.f32 %v2842_v6, %v6568_v62  ;;  %v5397_v10 = vpop.f32.mrb[85].mxu0  ;;  %v2793_v14 = vmul.f32 %v6879_v47, %v2759_v8 }
 0x48e   : > { %3689 = vst.msk [vmem:[#allocation4 + $0x8] sm:$0xf] %vm1903_vm6, %v3646_v53  ;;  %3782 = vrot.lane.b32.xlu1 %v5246_v46, %s5501_s23  ;;  %v7186_v1 = vpack.c.bf16 %v3473_v52, %v3473_v52  ;;  %v2762_v51 = vpop.f32.mrb[86].mxu0  ;;  %v3593_v31 = vld [vmem:[#allocation3 + $0x7f] sm:$0xff] }
 0x48f   : > { %3569 = vst.msk [vmem:[#allocation4 + $0x10] sm:$0xf] %vm1781_vm4, %v3527_v0  ;;  %3183 = vrot.lane.b32.xlu0 %v5217_v58, %s5496_s19  ;;  %v3474_v40 = vld [vmem:[#allocation3 + $0x81] sm:$0xff]  ;;  %v2822_v62 = vadd.f32 %v6887_v54, %v2793_v14  ;;  %v5398_v63 = vpop.f32.mrb[87].mxu0  ;;  %v5233_v41 = vpack.c.bf16 %v3593_v31, %v3593_v31 }
 0x490   : > { %v3767_v55 = vpop.permute.xlu1 %3766  ;;  %2884 = vst.msk [vmem:[#allocation3 + $0x98] sm:$0xff] %vm387_vm2, %v2863_v9  ;;  %v7191_v26 = vpack.c.bf16 %v3474_v40, %v3474_v40  ;;  %v3714_v61 = vld [vmem:[#allocation3 + $0x80] sm:$0xff]  ;;  %v3715_v58 = vld [vmem:[#allocation3 + $0x88] sm:$0xff] }
 0x491   : > { %v3168_v16 = vpop.permute.xlu0 %3167  ;;  %3910 = vst.msk [vmem:[#allocation4 + $0x54] sm:$0xf] %vm1171_vm11, %v7186_v1  ;;  %v2843_v47 = vmax.f32 %v2822_v62, 0.0  ;;  %v3594_v42 = vld [vmem:[#allocation3 + $0x87] sm:$0xff]  ;;  %v5248_v44 = vpack.c.bf16 %v3714_v61, %v3714_v61  ;;  %v5249_v18 = vpack.c.bf16 %v3715_v58, %v3715_v58 }
 0x492   : > { %3810 = vst.msk [vmem:[#allocation4 + $0x8] sm:$0xf] %vm2025_vm8, %v3767_v55  ;;  %3302 = vrot.lane.b32.xlu1 %v5231_v4, %s5497_s22  ;;  %v5234_v4 = vpack.c.bf16 %v3594_v42, %v3594_v42  ;;  %v5471_v31 = vld [vmem:[#allocation4 + $0x34] ss:$8 sps:$4 sm:$0xff]  }
 0x493   : > { %3208 = vst.msk [vmem:[#allocation4 + $0x20] sm:$0xf] %vm1415_vm3, %v3168_v16  ;;  %3663 = vrot.lane.b32.xlu0 %v7166_v32, %s5500_s18  ;;  %v2864_v54 = vmul.f32 %v2843_v47, %v6577_v7 }
 0x494   : > { %3911 = vst.msk [vmem:[#allocation4 + $0x5c] sm:$0xf] %vm1171_vm11, %v7191_v26  ;;  %v3287_v28 = vpop.permute.xlu1 %3286  ;;  %v3475_v59 = vld [vmem:[#allocation3 + $0x89] sm:$0xff] }
 0x495   : > { %v3648_v20 = vpop.permute.xlu0 %3647  ;;  %3328 = vst.msk [vmem:[#allocation4 + $0x18] sm:$0xf] %vm1537_vm5, %v3287_v28  ;;  %v7206_v29 = vpack.c.bf16 %v3475_v59, %v3475_v59  ;;  %v3595_v37 = vld [vmem:[#allocation3 + $0x8f] sm:$0xff] }
 0x496   : > { %3690 = vst.msk [vmem:[#allocation4 + $0x10] sm:$0xf] %vm1903_vm6, %v3648_v20  ;;  %3423 = vrot.lane.b32.xlu1 %v5246_v46, %s5498_s25  ;;  %v3716_v6 = vld [vmem:[#allocation3 + $0x90] sm:$0xff] }
 0x497   : > { %3784 = vrot.lane.b32.xlu0 %v5247_v3, %s5501_s23  ;;  %2885 = vst.msk [vmem:[#allocation3 + $0xa0] sm:$0xff] %vm387_vm2, %v2864_v54  ;;  %v3837_v49 = vld [vmem:[#allocation3 + $0x91] sm:$0xff] }
 0x498   : > { %3912 = vst.msk [vmem:[#allocation4 + $0x64] sm:$0xf] %vm1171_vm11, %v7206_v29  ;;  %v3408_v33 = vpop.permute.xlu1 %3407  ;;  %v5265_v2 = vpack.c.bf16 %v3837_v49, %v3837_v49  ;;  %v3717_v39 = vld [vmem:[#allocation3 + $0x98] sm:$0xff]  ;;  %v5469_v28 = vld [vmem:[#allocation4 + $0x24] ss:$8 sps:$4 sm:$0xff]  }
 0x499   : > { %v3769_v15 = vpop.permute.xlu0 %3768  ;;  %v5464_v43 = vld [vmem:[#allocation4] ss:$8 sps:$4 sm:$0xff]   ;;  %3449 = vst.msk [vmem:[#allocation4 + $0x18] sm:$0xf] %vm1659_vm7, %v3408_v33  ;;  %v5251_v60 = vpack.c.bf16 %v3717_v39, %v3717_v39  ;;  %v3596_v14 = vld [vmem:[#allocation3 + $0x97] sm:$0xff] }
 0x49a   : > { %3811 = vst.msk [vmem:[#allocation4 + $0x10] sm:$0xf] %vm2025_vm8, %v3769_v15  ;;  %3064 = vrot.lane.b32.xlu1 %v5246_v46, %s5494_s16  ;;  %4129 = vmatmul.mubr.bf16.vlgmr.msra.gmra.mrb[32].mxu1 %v5464_v43  ;;  %v5235_v46 = vpack.c.bf16 %v3595_v37, %v3595_v37  ;;  %v5236_v55 = vpack.c.bf16 %v3596_v14, %v3596_v14 }
 0x49b   : > { %3304 = vrot.lane.b32.xlu0 %v7166_v32, %s5497_s22  ;;  %3913 = vst.msk [vmem:[#allocation4 + $0x6c] sm:$0xf] %vm1171_vm11, %v5265_v2  ;;  %4976 = vmatprep.mubr.msk.bf16.mxu1 %vm387_vm2, %v5467_v19 }
 0x49c   : > { %v3049_v7 = vpop.permute.xlu1 %3048 }
 0x49d   : > { %v3289_v24 = vpop.permute.xlu0 %3288  ;;  %3088 = vst.msk [vmem:[#allocation4 + $0x28] sm:$0xf] %vm1293_vm15, %v3049_v7 }
 0x49e   : > { %3329 = vst.msk [vmem:[#allocation4 + $0x20] sm:$0xf] %vm1537_vm5, %v3289_v24  ;;  %3544 = vrot.lane.b32.xlu1 %v7168_v23, %s5499_s30  ;;  %v3838_v17 = vld [vmem:[#allocation3 + $0x99] sm:$0xff] }
 0x49f   : > { %3425 = vrot.lane.b32.xlu0 %v5247_v3, %s5498_s25  ;;  %v5266_v35 = vpack.c.bf16 %v3838_v17, %v3838_v17 }
 0x4a0   : > { %v3529_v34 = vpop.permute.xlu1 %3528 }
 0x4a1   : > { %v3410_v22 = vpop.permute.xlu0 %3409  ;;  %3570 = vst.msk [vmem:[#allocation4 + $0x18] sm:$0xf] %vm1781_vm4, %v3529_v34 }
 0x4a2   : > { %3450 = vst.msk [vmem:[#allocation4 + $0x20] sm:$0xf] %vm1659_vm7, %v3410_v22  ;;  %3185 = vrot.lane.b32.xlu1 %v7168_v23, %s5496_s19  ;;  %v3917_v23 = vld [vmem:[#allocation4 + $0x10] sm:$0xff] }
 0x4a3   : > { %3914 = vst.msk [vmem:[#allocation4 + $0x74] sm:$0xf] %vm1171_vm11, %v5266_v35  ;;  %3066 = vrot.lane.b32.xlu0 %v5247_v3, %s5494_s16  ;;  %s5502_s16 = smov 24  }
 0x4a4   : > { %v3170_v36 = vpop.permute.xlu1 %3169 }
 0x4a5   : > { %v3051_v25 = vpop.permute.xlu0 %3050  ;;  %3209 = vst.msk [vmem:[#allocation4 + $0x28] sm:$0xf] %vm1415_vm3, %v3170_v36 }
 0x4a6   : > { %3089 = vst.msk [vmem:[#allocation4 + $0x30] sm:$0xf] %vm1293_vm15, %v3051_v25  ;;  %3665 = vrot.lane.b32.xlu1 %v5233_v41, %s5500_s18 }
 0x4a7   : > { %3546 = vrot.lane.b32.xlu0 %v7186_v1, %s5499_s30 }
 0x4a8   : > { %v3650_v57 = vpop.permute.xlu1 %3649 }
 0x4a9   : > { %v3531_v21 = vpop.permute.xlu0 %3530  ;;  %3691 = vst.msk [vmem:[#allocation4 + $0x18] sm:$0xf] %vm1903_vm6, %v3650_v57 }
 0x4aa   : > { %3571 = vst.msk [vmem:[#allocation4 + $0x20] sm:$0xf] %vm1781_vm4, %v3531_v21  ;;  %3786 = vrot.lane.b32.xlu1 %v5248_v44, %s5501_s23 }
 0x4ab   : > { %3667 = vrot.lane.b32.xlu0 %v5234_v4, %s5500_s18 }
 0x4ac   : > { %v3771_v45 = vpop.permute.xlu1 %3770 }
 0x4ad   : > { %v3172_v11 = vpop.permute.xlu0 %3171  ;;  %3812 = vst.msk [vmem:[#allocation4 + $0x18] sm:$0xf] %vm2025_vm8, %v3771_v45 }
 0x4ae   : > { %3210 = vst.msk [vmem:[#allocation4 + $0x30] sm:$0xf] %vm1415_vm3, %v3172_v11  ;;  %3306 = vrot.lane.b32.xlu1 %v5233_v41, %s5497_s22 }
 0x4af   : > { %3788 = vrot.lane.b32.xlu0 %v5249_v18, %s5501_s23 }
 0x4b0   : > { %v3291_v30 = vpop.permute.xlu1 %3290 }
 0x4b1   : > { %v3652_v12 = vpop.permute.xlu0 %3651  ;;  %3330 = vst.msk [vmem:[#allocation4 + $0x28] sm:$0xf] %vm1537_vm5, %v3291_v30 }
 0x4b2   : > { %3692 = vst.msk [vmem:[#allocation4 + $0x20] sm:$0xf] %vm1903_vm6, %v3652_v12  ;;  %3427 = vrot.lane.b32.xlu1 %v5248_v44, %s5498_s25 }
 0x4b3   : > { %3308 = vrot.lane.b32.xlu0 %v5234_v4, %s5497_s22 }
 0x4b4   : > { %v3412_v38 = vpop.permute.xlu1 %3411  ;;  %v3918_v48 = vld [vmem:[#allocation4 + $0x18] sm:$0xff] }
 0x4b5   : > { %v3773_v32 = vpop.permute.xlu0 %3772  ;;  %3451 = vst.msk [vmem:[#allocation4 + $0x28] sm:$0xf] %vm1659_vm7, %v3412_v38  ;;  %v4952_v13 = vcombine.low %v3917_v23, %v3918_v48 }
 0x4b6   : > { %3813 = vst.msk [vmem:[#allocation4 + $0x20] sm:$0xf] %vm2025_vm8, %v3773_v32  ;;  %3187 = vrot.lane.b32.xlu1 %v7186_v1, %s5496_s19  ;;  %v5250_v1 = vpack.c.bf16 %v3716_v6, %v3716_v6  ;;  %v5473_v32 = vld [vmem:[#allocation4 + $0x44] ss:$8 sps:$4 sm:$0xff]  }
 0x4b7   : > { %3550 = vrot.lane.b32.xlu0 %v7206_v29, %s5499_s30  ;;  %4137 = vmatmul.mubr.bf16.gmra.mrb[36].mxu1 %v4952_v13 }
 0x4b8   : > { %v3053_v5 = vpop.permute.xlu1 %3052  ;;  %4977 = vmatprep.mubr.msk.bf16.mxu1 %vm387_vm2, %v5469_v28 }
 0x4b9   : > { %v3293_v50 = vpop.permute.xlu0 %3292  ;;  %3090 = vst.msk [vmem:[#allocation4 + $0x38] sm:$0xf] %vm1293_vm15, %v3053_v5 }
 0x4ba   : > { %3331 = vst.msk [vmem:[#allocation4 + $0x30] sm:$0xf] %vm1537_vm5, %v3293_v50  ;;  %3548 = vrot.lane.b32.xlu1 %v7191_v26, %s5499_s30 }
 0x4bb   : > { %3792 = vrot.lane.b32.xlu0 %v5251_v60, %s5501_s23 }
 0x4bc   : > { %v3533_v53 = vpop.permute.xlu1 %3532 }
 0x4bd   : > { %v3414_v0 = vpop.permute.xlu0 %3413  ;;  %3572 = vst.msk [vmem:[#allocation4 + $0x28] sm:$0xf] %vm1781_vm4, %v3533_v53  ;;  %v3919_v63 = vld [vmem:[#allocation4 + $0x20] sm:$0xff] }
 0x4be   : > { %3452 = vst.msk [vmem:[#allocation4 + $0x30] sm:$0xf] %vm1659_vm7, %v3414_v0  ;;  %3669 = vrot.lane.b32.xlu1 %v5235_v46, %s5500_s18 }
 0x4c0   : > { %v3174_v52 = vpop.permute.xlu1 %3173 }
 0x4c1   : > { %v3055_v8 = vpop.permute.xlu0 %3054  ;;  %3211 = vst.msk [vmem:[#allocation4 + $0x38] sm:$0xf] %vm1415_vm3, %v3174_v52 }
 0x4c2   : > { %3091 = vst.msk [vmem:[#allocation4 + $0x40] sm:$0xf] %vm1293_vm15, %v3055_v8  ;;  %3790 = vrot.lane.b32.xlu1 %v5250_v1, %s5501_s23 }
 0x4c4   : > { %v3654_v9 = vpop.permute.xlu1 %3653 }
 0x4c5   : > { %v3535_v10 = vpop.permute.xlu0 %3534  ;;  %3693 = vst.msk [vmem:[#allocation4 + $0x28] sm:$0xf] %vm1903_vm6, %v3654_v9 }
 0x4c6   : > { %3573 = vst.msk [vmem:[#allocation4 + $0x30] sm:$0xf] %vm1781_vm4, %v3535_v10  ;;  %3429 = vrot.lane.b32.xlu1 %v5249_v18, %s5498_s25  ;;  %v5475_v10 = vld [vmem:[#allocation4 + $0x54] ss:$8 sps:$4 sm:$0xff]  }
 0x4c8   : > { %v3775_v40 = vpop.permute.xlu1 %3774 }
 0x4c9   : > { %v3176_v51 = vpop.permute.xlu0 %3175  ;;  %3814 = vst.msk [vmem:[#allocation4 + $0x28] sm:$0xf] %vm2025_vm8, %v3775_v40 }
 0x4ca   : > { %3212 = vst.msk [vmem:[#allocation4 + $0x40] sm:$0xf] %vm1415_vm3, %v3176_v51  ;;  %3671 = vrot.lane.b32.xlu1 %v5236_v55, %s5500_s18 }
 0x4cc   : > { %v3295_v16 = vpop.permute.xlu1 %3294 }
 0x4cd   : > { %v3656_v26 = vpop.permute.xlu0 %3655  ;;  %3332 = vst.msk [vmem:[#allocation4 + $0x38] sm:$0xf] %vm1537_vm5, %v3295_v16 }
 0x4ce   : > { %3694 = vst.msk [vmem:[#allocation4 + $0x30] sm:$0xf] %vm1903_vm6, %v3656_v26 }
 0x4d0   : > { %v3416_v27 = vpop.permute.xlu1 %3415  ;;  %v3920_v47 = vld [vmem:[#allocation4 + $0x28] sm:$0xff] }
 0x4d1   : > { %v3777_v62 = vpop.permute.xlu0 %3776  ;;  %3453 = vst.msk [vmem:[#allocation4 + $0x38] sm:$0xf] %vm1659_vm7, %v3416_v27  ;;  %v4954_v20 = vcombine.low %v3919_v63, %v3920_v47  ;;  %v5477_v47 = vld [vmem:[#allocation4 + $0x64] ss:$8 sps:$4 sm:$0xff]  }
 0x4d2   : > { %3815 = vst.msk [vmem:[#allocation4 + $0x30] sm:$0xf] %vm2025_vm8, %v3777_v62 }
 0x4d3   : > { %4145 = vmatmul.mubr.bf16.gmra.mrb[40].mxu1 %v4954_v20 }
 0x4d4   : > { %v3057_v3 = vpop.permute.xlu1 %3056  ;;  %4978 = vmatprep.mubr.msk.bf16.mxu1 %vm387_vm2, %v5471_v31 }
 0x4d5   : > { %v3297_v59 = vpop.permute.xlu0 %3296  ;;  %3092 = vst.msk [vmem:[#allocation4 + $0x48] sm:$0xf] %vm1293_vm15, %v3057_v3 }
 0x4d6   : > { %3333 = vst.msk [vmem:[#allocation4 + $0x40] sm:$0xf] %vm1537_vm5, %v3297_v59 }
 0x4d8   : > { %v3537_v54 = vpop.permute.xlu1 %3536 }
 0x4d9   : > { %v3418_v29 = vpop.permute.xlu0 %3417  ;;  %3574 = vst.msk [vmem:[#allocation4 + $0x38] sm:$0xf] %vm1781_vm4, %v3537_v54  ;;  %v3921_v34 = vld [vmem:[#allocation4 + $0x30] sm:$0xff] }
 0x4da   : > { %3454 = vst.msk [vmem:[#allocation4 + $0x40] sm:$0xf] %vm1659_vm7, %v3418_v29 }
 0x4dc   : > { %v3178_v49 = vpop.permute.xlu1 %3177 }
 0x4dd   : > { %v3059_v33 = vpop.permute.xlu0 %3058  ;;  %3213 = vst.msk [vmem:[#allocation4 + $0x48] sm:$0xf] %vm1415_vm3, %v3178_v49 }
 0x4de   : > { %3093 = vst.msk [vmem:[#allocation4 + $0x50] sm:$0xf] %vm1293_vm15, %v3059_v33 }
 0x4e0   : > { %v3658_v15 = vpop.permute.xlu1 %3657 }
 0x4e1   : > { %v3539_v43 = vpop.permute.xlu0 %3538  ;;  %3695 = vst.msk [vmem:[#allocation4 + $0x38] sm:$0xf] %vm1903_vm6, %v3658_v15 }
 0x4e2   : > { %3575 = vst.msk [vmem:[#allocation4 + $0x40] sm:$0xf] %vm1781_vm4, %v3539_v43  ;;  %v5482_v43 = vld [vmem:[%s7465_s9] sm:$0xff]  }
 0x4e3   : > { %5399 = vmatprep.subr.bf16.mxu1 %v5482_v43 }
 0x4e4   : > { %v3779_v56 = vpop.permute.xlu1 %3778  ;;  %5400 = vmatpush3.bf16.msra.mxu1 %v5482_v43 }
 0x4e5   : > { %v3180_v2 = vpop.permute.xlu0 %3179  ;;  %3816 = vst.msk [vmem:[#allocation4 + $0x38] sm:$0xf] %vm2025_vm8, %v3779_v56  ;;  %v5483_v56 = vld [vmem:[%s7465_s9 + $0x8] sm:$0xff]  }
 0x4e6   : > { %3214 = vst.msk [vmem:[#allocation4 + $0x50] sm:$0xf] %vm1415_vm3, %v3180_v2  ;;  %5401 = vmatprep.subr.bf16.mxu1 %v5483_v56 }
 0x4e8   : > { %v3299_v7 = vpop.permute.xlu1 %3298  ;;  %5402 = vmatpush3.bf16.msra.mxu1 %v5483_v56 }
 0x4e9   : > { %v3660_v24 = vpop.permute.xlu0 %3659  ;;  %3334 = vst.msk [vmem:[#allocation4 + $0x48] sm:$0xf] %vm1537_vm5, %v3299_v7 }
 0x4ea   : > { %3696 = vst.msk [vmem:[#allocation4 + $0x40] sm:$0xf] %vm1903_vm6, %v3660_v24 }
 0x4ec   : > { %v3420_v17 = vpop.permute.xlu1 %3419  ;;  %v3922_v22 = vld [vmem:[#allocation4 + $0x38] sm:$0xff] }
 0x4ed   : > { %v3781_v35 = vpop.permute.xlu0 %3780  ;;  %3455 = vst.msk [vmem:[#allocation4 + $0x48] sm:$0xf] %vm1659_vm7, %v3420_v17  ;;  %v4956_v36 = vcombine.low %v3921_v34, %v3922_v22 }
 0x4ee   : > { %3817 = vst.msk [vmem:[#allocation4 + $0x40] sm:$0xf] %vm2025_vm8, %v3781_v35 }
 0x4ef   : > { %4153 = vmatmul.mubr.bf16.gmra.mrb[44].mxu1 %v4956_v36 }
 0x4f0   : > { %v3061_v25 = vpop.permute.xlu1 %3060  ;;  %4979 = vmatprep.mubr.msk.bf16.mxu1 %vm387_vm2, %v5473_v32 }
 0x4f1   : > { %v3301_v41 = vpop.permute.xlu0 %3300  ;;  %3094 = vst.msk [vmem:[#allocation4 + $0x58] sm:$0xf] %vm1293_vm15, %v3061_v25 }
 0x4f2   : > { %3335 = vst.msk [vmem:[#allocation4 + $0x50] sm:$0xf] %vm1537_vm5, %v3301_v41 }
 0x4f4   : > { %v3541_v61 = vpop.permute.xlu1 %3540 }
 0x4f5   : > { %v3422_v42 = vpop.permute.xlu0 %3421  ;;  %3576 = vst.msk [vmem:[#allocation4 + $0x48] sm:$0xf] %vm1781_vm4, %v3541_v61  ;;  %v3923_v39 = vld [vmem:[#allocation4 + $0x40] sm:$0xff] }
 0x4f6   : > { %3456 = vst.msk [vmem:[#allocation4 + $0x50] sm:$0xf] %vm1659_vm7, %v3422_v42 }
 0x4f8   : > { %v3182_v57 = vpop.permute.xlu1 %3181 }
 0x4f9   : > { %v3063_v21 = vpop.permute.xlu0 %3062  ;;  %3215 = vst.msk [vmem:[#allocation4 + $0x58] sm:$0xf] %vm1415_vm3, %v3182_v57 }
 0x4fa   : > { %3095 = vst.msk [vmem:[#allocation4 + $0x60] sm:$0xf] %vm1293_vm15, %v3063_v21 }
 0x4fc   : > { %v3662_v44 = vpop.permute.xlu1 %3661 }
 0x4fd   : > { %v3543_v4 = vpop.permute.xlu0 %3542  ;;  %3697 = vst.msk [vmem:[#allocation4 + $0x48] sm:$0xf] %vm1903_vm6, %v3662_v44 }
 0x4fe   : > { %3577 = vst.msk [vmem:[#allocation4 + $0x50] sm:$0xf] %vm1781_vm4, %v3543_v4 }
 0x500   : > { %v3783_v58 = vpop.permute.xlu1 %3782 }
 0x501   : > { %v3184_v45 = vpop.permute.xlu0 %3183  ;;  %3818 = vst.msk [vmem:[#allocation4 + $0x48] sm:$0xf] %vm2025_vm8, %v3783_v58 }
 0x502   : > { %3216 = vst.msk [vmem:[#allocation4 + $0x60] sm:$0xf] %vm1415_vm3, %v3184_v45  ;;  %v7353_v45 = vld [vmem:[%s7463_s7] ss:$0 sm:$0xff] }
 0x504   : > { %v3303_v11 = vpop.permute.xlu1 %3302 }
 0x505   : > { %v3664_v18 = vpop.permute.xlu0 %3663  ;;  %3336 = vst.msk [vmem:[#allocation4 + $0x58] sm:$0xf] %vm1537_vm5, %v3303_v11 }
 0x506   : > { %3698 = vst.msk [vmem:[#allocation4 + $0x50] sm:$0xf] %vm1903_vm6, %v3664_v18  ;;  %v7358_v18 = vld [vmem:[%s7464_s8] ss:$0 sm:$0xff] }
 0x508   : > { %v3424_v30 = vpop.permute.xlu1 %3423  ;;  %v3924_v38 = vld [vmem:[#allocation4 + $0x48] sm:$0xff] }
 0x509   : > { %v3785_v12 = vpop.permute.xlu0 %3784  ;;  %3457 = vst.msk [vmem:[#allocation4 + $0x58] sm:$0xf] %vm1659_vm7, %v3424_v30  ;;  %v4958_v23 = vcombine.low %v3923_v39, %v3924_v38 }
 0x50a   : > { %3819 = vst.msk [vmem:[#allocation4 + $0x50] sm:$0xf] %vm2025_vm8, %v3785_v12 }
 0x50b   : > { %4161 = vmatmul.mubr.bf16.gmra.mrb[48].mxu1 %v4958_v23 }
 0x50c   : > { %v3065_v48 = vpop.permute.xlu1 %3064  ;;  %4980 = vmatprep.mubr.msk.bf16.mxu1 %vm387_vm2, %v5475_v10 }
 0x50d   : > { %v3305_v19 = vpop.permute.xlu0 %3304  ;;  %3096 = vst.msk [vmem:[#allocation4 + $0x68] sm:$0xf] %vm1293_vm15, %v3065_v48 }
 0x50e   : > { %3337 = vst.msk [vmem:[#allocation4 + $0x60] sm:$0xf] %vm1537_vm5, %v3305_v19 }
 0x510   : > { %v3545_v13 = vpop.permute.xlu1 %3544 }
 0x511   : > { %v3426_v60 = vpop.permute.xlu0 %3425  ;;  %3578 = vst.msk [vmem:[#allocation4 + $0x58] sm:$0xf] %vm1781_vm4, %v3545_v13  ;;  %v3925_v1 = vld [vmem:[#allocation4 + $0x50] sm:$0xff] }
 0x512   : > { %3458 = vst.msk [vmem:[#allocation4 + $0x60] sm:$0xf] %vm1659_vm7, %v3426_v60 }
 0x514   : > { %v3186_v5 = vpop.permute.xlu1 %3185 }
 0x515   : > { %v3067_v50 = vpop.permute.xlu0 %3066  ;;  %3217 = vst.msk [vmem:[#allocation4 + $0x68] sm:$0xf] %vm1415_vm3, %v3186_v5 }
 0x516   : > { %3097 = vst.msk [vmem:[#allocation4 + $0x70] sm:$0xf] %vm1293_vm15, %v3067_v50 }
 0x518   : > { %v3666_v37 = vpop.permute.xlu1 %3665 }
 0x519   : > { %v3547_v53 = vpop.permute.xlu0 %3546  ;;  %3699 = vst.msk [vmem:[#allocation4 + $0x58] sm:$0xf] %vm1903_vm6, %v3666_v37 }
 0x51a   : > { %3579 = vst.msk [vmem:[#allocation4 + $0x60] sm:$0xf] %vm1781_vm4, %v3547_v53 }
 0x51c   : > { %v3787_v0 = vpop.permute.xlu1 %3786 }
 0x51d   : > { %v3668_v46 = vpop.permute.xlu0 %3667  ;;  %3820 = vst.msk [vmem:[#allocation4 + $0x58] sm:$0xf] %vm2025_vm8, %v3787_v0 }
 0x51e   : > { %3700 = vst.msk [vmem:[#allocation4 + $0x60] sm:$0xf] %vm1903_vm6, %v3668_v46 }
 0x520   : > { %v3307_v6 = vpop.permute.xlu1 %3306 }
 0x521   : > { %v3789_v52 = vpop.permute.xlu0 %3788  ;;  %3338 = vst.msk [vmem:[#allocation4 + $0x68] sm:$0xf] %vm1537_vm5, %v3307_v6 }
 0x522   : > { %3821 = vst.msk [vmem:[#allocation4 + $0x60] sm:$0xf] %vm2025_vm8, %v3789_v52 }
 0x524   : > { %v3428_v8 = vpop.permute.xlu1 %3427  ;;  %v3926_v9 = vld [vmem:[#allocation4 + $0x58] sm:$0xff] }
 0x525   : > { %3459 = vst.msk [vmem:[#allocation4 + $0x68] sm:$0xf] %vm1659_vm7, %v3428_v8  ;;  %v4960_v14 = vcombine.low %v3925_v1, %v3926_v9  ;;  %v3309_v51 = vpop.permute.xlu0 %3308 }
 0x527   : > { %4169 = vmatmul.mubr.bf16.gmra.mrb[52].mxu1 %v4960_v14 }
 0x528   : > { %v3188_v40 = vpop.permute.xlu1 %3187  ;;  %4981 = vmatprep.mubr.msk.bf16.mxu1 %vm387_vm2, %v5477_v47 }
 0x529   : > { %3218 = vst.msk [vmem:[#allocation4 + $0x70] sm:$0xf] %vm1415_vm3, %v3188_v40  ;;  %v3551_v62 = vpop.permute.xlu0 %3550 }
 0x52a   : > { %3339 = vst.msk [vmem:[#allocation4 + $0x70] sm:$0xf] %vm1537_vm5, %v3309_v51 }
 0x52c   : > { %v3549_v55 = vpop.permute.xlu1 %3548 }
 0x52d   : > { %3580 = vst.msk [vmem:[#allocation4 + $0x68] sm:$0xf] %vm1781_vm4, %v3549_v55  ;;  %v3793_v20 = vpop.permute.xlu0 %3792 }
 0x530   : > { %v3670_v16 = vpop.permute.xlu1 %3669 }
 0x531   : > { %3701 = vst.msk [vmem:[#allocation4 + $0x68] sm:$0xf] %vm1903_vm6, %v3670_v16 }
 0x534   : > { %v3791_v26 = vpop.permute.xlu1 %3790 }
 0x535   : > { %3822 = vst.msk [vmem:[#allocation4 + $0x68] sm:$0xf] %vm2025_vm8, %v3791_v26 }
 0x538   : > { %v3430_v27 = vpop.permute.xlu1 %3429 }
 0x539   : > { %3460 = vst.msk [vmem:[#allocation4 + $0x70] sm:$0xf] %vm1659_vm7, %v3430_v27 }
 0x53a   : > { %3581 = vst.msk [vmem:[#allocation4 + $0x70] sm:$0xf] %vm1781_vm4, %v3551_v62 }
 0x53c   : > { %v3672_v63 = vpop.permute.xlu1 %3671  ;;  %v5479_v28 = vld [vmem:[#allocation4 + $0x60] ss:$8 sps:$4 sm:$0xff]  }
 0x53d   : > { %3702 = vst.msk [vmem:[#allocation4 + $0x70] sm:$0xf] %vm1903_vm6, %v3672_v63  ;;  %4177 = vmatmul.mubr.bf16.gmra.mrb[56].mxu1 %v5479_v28 }
 0x53e   : > { %3823 = vst.msk [vmem:[#allocation4 + $0x70] sm:$0xf] %vm2025_vm8, %v3793_v20 }
 0x545   : > { %v3929_v3 = vld [vmem:[#allocation4 + $0x70] sm:$0xff] }
 0x546   : > { %v4965_v59 = vcombine.high %v3929_v3, %v3929_v3  ;;  %v4964_v54 = vcombine.low %v3929_v3, %v3929_v3 }
 0x548   : > { %4982 = vmatprep.mubr.msk.bf16.mxu1 %vm387_vm2, %v4965_v59 }
 0x549   : > { %4185 = vmatmul.mubr.bf16.gmra.mrb[60].mxu1 %v4964_v54 }
 0x56d   : > { %v4130_v29 = vpop.f32.mrb[32].mxu1 }
 0x56e   : > { %v4132_v49 = vpop.f32.mrb[33].mxu1  ;;  %4207 = vrot.lane.b32.xlu1 %v4130_v29, %s5502_s16 }
 0x56f   : > { %v4133_v33 = vpop.f32.mrb[34].mxu1 }
 0x570   : > { %v4135_v15 = vpop.f32.mrb[35].mxu1  ;;  %4209 = vrot.lane.b32.xlu0 %v4133_v33, %s5502_s16 }
 0x58a   : > { %v4138_v2 = vpop.f32.mrb[36].mxu1 }
 0x58b   : > { %v4140_v7 = vpop.f32.mrb[37].mxu1  ;;  %4211 = vrot.lane.b32.xlu1 %v4138_v2, %s5502_s16 }
 0x58c   : > { %v4141_v24 = vpop.f32.mrb[38].mxu1 }
 0x58d   : > { %v4143_v17 = vpop.f32.mrb[39].mxu1  ;;  %4213 = vrot.lane.b32.xlu0 %v4141_v24, %s5502_s16 }
 0x5a6   : > { %v4146_v35 = vpop.f32.mrb[40].mxu1 }
 0x5a7   : > { %v4148_v34 = vpop.f32.mrb[41].mxu1  ;;  %4215 = vrot.lane.b32.xlu1 %v4146_v35, %s5502_s16 }
 0x5a8   : > { %v4149_v22 = vpop.f32.mrb[42].mxu1 }
 0x5a9   : > { %v4151_v31 = vpop.f32.mrb[43].mxu1  ;;  %4217 = vrot.lane.b32.xlu0 %v4149_v22, %s5502_s16 }
 0x5c2   : > { %v4154_v36 = vpop.f32.mrb[44].mxu1 }
 0x5c3   : > { %v4156_v25 = vpop.f32.mrb[45].mxu1  ;;  %4219 = vrot.lane.b32.xlu1 %v4154_v36, %s5502_s16 }
 0x5c4   : > { %v4157_v41 = vpop.f32.mrb[46].mxu1 }
 0x5c5   : > { %v4159_v61 = vpop.f32.mrb[47].mxu1  ;;  %4221 = vrot.lane.b32.xlu0 %v4157_v41, %s5502_s16 }
 0x5de   : > { %v4162_v42 = vpop.f32.mrb[48].mxu1 }
 0x5df   : > { %v4164_v57 = vpop.f32.mrb[49].mxu1  ;;  %4223 = vrot.lane.b32.xlu1 %v4162_v42, %s5502_s16 }
 0x5e0   : > { %v4165_v21 = vpop.f32.mrb[50].mxu1  ;;  %v4208_v4 = vpop.permute.xlu1 %4207 }
 0x5e1   : > { %v4167_v44 = vpop.f32.mrb[51].mxu1  ;;  %4225 = vrot.lane.b32.xlu0 %v4165_v21, %s5502_s16  ;;  %4253 = vst.msk [vmem:[#allocation2 + $0x18] sm:$0xff] %vm4252_vm0, %v4208_v4 }
 0x5e2   : > { %v4210_v58 = vpop.permute.xlu0 %4209 }
 0x5e3   : > { %4254 = vst.msk [vmem:[#allocation2 + $0x20] sm:$0xff] %vm4252_vm0, %v4210_v58 }
 0x5e8   : > { %v4268_v11 = vld [vmem:[#allocation2 + $0x18] sm:$0xff] }
 0x5e9   : > { %v4290_v30 = vmul.f32 %v7353_v45, %v4268_v11 }
 0x5ea   : > { %v4269_v12 = vld [vmem:[#allocation2 + $0x20] sm:$0xff] }
 0x5eb   : > { %v4291_v39 = vmul.f32 %v7353_v45, %v4269_v12  ;;  %v4312_v38 = vadd.f32 %v7358_v18, %v4290_v30 }
 0x5ed   : > { %v4313_v32 = vadd.f32 %v7358_v18, %v4291_v39  ;;  %v4327_v23 = vmax.f32 %v4312_v38, 0.0 }
 0x5ef   : > { %v4328_v48 = vmax.f32 %v4313_v32, 0.0 }
 0x5f1   : > { %v4342_v19 = vpack.c.bf16 %v4328_v48, %v4327_v23 }
 0x5f3   : > { %5403 = vmatprep.mubr.msk.bf16.mxu1 %vm364_vm1, %v4342_v19 }
 0x5fa   : > { %v4170_v13 = vpop.f32.mrb[52].mxu1 }
 0x5fb   : > { %v4172_v60 = vpop.f32.mrb[53].mxu1  ;;  %4227 = vrot.lane.b32.xlu1 %v4170_v13, %s5502_s16 }
 0x5fc   : > { %v4173_v5 = vpop.f32.mrb[54].mxu1 }
 0x5fd   : > { %v4175_v50 = vpop.f32.mrb[55].mxu1  ;;  %4229 = vrot.lane.b32.xlu0 %v4173_v5, %s5502_s16  ;;  %v4212_v37 = vpop.permute.xlu1 %4211 }
 0x5fe   : > { %4255 = vst.msk [vmem:[#allocation2 + $0x28] sm:$0xff] %vm4252_vm0, %v4212_v37 }
 0x5ff   : > { %v4214_v53 = vpop.permute.xlu0 %4213 }
 0x600   : > { %4256 = vst.msk [vmem:[#allocation2 + $0x30] sm:$0xff] %vm4252_vm0, %v4214_v53 }
 0x605   : > { %v4270_v0 = vld [vmem:[#allocation2 + $0x28] sm:$0xff] }
 0x606   : > { %v4292_v46 = vmul.f32 %v7353_v45, %v4270_v0 }
 0x607   : > { %v4271_v6 = vld [vmem:[#allocation2 + $0x30] sm:$0xff] }
 0x608   : > { %v4293_v52 = vmul.f32 %v7353_v45, %v4271_v6  ;;  %v4314_v8 = vadd.f32 %v7358_v18, %v4292_v46 }
 0x60a   : > { %v4315_v1 = vadd.f32 %v7358_v18, %v4293_v52  ;;  %v4329_v9 = vmax.f32 %v4314_v8, 0.0 }
 0x60c   : > { %v4330_v10 = vmax.f32 %v4315_v1, 0.0 }
 0x60e   : > { %v4343_v14 = vpack.c.bf16 %v4330_v10, %v4329_v9 }
 0x610   : > { %5404 = vmatmul.mubr.msk.bf16.vlgmr.msra.gmra.mrb[64].mxu1 %vm364_vm1, %v4343_v14  ;;  %v4178_v40 = vpop.f32.mrb[56].mxu1 }
 0x611   : > { %v4180_v51 = vpop.f32.mrb[57].mxu1  ;;  %4231 = vrot.lane.b32.xlu1 %v4178_v40, %s5502_s16 }
 0x612   : > { %v4181_v55 = vpop.f32.mrb[58].mxu1 }
 0x613   : > { %v4183_v16 = vpop.f32.mrb[59].mxu1  ;;  %4233 = vrot.lane.b32.xlu0 %v4181_v55, %s5502_s16 }
 0x619   : > { %v4216_v26 = vpop.permute.xlu1 %4215 }
 0x61a   : > { %4257 = vst.msk [vmem:[#allocation2 + $0x38] sm:$0xff] %vm4252_vm0, %v4216_v26 }
 0x61b   : > { %v4218_v27 = vpop.permute.xlu0 %4217 }
 0x61c   : > { %4258 = vst.msk [vmem:[#allocation2 + $0x40] sm:$0xff] %vm4252_vm0, %v4218_v27  ;;  %v4186_v62 = vpop.f32.mrb[60].mxu1 }
 0x61d   : > { %4235 = vrot.lane.b32.xlu1 %v4186_v62, %s5502_s16  ;;  %v4188_v63 = vpop.f32.mrb[61].mxu1 }
 0x61e   : > { %v4189_v47 = vpop.f32.mrb[62].mxu1 }
 0x61f   : > { %v4190_v28 = vpop.f32.mrb[63].mxu1 }
 0x621   : > { %v4272_v20 = vld [vmem:[#allocation2 + $0x38] sm:$0xff] }
 0x622   : > { %v4294_v3 = vmul.f32 %v7353_v45, %v4272_v20 }
 0x623   : > { %v4273_v59 = vld [vmem:[#allocation2 + $0x40] sm:$0xff] }
 0x624   : > { %v4295_v54 = vmul.f32 %v7353_v45, %v4273_v59  ;;  %v4316_v29 = vadd.f32 %v7358_v18, %v4294_v3 }
 0x626   : > { %v4317_v49 = vadd.f32 %v7358_v18, %v4295_v54  ;;  %v4331_v33 = vmax.f32 %v4316_v29, 0.0 }
 0x628   : > { %v4332_v15 = vmax.f32 %v4317_v49, 0.0 }
 0x62a   : > { %v4344_v43 = vpack.c.bf16 %v4332_v15, %v4331_v33 }
 0x62c   : > { %5407 = vmatprep.mubr.msk.bf16.mxu1 %vm364_vm1, %v4344_v43 }
 0x635   : > { %v4220_v56 = vpop.permute.xlu1 %4219 }
 0x636   : > { %4259 = vst.msk [vmem:[#allocation2 + $0x48] sm:$0xff] %vm4252_vm0, %v4220_v56 }
 0x637   : > { %v4222_v2 = vpop.permute.xlu0 %4221 }
 0x638   : > { %4260 = vst.msk [vmem:[#allocation2 + $0x50] sm:$0xff] %vm4252_vm0, %v4222_v2 }
 0x63d   : > { %v4274_v7 = vld [vmem:[#allocation2 + $0x48] sm:$0xff] }
 0x63e   : > { %v4296_v24 = vmul.f32 %v7353_v45, %v4274_v7 }
 0x63f   : > { %v4275_v17 = vld [vmem:[#allocation2 + $0x50] sm:$0xff] }
 0x640   : > { %v4297_v35 = vmul.f32 %v7353_v45, %v4275_v17  ;;  %v4318_v34 = vadd.f32 %v7358_v18, %v4296_v24 }
 0x642   : > { %v4319_v22 = vadd.f32 %v7358_v18, %v4297_v35  ;;  %v4333_v31 = vmax.f32 %v4318_v34, 0.0 }
 0x644   : > { %v4334_v36 = vmax.f32 %v4319_v22, 0.0 }
 0x646   : > { %v4345_v25 = vpack.c.bf16 %v4334_v36, %v4333_v31 }
 0x648   : > { %5408 = vmatmul.mubr.msk.bf16.gmra.mrb[68].mxu1 %vm364_vm1, %v4345_v25 }
 0x651   : > { %v4224_v41 = vpop.permute.xlu1 %4223 }
 0x652   : > { %4261 = vst.msk [vmem:[#allocation2 + $0x58] sm:$0xff] %vm4252_vm0, %v4224_v41 }
 0x653   : > { %v4226_v61 = vpop.permute.xlu0 %4225 }
 0x654   : > { %4262 = vst.msk [vmem:[#allocation2 + $0x60] sm:$0xff] %vm4252_vm0, %v4226_v61 }
 0x659   : > { %v4276_v42 = vld [vmem:[#allocation2 + $0x58] sm:$0xff] }
 0x65a   : > { %v4298_v57 = vmul.f32 %v7353_v45, %v4276_v42 }
 0x65b   : > { %v4277_v21 = vld [vmem:[#allocation2 + $0x60] sm:$0xff] }
 0x65c   : > { %v4299_v44 = vmul.f32 %v7353_v45, %v4277_v21  ;;  %v4320_v4 = vadd.f32 %v7358_v18, %v4298_v57 }
 0x65e   : > { %v4321_v58 = vadd.f32 %v7358_v18, %v4299_v44  ;;  %v4335_v11 = vmax.f32 %v4320_v4, 0.0 }
 0x660   : > { %v4336_v30 = vmax.f32 %v4321_v58, 0.0 }
 0x662   : > { %v4346_v12 = vpack.c.bf16 %v4336_v30, %v4335_v11 }
 0x664   : > { %5411 = vmatprep.mubr.msk.bf16.mxu1 %vm364_vm1, %v4346_v12 }
 0x66d   : > { %v4228_v39 = vpop.permute.xlu1 %4227 }
 0x66e   : > { %4263 = vst.msk [vmem:[#allocation2 + $0x68] sm:$0xff] %vm4252_vm0, %v4228_v39 }
 0x66f   : > { %v4230_v38 = vpop.permute.xlu0 %4229 }
 0x670   : > { %4264 = vst.msk [vmem:[#allocation2 + $0x70] sm:$0xff] %vm4252_vm0, %v4230_v38 }
 0x675   : > { %v4278_v32 = vld [vmem:[#allocation2 + $0x68] sm:$0xff] }
 0x676   : > { %v4300_v23 = vmul.f32 %v7353_v45, %v4278_v32 }
 0x677   : > { %v4279_v48 = vld [vmem:[#allocation2 + $0x70] sm:$0xff] }
 0x678   : > { %v4301_v19 = vmul.f32 %v7353_v45, %v4279_v48  ;;  %v4322_v13 = vadd.f32 %v7358_v18, %v4300_v23 }
 0x67a   : > { %v4323_v60 = vadd.f32 %v7358_v18, %v4301_v19  ;;  %v4337_v5 = vmax.f32 %v4322_v13, 0.0 }
 0x67c   : > { %v4338_v50 = vmax.f32 %v4323_v60, 0.0 }
 0x67e   : > { %v4347_v37 = vpack.c.bf16 %v4338_v50, %v4337_v5 }
 0x680   : > { %5412 = vmatmul.mubr.msk.bf16.gmra.mrb[72].mxu1 %vm364_vm1, %v4347_v37 }
 0x683   : > { %v4232_v53 = vpop.permute.xlu1 %4231 }
 0x684   : > { %4265 = vst.msk [vmem:[#allocation2 + $0x78] sm:$0xff] %vm4252_vm0, %v4232_v53 }
 0x685   : > { %v4234_v0 = vpop.permute.xlu0 %4233 }
 0x686   : > { %4266 = vst.msk [vmem:[#allocation2 + $0x80] sm:$0xff] %vm4252_vm0, %v4234_v0 }
 0x68b   : > { %v4280_v46 = vld [vmem:[#allocation2 + $0x78] sm:$0xff] }
 0x68c   : > { %v4302_v6 = vmul.f32 %v7353_v45, %v4280_v46 }
 0x68d   : > { %v4281_v8 = vld [vmem:[#allocation2 + $0x80] sm:$0xff] }
 0x68e   : > { %v4303_v1 = vmul.f32 %v7353_v45, %v4281_v8  ;;  %v4324_v9 = vadd.f32 %v7358_v18, %v4302_v6 }
 0x68f   : > { %v4236_v52 = vpop.permute.xlu1 %4235 }
 0x690   : > { %4267 = vst.msk [vmem:[#allocation2 + $0x88] sm:$0xff] %vm4252_vm0, %v4236_v52  ;;  %v4325_v10 = vadd.f32 %v7358_v18, %v4303_v1  ;;  %v4339_v14 = vmax.f32 %v4324_v9, 0.0 }
 0x692   : > { %v4340_v40 = vmax.f32 %v4325_v10, 0.0 }
 0x694   : > { %v4348_v51 = vpack.c.bf16 %v4340_v40, %v4339_v14 }
 0x696   : > { %5415 = vmatprep.mubr.msk.bf16.mxu1 %vm364_vm1, %v4348_v51 }
 0x697   : > { %v4282_v55 = vld [vmem:[#allocation2 + $0x88] sm:$0xff] }
 0x698   : > { %v4304_v16 = vmul.f32 %v7353_v45, %v4282_v55 }
 0x69a   : > { %v4326_v26 = vadd.f32 %v7358_v18, %v4304_v16 }
 0x69c   : > { %v4341_v27 = vmax.f32 %v4326_v26, 0.0 }
 0x69e   : > { %v4349_v62 = vpack.c.bf16 %v4341_v27, %v4341_v27 }
 0x6a0   : > { %5416 = vmatmul.mubr.msk.bf16.gmra.mrb[76].mxu1 %vm364_vm1, %v4349_v62 }
 0x6e3   : > { %v5405_v45 = vpop.f32.mrb[64].mxu1 }
 0x6e4   : > { %4488 = vst.msk [vmem:[%s7421_s28 + $0x10] sm:$0xff] %vm387_vm2, %v5405_v45  ;;  %v4424_v18 = vpop.f32.mrb[65].mxu1 }
 0x6e5   : > { %4486 = vst.msk [vmem:[%s7421_s28] sm:$0xff] %vm387_vm2, %v4424_v18  ;;  %v5406_v63 = vpop.f32.mrb[66].mxu1 }
 0x6e6   : > { %4489 = vst.msk [vmem:[%s7421_s28 + $0x18] sm:$0xff] %vm387_vm2, %v5406_v63  ;;  %v4427_v47 = vpop.f32.mrb[67].mxu1 }
 0x6e7   : > { %4487 = vst.msk [vmem:[%s7421_s28 + $0x8] sm:$0xff] %vm387_vm2, %v4427_v47 }
 0x71b   : > { %v5409_v28 = vpop.f32.mrb[68].mxu1 }
 0x71c   : > { %4492 = vst.msk [vmem:[%s7421_s28 + $0x30] sm:$0xff] %vm387_vm2, %v5409_v28  ;;  %v4440_v20 = vpop.f32.mrb[69].mxu1 }
 0x71d   : > { %4490 = vst.msk [vmem:[%s7421_s28 + $0x20] sm:$0xff] %vm387_vm2, %v4440_v20  ;;  %v5410_v3 = vpop.f32.mrb[70].mxu1 }
 0x71e   : > { %4493 = vst.msk [vmem:[%s7421_s28 + $0x38] sm:$0xff] %vm387_vm2, %v5410_v3  ;;  %v4443_v59 = vpop.f32.mrb[71].mxu1 }
 0x71f   : > { %4491 = vst.msk [vmem:[%s7421_s28 + $0x28] sm:$0xff] %vm387_vm2, %v4443_v59 }
 0x753   : > { %v5413_v54 = vpop.f32.mrb[72].mxu1 }
 0x754   : > { %4496 = vst.msk [vmem:[%s7421_s28 + $0x50] sm:$0xff] %vm387_vm2, %v5413_v54  ;;  %v4456_v29 = vpop.f32.mrb[73].mxu1 }
 0x755   : > { %4494 = vst.msk [vmem:[%s7421_s28 + $0x40] sm:$0xff] %vm387_vm2, %v4456_v29  ;;  %v5414_v49 = vpop.f32.mrb[74].mxu1 }
 0x756   : > { %4497 = vst.msk [vmem:[%s7421_s28 + $0x58] sm:$0xff] %vm387_vm2, %v5414_v49  ;;  %v4459_v33 = vpop.f32.mrb[75].mxu1 }
 0x757   : > { %4495 = vst.msk [vmem:[%s7421_s28 + $0x48] sm:$0xff] %vm387_vm2, %v4459_v33 }
 0x773   : > { %v5417_v15 = vpop.f32.mrb[76].mxu1 }
 0x774   : > { %4500 = vst.msk [vmem:[%s7421_s28 + $0x70] sm:$0xff] %vm387_vm2, %v5417_v15  ;;  %v4472_v43 = vpop.f32.mrb[77].mxu1 }
 0x775   : > { %4498 = vst.msk [vmem:[%s7421_s28 + $0x60] sm:$0xff] %vm387_vm2, %v4472_v43  ;;  %v5418_v56 = vpop.f32.mrb[78].mxu1 }
 0x776   : > { %v4475_v2 = vpop.f32.mrb[79].mxu1 }
 0x777   : > { %4499 = vst.msk [vmem:[%s7421_s28 + $0x68] sm:$0xff] %vm387_vm2, %v4475_v2 }
 0x778 PF: > { %s20_s13 = sadd.s32 1, %s5490_s13  }
 0x779   : > { %p17_p5 = scmp.ge.s32.totalorder %s20_s13, 4  }
 0x77b   :  { %19 = sbr.rel (!%p17_p5) target bundleno = 1 (0x1), region = 96 }

</bundles_post_ra>
